<compile_context>
chip_gen: v7x
topology: tpu7x:2x2x1
jax: 0.10.0
libtpu: 0.0.40
codegen_flags: <defaults>
</compile_context>

<pallas_src>
import functools

import jax
import jax.numpy as jnp
from jax.experimental import pallas as pl
from jax.experimental.pallas import tpu as pltpu

_LANES = 128
_PARALLEL1 = pltpu.CompilerParams(dimension_semantics=("parallel",))


def _pick_tile(n, cap):
    """Largest row tile: n itself when small (full-dim block), else a power-of-two divisor <= cap."""
    if n <= cap:
        return n
    t = cap
    while t >= 8:
        if n % t == 0:
            return t
        t //= 2
    return n


def _lane_pack(x2d, vecs):
    """Reshape (N, C) -> lane-dense (N*C/128, 128) when C | 128; tile per-channel vectors to 128."""
    N, C = x2d.shape
    if C < _LANES and _LANES % C == 0 and (N * C) % _LANES == 0:
        R = (N * C) // _LANES
        reps = _LANES // C
        packed = tuple(jnp.tile(v.astype(jnp.float32), reps).reshape(1, _LANES) for v in vecs)
        return x2d.reshape(R, _LANES), packed, True
    return x2d, tuple(v.astype(jnp.float32).reshape(1, C) for v in vecs), False


# ----------------------------- Pallas kernels --------------------------------

def _matmul_bias_kernel(a_ref, w_ref, b_ref, o_ref):
    o_ref[...] = (jnp.dot(a_ref[...], w_ref[...],
                          preferred_element_type=jnp.float32) + b_ref[...])


def pallas_matmul(a, w, bias=None, tm_cap=1024):
    """(M,K) @ (K,N) + bias on the MXU; bf16 operands, f32 accumulation, M tiled over the grid."""
    M, K = a.shape
    K2, N = w.shape
    assert K == K2
    a16 = a.astype(jnp.bfloat16)
    w16 = w.astype(jnp.bfloat16)
    if bias is None:
        bias = jnp.zeros((N,), jnp.float32)
    bias = bias.astype(jnp.float32).reshape(1, N)
    tm = _pick_tile(M, tm_cap)
    return pl.pallas_call(
        _matmul_bias_kernel,
        out_shape=jax.ShapeDtypeStruct((M, N), jnp.float32),
        grid=(M // tm,),
        in_specs=[pl.BlockSpec((tm, K), lambda i: (i, 0)),
                  pl.BlockSpec((K, N), lambda i: (0, 0)),
                  pl.BlockSpec((1, N), lambda i: (0, 0))],
        out_specs=pl.BlockSpec((tm, N), lambda i: (i, 0)),
        compiler_params=_PARALLEL1,
    )(a16, w16, bias)


def _layernorm_kernel(x_ref, w_ref, b_ref, o_ref, *, eps):
    x = x_ref[...]
    mu = jnp.mean(x, axis=-1, keepdims=True)
    var = jnp.mean((x - mu) * (x - mu), axis=-1, keepdims=True)
    o_ref[...] = (x - mu) * jax.lax.rsqrt(var + eps) * w_ref[...] + b_ref[...]


def pallas_layernorm(x2d, w, b, eps=1e-6):
    R, C = x2d.shape
    tr = _pick_tile(R, 1024)
    return pl.pallas_call(
        functools.partial(_layernorm_kernel, eps=eps),
        out_shape=jax.ShapeDtypeStruct((R, C), jnp.float32),
        grid=(R // tr,),
        in_specs=[pl.BlockSpec((tr, C), lambda i: (i, 0)),
                  pl.BlockSpec((1, C), lambda i: (0, 0)),
                  pl.BlockSpec((1, C), lambda i: (0, 0))],
        out_specs=pl.BlockSpec((tr, C), lambda i: (i, 0)),
        compiler_params=_PARALLEL1,
    )(x2d.astype(jnp.float32), w.reshape(1, C), b.reshape(1, C))


def _scale_shift_act_kernel(x_ref, s_ref, t_ref, o_ref, *, act):
    y = x_ref[...] * s_ref[...] + t_ref[...]
    if act == "relu":
        y = jnp.maximum(y, 0.0)
    elif act == "elu":
        y = jnp.where(y > 0, y, jnp.exp(jnp.minimum(y, 0.0)) - 1.0)
    o_ref[...] = y


def pallas_scale_shift_act(x2d, scale, shift, act=None):
    """Per-channel affine (+activation) applied over a lane-packed view of the activation."""
    N, C = x2d.shape
    xr, (s_r, t_r), _ = _lane_pack(x2d.astype(jnp.float32), (scale, shift))
    R, L = xr.shape
    tr = _pick_tile(R, 1024)
    out = pl.pallas_call(
        functools.partial(_scale_shift_act_kernel, act=act),
        out_shape=jax.ShapeDtypeStruct((R, L), jnp.float32),
        grid=(R // tr,),
        in_specs=[pl.BlockSpec((tr, L), lambda i: (i, 0)),
                  pl.BlockSpec((1, L), lambda i: (0, 0)),
                  pl.BlockSpec((1, L), lambda i: (0, 0))],
        out_specs=pl.BlockSpec((tr, L), lambda i: (i, 0)),
        compiler_params=_PARALLEL1,
    )(xr, s_r, t_r)
    return out.reshape(N, C)


def _affine_relu_max4_kernel(a_ref, b_ref, c_ref, d_ref, s_ref, t_ref, o_ref):
    s = s_ref[...]
    t = t_ref[...]

    def f(r):
        return jnp.maximum(r[...] * s + t, 0.0)

    o_ref[...] = jnp.maximum(jnp.maximum(f(a_ref), f(b_ref)),
                             jnp.maximum(f(c_ref), f(d_ref)))


def pallas_bn_relu_maxpool(y, gamma, beta, eps=1e-5):
    """Fused BatchNorm(train stats) + ReLU + MaxPool3d(1,2,2) on a conv output (B,T,H,W,C)."""
    B, T, H, W, C = y.shape
    y2d = y.reshape(-1, C)
    mean = jnp.mean(y2d, axis=0)
    var = jnp.var(y2d, axis=0)                       # biased, as in torch training mode
    scale = gamma * jax.lax.rsqrt(var + eps)
    shift = beta - mean * scale
    slabs = [y[:, :, i::2, j::2, :].reshape(-1, C) for i in (0, 1) for j in (0, 1)]
    s0, (s_r, t_r), _ = _lane_pack(slabs[0], (scale, shift))
    R, L = s0.shape
    slabs = [s0] + [s.reshape(R, L) for s in slabs[1:]]
    tr = _pick_tile(R, 1024)
    out = pl.pallas_call(
        _affine_relu_max4_kernel,
        out_shape=jax.ShapeDtypeStruct((R, L), jnp.float32),
        grid=(R // tr,),
        in_specs=[pl.BlockSpec((tr, L), lambda i: (i, 0))] * 4
                 + [pl.BlockSpec((1, L), lambda i: (0, 0))] * 2,
        out_specs=pl.BlockSpec((tr, L), lambda i: (i, 0)),
        compiler_params=_PARALLEL1,
    )(*slabs, s_r, t_r)
    return out.reshape(B, T, H // 2, W // 2, C)


def _depthwise_kernel(p_ref, w_ref, o_ref, *, taps):
    acc = p_ref[0] * w_ref[0]
    for t in range(1, taps):
        acc = acc + p_ref[t] * w_ref[t]
    o_ref[...] = acc


def depthwise_conv3x3x3(x, w):
    """Grouped (depthwise) 3x3x3 conv, padding 1, bias-free; w: torch layout (C, 1, 3, 3, 3)."""
    B, T, H, W, C = x.shape
    xp = jnp.pad(x, ((0, 0), (1, 1), (1, 1), (1, 1), (0, 0)))
    cols = [xp[:, dt:dt + T, dh:dh + H, dw:dw + W, :].reshape(-1, C)
            for dt in range(3) for dh in range(3) for dw in range(3)]
    w_taps = jnp.transpose(w[:, 0].reshape(C, 27), (1, 0)).astype(jnp.float32)   # (27, C)
    N = B * T * H * W
    if C < _LANES and _LANES % C == 0 and (N * C) % _LANES == 0:
        R, L = (N * C) // _LANES, _LANES
        reps = L // C
        patches = jnp.stack([c.reshape(R, L) for c in cols], axis=0)             # (27, R, L)
        w_lane = jnp.tile(w_taps, (1, reps)).reshape(27, 1, L)
    else:
        R, L = N, C
        patches = jnp.stack(cols, axis=0)
        w_lane = w_taps.reshape(27, 1, C)
    tr = _pick_tile(R, 128)
    out = pl.pallas_call(
        functools.partial(_depthwise_kernel, taps=27),
        out_shape=jax.ShapeDtypeStruct((R, L), jnp.float32),
        grid=(R // tr,),
        in_specs=[pl.BlockSpec((27, tr, L), lambda i: (0, i, 0)),
                  pl.BlockSpec((27, 1, L), lambda i: (0, 0, 0))],
        out_specs=pl.BlockSpec((tr, L), lambda i: (i, 0)),
        compiler_params=_PARALLEL1,
    )(patches, w_lane)
    return out.reshape(B, T, H, W, C)


def _attention_kernel(q_ref, k_ref, v_ref, o_ref, *, inv_sharp, bh):
    for i in range(bh):
        q = q_ref[i]
        k = k_ref[i]
        v = v_ref[i]
        s = jnp.dot(q, k.T, preferred_element_type=jnp.float32) * inv_sharp
        m = jnp.max(s, axis=-1, keepdims=True)
        e = jnp.exp(s - m)
        p = e * pl.reciprocal(jnp.sum(e, axis=-1, keepdims=True), approx=True)
        o_ref[i] = jnp.dot(p, v, preferred_element_type=jnp.float32)


def pallas_attention(q, k, v, inv_sharp):
    """q,k,v: (B*H, P, Wd) -> (B*H, P, Wd); all heads in one grid step, scores never written."""
    BH, P, Wd = q.shape
    return pl.pallas_call(
        functools.partial(_attention_kernel, inv_sharp=inv_sharp, bh=BH),
        out_shape=jax.ShapeDtypeStruct((BH, P, Wd), jnp.float32),
        grid=(1,),
        in_specs=[pl.BlockSpec((BH, P, Wd), lambda i: (0, 0, 0))] * 3,
        out_specs=pl.BlockSpec((BH, P, Wd), lambda i: (0, 0, 0)),
        compiler_params=_PARALLEL1,
    )(q.astype(jnp.float32), k.astype(jnp.float32), v.astype(jnp.float32))


# ----------------------------- JAX glue (im2col, BN stats, weight folds) ------

# TODO(synk): the stem im2col below is still JAX-side patch materialization; an in-kernel
#             shifted-window DMA version would cut its HBM traffic further.
def im2col_patches(x, ksize, stride, padding):
    """x: NDHWC -> (B*To*Ho*Wo, kt*kh*kw*Cin) patch matrix (tap-major, channel-minor)."""
    B, T, H, W, Cin = x.shape
    kt, kh, kw = ksize
    st, sh, sw = stride
    pt, ph, pw = padding
    xp = jnp.pad(x, ((0, 0), (pt, pt), (ph, ph), (pw, pw), (0, 0)))
    To = (T + 2 * pt - kt) // st + 1
    Ho = (H + 2 * ph - kh) // sh + 1
    Wo = (W + 2 * pw - kw) // sw + 1
    cols = []
    for dt in range(kt):
        for dh in range(kh):
            for dw in range(kw):
                cols.append(xp[:, dt:dt + (To - 1) * st + 1:st,
                               dh:dh + (Ho - 1) * sh + 1:sh,
                               dw:dw + (Wo - 1) * sw + 1:sw, :])
    patches = jnp.stack(cols, axis=-2)                           # (B,To,Ho,Wo,K,Cin)
    return patches.reshape(B * To * Ho * Wo, kt * kh * kw * Cin), (B, To, Ho, Wo)


def conv_weight_matrix(w):
    """torch (Cout, Cin, kt, kh, kw) -> (kt*kh*kw*Cin, Cout), matching im2col_patches ordering."""
    Cout, Cin, kt, kh, kw = w.shape
    return jnp.transpose(w, (2, 3, 4, 1, 0)).reshape(kt * kh * kw * Cin, Cout).astype(jnp.float32)


def fold_cdc_weight(w, theta):
    """CDC_T: fold -theta * temporal-difference 1x1x1 kernel into the center (1,1,1) tap. Exact."""
    Cin = w.shape[1]
    wm = conv_weight_matrix(w)
    kdiff = w[:, :, 0].sum(axis=(2, 3)) + w[:, :, 2].sum(axis=(2, 3))      # (Cout, Cin)
    center = 13 * Cin                                                      # tap (dt,dh,dw)=(1,1,1)
    return wm.at[center:center + Cin, :].add(-theta * kdiff.T)


def conv3d_im2col(x, w, b, stride=(1, 1, 1), padding=(0, 0, 0)):
    Cout = w.shape[0]
    patches, (B, To, Ho, Wo) = im2col_patches(x, w.shape[2:], stride, padding)
    out = pallas_matmul(patches, conv_weight_matrix(w), b)
    return out.reshape(B, To, Ho, Wo, Cout)


def conv1x1(x, w2d, b=None):
    shp = x.shape
    out = pallas_matmul(x.reshape(-1, shp[-1]), jnp.transpose(w2d), b)
    return out.reshape(*shp[:-1], w2d.shape[0])


def batchnorm3d_act(x, gamma, beta, act=None, eps=1e-5):
    """BatchNorm3d (training-mode batch stats); normalization + activation in one Pallas pass."""
    C = x.shape[-1]
    x2d = x.reshape(-1, C)
    mean = jnp.mean(x2d, axis=0)
    var = jnp.var(x2d, axis=0)
    scale = gamma * jax.lax.rsqrt(var + eps)
    shift = beta - mean * scale
    return pallas_scale_shift_act(x2d, scale, shift, act).reshape(x.shape)


# ----------------------------- Transformer modules ----------------------------

def mhsa_tdc(x, p, n_heads, gra_sharp, theta):
    """MultiHeadedSelfAttention_TDC_gra_sharp with q/k/v fused into one MXU matmul. x: (B,P,C)."""
    B, P, C = x.shape
    xv = x.reshape(B, P // 16, 4, 4, C)                    # matches torch view(B,C,P//16,4,4)
    patches, _ = im2col_patches(xv, (3, 3, 3), (1, 1, 1), (1, 1, 1))       # (B*P, 27*C)

    wq = fold_cdc_weight(p["wq"], theta)                                   # CDC_T(q), bias-free
    wk = fold_cdc_weight(p["wk"], theta)                                   # CDC_T(k), bias-free
    wv = jnp.zeros((27 * C, C), jnp.float32).at[13 * C:14 * C, :].set(p["wv"].T)   # 1x1 conv
    w_qkv = jnp.concatenate([wq, wk, wv], axis=1)                          # (27*C, 3*C)
    qkv = pallas_matmul(patches, w_qkv)                                    # (B*P, 3*C)

    # training-mode BatchNorm3d on q/k conv outputs, folded into one per-column affine
    eps = 1e-5
    q_raw, k_raw = qkv[:, :C], qkv[:, C:2 * C]
    sq = p["q_gamma"] * jax.lax.rsqrt(jnp.var(q_raw, axis=0) + eps)
    sk = p["k_gamma"] * jax.lax.rsqrt(jnp.var(k_raw, axis=0) + eps)
    scale = jnp.concatenate([sq, sk, jnp.ones((C,), jnp.float32)])
    shift = jnp.concatenate([p["q_beta"] - jnp.mean(q_raw, axis=0) * sq,
                             p["k_beta"] - jnp.mean(k_raw, axis=0) * sk,
                             jnp.zeros((C,), jnp.float32)])
    qkv = qkv * scale + shift                                              # tiny; fused by XLA

    Wd = C // n_heads

    def to_heads(t):
        return t.reshape(B, P, n_heads, Wd).transpose(0, 2, 1, 3).reshape(B * n_heads, P, Wd)

    oh = pallas_attention(to_heads(qkv[:, :C].reshape(B, P, C)),
                          to_heads(qkv[:, C:2 * C].reshape(B, P, C)),
                          to_heads(qkv[:, 2 * C:].reshape(B, P, C)),
                          1.0 / gra_sharp)
    return oh.reshape(B, n_heads, P, Wd).transpose(0, 2, 1, 3).reshape(B, P, C)


def pwff_st(x, p):
    """PositionWiseFeedForward_ST. x: (B, P, C)."""
    B, P, C = x.shape
    xv = x.reshape(B, P // 16, 4, 4, C)
    h = batchnorm3d_act(conv1x1(xv, p["w1"]), p["g1"], p["b1"], "elu")
    h = batchnorm3d_act(depthwise_conv3x3x3(h, p["wd"]), p["g2"], p["b2"], "elu")
    h = batchnorm3d_act(conv1x1(h, p["w2"]), p["g3"], p["b3"], None)
    return h.reshape(B, P, -1)


def transformer_block(x, p, n_heads, gra_sharp, theta):
    B, P, C = x.shape
    xn = pallas_layernorm(x.reshape(-1, C), p["ln1_w"], p["ln1_b"], 1e-6).reshape(B, P, C)
    atten = mhsa_tdc(xn, p["attn"], n_heads, gra_sharp, theta)
    h = pallas_matmul(atten.reshape(-1, C), p["proj_w"].T, p["proj_b"]).reshape(B, P, C)
    x = x + h                                                   # dropout rate 0.0 -> identity
    xn = pallas_layernorm(x.reshape(-1, C), p["ln2_w"], p["ln2_b"], 1e-6).reshape(B, P, C)
    x = x + pwff_st(xn, p["ff"])
    return x


# ----------------------------- Full model -------------------------------------

def tdtransformer_forward(params, x_ncthw, *, dim, n_heads, gra_sharp, theta):
    B, _, T, H, W = x_ncthw.shape
    x = jnp.transpose(x_ncthw, (0, 2, 3, 4, 1)).astype(jnp.float32)   # NCDHW -> NDHWC

    # Stem0: Conv3d(3, dim//4, [1,5,5], pad [0,2,2]) + BN + ReLU + MaxPool(1,2,2)
    x = conv3d_im2col(x, params["stem0_w"], params["stem0_b"], (1, 1, 1), (0, 2, 2))
    x = pallas_bn_relu_maxpool(x, params["stem0_g"], params["stem0_be"])
    # Stem1
    x = conv3d_im2col(x, params["stem1_w"], params["stem1_b"], (1, 1, 1), (1, 1, 1))
    x = pallas_bn_relu_maxpool(x, params["stem1_g"], params["stem1_be"])
    # Stem2
    x = conv3d_im2col(x, params["stem2_w"], params["stem2_b"], (1, 1, 1), (1, 1, 1))
    x = pallas_bn_relu_maxpool(x, params["stem2_g"], params["stem2_be"])

    # patch embedding: Conv3d(dim, dim, (4,1,1), stride (4,1,1))
    x = conv3d_im2col(x, params["patch_w"], params["patch_b"], (4, 1, 1), (0, 0, 0))
    Bx, To, Ho, Wo, C = x.shape
    x = x.reshape(Bx, To * Ho * Wo, C)                          # (B, seq_len, dim)

    for bp in params["blocks"]:
        x = transformer_block(x, bp, n_heads, gra_sharp, theta)

    feat = x.reshape(B, T // 4, 4, 4, dim)
    # upsample: nearest (2,1,1) + Conv3d(dim,dim,[3,1,1],pad(1,0,0)) + BN + ELU
    feat = jnp.repeat(feat, 2, axis=1)
    feat = conv3d_im2col(feat, params["up1_w"], params["up1_b"], (1, 1, 1), (1, 0, 0))
    feat = batchnorm3d_act(feat, params["up1_g"], params["up1_be"], "elu")
    # upsample2
    feat = jnp.repeat(feat, 2, axis=1)
    feat = conv3d_im2col(feat, params["up2_w"], params["up2_b"], (1, 1, 1), (1, 0, 0))
    feat = batchnorm3d_act(feat, params["up2_g"], params["up2_be"], "elu")
    return jnp.transpose(feat, (0, 4, 1, 2, 3))                 # back to NCDHW


# ----------------------------- deterministic parameter init -------------------

def init_params(key, dim, ff_dim, n_blocks):
    keys = iter(jax.random.split(key, 512))

    def nrm(shape, fan_in):
        return jax.random.normal(next(keys), shape, jnp.float32) / jnp.sqrt(float(fan_in))

    def vec(c):
        return 0.02 * jax.random.normal(next(keys), (c,), jnp.float32)

    def bn(c):
        return 1.0 + vec(c), vec(c)

    d4, d2 = dim // 4, dim // 2
    params = {
        "stem0_w": nrm((d4, 3, 1, 5, 5), 3 * 25), "stem0_b": vec(d4),
        "stem1_w": nrm((d2, d4, 3, 3, 3), d4 * 27), "stem1_b": vec(d2),
        "stem2_w": nrm((dim, d2, 3, 3, 3), d2 * 27), "stem2_b": vec(dim),
        "patch_w": nrm((dim, dim, 4, 1, 1), dim * 4), "patch_b": vec(dim),
        "up1_w": nrm((dim, dim, 3, 1, 1), dim * 3), "up1_b": vec(dim),
        "up2_w": nrm((d2, dim, 3, 1, 1), dim * 3), "up2_b": vec(d2),
    }
    params["stem0_g"], params["stem0_be"] = bn(d4)
    params["stem1_g"], params["stem1_be"] = bn(d2)
    params["stem2_g"], params["stem2_be"] = bn(dim)
    params["up1_g"], params["up1_be"] = bn(dim)
    params["up2_g"], params["up2_be"] = bn(d2)

    blocks = []
    for _ in range(n_blocks):
        attn = {"wq": nrm((dim, dim, 3, 3, 3), dim * 27),
                "wk": nrm((dim, dim, 3, 3, 3), dim * 27),
                "wv": nrm((dim, dim), dim)}
        attn["q_gamma"], attn["q_beta"] = bn(dim)
        attn["k_gamma"], attn["k_beta"] = bn(dim)
        ff = {"w1": nrm((ff_dim, dim), dim),
              "wd": nrm((ff_dim, 1, 3, 3, 3), 27),
              "w2": nrm((dim, ff_dim), ff_dim)}
        ff["g1"], ff["b1"] = bn(ff_dim)
        ff["g2"], ff["b2"] = bn(ff_dim)
        ff["g3"], ff["b3"] = bn(dim)
        blocks.append({
            "ln1_w": 1.0 + vec(dim), "ln1_b": vec(dim),
            "ln2_w": 1.0 + vec(dim), "ln2_b": vec(dim),
            "proj_w": nrm((dim, dim), dim), "proj_b": vec(dim),
            "attn": attn, "ff": ff,
        })
    params["blocks"] = blocks
    return params


# ----------------------------- main -------------------------------------------

if __name__ == "__main__":
    # opt-equivalent (small) hyperparameters:
    #   tdt_dim=8, tdt_ff_dim=16, tdt_num_heads=2, tdt_num_layers=3, tdt_dropout_rate=0.0,
    #   tdt_theta=0.7, tdt_gra_sharp=2.0, tdt_image_size=(8,32,32), tdt_patches=(4,1,1)
    dim, ff_dim, num_heads, num_layers = 8, 16, 2, 3
    theta, gra_sharp = 0.7, 2.0
    image_size = (8, 32, 32)        # (t, h, w); patches (4,1,1) -> seq_len = 2*4*4 = 32
    B = 1

    key = jax.random.PRNGKey(0)
    pkey, xkey = jax.random.split(key)
    params = init_params(pkey, dim, ff_dim, n_blocks=3 * (num_layers // 3))
    x = jax.random.normal(xkey, (B, 3) + image_size, jnp.float32)   # NCDHW like PyTorch

    fwd = jax.jit(functools.partial(tdtransformer_forward, dim=dim, n_heads=num_heads,
                                    gra_sharp=gra_sharp, theta=theta))
    out = fwd(params, x)
    out = jax.block_until_ready(out)

    assert out.shape == (B, dim // 2, image_size[0], 4, 4), out.shape
    assert bool(jnp.all(jnp.isfinite(out)))
    print("KERNEL_OK")
</pallas_src>

<mosaic_0001>
module attributes {stable_mosaic.version = 11 : i64} {
  func.func @_matmul_bias_kernel(%arg0: i32, %arg1: memref<1024x75xbf16, #tpu.memory_space<vmem>>, %arg2: memref<75x2xbf16, #tpu.memory_space<vmem>>, %arg3: memref<1x2xf32, #tpu.memory_space<vmem>>, %arg4: memref<1024x2xf32, #tpu.memory_space<vmem>>) attributes {dimension_semantics = [#tpu.dimension_semantics<parallel>], iteration_bounds = array<i64: 8>, scalar_prefetch = 0 : i64, scratch_operands = 0 : i64, tpu.core_type = #tpu.core_type<tc>, window_params = [{transform_indices = @transform_0, window_bounds = array<i64: 1024, 75>}, {pipeline_mode = #tpu.pipeline_mode<synchronous>, transform_indices = @transform_1, window_bounds = array<i64: 75, 2>}, {pipeline_mode = #tpu.pipeline_mode<synchronous>, transform_indices = @transform_2, window_bounds = array<i64: 1, 2>}, {transform_indices = @transform_3, window_bounds = array<i64: 1024, 2>}]} {
    %c0 = arith.constant 0 : index
    %c0_0 = arith.constant 0 : index
    %0 = vector.load %arg1[%c0, %c0_0] : memref<1024x75xbf16, #tpu.memory_space<vmem>>, vector<1024x75xbf16>
    %c0_1 = arith.constant 0 : index
    %c0_2 = arith.constant 0 : index
    %1 = vector.load %arg2[%c0_1, %c0_2] : memref<75x2xbf16, #tpu.memory_space<vmem>>, vector<75x2xbf16>
    %cst = arith.constant dense<0.000000e+00> : vector<1024x2xf32>
    %2 = tpu.matmul %0, %1, %cst {dimension_numbers = #tpu.dot_dimension_numbers<[1], [0], [0], [1], [0, 0, 1, 1], [], []>} : vector<1024x75xbf16>, vector<75x2xbf16>, vector<1024x2xf32> -> vector<1024x2xf32>
    %c0_3 = arith.constant 0 : index
    %c0_4 = arith.constant 0 : index
    %3 = vector.load %arg3[%c0_3, %c0_4] : memref<1x2xf32, #tpu.memory_space<vmem>>, vector<1x2xf32>
    %4 = vector.broadcast %3 : vector<1x2xf32> to vector<1024x2xf32>
    %5 = arith.addf %2, %4 : vector<1024x2xf32>
    %c0_5 = arith.constant 0 : index
    %c0_6 = arith.constant 0 : index
    %6 = vector.load %arg4[%c0_5, %c0_6] : memref<1024x2xf32, #tpu.memory_space<vmem>>, vector<1024x2xf32>
    tpu.vector_store %arg4[%c0_5, %c0_6], %5 {strides = array<i32>} : memref<1024x2xf32, #tpu.memory_space<vmem>>, vector<1024x2xf32>,
    return
  }
  func.func @transform_0(%arg0: i32) -> (i32, i32) {
    %c0_i32 = arith.constant 0 : i32
    %c0_i32_0 = arith.constant 0 : i32
    return %arg0, %c0_i32 : i32, i32
  }
  func.func @transform_1(%arg0: i32) -> (i32, i32) {
    %c0_i32 = arith.constant 0 : i32
    %c0_i32_0 = arith.constant 0 : i32
    %c0_i32_1 = arith.constant 0 : i32
    return %c0_i32, %c0_i32_0 : i32, i32
  }
  func.func @transform_2(%arg0: i32) -> (i32, i32) {
    %c0_i32 = arith.constant 0 : i32
    %c0_i32_0 = arith.constant 0 : i32
    %c0_i32_1 = arith.constant 0 : i32
    return %c0_i32, %c0_i32_0 : i32, i32
  }
  func.func @transform_3(%arg0: i32) -> (i32, i32) {
    %c0_i32 = arith.constant 0 : i32
    %c0_i32_0 = arith.constant 0 : i32
    return %arg0, %c0_i32 : i32, i32
  }
}

module attributes {stable_mosaic.version = 11 : i64} {
  func.func @_affine_relu_max4_kernel(%arg0: i32, %arg1: memref<32x128xf32, #tpu.memory_space<vmem>>, %arg2: memref<32x128xf32, #tpu.memory_space<vmem>>, %arg3: memref<32x128xf32, #tpu.memory_space<vmem>>, %arg4: memref<32x128xf32, #tpu.memory_space<vmem>>, %arg5: memref<1x128xf32, #tpu.memory_space<vmem>>, %arg6: memref<1x128xf32, #tpu.memory_space<vmem>>, %arg7: memref<32x128xf32, #tpu.memory_space<vmem>>) attributes {dimension_semantics = [#tpu.dimension_semantics<parallel>], iteration_bounds = array<i64: 1>, scalar_prefetch = 0 : i64, scratch_operands = 0 : i64, tpu.core_type = #tpu.core_type<tc>, window_params = [{transform_indices = @transform_0, window_bounds = array<i64: 32, 128>}, {transform_indices = @transform_1, window_bounds = array<i64: 32, 128>}, {transform_indices = @transform_2, window_bounds = array<i64: 32, 128>}, {transform_indices = @transform_3, window_bounds = array<i64: 32, 128>}, {pipeline_mode = #tpu.pipeline_mode<synchronous>, transform_indices = @transform_4, window_bounds = array<i64: 1, 128>}, {pipeline_mode = #tpu.pipeline_mode<synchronous>, transform_indices = @transform_5, window_bounds = array<i64: 1, 128>}, {transform_indices = @transform_6, window_bounds = array<i64: 32, 128>}]} {
    %c0 = arith.constant 0 : index
    %c0_0 = arith.constant 0 : index
    %0 = vector.load %arg5[%c0, %c0_0] : memref<1x128xf32, #tpu.memory_space<vmem>>, vector<1x128xf32>
    %c0_1 = arith.constant 0 : index
    %c0_2 = arith.constant 0 : index
    %1 = vector.load %arg6[%c0_1, %c0_2] : memref<1x128xf32, #tpu.memory_space<vmem>>, vector<1x128xf32>
    %c0_3 = arith.constant 0 : index
    %c0_4 = arith.constant 0 : index
    %2 = vector.load %arg1[%c0_3, %c0_4] : memref<32x128xf32, #tpu.memory_space<vmem>>, vector<32x128xf32>
    %3 = vector.broadcast %0 : vector<1x128xf32> to vector<32x128xf32>
    %4 = arith.mulf %2, %3 : vector<32x128xf32>
    %5 = vector.broadcast %1 : vector<1x128xf32> to vector<32x128xf32>
    %6 = arith.addf %4, %5 : vector<32x128xf32>
    %cst = arith.constant 0.000000e+00 : f32
    %7 = vector.broadcast %cst : f32 to vector<32x128xf32>
    %8 = arith.maximumf %6, %7 : vector<32x128xf32>
    %c0_5 = arith.constant 0 : index
    %c0_6 = arith.constant 0 : index
    %9 = vector.load %arg2[%c0_5, %c0_6] : memref<32x128xf32, #tpu.memory_space<vmem>>, vector<32x128xf32>
    %10 = vector.broadcast %0 : vector<1x128xf32> to vector<32x128xf32>
    %11 = arith.mulf %9, %10 : vector<32x128xf32>
    %12 = vector.broadcast %1 : vector<1x128xf32> to vector<32x128xf32>
    %13 = arith.addf %11, %12 : vector<32x128xf32>
    %cst_7 = arith.constant 0.000000e+00 : f32
    %14 = vector.broadcast %cst_7 : f32 to vector<32x128xf32>
    %15 = arith.maximumf %13, %14 : vector<32x128xf32>
    %16 = arith.maximumf %8, %15 : vector<32x128xf32>
    %c0_8 = arith.constant 0 : index
    %c0_9 = arith.constant 0 : index
    %17 = vector.load %arg3[%c0_8, %c0_9] : memref<32x128xf32, #tpu.memory_space<vmem>>, vector<32x128xf32>
    %18 = vector.broadcast %0 : vector<1x128xf32> to vector<32x128xf32>
    %19 = arith.mulf %17, %18 : vector<32x128xf32>
    %20 = vector.broadcast %1 : vector<1x128xf32> to vector<32x128xf32>
    %21 = arith.addf %19, %20 : vector<32x128xf32>
    %cst_10 = arith.constant 0.000000e+00 : f32
    %22 = vector.broadcast %cst_10 : f32 to vector<32x128xf32>
    %23 = arith.maximumf %21, %22 : vector<32x128xf32>
    %c0_11 = arith.constant 0 : index
    %c0_12 = arith.constant 0 : index
    %24 = vector.load %arg4[%c0_11, %c0_12] : memref<32x128xf32, #tpu.memory_space<vmem>>, vector<32x128xf32>
    %25 = vector.broadcast %0 : vector<1x128xf32> to vector<32x128xf32>
    %26 = arith.mulf %24, %25 : vector<32x128xf32>
    %27 = vector.broadcast %1 : vector<1x128xf32> to vector<32x128xf32>
    %28 = arith.addf %26, %27 : vector<32x128xf32>
    %cst_13 = arith.constant 0.000000e+00 : f32
    %29 = vector.broadcast %cst_13 : f32 to vector<32x128xf32>
    %30 = arith.maximumf %28, %29 : vector<32x128xf32>
    %31 = arith.maximumf %23, %30 : vector<32x128xf32>
    %32 = arith.maximumf %16, %31 : vector<32x128xf32>
    %c0_14 = arith.constant 0 : index
    %c0_15 = arith.constant 0 : index
    %33 = vector.load %arg7[%c0_14, %c0_15] : memref<32x128xf32, #tpu.memory_space<vmem>>, vector<32x128xf32>
    tpu.vector_store %arg7[%c0_14, %c0_15], %32 {strides = array<i32>} : memref<32x128xf32, #tpu.memory_space<vmem>>, vector<32x128xf32>,
    return
  }
  func.func @transform_0(%arg0: i32) -> (i32, i32) {
    %c0_i32 = arith.constant 0 : i32
    %c0_i32_0 = arith.constant 0 : i32
    return %arg0, %c0_i32 : i32, i32
  }
  func.func @transform_1(%arg0: i32) -> (i32, i32) {
    %c0_i32 = arith.constant 0 : i32
    %c0_i32_0 = arith.constant 0 : i32
    return %arg0, %c0_i32 : i32, i32
  }
  func.func @transform_2(%arg0: i32) -> (i32, i32) {
    %c0_i32 = arith.constant 0 : i32
    %c0_i32_0 = arith.constant 0 : i32
    return %arg0, %c0_i32 : i32, i32
  }
  func.func @transform_3(%arg0: i32) -> (i32, i32) {
    %c0_i32 = arith.constant 0 : i32
    %c0_i32_0 = arith.constant 0 : i32
    return %arg0, %c0_i32 : i32, i32
  }
  func.func @transform_4(%arg0: i32) -> (i32, i32) {
    %c0_i32 = arith.constant 0 : i32
    %c0_i32_0 = arith.constant 0 : i32
    %c0_i32_1 = arith.constant 0 : i32
    return %c0_i32, %c0_i32_0 : i32, i32
  }
  func.func @transform_5(%arg0: i32) -> (i32, i32) {
    %c0_i32 = arith.constant 0 : i32
    %c0_i32_0 = arith.constant 0 : i32
    %c0_i32_1 = arith.constant 0 : i32
    return %c0_i32, %c0_i32_0 : i32, i32
  }
  func.func @transform_6(%arg0: i32) -> (i32, i32) {
    %c0_i32 = arith.constant 0 : i32
    %c0_i32_0 = arith.constant 0 : i32
    return %arg0, %c0_i32 : i32, i32
  }
}

module attributes {stable_mosaic.version = 11 : i64} {
  func.func @_matmul_bias_kernel(%arg0: i32, %arg1: memref<1024x54xbf16, #tpu.memory_space<vmem>>, %arg2: memref<54x4xbf16, #tpu.memory_space<vmem>>, %arg3: memref<1x4xf32, #tpu.memory_space<vmem>>, %arg4: memref<1024x4xf32, #tpu.memory_space<vmem>>) attributes {dimension_semantics = [#tpu.dimension_semantics<parallel>], iteration_bounds = array<i64: 2>, scalar_prefetch = 0 : i64, scratch_operands = 0 : i64, tpu.core_type = #tpu.core_type<tc>, window_params = [{transform_indices = @transform_0, window_bounds = array<i64: 1024, 54>}, {pipeline_mode = #tpu.pipeline_mode<synchronous>, transform_indices = @transform_1, window_bounds = array<i64: 54, 4>}, {pipeline_mode = #tpu.pipeline_mode<synchronous>, transform_indices = @transform_2, window_bounds = array<i64: 1, 4>}, {transform_indices = @transform_3, window_bounds = array<i64: 1024, 4>}]} {
    %c0 = arith.constant 0 : index
    %c0_0 = arith.constant 0 : index
    %0 = vector.load %arg1[%c0, %c0_0] : memref<1024x54xbf16, #tpu.memory_space<vmem>>, vector<1024x54xbf16>
    %c0_1 = arith.constant 0 : index
    %c0_2 = arith.constant 0 : index
    %1 = vector.load %arg2[%c0_1, %c0_2] : memref<54x4xbf16, #tpu.memory_space<vmem>>, vector<54x4xbf16>
    %cst = arith.constant dense<0.000000e+00> : vector<1024x4xf32>
    %2 = tpu.matmul %0, %1, %cst {dimension_numbers = #tpu.dot_dimension_numbers<[1], [0], [0], [1], [0, 0, 1, 1], [], []>} : vector<1024x54xbf16>, vector<54x4xbf16>, vector<1024x4xf32> -> vector<1024x4xf32>
    %c0_3 = arith.constant 0 : index
    %c0_4 = arith.constant 0 : index
    %3 = vector.load %arg3[%c0_3, %c0_4] : memref<1x4xf32, #tpu.memory_space<vmem>>, vector<1x4xf32>
    %4 = vector.broadcast %3 : vector<1x4xf32> to vector<1024x4xf32>
    %5 = arith.addf %2, %4 : vector<1024x4xf32>
    %c0_5 = arith.constant 0 : index
    %c0_6 = arith.constant 0 : index
    %6 = vector.load %arg4[%c0_5, %c0_6] : memref<1024x4xf32, #tpu.memory_space<vmem>>, vector<1024x4xf32>
    tpu.vector_store %arg4[%c0_5, %c0_6], %5 {strides = array<i32>} : memref<1024x4xf32, #tpu.memory_space<vmem>>, vector<1024x4xf32>,
    return
  }
  func.func @transform_0(%arg0: i32) -> (i32, i32) {
    %c0_i32 = arith.constant 0 : i32
    %c0_i32_0 = arith.constant 0 : i32
    return %arg0, %c0_i32 : i32, i32
  }
  func.func @transform_1(%arg0: i32) -> (i32, i32) {
    %c0_i32 = arith.constant 0 : i32
    %c0_i32_0 = arith.constant 0 : i32
    %c0_i32_1 = arith.constant 0 : i32
    return %c0_i32, %c0_i32_0 : i32, i32
  }
  func.func @transform_2(%arg0: i32) -> (i32, i32) {
    %c0_i32 = arith.constant 0 : i32
    %c0_i32_0 = arith.constant 0 : i32
    %c0_i32_1 = arith.constant 0 : i32
    return %c0_i32, %c0_i32_0 : i32, i32
  }
  func.func @transform_3(%arg0: i32) -> (i32, i32) {
    %c0_i32 = arith.constant 0 : i32
    %c0_i32_0 = arith.constant 0 : i32
    return %arg0, %c0_i32 : i32, i32
  }
}

module attributes {stable_mosaic.version = 11 : i64} {
  func.func @_affine_relu_max4_kernel(%arg0: i32, %arg1: memref<16x128xf32, #tpu.memory_space<vmem>>, %arg2: memref<16x128xf32, #tpu.memory_space<vmem>>, %arg3: memref<16x128xf32, #tpu.memory_space<vmem>>, %arg4: memref<16x128xf32, #tpu.memory_space<vmem>>, %arg5: memref<1x128xf32, #tpu.memory_space<vmem>>, %arg6: memref<1x128xf32, #tpu.memory_space<vmem>>, %arg7: memref<16x128xf32, #tpu.memory_space<vmem>>) attributes {dimension_semantics = [#tpu.dimension_semantics<parallel>], iteration_bounds = array<i64: 1>, scalar_prefetch = 0 : i64, scratch_operands = 0 : i64, tpu.core_type = #tpu.core_type<tc>, window_params = [{transform_indices = @transform_0, window_bounds = array<i64: 16, 128>}, {transform_indices = @transform_1, window_bounds = array<i64: 16, 128>}, {transform_indices = @transform_2, window_bounds = array<i64: 16, 128>}, {transform_indices = @transform_3, window_bounds = array<i64: 16, 128>}, {pipeline_mode = #tpu.pipeline_mode<synchronous>, transform_indices = @transform_4, window_bounds = array<i64: 1, 128>}, {pipeline_mode = #tpu.pipeline_mode<synchronous>, transform_indices = @transform_5, window_bounds = array<i64: 1, 128>}, {transform_indices = @transform_6, window_bounds = array<i64: 16, 128>}]} {
    %c0 = arith.constant 0 : index
    %c0_0 = arith.constant 0 : index
    %0 = vector.load %arg5[%c0, %c0_0] : memref<1x128xf32, #tpu.memory_space<vmem>>, vector<1x128xf32>
    %c0_1 = arith.constant 0 : index
    %c0_2 = arith.constant 0 : index
    %1 = vector.load %arg6[%c0_1, %c0_2] : memref<1x128xf32, #tpu.memory_space<vmem>>, vector<1x128xf32>
    %c0_3 = arith.constant 0 : index
    %c0_4 = arith.constant 0 : index
    %2 = vector.load %arg1[%c0_3, %c0_4] : memref<16x128xf32, #tpu.memory_space<vmem>>, vector<16x128xf32>
    %3 = vector.broadcast %0 : vector<1x128xf32> to vector<16x128xf32>
    %4 = arith.mulf %2, %3 : vector<16x128xf32>
    %5 = vector.broadcast %1 : vector<1x128xf32> to vector<16x128xf32>
    %6 = arith.addf %4, %5 : vector<16x128xf32>
    %cst = arith.constant 0.000000e+00 : f32
    %7 = vector.broadcast %cst : f32 to vector<16x128xf32>
    %8 = arith.maximumf %6, %7 : vector<16x128xf32>
    %c0_5 = arith.constant 0 : index
    %c0_6 = arith.constant 0 : index
    %9 = vector.load %arg2[%c0_5, %c0_6] : memref<16x128xf32, #tpu.memory_space<vmem>>, vector<16x128xf32>
    %10 = vector.broadcast %0 : vector<1x128xf32> to vector<16x128xf32>
    %11 = arith.mulf %9, %10 : vector<16x128xf32>
    %12 = vector.broadcast %1 : vector<1x128xf32> to vector<16x128xf32>
    %13 = arith.addf %11, %12 : vector<16x128xf32>
    %cst_7 = arith.constant 0.000000e+00 : f32
    %14 = vector.broadcast %cst_7 : f32 to vector<16x128xf32>
    %15 = arith.maximumf %13, %14 : vector<16x128xf32>
    %16 = arith.maximumf %8, %15 : vector<16x128xf32>
    %c0_8 = arith.constant 0 : index
    %c0_9 = arith.constant 0 : index
    %17 = vector.load %arg3[%c0_8, %c0_9] : memref<16x128xf32, #tpu.memory_space<vmem>>, vector<16x128xf32>
    %18 = vector.broadcast %0 : vector<1x128xf32> to vector<16x128xf32>
    %19 = arith.mulf %17, %18 : vector<16x128xf32>
    %20 = vector.broadcast %1 : vector<1x128xf32> to vector<16x128xf32>
    %21 = arith.addf %19, %20 : vector<16x128xf32>
    %cst_10 = arith.constant 0.000000e+00 : f32
    %22 = vector.broadcast %cst_10 : f32 to vector<16x128xf32>
    %23 = arith.maximumf %21, %22 : vector<16x128xf32>
    %c0_11 = arith.constant 0 : index
    %c0_12 = arith.constant 0 : index
    %24 = vector.load %arg4[%c0_11, %c0_12] : memref<16x128xf32, #tpu.memory_space<vmem>>, vector<16x128xf32>
    %25 = vector.broadcast %0 : vector<1x128xf32> to vector<16x128xf32>
    %26 = arith.mulf %24, %25 : vector<16x128xf32>
    %27 = vector.broadcast %1 : vector<1x128xf32> to vector<16x128xf32>
    %28 = arith.addf %26, %27 : vector<16x128xf32>
    %cst_13 = arith.constant 0.000000e+00 : f32
    %29 = vector.broadcast %cst_13 : f32 to vector<16x128xf32>
    %30 = arith.maximumf %28, %29 : vector<16x128xf32>
    %31 = arith.maximumf %23, %30 : vector<16x128xf32>
    %32 = arith.maximumf %16, %31 : vector<16x128xf32>
    %c0_14 = arith.constant 0 : index
    %c0_15 = arith.constant 0 : index
    %33 = vector.load %arg7[%c0_14, %c0_15] : memref<16x128xf32, #tpu.memory_space<vmem>>, vector<16x128xf32>
    tpu.vector_store %arg7[%c0_14, %c0_15], %32 {strides = array<i32>} : memref<16x128xf32, #tpu.memory_space<vmem>>, vector<16x128xf32>,
    return
  }
  func.func @transform_0(%arg0: i32) -> (i32, i32) {
    %c0_i32 = arith.constant 0 : i32
    %c0_i32_0 = arith.constant 0 : i32
    return %arg0, %c0_i32 : i32, i32
  }
  func.func @transform_1(%arg0: i32) -> (i32, i32) {
    %c0_i32 = arith.constant 0 : i32
    %c0_i32_0 = arith.constant 0 : i32
    return %arg0, %c0_i32 : i32, i32
  }
  func.func @transform_2(%arg0: i32) -> (i32, i32) {
    %c0_i32 = arith.constant 0 : i32
    %c0_i32_0 = arith.constant 0 : i32
    return %arg0, %c0_i32 : i32, i32
  }
  func.func @transform_3(%arg0: i32) -> (i32, i32) {
    %c0_i32 = arith.constant 0 : i32
    %c0_i32_0 = arith.constant 0 : i32
    return %arg0, %c0_i32 : i32, i32
  }
  func.func @transform_4(%arg0: i32) -> (i32, i32) {
    %c0_i32 = arith.constant 0 : i32
    %c0_i32_0 = arith.constant 0 : i32
    %c0_i32_1 = arith.constant 0 : i32
    return %c0_i32, %c0_i32_0 : i32, i32
  }
  func.func @transform_5(%arg0: i32) -> (i32, i32) {
    %c0_i32 = arith.constant 0 : i32
    %c0_i32_0 = arith.constant 0 : i32
    %c0_i32_1 = arith.constant 0 : i32
    return %c0_i32, %c0_i32_0 : i32, i32
  }
  func.func @transform_6(%arg0: i32) -> (i32, i32) {
    %c0_i32 = arith.constant 0 : i32
    %c0_i32_0 = arith.constant 0 : i32
    return %arg0, %c0_i32 : i32, i32
  }
}

module attributes {stable_mosaic.version = 11 : i64} {
  func.func @_matmul_bias_kernel(%arg0: i32, %arg1: memref<512x108xbf16, #tpu.memory_space<vmem>>, %arg2: memref<108x8xbf16, #tpu.memory_space<vmem>>, %arg3: memref<1x8xf32, #tpu.memory_space<vmem>>, %arg4: memref<512x8xf32, #tpu.memory_space<vmem>>) attributes {dimension_semantics = [#tpu.dimension_semantics<parallel>], iteration_bounds = array<i64: 1>, scalar_prefetch = 0 : i64, scratch_operands = 0 : i64, tpu.core_type = #tpu.core_type<tc>, window_params = [{transform_indices = @transform_0, window_bounds = array<i64: 512, 108>}, {pipeline_mode = #tpu.pipeline_mode<synchronous>, transform_indices = @transform_1, window_bounds = array<i64: 108, 8>}, {pipeline_mode = #tpu.pipeline_mode<synchronous>, transform_indices = @transform_2, window_bounds = array<i64: 1, 8>}, {transform_indices = @transform_3, window_bounds = array<i64: 512, 8>}]} {
    %c0 = arith.constant 0 : index
    %c0_0 = arith.constant 0 : index
    %0 = vector.load %arg1[%c0, %c0_0] : memref<512x108xbf16, #tpu.memory_space<vmem>>, vector<512x108xbf16>
    %c0_1 = arith.constant 0 : index
    %c0_2 = arith.constant 0 : index
    %1 = vector.load %arg2[%c0_1, %c0_2] : memref<108x8xbf16, #tpu.memory_space<vmem>>, vector<108x8xbf16>
    %cst = arith.constant dense<0.000000e+00> : vector<512x8xf32>
    %2 = tpu.matmul %0, %1, %cst {dimension_numbers = #tpu.dot_dimension_numbers<[1], [0], [0], [1], [0, 0, 1, 1], [], []>} : vector<512x108xbf16>, vector<108x8xbf16>, vector<512x8xf32> -> vector<512x8xf32>
    %c0_3 = arith.constant 0 : index
    %c0_4 = arith.constant 0 : index
    %3 = vector.load %arg3[%c0_3, %c0_4] : memref<1x8xf32, #tpu.memory_space<vmem>>, vector<1x8xf32>
    %4 = vector.broadcast %3 : vector<1x8xf32> to vector<512x8xf32>
    %5 = arith.addf %2, %4 : vector<512x8xf32>
    %c0_5 = arith.constant 0 : index
    %c0_6 = arith.constant 0 : index
    %6 = vector.load %arg4[%c0_5, %c0_6] : memref<512x8xf32, #tpu.memory_space<vmem>>, vector<512x8xf32>
    tpu.vector_store %arg4[%c0_5, %c0_6], %5 {strides = array<i32>} : memref<512x8xf32, #tpu.memory_space<vmem>>, vector<512x8xf32>,
    return
  }
  func.func @transform_0(%arg0: i32) -> (i32, i32) {
    %c0_i32 = arith.constant 0 : i32
    %c0_i32_0 = arith.constant 0 : i32
    return %arg0, %c0_i32 : i32, i32
  }
  func.func @transform_1(%arg0: i32) -> (i32, i32) {
    %c0_i32 = arith.constant 0 : i32
    %c0_i32_0 = arith.constant 0 : i32
    %c0_i32_1 = arith.constant 0 : i32
    return %c0_i32, %c0_i32_0 : i32, i32
  }
  func.func @transform_2(%arg0: i32) -> (i32, i32) {
    %c0_i32 = arith.constant 0 : i32
    %c0_i32_0 = arith.constant 0 : i32
    %c0_i32_1 = arith.constant 0 : i32
    return %c0_i32, %c0_i32_0 : i32, i32
  }
  func.func @transform_3(%arg0: i32) -> (i32, i32) {
    %c0_i32 = arith.constant 0 : i32
    %c0_i32_0 = arith.constant 0 : i32
    return %arg0, %c0_i32 : i32, i32
  }
}

module attributes {stable_mosaic.version = 11 : i64} {
  func.func @_affine_relu_max4_kernel(%arg0: i32, %arg1: memref<8x128xf32, #tpu.memory_space<vmem>>, %arg2: memref<8x128xf32, #tpu.memory_space<vmem>>, %arg3: memref<8x128xf32, #tpu.memory_space<vmem>>, %arg4: memref<8x128xf32, #tpu.memory_space<vmem>>, %arg5: memref<1x128xf32, #tpu.memory_space<vmem>>, %arg6: memref<1x128xf32, #tpu.memory_space<vmem>>, %arg7: memref<8x128xf32, #tpu.memory_space<vmem>>) attributes {dimension_semantics = [#tpu.dimension_semantics<parallel>], iteration_bounds = array<i64: 1>, scalar_prefetch = 0 : i64, scratch_operands = 0 : i64, tpu.core_type = #tpu.core_type<tc>, window_params = [{transform_indices = @transform_0, window_bounds = array<i64: 8, 128>}, {transform_indices = @transform_1, window_bounds = array<i64: 8, 128>}, {transform_indices = @transform_2, window_bounds = array<i64: 8, 128>}, {transform_indices = @transform_3, window_bounds = array<i64: 8, 128>}, {pipeline_mode = #tpu.pipeline_mode<synchronous>, transform_indices = @transform_4, window_bounds = array<i64: 1, 128>}, {pipeline_mode = #tpu.pipeline_mode<synchronous>, transform_indices = @transform_5, window_bounds = array<i64: 1, 128>}, {transform_indices = @transform_6, window_bounds = array<i64: 8, 128>}]} {
    %c0 = arith.constant 0 : index
    %c0_0 = arith.constant 0 : index
    %0 = vector.load %arg5[%c0, %c0_0] : memref<1x128xf32, #tpu.memory_space<vmem>>, vector<1x128xf32>
    %c0_1 = arith.constant 0 : index
    %c0_2 = arith.constant 0 : index
    %1 = vector.load %arg6[%c0_1, %c0_2] : memref<1x128xf32, #tpu.memory_space<vmem>>, vector<1x128xf32>
    %c0_3 = arith.constant 0 : index
    %c0_4 = arith.constant 0 : index
    %2 = vector.load %arg1[%c0_3, %c0_4] : memref<8x128xf32, #tpu.memory_space<vmem>>, vector<8x128xf32>
    %3 = vector.broadcast %0 : vector<1x128xf32> to vector<8x128xf32>
    %4 = arith.mulf %2, %3 : vector<8x128xf32>
    %5 = vector.broadcast %1 : vector<1x128xf32> to vector<8x128xf32>
    %6 = arith.addf %4, %5 : vector<8x128xf32>
    %cst = arith.constant 0.000000e+00 : f32
    %7 = vector.broadcast %cst : f32 to vector<8x128xf32>
    %8 = arith.maximumf %6, %7 : vector<8x128xf32>
    %c0_5 = arith.constant 0 : index
    %c0_6 = arith.constant 0 : index
    %9 = vector.load %arg2[%c0_5, %c0_6] : memref<8x128xf32, #tpu.memory_space<vmem>>, vector<8x128xf32>
    %10 = vector.broadcast %0 : vector<1x128xf32> to vector<8x128xf32>
    %11 = arith.mulf %9, %10 : vector<8x128xf32>
    %12 = vector.broadcast %1 : vector<1x128xf32> to vector<8x128xf32>
    %13 = arith.addf %11, %12 : vector<8x128xf32>
    %cst_7 = arith.constant 0.000000e+00 : f32
    %14 = vector.broadcast %cst_7 : f32 to vector<8x128xf32>
    %15 = arith.maximumf %13, %14 : vector<8x128xf32>
    %16 = arith.maximumf %8, %15 : vector<8x128xf32>
    %c0_8 = arith.constant 0 : index
    %c0_9 = arith.constant 0 : index
    %17 = vector.load %arg3[%c0_8, %c0_9] : memref<8x128xf32, #tpu.memory_space<vmem>>, vector<8x128xf32>
    %18 = vector.broadcast %0 : vector<1x128xf32> to vector<8x128xf32>
    %19 = arith.mulf %17, %18 : vector<8x128xf32>
    %20 = vector.broadcast %1 : vector<1x128xf32> to vector<8x128xf32>
    %21 = arith.addf %19, %20 : vector<8x128xf32>
    %cst_10 = arith.constant 0.000000e+00 : f32
    %22 = vector.broadcast %cst_10 : f32 to vector<8x128xf32>
    %23 = arith.maximumf %21, %22 : vector<8x128xf32>
    %c0_11 = arith.constant 0 : index
    %c0_12 = arith.constant 0 : index
    %24 = vector.load %arg4[%c0_11, %c0_12] : memref<8x128xf32, #tpu.memory_space<vmem>>, vector<8x128xf32>
    %25 = vector.broadcast %0 : vector<1x128xf32> to vector<8x128xf32>
    %26 = arith.mulf %24, %25 : vector<8x128xf32>
    %27 = vector.broadcast %1 : vector<1x128xf32> to vector<8x128xf32>
    %28 = arith.addf %26, %27 : vector<8x128xf32>
    %cst_13 = arith.constant 0.000000e+00 : f32
    %29 = vector.broadcast %cst_13 : f32 to vector<8x128xf32>
    %30 = arith.maximumf %28, %29 : vector<8x128xf32>
    %31 = arith.maximumf %23, %30 : vector<8x128xf32>
    %32 = arith.maximumf %16, %31 : vector<8x128xf32>
    %c0_14 = arith.constant 0 : index
    %c0_15 = arith.constant 0 : index
    %33 = vector.load %arg7[%c0_14, %c0_15] : memref<8x128xf32, #tpu.memory_space<vmem>>, vector<8x128xf32>
    tpu.vector_store %arg7[%c0_14, %c0_15], %32 {strides = array<i32>} : memref<8x128xf32, #tpu.memory_space<vmem>>, vector<8x128xf32>,
    return
  }
  func.func @transform_0(%arg0: i32) -> (i32, i32) {
    %c0_i32 = arith.constant 0 : i32
    %c0_i32_0 = arith.constant 0 : i32
    return %arg0, %c0_i32 : i32, i32
  }
  func.func @transform_1(%arg0: i32) -> (i32, i32) {
    %c0_i32 = arith.constant 0 : i32
    %c0_i32_0 = arith.constant 0 : i32
    return %arg0, %c0_i32 : i32, i32
  }
  func.func @transform_2(%arg0: i32) -> (i32, i32) {
    %c0_i32 = arith.constant 0 : i32
    %c0_i32_0 = arith.constant 0 : i32
    return %arg0, %c0_i32 : i32, i32
  }
  func.func @transform_3(%arg0: i32) -> (i32, i32) {
    %c0_i32 = arith.constant 0 : i32
    %c0_i32_0 = arith.constant 0 : i32
    return %arg0, %c0_i32 : i32, i32
  }
  func.func @transform_4(%arg0: i32) -> (i32, i32) {
    %c0_i32 = arith.constant 0 : i32
    %c0_i32_0 = arith.constant 0 : i32
    %c0_i32_1 = arith.constant 0 : i32
    return %c0_i32, %c0_i32_0 : i32, i32
  }
  func.func @transform_5(%arg0: i32) -> (i32, i32) {
    %c0_i32 = arith.constant 0 : i32
    %c0_i32_0 = arith.constant 0 : i32
    %c0_i32_1 = arith.constant 0 : i32
    return %c0_i32, %c0_i32_0 : i32, i32
  }
  func.func @transform_6(%arg0: i32) -> (i32, i32) {
    %c0_i32 = arith.constant 0 : i32
    %c0_i32_0 = arith.constant 0 : i32
    return %arg0, %c0_i32 : i32, i32
  }
}

module attributes {stable_mosaic.version = 11 : i64} {
  func.func @_matmul_bias_kernel(%arg0: i32, %arg1: memref<32x32xbf16, #tpu.memory_space<vmem>>, %arg2: memref<32x8xbf16, #tpu.memory_space<vmem>>, %arg3: memref<1x8xf32, #tpu.memory_space<vmem>>, %arg4: memref<32x8xf32, #tpu.memory_space<vmem>>) attributes {dimension_semantics = [#tpu.dimension_semantics<parallel>], iteration_bounds = array<i64: 1>, scalar_prefetch = 0 : i64, scratch_operands = 0 : i64, tpu.core_type = #tpu.core_type<tc>, window_params = [{transform_indices = @transform_0, window_bounds = array<i64: 32, 32>}, {pipeline_mode = #tpu.pipeline_mode<synchronous>, transform_indices = @transform_1, window_bounds = array<i64: 32, 8>}, {pipeline_mode = #tpu.pipeline_mode<synchronous>, transform_indices = @transform_2, window_bounds = array<i64: 1, 8>}, {transform_indices = @transform_3, window_bounds = array<i64: 32, 8>}]} {
    %c0 = arith.constant 0 : index
    %c0_0 = arith.constant 0 : index
    %0 = vector.load %arg1[%c0, %c0_0] : memref<32x32xbf16, #tpu.memory_space<vmem>>, vector<32x32xbf16>
    %c0_1 = arith.constant 0 : index
    %c0_2 = arith.constant 0 : index
    %1 = vector.load %arg2[%c0_1, %c0_2] : memref<32x8xbf16, #tpu.memory_space<vmem>>, vector<32x8xbf16>
    %cst = arith.constant dense<0.000000e+00> : vector<32x8xf32>
    %2 = tpu.matmul %0, %1, %cst {dimension_numbers = #tpu.dot_dimension_numbers<[1], [0], [0], [1], [0, 0, 1, 1], [], []>} : vector<32x32xbf16>, vector<32x8xbf16>, vector<32x8xf32> -> vector<32x8xf32>
    %c0_3 = arith.constant 0 : index
    %c0_4 = arith.constant 0 : index
    %3 = vector.load %arg3[%c0_3, %c0_4] : memref<1x8xf32, #tpu.memory_space<vmem>>, vector<1x8xf32>
    %4 = vector.broadcast %3 : vector<1x8xf32> to vector<32x8xf32>
    %5 = arith.addf %2, %4 : vector<32x8xf32>
    %c0_5 = arith.constant 0 : index
    %c0_6 = arith.constant 0 : index
    %6 = vector.load %arg4[%c0_5, %c0_6] : memref<32x8xf32, #tpu.memory_space<vmem>>, vector<32x8xf32>
    tpu.vector_store %arg4[%c0_5, %c0_6], %5 {strides = array<i32>} : memref<32x8xf32, #tpu.memory_space<vmem>>, vector<32x8xf32>,
    return
  }
  func.func @transform_0(%arg0: i32) -> (i32, i32) {
    %c0_i32 = arith.constant 0 : i32
    %c0_i32_0 = arith.constant 0 : i32
    return %arg0, %c0_i32 : i32, i32
  }
  func.func @transform_1(%arg0: i32) -> (i32, i32) {
    %c0_i32 = arith.constant 0 : i32
    %c0_i32_0 = arith.constant 0 : i32
    %c0_i32_1 = arith.constant 0 : i32
    return %c0_i32, %c0_i32_0 : i32, i32
  }
  func.func @transform_2(%arg0: i32) -> (i32, i32) {
    %c0_i32 = arith.constant 0 : i32
    %c0_i32_0 = arith.constant 0 : i32
    %c0_i32_1 = arith.constant 0 : i32
    return %c0_i32, %c0_i32_0 : i32, i32
  }
  func.func @transform_3(%arg0: i32) -> (i32, i32) {
    %c0_i32 = arith.constant 0 : i32
    %c0_i32_0 = arith.constant 0 : i32
    return %arg0, %c0_i32 : i32, i32
  }
}

module attributes {stable_mosaic.version = 11 : i64} {
  func.func @_layernorm_kernel(%arg0: i32, %arg1: memref<32x8xf32, #tpu.memory_space<vmem>>, %arg2: memref<1x8xf32, #tpu.memory_space<vmem>>, %arg3: memref<1x8xf32, #tpu.memory_space<vmem>>, %arg4: memref<32x8xf32, #tpu.memory_space<vmem>>) attributes {dimension_semantics = [#tpu.dimension_semantics<parallel>], iteration_bounds = array<i64: 1>, scalar_prefetch = 0 : i64, scratch_operands = 0 : i64, tpu.core_type = #tpu.core_type<tc>, window_params = [{transform_indices = @transform_0, window_bounds = array<i64: 32, 8>}, {pipeline_mode = #tpu.pipeline_mode<synchronous>, transform_indices = @transform_1, window_bounds = array<i64: 1, 8>}, {pipeline_mode = #tpu.pipeline_mode<synchronous>, transform_indices = @transform_2, window_bounds = array<i64: 1, 8>}, {transform_indices = @transform_3, window_bounds = array<i64: 32, 8>}]} {
    %c0 = arith.constant 0 : index
    %c0_0 = arith.constant 0 : index
    %0 = vector.load %arg1[%c0, %c0_0] : memref<32x8xf32, #tpu.memory_space<vmem>>, vector<32x8xf32>
    %cst = arith.constant dense<0.000000e+00> : vector<32xf32>
    %1 = vector.multi_reduction <add>, %0, %cst [1] : vector<32x8xf32> to vector<32xf32>
    %2 = vector.shape_cast %1 : vector<32xf32> to vector<32x1xf32>
    %cst_1 = arith.constant 8.000000e+00 : f32
    %3 = vector.broadcast %cst_1 : f32 to vector<32x1xf32>
    %4 = arith.divf %2, %3 : vector<32x1xf32>
    %5 = vector.broadcast %4 : vector<32x1xf32> to vector<32x8xf32>
    %6 = arith.subf %0, %5 : vector<32x8xf32>
    %7 = vector.broadcast %4 : vector<32x1xf32> to vector<32x8xf32>
    %8 = arith.subf %0, %7 : vector<32x8xf32>
    %9 = arith.mulf %6, %8 : vector<32x8xf32>
    %cst_2 = arith.constant dense<0.000000e+00> : vector<32xf32>
    %10 = vector.multi_reduction <add>, %9, %cst_2 [1] : vector<32x8xf32> to vector<32xf32>
    %11 = vector.shape_cast %10 : vector<32xf32> to vector<32x1xf32>
    %cst_3 = arith.constant 8.000000e+00 : f32
    %12 = vector.broadcast %cst_3 : f32 to vector<32x1xf32>
    %13 = arith.divf %11, %12 : vector<32x1xf32>
    %14 = vector.broadcast %4 : vector<32x1xf32> to vector<32x8xf32>
    %15 = arith.subf %0, %14 : vector<32x8xf32>
    %cst_4 = arith.constant 9.99999997E-7 : f32
    %16 = vector.broadcast %cst_4 : f32 to vector<32x1xf32>
    %17 = arith.addf %13, %16 : vector<32x1xf32>
    %18 = math.rsqrt %17 : vector<32x1xf32>
    %19 = vector.broadcast %18 : vector<32x1xf32> to vector<32x8xf32>
    %20 = arith.mulf %15, %19 : vector<32x8xf32>
    %c0_5 = arith.constant 0 : index
    %c0_6 = arith.constant 0 : index
    %21 = vector.load %arg2[%c0_5, %c0_6] : memref<1x8xf32, #tpu.memory_space<vmem>>, vector<1x8xf32>
    %22 = vector.broadcast %21 : vector<1x8xf32> to vector<32x8xf32>
    %23 = arith.mulf %20, %22 : vector<32x8xf32>
    %c0_7 = arith.constant 0 : index
    %c0_8 = arith.constant 0 : index
    %24 = vector.load %arg3[%c0_7, %c0_8] : memref<1x8xf32, #tpu.memory_space<vmem>>, vector<1x8xf32>
    %25 = vector.broadcast %24 : vector<1x8xf32> to vector<32x8xf32>
    %26 = arith.addf %23, %25 : vector<32x8xf32>
    %c0_9 = arith.constant 0 : index
    %c0_10 = arith.constant 0 : index
    %27 = vector.load %arg4[%c0_9, %c0_10] : memref<32x8xf32, #tpu.memory_space<vmem>>, vector<32x8xf32>
    tpu.vector_store %arg4[%c0_9, %c0_10], %26 {strides = array<i32>} : memref<32x8xf32, #tpu.memory_space<vmem>>, vector<32x8xf32>,
    return
  }
  func.func @transform_0(%arg0: i32) -> (i32, i32) {
    %c0_i32 = arith.constant 0 : i32
    %c0_i32_0 = arith.constant 0 : i32
    return %arg0, %c0_i32 : i32, i32
  }
  func.func @transform_1(%arg0: i32) -> (i32, i32) {
    %c0_i32 = arith.constant 0 : i32
    %c0_i32_0 = arith.constant 0 : i32
    %c0_i32_1 = arith.constant 0 : i32
    return %c0_i32, %c0_i32_0 : i32, i32
  }
  func.func @transform_2(%arg0: i32) -> (i32, i32) {
    %c0_i32 = arith.constant 0 : i32
    %c0_i32_0 = arith.constant 0 : i32
    %c0_i32_1 = arith.constant 0 : i32
    return %c0_i32, %c0_i32_0 : i32, i32
  }
  func.func @transform_3(%arg0: i32) -> (i32, i32) {
    %c0_i32 = arith.constant 0 : i32
    %c0_i32_0 = arith.constant 0 : i32
    return %arg0, %c0_i32 : i32, i32
  }
}

module attributes {stable_mosaic.version = 11 : i64} {
  func.func @_matmul_bias_kernel(%arg0: i32, %arg1: memref<32x216xbf16, #tpu.memory_space<vmem>>, %arg2: memref<216x24xbf16, #tpu.memory_space<vmem>>, %arg3: memref<1x24xf32, #tpu.memory_space<vmem>>, %arg4: memref<32x24xf32, #tpu.memory_space<vmem>>) attributes {dimension_semantics = [#tpu.dimension_semantics<parallel>], iteration_bounds = array<i64: 1>, scalar_prefetch = 0 : i64, scratch_operands = 0 : i64, tpu.core_type = #tpu.core_type<tc>, window_params = [{transform_indices = @transform_0, window_bounds = array<i64: 32, 216>}, {pipeline_mode = #tpu.pipeline_mode<synchronous>, transform_indices = @transform_1, window_bounds = array<i64: 216, 24>}, {pipeline_mode = #tpu.pipeline_mode<synchronous>, transform_indices = @transform_2, window_bounds = array<i64: 1, 24>}, {transform_indices = @transform_3, window_bounds = array<i64: 32, 24>}]} {
    %c0 = arith.constant 0 : index
    %c0_0 = arith.constant 0 : index
    %0 = vector.load %arg1[%c0, %c0_0] : memref<32x216xbf16, #tpu.memory_space<vmem>>, vector<32x216xbf16>
    %c0_1 = arith.constant 0 : index
    %c0_2 = arith.constant 0 : index
    %1 = vector.load %arg2[%c0_1, %c0_2] : memref<216x24xbf16, #tpu.memory_space<vmem>>, vector<216x24xbf16>
    %cst = arith.constant dense<0.000000e+00> : vector<32x24xf32>
    %2 = tpu.matmul %0, %1, %cst {dimension_numbers = #tpu.dot_dimension_numbers<[1], [0], [0], [1], [0, 0, 1, 1], [], []>} : vector<32x216xbf16>, vector<216x24xbf16>, vector<32x24xf32> -> vector<32x24xf32>
    %c0_3 = arith.constant 0 : index
    %c0_4 = arith.constant 0 : index
    %3 = vector.load %arg3[%c0_3, %c0_4] : memref<1x24xf32, #tpu.memory_space<vmem>>, vector<1x24xf32>
    %4 = vector.broadcast %3 : vector<1x24xf32> to vector<32x24xf32>
    %5 = arith.addf %2, %4 : vector<32x24xf32>
    %c0_5 = arith.constant 0 : index
    %c0_6 = arith.constant 0 : index
    %6 = vector.load %arg4[%c0_5, %c0_6] : memref<32x24xf32, #tpu.memory_space<vmem>>, vector<32x24xf32>
    tpu.vector_store %arg4[%c0_5, %c0_6], %5 {strides = array<i32>} : memref<32x24xf32, #tpu.memory_space<vmem>>, vector<32x24xf32>,
    return
  }
  func.func @transform_0(%arg0: i32) -> (i32, i32) {
    %c0_i32 = arith.constant 0 : i32
    %c0_i32_0 = arith.constant 0 : i32
    return %arg0, %c0_i32 : i32, i32
  }
  func.func @transform_1(%arg0: i32) -> (i32, i32) {
    %c0_i32 = arith.constant 0 : i32
    %c0_i32_0 = arith.constant 0 : i32
    %c0_i32_1 = arith.constant 0 : i32
    return %c0_i32, %c0_i32_0 : i32, i32
  }
  func.func @transform_2(%arg0: i32) -> (i32, i32) {
    %c0_i32 = arith.constant 0 : i32
    %c0_i32_0 = arith.constant 0 : i32
    %c0_i32_1 = arith.constant 0 : i32
    return %c0_i32, %c0_i32_0 : i32, i32
  }
  func.func @transform_3(%arg0: i32) -> (i32, i32) {
    %c0_i32 = arith.constant 0 : i32
    %c0_i32_0 = arith.constant 0 : i32
    return %arg0, %c0_i32 : i32, i32
  }
}

module attributes {stable_mosaic.version = 11 : i64} {
  func.func @_attention_kernel(%arg0: i32, %arg1: memref<2x32x4xf32, #tpu.memory_space<vmem>>, %arg2: memref<2x32x4xf32, #tpu.memory_space<vmem>>, %arg3: memref<2x32x4xf32, #tpu.memory_space<vmem>>, %arg4: memref<2x32x4xf32, #tpu.memory_space<vmem>>) attributes {dimension_semantics = [#tpu.dimension_semantics<parallel>], iteration_bounds = array<i64: 1>, scalar_prefetch = 0 : i64, scratch_operands = 0 : i64, tpu.core_type = #tpu.core_type<tc>, window_params = [{pipeline_mode = #tpu.pipeline_mode<synchronous>, transform_indices = @transform_0, window_bounds = array<i64: 2, 32, 4>}, {pipeline_mode = #tpu.pipeline_mode<synchronous>, transform_indices = @transform_1, window_bounds = array<i64: 2, 32, 4>}, {pipeline_mode = #tpu.pipeline_mode<synchronous>, transform_indices = @transform_2, window_bounds = array<i64: 2, 32, 4>}, {pipeline_mode = #tpu.pipeline_mode<synchronous>, transform_indices = @transform_3, window_bounds = array<i64: 2, 32, 4>}]} {
    %c0 = arith.constant 0 : index
    %c0_0 = arith.constant 0 : index
    %c0_1 = arith.constant 0 : index
    %0 = vector.load %arg1[%c0, %c0_0, %c0_1] : memref<2x32x4xf32, #tpu.memory_space<vmem>>, vector<1x32x4xf32>
    %1 = vector.shape_cast %0 : vector<1x32x4xf32> to vector<32x4xf32>
    %c0_2 = arith.constant 0 : index
    %c0_3 = arith.constant 0 : index
    %c0_4 = arith.constant 0 : index
    %2 = vector.load %arg2[%c0_2, %c0_3, %c0_4] : memref<2x32x4xf32, #tpu.memory_space<vmem>>, vector<1x32x4xf32>
    %3 = vector.shape_cast %2 : vector<1x32x4xf32> to vector<32x4xf32>
    %c0_5 = arith.constant 0 : index
    %c0_6 = arith.constant 0 : index
    %c0_7 = arith.constant 0 : index
    %4 = vector.load %arg3[%c0_5, %c0_6, %c0_7] : memref<2x32x4xf32, #tpu.memory_space<vmem>>, vector<1x32x4xf32>
    %5 = vector.shape_cast %4 : vector<1x32x4xf32> to vector<32x4xf32>
    %6 = tpu.transpose %3, [1, 0] : vector<32x4xf32> -> vector<4x32xf32>
    %cst = arith.constant dense<0.000000e+00> : vector<32x32xf32>
    %7 = tpu.matmul %1, %6, %cst {dimension_numbers = #tpu.dot_dimension_numbers<[1], [0], [0], [1], [0, 0, 1, 1], [], []>} : vector<32x4xf32>, vector<4x32xf32>, vector<32x32xf32> -> vector<32x32xf32>
    %cst_8 = arith.constant 5.000000e-01 : f32
    %8 = vector.broadcast %cst_8 : f32 to vector<32x32xf32>
    %9 = arith.mulf %7, %8 : vector<32x32xf32>
    %cst_9 = arith.constant dense<0xFF800000> : vector<32xf32>
    %10 = vector.multi_reduction <maximumf>, %9, %cst_9 [1] : vector<32x32xf32> to vector<32xf32>
    %11 = vector.shape_cast %10 : vector<32xf32> to vector<32x1xf32>
    %12 = vector.broadcast %11 : vector<32x1xf32> to vector<32x32xf32>
    %13 = arith.subf %9, %12 : vector<32x32xf32>
    %14 = math.exp %13 : vector<32x32xf32>
    %cst_10 = arith.constant dense<0.000000e+00> : vector<32xf32>
    %15 = vector.multi_reduction <add>, %14, %cst_10 [1] : vector<32x32xf32> to vector<32xf32>
    %16 = vector.shape_cast %15 : vector<32xf32> to vector<32x1xf32>
    %17 = tpu.reciprocal %16 {approx = true} : vector<32x1xf32> -> vector<32x1xf32>
    %18 = vector.broadcast %17 : vector<32x1xf32> to vector<32x32xf32>
    %19 = arith.mulf %14, %18 : vector<32x32xf32>
    %cst_11 = arith.constant dense<0.000000e+00> : vector<32x4xf32>
    %20 = tpu.matmul %19, %5, %cst_11 {dimension_numbers = #tpu.dot_dimension_numbers<[1], [0], [0], [1], [0, 0, 1, 1], [], []>} : vector<32x32xf32>, vector<32x4xf32>, vector<32x4xf32> -> vector<32x4xf32>
    %c0_12 = arith.constant 0 : index
    %c0_13 = arith.constant 0 : index
    %c0_14 = arith.constant 0 : index
    %21 = vector.load %arg4[%c0_12, %c0_13, %c0_14] : memref<2x32x4xf32, #tpu.memory_space<vmem>>, vector<1x32x4xf32>
    %22 = vector.shape_cast %21 : vector<1x32x4xf32> to vector<32x4xf32>
    %23 = vector.shape_cast %20 : vector<32x4xf32> to vector<1x32x4xf32>
    tpu.vector_store %arg4[%c0_12, %c0_13, %c0_14], %23 {strides = array<i32>} : memref<2x32x4xf32, #tpu.memory_space<vmem>>, vector<1x32x4xf32>,
    %c1 = arith.constant 1 : index
    %c0_15 = arith.constant 0 : index
    %c0_16 = arith.constant 0 : index
    %24 = vector.load %arg1[%c1, %c0_15, %c0_16] : memref<2x32x4xf32, #tpu.memory_space<vmem>>, vector<1x32x4xf32>
    %25 = vector.shape_cast %24 : vector<1x32x4xf32> to vector<32x4xf32>
    %c1_17 = arith.constant 1 : index
    %c0_18 = arith.constant 0 : index
    %c0_19 = arith.constant 0 : index
    %26 = vector.load %arg2[%c1_17, %c0_18, %c0_19] : memref<2x32x4xf32, #tpu.memory_space<vmem>>, vector<1x32x4xf32>
    %27 = vector.shape_cast %26 : vector<1x32x4xf32> to vector<32x4xf32>
    %c1_20 = arith.constant 1 : index
    %c0_21 = arith.constant 0 : index
    %c0_22 = arith.constant 0 : index
    %28 = vector.load %arg3[%c1_20, %c0_21, %c0_22] : memref<2x32x4xf32, #tpu.memory_space<vmem>>, vector<1x32x4xf32>
    %29 = vector.shape_cast %28 : vector<1x32x4xf32> to vector<32x4xf32>
    %30 = tpu.transpose %27, [1, 0] : vector<32x4xf32> -> vector<4x32xf32>
    %cst_23 = arith.constant dense<0.000000e+00> : vector<32x32xf32>
    %31 = tpu.matmul %25, %30, %cst_23 {dimension_numbers = #tpu.dot_dimension_numbers<[1], [0], [0], [1], [0, 0, 1, 1], [], []>} : vector<32x4xf32>, vector<4x32xf32>, vector<32x32xf32> -> vector<32x32xf32>
    %cst_24 = arith.constant 5.000000e-01 : f32
    %32 = vector.broadcast %cst_24 : f32 to vector<32x32xf32>
    %33 = arith.mulf %31, %32 : vector<32x32xf32>
    %cst_25 = arith.constant dense<0xFF800000> : vector<32xf32>
    %34 = vector.multi_reduction <maximumf>, %33, %cst_25 [1] : vector<32x32xf32> to vector<32xf32>
    %35 = vector.shape_cast %34 : vector<32xf32> to vector<32x1xf32>
    %36 = vector.broadcast %35 : vector<32x1xf32> to vector<32x32xf32>
    %37 = arith.subf %33, %36 : vector<32x32xf32>
    %38 = math.exp %37 : vector<32x32xf32>
    %cst_26 = arith.constant dense<0.000000e+00> : vector<32xf32>
    %39 = vector.multi_reduction <add>, %38, %cst_26 [1] : vector<32x32xf32> to vector<32xf32>
    %40 = vector.shape_cast %39 : vector<32xf32> to vector<32x1xf32>
    %41 = tpu.reciprocal %40 {approx = true} : vector<32x1xf32> -> vector<32x1xf32>
    %42 = vector.broadcast %41 : vector<32x1xf32> to vector<32x32xf32>
    %43 = arith.mulf %38, %42 : vector<32x32xf32>
    %cst_27 = arith.constant dense<0.000000e+00> : vector<32x4xf32>
    %44 = tpu.matmul %43, %29, %cst_27 {dimension_numbers = #tpu.dot_dimension_numbers<[1], [0], [0], [1], [0, 0, 1, 1], [], []>} : vector<32x32xf32>, vector<32x4xf32>, vector<32x4xf32> -> vector<32x4xf32>
    %c1_28 = arith.constant 1 : index
    %c0_29 = arith.constant 0 : index
    %c0_30 = arith.constant 0 : index
    %45 = vector.load %arg4[%c1_28, %c0_29, %c0_30] : memref<2x32x4xf32, #tpu.memory_space<vmem>>, vector<1x32x4xf32>
    %46 = vector.shape_cast %45 : vector<1x32x4xf32> to vector<32x4xf32>
    %47 = vector.shape_cast %44 : vector<32x4xf32> to vector<1x32x4xf32>
    tpu.vector_store %arg4[%c1_28, %c0_29, %c0_30], %47 {strides = array<i32>} : memref<2x32x4xf32, #tpu.memory_space<vmem>>, vector<1x32x4xf32>,
    return
  }
  func.func @transform_0(%arg0: i32) -> (i32, i32, i32) {
    %c0_i32 = arith.constant 0 : i32
    %c0_i32_0 = arith.constant 0 : i32
    %c0_i32_1 = arith.constant 0 : i32
    %c0_i32_2 = arith.constant 0 : i32
    return %c0_i32, %c0_i32_0, %c0_i32_1 : i32, i32, i32
  }
  func.func @transform_1(%arg0: i32) -> (i32, i32, i32) {
    %c0_i32 = arith.constant 0 : i32
    %c0_i32_0 = arith.constant 0 : i32
    %c0_i32_1 = arith.constant 0 : i32
    %c0_i32_2 = arith.constant 0 : i32
    return %c0_i32, %c0_i32_0, %c0_i32_1 : i32, i32, i32
  }
  func.func @transform_2(%arg0: i32) -> (i32, i32, i32) {
    %c0_i32 = arith.constant 0 : i32
    %c0_i32_0 = arith.constant 0 : i32
    %c0_i32_1 = arith.constant 0 : i32
    %c0_i32_2 = arith.constant 0 : i32
    return %c0_i32, %c0_i32_0, %c0_i32_1 : i32, i32, i32
  }
  func.func @transform_3(%arg0: i32) -> (i32, i32, i32) {
    %c0_i32 = arith.constant 0 : i32
    %c0_i32_0 = arith.constant 0 : i32
    %c0_i32_1 = arith.constant 0 : i32
    %c0_i32_2 = arith.constant 0 : i32
    return %c0_i32, %c0_i32_0, %c0_i32_1 : i32, i32, i32
  }
}

module attributes {stable_mosaic.version = 11 : i64} {
  func.func @_matmul_bias_kernel(%arg0: i32, %arg1: memref<32x8xbf16, #tpu.memory_space<vmem>>, %arg2: memref<8x8xbf16, #tpu.memory_space<vmem>>, %arg3: memref<1x8xf32, #tpu.memory_space<vmem>>, %arg4: memref<32x8xf32, #tpu.memory_space<vmem>>) attributes {dimension_semantics = [#tpu.dimension_semantics<parallel>], iteration_bounds = array<i64: 1>, scalar_prefetch = 0 : i64, scratch_operands = 0 : i64, tpu.core_type = #tpu.core_type<tc>, window_params = [{transform_indices = @transform_0, window_bounds = array<i64: 32, 8>}, {pipeline_mode = #tpu.pipeline_mode<synchronous>, transform_indices = @transform_1, window_bounds = array<i64: 8, 8>}, {pipeline_mode = #tpu.pipeline_mode<synchronous>, transform_indices = @transform_2, window_bounds = array<i64: 1, 8>}, {transform_indices = @transform_3, window_bounds = array<i64: 32, 8>}]} {
    %c0 = arith.constant 0 : index
    %c0_0 = arith.constant 0 : index
    %0 = vector.load %arg1[%c0, %c0_0] : memref<32x8xbf16, #tpu.memory_space<vmem>>, vector<32x8xbf16>
    %c0_1 = arith.constant 0 : index
    %c0_2 = arith.constant 0 : index
    %1 = vector.load %arg2[%c0_1, %c0_2] : memref<8x8xbf16, #tpu.memory_space<vmem>>, vector<8x8xbf16>
    %cst = arith.constant dense<0.000000e+00> : vector<32x8xf32>
    %2 = tpu.matmul %0, %1, %cst {dimension_numbers = #tpu.dot_dimension_numbers<[1], [0], [0], [1], [0, 0, 1, 1], [], []>} : vector<32x8xbf16>, vector<8x8xbf16>, vector<32x8xf32> -> vector<32x8xf32>
    %c0_3 = arith.constant 0 : index
    %c0_4 = arith.constant 0 : index
    %3 = vector.load %arg3[%c0_3, %c0_4] : memref<1x8xf32, #tpu.memory_space<vmem>>, vector<1x8xf32>
    %4 = vector.broadcast %3 : vector<1x8xf32> to vector<32x8xf32>
    %5 = arith.addf %2, %4 : vector<32x8xf32>
    %c0_5 = arith.constant 0 : index
    %c0_6 = arith.constant 0 : index
    %6 = vector.load %arg4[%c0_5, %c0_6] : memref<32x8xf32, #tpu.memory_space<vmem>>, vector<32x8xf32>
    tpu.vector_store %arg4[%c0_5, %c0_6], %5 {strides = array<i32>} : memref<32x8xf32, #tpu.memory_space<vmem>>, vector<32x8xf32>,
    return
  }
  func.func @transform_0(%arg0: i32) -> (i32, i32) {
    %c0_i32 = arith.constant 0 : i32
    %c0_i32_0 = arith.constant 0 : i32
    return %arg0, %c0_i32 : i32, i32
  }
  func.func @transform_1(%arg0: i32) -> (i32, i32) {
    %c0_i32 = arith.constant 0 : i32
    %c0_i32_0 = arith.constant 0 : i32
    %c0_i32_1 = arith.constant 0 : i32
    return %c0_i32, %c0_i32_0 : i32, i32
  }
  func.func @transform_2(%arg0: i32) -> (i32, i32) {
    %c0_i32 = arith.constant 0 : i32
    %c0_i32_0 = arith.constant 0 : i32
    %c0_i32_1 = arith.constant 0 : i32
    return %c0_i32, %c0_i32_0 : i32, i32
  }
  func.func @transform_3(%arg0: i32) -> (i32, i32) {
    %c0_i32 = arith.constant 0 : i32
    %c0_i32_0 = arith.constant 0 : i32
    return %arg0, %c0_i32 : i32, i32
  }
}

module attributes {stable_mosaic.version = 11 : i64} {
  func.func @_matmul_bias_kernel(%arg0: i32, %arg1: memref<32x8xbf16, #tpu.memory_space<vmem>>, %arg2: memref<8x16xbf16, #tpu.memory_space<vmem>>, %arg3: memref<1x16xf32, #tpu.memory_space<vmem>>, %arg4: memref<32x16xf32, #tpu.memory_space<vmem>>) attributes {dimension_semantics = [#tpu.dimension_semantics<parallel>], iteration_bounds = array<i64: 1>, scalar_prefetch = 0 : i64, scratch_operands = 0 : i64, tpu.core_type = #tpu.core_type<tc>, window_params = [{transform_indices = @transform_0, window_bounds = array<i64: 32, 8>}, {pipeline_mode = #tpu.pipeline_mode<synchronous>, transform_indices = @transform_1, window_bounds = array<i64: 8, 16>}, {pipeline_mode = #tpu.pipeline_mode<synchronous>, transform_indices = @transform_2, window_bounds = array<i64: 1, 16>}, {transform_indices = @transform_3, window_bounds = array<i64: 32, 16>}]} {
    %c0 = arith.constant 0 : index
    %c0_0 = arith.constant 0 : index
    %0 = vector.load %arg1[%c0, %c0_0] : memref<32x8xbf16, #tpu.memory_space<vmem>>, vector<32x8xbf16>
    %c0_1 = arith.constant 0 : index
    %c0_2 = arith.constant 0 : index
    %1 = vector.load %arg2[%c0_1, %c0_2] : memref<8x16xbf16, #tpu.memory_space<vmem>>, vector<8x16xbf16>
    %cst = arith.constant dense<0.000000e+00> : vector<32x16xf32>
    %2 = tpu.matmul %0, %1, %cst {dimension_numbers = #tpu.dot_dimension_numbers<[1], [0], [0], [1], [0, 0, 1, 1], [], []>} : vector<32x8xbf16>, vector<8x16xbf16>, vector<32x16xf32> -> vector<32x16xf32>
    %c0_3 = arith.constant 0 : index
    %c0_4 = arith.constant 0 : index
    %3 = vector.load %arg3[%c0_3, %c0_4] : memref<1x16xf32, #tpu.memory_space<vmem>>, vector<1x16xf32>
    %4 = vector.broadcast %3 : vector<1x16xf32> to vector<32x16xf32>
    %5 = arith.addf %2, %4 : vector<32x16xf32>
    %c0_5 = arith.constant 0 : index
    %c0_6 = arith.constant 0 : index
    %6 = vector.load %arg4[%c0_5, %c0_6] : memref<32x16xf32, #tpu.memory_space<vmem>>, vector<32x16xf32>
    tpu.vector_store %arg4[%c0_5, %c0_6], %5 {strides = array<i32>} : memref<32x16xf32, #tpu.memory_space<vmem>>, vector<32x16xf32>,
    return
  }
  func.func @transform_0(%arg0: i32) -> (i32, i32) {
    %c0_i32 = arith.constant 0 : i32
    %c0_i32_0 = arith.constant 0 : i32
    return %arg0, %c0_i32 : i32, i32
  }
  func.func @transform_1(%arg0: i32) -> (i32, i32) {
    %c0_i32 = arith.constant 0 : i32
    %c0_i32_0 = arith.constant 0 : i32
    %c0_i32_1 = arith.constant 0 : i32
    return %c0_i32, %c0_i32_0 : i32, i32
  }
  func.func @transform_2(%arg0: i32) -> (i32, i32) {
    %c0_i32 = arith.constant 0 : i32
    %c0_i32_0 = arith.constant 0 : i32
    %c0_i32_1 = arith.constant 0 : i32
    return %c0_i32, %c0_i32_0 : i32, i32
  }
  func.func @transform_3(%arg0: i32) -> (i32, i32) {
    %c0_i32 = arith.constant 0 : i32
    %c0_i32_0 = arith.constant 0 : i32
    return %arg0, %c0_i32 : i32, i32
  }
}

module attributes {stable_mosaic.version = 11 : i64} {
  func.func @_scale_shift_act_kernel(%arg0: i32, %arg1: memref<4x128xf32, #tpu.memory_space<vmem>>, %arg2: memref<1x128xf32, #tpu.memory_space<vmem>>, %arg3: memref<1x128xf32, #tpu.memory_space<vmem>>, %arg4: memref<4x128xf32, #tpu.memory_space<vmem>>) attributes {dimension_semantics = [#tpu.dimension_semantics<parallel>], iteration_bounds = array<i64: 1>, scalar_prefetch = 0 : i64, scratch_operands = 0 : i64, tpu.core_type = #tpu.core_type<tc>, window_params = [{transform_indices = @transform_0, window_bounds = array<i64: 4, 128>}, {pipeline_mode = #tpu.pipeline_mode<synchronous>, transform_indices = @transform_1, window_bounds = array<i64: 1, 128>}, {pipeline_mode = #tpu.pipeline_mode<synchronous>, transform_indices = @transform_2, window_bounds = array<i64: 1, 128>}, {transform_indices = @transform_3, window_bounds = array<i64: 4, 128>}]} {
    %c0 = arith.constant 0 : index
    %c0_0 = arith.constant 0 : index
    %0 = vector.load %arg1[%c0, %c0_0] : memref<4x128xf32, #tpu.memory_space<vmem>>, vector<4x128xf32>
    %c0_1 = arith.constant 0 : index
    %c0_2 = arith.constant 0 : index
    %1 = vector.load %arg2[%c0_1, %c0_2] : memref<1x128xf32, #tpu.memory_space<vmem>>, vector<1x128xf32>
    %2 = vector.broadcast %1 : vector<1x128xf32> to vector<4x128xf32>
    %3 = arith.mulf %0, %2 : vector<4x128xf32>
    %c0_3 = arith.constant 0 : index
    %c0_4 = arith.constant 0 : index
    %4 = vector.load %arg3[%c0_3, %c0_4] : memref<1x128xf32, #tpu.memory_space<vmem>>, vector<1x128xf32>
    %5 = vector.broadcast %4 : vector<1x128xf32> to vector<4x128xf32>
    %6 = arith.addf %3, %5 : vector<4x128xf32>
    %cst = arith.constant 0.000000e+00 : f32
    %7 = vector.broadcast %cst : f32 to vector<4x128xf32>
    %8 = arith.cmpf ogt, %6, %7 : vector<4x128xf32>
    %cst_5 = arith.constant 0.000000e+00 : f32
    %9 = vector.broadcast %cst_5 : f32 to vector<4x128xf32>
    %10 = arith.minimumf %6, %9 : vector<4x128xf32>
    %11 = math.exp %10 : vector<4x128xf32>
    %cst_6 = arith.constant 1.000000e+00 : f32
    %12 = vector.broadcast %cst_6 : f32 to vector<4x128xf32>
    %13 = arith.subf %11, %12 : vector<4x128xf32>
    %14 = arith.select %8, %6, %13 : vector<4x128xi1>, vector<4x128xf32>
    %c0_7 = arith.constant 0 : index
    %c0_8 = arith.constant 0 : index
    %15 = vector.load %arg4[%c0_7, %c0_8] : memref<4x128xf32, #tpu.memory_space<vmem>>, vector<4x128xf32>
    tpu.vector_store %arg4[%c0_7, %c0_8], %14 {strides = array<i32>} : memref<4x128xf32, #tpu.memory_space<vmem>>, vector<4x128xf32>,
    return
  }
  func.func @transform_0(%arg0: i32) -> (i32, i32) {
    %c0_i32 = arith.constant 0 : i32
    %c0_i32_0 = arith.constant 0 : i32
    return %arg0, %c0_i32 : i32, i32
  }
  func.func @transform_1(%arg0: i32) -> (i32, i32) {
    %c0_i32 = arith.constant 0 : i32
    %c0_i32_0 = arith.constant 0 : i32
    %c0_i32_1 = arith.constant 0 : i32
    return %c0_i32, %c0_i32_0 : i32, i32
  }
  func.func @transform_2(%arg0: i32) -> (i32, i32) {
    %c0_i32 = arith.constant 0 : i32
    %c0_i32_0 = arith.constant 0 : i32
    %c0_i32_1 = arith.constant 0 : i32
    return %c0_i32, %c0_i32_0 : i32, i32
  }
  func.func @transform_3(%arg0: i32) -> (i32, i32) {
    %c0_i32 = arith.constant 0 : i32
    %c0_i32_0 = arith.constant 0 : i32
    return %arg0, %c0_i32 : i32, i32
  }
}

module attributes {stable_mosaic.version = 11 : i64} {
  func.func @_depthwise_kernel(%arg0: i32, %arg1: memref<27x4x128xf32, #tpu.memory_space<vmem>>, %arg2: memref<27x1x128xf32, #tpu.memory_space<vmem>>, %arg3: memref<4x128xf32, #tpu.memory_space<vmem>>) attributes {dimension_semantics = [#tpu.dimension_semantics<parallel>], iteration_bounds = array<i64: 1>, scalar_prefetch = 0 : i64, scratch_operands = 0 : i64, tpu.core_type = #tpu.core_type<tc>, window_params = [{transform_indices = @transform_0, window_bounds = array<i64: 27, 4, 128>}, {pipeline_mode = #tpu.pipeline_mode<synchronous>, transform_indices = @transform_1, window_bounds = array<i64: 27, 1, 128>}, {transform_indices = @transform_2, window_bounds = array<i64: 4, 128>}]} {
    %c0 = arith.constant 0 : index
    %c0_0 = arith.constant 0 : index
    %c0_1 = arith.constant 0 : index
    %0 = vector.load %arg1[%c0, %c0_0, %c0_1] : memref<27x4x128xf32, #tpu.memory_space<vmem>>, vector<1x4x128xf32>
    %1 = vector.shape_cast %0 : vector<1x4x128xf32> to vector<4x128xf32>
    %c0_2 = arith.constant 0 : index
    %c0_3 = arith.constant 0 : index
    %c0_4 = arith.constant 0 : index
    %2 = vector.load %arg2[%c0_2, %c0_3, %c0_4] : memref<27x1x128xf32, #tpu.memory_space<vmem>>, vector<1x1x128xf32>
    %3 = vector.shape_cast %2 : vector<1x1x128xf32> to vector<1x128xf32>
    %4 = vector.broadcast %3 : vector<1x128xf32> to vector<4x128xf32>
    %5 = arith.mulf %1, %4 : vector<4x128xf32>
    %c1 = arith.constant 1 : index
    %c0_5 = arith.constant 0 : index
    %c0_6 = arith.constant 0 : index
    %6 = vector.load %arg1[%c1, %c0_5, %c0_6] : memref<27x4x128xf32, #tpu.memory_space<vmem>>, vector<1x4x128xf32>
    %7 = vector.shape_cast %6 : vector<1x4x128xf32> to vector<4x128xf32>
    %c1_7 = arith.constant 1 : index
    %c0_8 = arith.constant 0 : index
    %c0_9 = arith.constant 0 : index
    %8 = vector.load %arg2[%c1_7, %c0_8, %c0_9] : memref<27x1x128xf32, #tpu.memory_space<vmem>>, vector<1x1x128xf32>
    %9 = vector.shape_cast %8 : vector<1x1x128xf32> to vector<1x128xf32>
    %10 = vector.broadcast %9 : vector<1x128xf32> to vector<4x128xf32>
    %11 = arith.mulf %7, %10 : vector<4x128xf32>
    %12 = arith.addf %5, %11 : vector<4x128xf32>
    %c2 = arith.constant 2 : index
    %c0_10 = arith.constant 0 : index
    %c0_11 = arith.constant 0 : index
    %13 = vector.load %arg1[%c2, %c0_10, %c0_11] : memref<27x4x128xf32, #tpu.memory_space<vmem>>, vector<1x4x128xf32>
    %14 = vector.shape_cast %13 : vector<1x4x128xf32> to vector<4x128xf32>
    %c2_12 = arith.constant 2 : index
    %c0_13 = arith.constant 0 : index
    %c0_14 = arith.constant 0 : index
    %15 = vector.load %arg2[%c2_12, %c0_13, %c0_14] : memref<27x1x128xf32, #tpu.memory_space<vmem>>, vector<1x1x128xf32>
    %16 = vector.shape_cast %15 : vector<1x1x128xf32> to vector<1x128xf32>
    %17 = vector.broadcast %16 : vector<1x128xf32> to vector<4x128xf32>
    %18 = arith.mulf %14, %17 : vector<4x128xf32>
    %19 = arith.addf %12, %18 : vector<4x128xf32>
    %c3 = arith.constant 3 : index
    %c0_15 = arith.constant 0 : index
    %c0_16 = arith.constant 0 : index
    %20 = vector.load %arg1[%c3, %c0_15, %c0_16] : memref<27x4x128xf32, #tpu.memory_space<vmem>>, vector<1x4x128xf32>
    %21 = vector.shape_cast %20 : vector<1x4x128xf32> to vector<4x128xf32>
    %c3_17 = arith.constant 3 : index
    %c0_18 = arith.constant 0 : index
    %c0_19 = arith.constant 0 : index
    %22 = vector.load %arg2[%c3_17, %c0_18, %c0_19] : memref<27x1x128xf32, #tpu.memory_space<vmem>>, vector<1x1x128xf32>
    %23 = vector.shape_cast %22 : vector<1x1x128xf32> to vector<1x128xf32>
    %24 = vector.broadcast %23 : vector<1x128xf32> to vector<4x128xf32>
    %25 = arith.mulf %21, %24 : vector<4x128xf32>
    %26 = arith.addf %19, %25 : vector<4x128xf32>
    %c4 = arith.constant 4 : index
    %c0_20 = arith.constant 0 : index
    %c0_21 = arith.constant 0 : index
    %27 = vector.load %arg1[%c4, %c0_20, %c0_21] : memref<27x4x128xf32, #tpu.memory_space<vmem>>, vector<1x4x128xf32>
    %28 = vector.shape_cast %27 : vector<1x4x128xf32> to vector<4x128xf32>
    %c4_22 = arith.constant 4 : index
    %c0_23 = arith.constant 0 : index
    %c0_24 = arith.constant 0 : index
    %29 = vector.load %arg2[%c4_22, %c0_23, %c0_24] : memref<27x1x128xf32, #tpu.memory_space<vmem>>, vector<1x1x128xf32>
    %30 = vector.shape_cast %29 : vector<1x1x128xf32> to vector<1x128xf32>
    %31 = vector.broadcast %30 : vector<1x128xf32> to vector<4x128xf32>
    %32 = arith.mulf %28, %31 : vector<4x128xf32>
    %33 = arith.addf %26, %32 : vector<4x128xf32>
    %c5 = arith.constant 5 : index
    %c0_25 = arith.constant 0 : index
    %c0_26 = arith.constant 0 : index
    %34 = vector.load %arg1[%c5, %c0_25, %c0_26] : memref<27x4x128xf32, #tpu.memory_space<vmem>>, vector<1x4x128xf32>
    %35 = vector.shape_cast %34 : vector<1x4x128xf32> to vector<4x128xf32>
    %c5_27 = arith.constant 5 : index
    %c0_28 = arith.constant 0 : index
    %c0_29 = arith.constant 0 : index
    %36 = vector.load %arg2[%c5_27, %c0_28, %c0_29] : memref<27x1x128xf32, #tpu.memory_space<vmem>>, vector<1x1x128xf32>
    %37 = vector.shape_cast %36 : vector<1x1x128xf32> to vector<1x128xf32>
    %38 = vector.broadcast %37 : vector<1x128xf32> to vector<4x128xf32>
    %39 = arith.mulf %35, %38 : vector<4x128xf32>
    %40 = arith.addf %33, %39 : vector<4x128xf32>
    %c6 = arith.constant 6 : index
    %c0_30 = arith.constant 0 : index
    %c0_31 = arith.constant 0 : index
    %41 = vector.load %arg1[%c6, %c0_30, %c0_31] : memref<27x4x128xf32, #tpu.memory_space<vmem>>, vector<1x4x128xf32>
    %42 = vector.shape_cast %41 : vector<1x4x128xf32> to vector<4x128xf32>
    %c6_32 = arith.constant 6 : index
    %c0_33 = arith.constant 0 : index
    %c0_34 = arith.constant 0 : index
    %43 = vector.load %arg2[%c6_32, %c0_33, %c0_34] : memref<27x1x128xf32, #tpu.memory_space<vmem>>, vector<1x1x128xf32>
    %44 = vector.shape_cast %43 : vector<1x1x128xf32> to vector<1x128xf32>
    %45 = vector.broadcast %44 : vector<1x128xf32> to vector<4x128xf32>
    %46 = arith.mulf %42, %45 : vector<4x128xf32>
    %47 = arith.addf %40, %46 : vector<4x128xf32>
    %c7 = arith.constant 7 : index
    %c0_35 = arith.constant 0 : index
    %c0_36 = arith.constant 0 : index
    %48 = vector.load %arg1[%c7, %c0_35, %c0_36] : memref<27x4x128xf32, #tpu.memory_space<vmem>>, vector<1x4x128xf32>
    %49 = vector.shape_cast %48 : vector<1x4x128xf32> to vector<4x128xf32>
    %c7_37 = arith.constant 7 : index
    %c0_38 = arith.constant 0 : index
    %c0_39 = arith.constant 0 : index
    %50 = vector.load %arg2[%c7_37, %c0_38, %c0_39] : memref<27x1x128xf32, #tpu.memory_space<vmem>>, vector<1x1x128xf32>
    %51 = vector.shape_cast %50 : vector<1x1x128xf32> to vector<1x128xf32>
    %52 = vector.broadcast %51 : vector<1x128xf32> to vector<4x128xf32>
    %53 = arith.mulf %49, %52 : vector<4x128xf32>
    %54 = arith.addf %47, %53 : vector<4x128xf32>
    %c8 = arith.constant 8 : index
    %c0_40 = arith.constant 0 : index
    %c0_41 = arith.constant 0 : index
    %55 = vector.load %arg1[%c8, %c0_40, %c0_41] : memref<27x4x128xf32, #tpu.memory_space<vmem>>, vector<1x4x128xf32>
    %56 = vector.shape_cast %55 : vector<1x4x128xf32> to vector<4x128xf32>
    %c8_42 = arith.constant 8 : index
    %c0_43 = arith.constant 0 : index
    %c0_44 = arith.constant 0 : index
    %57 = vector.load %arg2[%c8_42, %c0_43, %c0_44] : memref<27x1x128xf32, #tpu.memory_space<vmem>>, vector<1x1x128xf32>
    %58 = vector.shape_cast %57 : vector<1x1x128xf32> to vector<1x128xf32>
    %59 = vector.broadcast %58 : vector<1x128xf32> to vector<4x128xf32>
    %60 = arith.mulf %56, %59 : vector<4x128xf32>
    %61 = arith.addf %54, %60 : vector<4x128xf32>
    %c9 = arith.constant 9 : index
    %c0_45 = arith.constant 0 : index
    %c0_46 = arith.constant 0 : index
    %62 = vector.load %arg1[%c9, %c0_45, %c0_46] : memref<27x4x128xf32, #tpu.memory_space<vmem>>, vector<1x4x128xf32>
    %63 = vector.shape_cast %62 : vector<1x4x128xf32> to vector<4x128xf32>
    %c9_47 = arith.constant 9 : index
    %c0_48 = arith.constant 0 : index
    %c0_49 = arith.constant 0 : index
    %64 = vector.load %arg2[%c9_47, %c0_48, %c0_49] : memref<27x1x128xf32, #tpu.memory_space<vmem>>, vector<1x1x128xf32>
    %65 = vector.shape_cast %64 : vector<1x1x128xf32> to vector<1x128xf32>
    %66 = vector.broadcast %65 : vector<1x128xf32> to vector<4x128xf32>
    %67 = arith.mulf %63, %66 : vector<4x128xf32>
    %68 = arith.addf %61, %67 : vector<4x128xf32>
    %c10 = arith.constant 10 : index
    %c0_50 = arith.constant 0 : index
    %c0_51 = arith.constant 0 : index
    %69 = vector.load %arg1[%c10, %c0_50, %c0_51] : memref<27x4x128xf32, #tpu.memory_space<vmem>>, vector<1x4x128xf32>
    %70 = vector.shape_cast %69 : vector<1x4x128xf32> to vector<4x128xf32>
    %c10_52 = arith.constant 10 : index
    %c0_53 = arith.constant 0 : index
    %c0_54 = arith.constant 0 : index
    %71 = vector.load %arg2[%c10_52, %c0_53, %c0_54] : memref<27x1x128xf32, #tpu.memory_space<vmem>>, vector<1x1x128xf32>
    %72 = vector.shape_cast %71 : vector<1x1x128xf32> to vector<1x128xf32>
    %73 = vector.broadcast %72 : vector<1x128xf32> to vector<4x128xf32>
    %74 = arith.mulf %70, %73 : vector<4x128xf32>
    %75 = arith.addf %68, %74 : vector<4x128xf32>
    %c11 = arith.constant 11 : index
    %c0_55 = arith.constant 0 : index
    %c0_56 = arith.constant 0 : index
    %76 = vector.load %arg1[%c11, %c0_55, %c0_56] : memref<27x4x128xf32, #tpu.memory_space<vmem>>, vector<1x4x128xf32>
    %77 = vector.shape_cast %76 : vector<1x4x128xf32> to vector<4x128xf32>
    %c11_57 = arith.constant 11 : index
    %c0_58 = arith.constant 0 : index
    %c0_59 = arith.constant 0 : index
    %78 = vector.load %arg2[%c11_57, %c0_58, %c0_59] : memref<27x1x128xf32, #tpu.memory_space<vmem>>, vector<1x1x128xf32>
    %79 = vector.shape_cast %78 : vector<1x1x128xf32> to vector<1x128xf32>
    %80 = vector.broadcast %79 : vector<1x128xf32> to vector<4x128xf32>
    %81 = arith.mulf %77, %80 : vector<4x128xf32>
    %82 = arith.addf %75, %81 : vector<4x128xf32>
    %c12 = arith.constant 12 : index
    %c0_60 = arith.constant 0 : index
    %c0_61 = arith.constant 0 : index
    %83 = vector.load %arg1[%c12, %c0_60, %c0_61] : memref<27x4x128xf32, #tpu.memory_space<vmem>>, vector<1x4x128xf32>
    %84 = vector.shape_cast %83 : vector<1x4x128xf32> to vector<4x128xf32>
    %c12_62 = arith.constant 12 : index
    %c0_63 = arith.constant 0 : index
    %c0_64 = arith.constant 0 : index
    %85 = vector.load %arg2[%c12_62, %c0_63, %c0_64] : memref<27x1x128xf32, #tpu.memory_space<vmem>>, vector<1x1x128xf32>
    %86 = vector.shape_cast %85 : vector<1x1x128xf32> to vector<1x128xf32>
    %87 = vector.broadcast %86 : vector<1x128xf32> to vector<4x128xf32>
    %88 = arith.mulf %84, %87 : vector<4x128xf32>
    %89 = arith.addf %82, %88 : vector<4x128xf32>
    %c13 = arith.constant 13 : index
    %c0_65 = arith.constant 0 : index
    %c0_66 = arith.constant 0 : index
    %90 = vector.load %arg1[%c13, %c0_65, %c0_66] : memref<27x4x128xf32, #tpu.memory_space<vmem>>, vector<1x4x128xf32>
    %91 = vector.shape_cast %90 : vector<1x4x128xf32> to vector<4x128xf32>
    %c13_67 = arith.constant 13 : index
    %c0_68 = arith.constant 0 : index
    %c0_69 = arith.constant 0 : index
    %92 = vector.load %arg2[%c13_67, %c0_68, %c0_69] : memref<27x1x128xf32, #tpu.memory_space<vmem>>, vector<1x1x128xf32>
    %93 = vector.shape_cast %92 : vector<1x1x128xf32> to vector<1x128xf32>
    %94 = vector.broadcast %93 : vector<1x128xf32> to vector<4x128xf32>
    %95 = arith.mulf %91, %94 : vector<4x128xf32>
    %96 = arith.addf %89, %95 : vector<4x128xf32>
    %c14 = arith.constant 14 : index
    %c0_70 = arith.constant 0 : index
    %c0_71 = arith.constant 0 : index
    %97 = vector.load %arg1[%c14, %c0_70, %c0_71] : memref<27x4x128xf32, #tpu.memory_space<vmem>>, vector<1x4x128xf32>
    %98 = vector.shape_cast %97 : vector<1x4x128xf32> to vector<4x128xf32>
    %c14_72 = arith.constant 14 : index
    %c0_73 = arith.constant 0 : index
    %c0_74 = arith.constant 0 : index
    %99 = vector.load %arg2[%c14_72, %c0_73, %c0_74] : memref<27x1x128xf32, #tpu.memory_space<vmem>>, vector<1x1x128xf32>
    %100 = vector.shape_cast %99 : vector<1x1x128xf32> to vector<1x128xf32>
    %101 = vector.broadcast %100 : vector<1x128xf32> to vector<4x128xf32>
    %102 = arith.mulf %98, %101 : vector<4x128xf32>
    %103 = arith.addf %96, %102 : vector<4x128xf32>
    %c15 = arith.constant 15 : index
    %c0_75 = arith.constant 0 : index
    %c0_76 = arith.constant 0 : index
    %104 = vector.load %arg1[%c15, %c0_75, %c0_76] : memref<27x4x128xf32, #tpu.memory_space<vmem>>, vector<1x4x128xf32>
    %105 = vector.shape_cast %104 : vector<1x4x128xf32> to vector<4x128xf32>
    %c15_77 = arith.constant 15 : index
    %c0_78 = arith.constant 0 : index
    %c0_79 = arith.constant 0 : index
    %106 = vector.load %arg2[%c15_77, %c0_78, %c0_79] : memref<27x1x128xf32, #tpu.memory_space<vmem>>, vector<1x1x128xf32>
    %107 = vector.shape_cast %106 : vector<1x1x128xf32> to vector<1x128xf32>
    %108 = vector.broadcast %107 : vector<1x128xf32> to vector<4x128xf32>
    %109 = arith.mulf %105, %108 : vector<4x128xf32>
    %110 = arith.addf %103, %109 : vector<4x128xf32>
    %c16 = arith.constant 16 : index
    %c0_80 = arith.constant 0 : index
    %c0_81 = arith.constant 0 : index
    %111 = vector.load %arg1[%c16, %c0_80, %c0_81] : memref<27x4x128xf32, #tpu.memory_space<vmem>>, vector<1x4x128xf32>
    %112 = vector.shape_cast %111 : vector<1x4x128xf32> to vector<4x128xf32>
    %c16_82 = arith.constant 16 : index
    %c0_83 = arith.constant 0 : index
    %c0_84 = arith.constant 0 : index
    %113 = vector.load %arg2[%c16_82, %c0_83, %c0_84] : memref<27x1x128xf32, #tpu.memory_space<vmem>>, vector<1x1x128xf32>
    %114 = vector.shape_cast %113 : vector<1x1x128xf32> to vector<1x128xf32>
    %115 = vector.broadcast %114 : vector<1x128xf32> to vector<4x128xf32>
    %116 = arith.mulf %112, %115 : vector<4x128xf32>
    %117 = arith.addf %110, %116 : vector<4x128xf32>
    %c17 = arith.constant 17 : index
    %c0_85 = arith.constant 0 : index
    %c0_86 = arith.constant 0 : index
    %118 = vector.load %arg1[%c17, %c0_85, %c0_86] : memref<27x4x128xf32, #tpu.memory_space<vmem>>, vector<1x4x128xf32>
    %119 = vector.shape_cast %118 : vector<1x4x128xf32> to vector<4x128xf32>
    %c17_87 = arith.constant 17 : index
    %c0_88 = arith.constant 0 : index
    %c0_89 = arith.constant 0 : index
    %120 = vector.load %arg2[%c17_87, %c0_88, %c0_89] : memref<27x1x128xf32, #tpu.memory_space<vmem>>, vector<1x1x128xf32>
    %121 = vector.shape_cast %120 : vector<1x1x128xf32> to vector<1x128xf32>
    %122 = vector.broadcast %121 : vector<1x128xf32> to vector<4x128xf32>
    %123 = arith.mulf %119, %122 : vector<4x128xf32>
    %124 = arith.addf %117, %123 : vector<4x128xf32>
    %c18 = arith.constant 18 : index
    %c0_90 = arith.constant 0 : index
    %c0_91 = arith.constant 0 : index
    %125 = vector.load %arg1[%c18, %c0_90, %c0_91] : memref<27x4x128xf32, #tpu.memory_space<vmem>>, vector<1x4x128xf32>
    %126 = vector.shape_cast %125 : vector<1x4x128xf32> to vector<4x128xf32>
    %c18_92 = arith.constant 18 : index
    %c0_93 = arith.constant 0 : index
    %c0_94 = arith.constant 0 : index
    %127 = vector.load %arg2[%c18_92, %c0_93, %c0_94] : memref<27x1x128xf32, #tpu.memory_space<vmem>>, vector<1x1x128xf32>
    %128 = vector.shape_cast %127 : vector<1x1x128xf32> to vector<1x128xf32>
    %129 = vector.broadcast %128 : vector<1x128xf32> to vector<4x128xf32>
    %130 = arith.mulf %126, %129 : vector<4x128xf32>
    %131 = arith.addf %124, %130 : vector<4x128xf32>
    %c19 = arith.constant 19 : index
    %c0_95 = arith.constant 0 : index
    %c0_96 = arith.constant 0 : index
    %132 = vector.load %arg1[%c19, %c0_95, %c0_96] : memref<27x4x128xf32, #tpu.memory_space<vmem>>, vector<1x4x128xf32>
    %133 = vector.shape_cast %132 : vector<1x4x128xf32> to vector<4x128xf32>
    %c19_97 = arith.constant 19 : index
    %c0_98 = arith.constant 0 : index
    %c0_99 = arith.constant 0 : index
    %134 = vector.load %arg2[%c19_97, %c0_98, %c0_99] : memref<27x1x128xf32, #tpu.memory_space<vmem>>, vector<1x1x128xf32>
    %135 = vector.shape_cast %134 : vector<1x1x128xf32> to vector<1x128xf32>
    %136 = vector.broadcast %135 : vector<1x128xf32> to vector<4x128xf32>
    %137 = arith.mulf %133, %136 : vector<4x128xf32>
    %138 = arith.addf %131, %137 : vector<4x128xf32>
    %c20 = arith.constant 20 : index
    %c0_100 = arith.constant 0 : index
    %c0_101 = arith.constant 0 : index
    %139 = vector.load %arg1[%c20, %c0_100, %c0_101] : memref<27x4x128xf32, #tpu.memory_space<vmem>>, vector<1x4x128xf32>
    %140 = vector.shape_cast %139 : vector<1x4x128xf32> to vector<4x128xf32>
    %c20_102 = arith.constant 20 : index
    %c0_103 = arith.constant 0 : index
    %c0_104 = arith.constant 0 : index
    %141 = vector.load %arg2[%c20_102, %c0_103, %c0_104] : memref<27x1x128xf32, #tpu.memory_space<vmem>>, vector<1x1x128xf32>
    %142 = vector.shape_cast %141 : vector<1x1x128xf32> to vector<1x128xf32>
    %143 = vector.broadcast %142 : vector<1x128xf32> to vector<4x128xf32>
    %144 = arith.mulf %140, %143 : vector<4x128xf32>
    %145 = arith.addf %138, %144 : vector<4x128xf32>
    %c21 = arith.constant 21 : index
    %c0_105 = arith.constant 0 : index
    %c0_106 = arith.constant 0 : index
    %146 = vector.load %arg1[%c21, %c0_105, %c0_106] : memref<27x4x128xf32, #tpu.memory_space<vmem>>, vector<1x4x128xf32>
    %147 = vector.shape_cast %146 : vector<1x4x128xf32> to vector<4x128xf32>
    %c21_107 = arith.constant 21 : index
    %c0_108 = arith.constant 0 : index
    %c0_109 = arith.constant 0 : index
    %148 = vector.load %arg2[%c21_107, %c0_108, %c0_109] : memref<27x1x128xf32, #tpu.memory_space<vmem>>, vector<1x1x128xf32>
    %149 = vector.shape_cast %148 : vector<1x1x128xf32> to vector<1x128xf32>
    %150 = vector.broadcast %149 : vector<1x128xf32> to vector<4x128xf32>
    %151 = arith.mulf %147, %150 : vector<4x128xf32>
    %152 = arith.addf %145, %151 : vector<4x128xf32>
    %c22 = arith.constant 22 : index
    %c0_110 = arith.constant 0 : index
    %c0_111 = arith.constant 0 : index
    %153 = vector.load %arg1[%c22, %c0_110, %c0_111] : memref<27x4x128xf32, #tpu.memory_space<vmem>>, vector<1x4x128xf32>
    %154 = vector.shape_cast %153 : vector<1x4x128xf32> to vector<4x128xf32>
    %c22_112 = arith.constant 22 : index
    %c0_113 = arith.constant 0 : index
    %c0_114 = arith.constant 0 : index
    %155 = vector.load %arg2[%c22_112, %c0_113, %c0_114] : memref<27x1x128xf32, #tpu.memory_space<vmem>>, vector<1x1x128xf32>
    %156 = vector.shape_cast %155 : vector<1x1x128xf32> to vector<1x128xf32>
    %157 = vector.broadcast %156 : vector<1x128xf32> to vector<4x128xf32>
    %158 = arith.mulf %154, %157 : vector<4x128xf32>
    %159 = arith.addf %152, %158 : vector<4x128xf32>
    %c23 = arith.constant 23 : index
    %c0_115 = arith.constant 0 : index
    %c0_116 = arith.constant 0 : index
    %160 = vector.load %arg1[%c23, %c0_115, %c0_116] : memref<27x4x128xf32, #tpu.memory_space<vmem>>, vector<1x4x128xf32>
    %161 = vector.shape_cast %160 : vector<1x4x128xf32> to vector<4x128xf32>
    %c23_117 = arith.constant 23 : index
    %c0_118 = arith.constant 0 : index
    %c0_119 = arith.constant 0 : index
    %162 = vector.load %arg2[%c23_117, %c0_118, %c0_119] : memref<27x1x128xf32, #tpu.memory_space<vmem>>, vector<1x1x128xf32>
    %163 = vector.shape_cast %162 : vector<1x1x128xf32> to vector<1x128xf32>
    %164 = vector.broadcast %163 : vector<1x128xf32> to vector<4x128xf32>
    %165 = arith.mulf %161, %164 : vector<4x128xf32>
    %166 = arith.addf %159, %165 : vector<4x128xf32>
    %c24 = arith.constant 24 : index
    %c0_120 = arith.constant 0 : index
    %c0_121 = arith.constant 0 : index
    %167 = vector.load %arg1[%c24, %c0_120, %c0_121] : memref<27x4x128xf32, #tpu.memory_space<vmem>>, vector<1x4x128xf32>
    %168 = vector.shape_cast %167 : vector<1x4x128xf32> to vector<4x128xf32>
    %c24_122 = arith.constant 24 : index
    %c0_123 = arith.constant 0 : index
    %c0_124 = arith.constant 0 : index
    %169 = vector.load %arg2[%c24_122, %c0_123, %c0_124] : memref<27x1x128xf32, #tpu.memory_space<vmem>>, vector<1x1x128xf32>
    %170 = vector.shape_cast %169 : vector<1x1x128xf32> to vector<1x128xf32>
    %171 = vector.broadcast %170 : vector<1x128xf32> to vector<4x128xf32>
    %172 = arith.mulf %168, %171 : vector<4x128xf32>
    %173 = arith.addf %166, %172 : vector<4x128xf32>
    %c25 = arith.constant 25 : index
    %c0_125 = arith.constant 0 : index
    %c0_126 = arith.constant 0 : index
    %174 = vector.load %arg1[%c25, %c0_125, %c0_126] : memref<27x4x128xf32, #tpu.memory_space<vmem>>, vector<1x4x128xf32>
    %175 = vector.shape_cast %174 : vector<1x4x128xf32> to vector<4x128xf32>
    %c25_127 = arith.constant 25 : index
    %c0_128 = arith.constant 0 : index
    %c0_129 = arith.constant 0 : index
    %176 = vector.load %arg2[%c25_127, %c0_128, %c0_129] : memref<27x1x128xf32, #tpu.memory_space<vmem>>, vector<1x1x128xf32>
    %177 = vector.shape_cast %176 : vector<1x1x128xf32> to vector<1x128xf32>
    %178 = vector.broadcast %177 : vector<1x128xf32> to vector<4x128xf32>
    %179 = arith.mulf %175, %178 : vector<4x128xf32>
    %180 = arith.addf %173, %179 : vector<4x128xf32>
    %c26 = arith.constant 26 : index
    %c0_130 = arith.constant 0 : index
    %c0_131 = arith.constant 0 : index
    %181 = vector.load %arg1[%c26, %c0_130, %c0_131] : memref<27x4x128xf32, #tpu.memory_space<vmem>>, vector<1x4x128xf32>
    %182 = vector.shape_cast %181 : vector<1x4x128xf32> to vector<4x128xf32>
    %c26_132 = arith.constant 26 : index
    %c0_133 = arith.constant 0 : index
    %c0_134 = arith.constant 0 : index
    %183 = vector.load %arg2[%c26_132, %c0_133, %c0_134] : memref<27x1x128xf32, #tpu.memory_space<vmem>>, vector<1x1x128xf32>
    %184 = vector.shape_cast %183 : vector<1x1x128xf32> to vector<1x128xf32>
    %185 = vector.broadcast %184 : vector<1x128xf32> to vector<4x128xf32>
    %186 = arith.mulf %182, %185 : vector<4x128xf32>
    %187 = arith.addf %180, %186 : vector<4x128xf32>
    %c0_135 = arith.constant 0 : index
    %c0_136 = arith.constant 0 : index
    %188 = vector.load %arg3[%c0_135, %c0_136] : memref<4x128xf32, #tpu.memory_space<vmem>>, vector<4x128xf32>
    tpu.vector_store %arg3[%c0_135, %c0_136], %187 {strides = array<i32>} : memref<4x128xf32, #tpu.memory_space<vmem>>, vector<4x128xf32>,
    return
  }
  func.func @transform_0(%arg0: i32) -> (i32, i32, i32) {
    %c0_i32 = arith.constant 0 : i32
    %c0_i32_0 = arith.constant 0 : i32
    %c0_i32_1 = arith.constant 0 : i32
    return %c0_i32, %arg0, %c0_i32_0 : i32, i32, i32
  }
  func.func @transform_1(%arg0: i32) -> (i32, i32, i32) {
    %c0_i32 = arith.constant 0 : i32
    %c0_i32_0 = arith.constant 0 : i32
    %c0_i32_1 = arith.constant 0 : i32
    %c0_i32_2 = arith.constant 0 : i32
    return %c0_i32, %c0_i32_0, %c0_i32_1 : i32, i32, i32
  }
  func.func @transform_2(%arg0: i32) -> (i32, i32) {
    %c0_i32 = arith.constant 0 : i32
    %c0_i32_0 = arith.constant 0 : i32
    return %arg0, %c0_i32 : i32, i32
  }
}

module attributes {stable_mosaic.version = 11 : i64} {
  func.func @_matmul_bias_kernel(%arg0: i32, %arg1: memref<32x16xbf16, #tpu.memory_space<vmem>>, %arg2: memref<16x8xbf16, #tpu.memory_space<vmem>>, %arg3: memref<1x8xf32, #tpu.memory_space<vmem>>, %arg4: memref<32x8xf32, #tpu.memory_space<vmem>>) attributes {dimension_semantics = [#tpu.dimension_semantics<parallel>], iteration_bounds = array<i64: 1>, scalar_prefetch = 0 : i64, scratch_operands = 0 : i64, tpu.core_type = #tpu.core_type<tc>, window_params = [{transform_indices = @transform_0, window_bounds = array<i64: 32, 16>}, {pipeline_mode = #tpu.pipeline_mode<synchronous>, transform_indices = @transform_1, window_bounds = array<i64: 16, 8>}, {pipeline_mode = #tpu.pipeline_mode<synchronous>, transform_indices = @transform_2, window_bounds = array<i64: 1, 8>}, {transform_indices = @transform_3, window_bounds = array<i64: 32, 8>}]} {
    %c0 = arith.constant 0 : index
    %c0_0 = arith.constant 0 : index
    %0 = vector.load %arg1[%c0, %c0_0] : memref<32x16xbf16, #tpu.memory_space<vmem>>, vector<32x16xbf16>
    %c0_1 = arith.constant 0 : index
    %c0_2 = arith.constant 0 : index
    %1 = vector.load %arg2[%c0_1, %c0_2] : memref<16x8xbf16, #tpu.memory_space<vmem>>, vector<16x8xbf16>
    %cst = arith.constant dense<0.000000e+00> : vector<32x8xf32>
    %2 = tpu.matmul %0, %1, %cst {dimension_numbers = #tpu.dot_dimension_numbers<[1], [0], [0], [1], [0, 0, 1, 1], [], []>} : vector<32x16xbf16>, vector<16x8xbf16>, vector<32x8xf32> -> vector<32x8xf32>
    %c0_3 = arith.constant 0 : index
    %c0_4 = arith.constant 0 : index
    %3 = vector.load %arg3[%c0_3, %c0_4] : memref<1x8xf32, #tpu.memory_space<vmem>>, vector<1x8xf32>
    %4 = vector.broadcast %3 : vector<1x8xf32> to vector<32x8xf32>
    %5 = arith.addf %2, %4 : vector<32x8xf32>
    %c0_5 = arith.constant 0 : index
    %c0_6 = arith.constant 0 : index
    %6 = vector.load %arg4[%c0_5, %c0_6] : memref<32x8xf32, #tpu.memory_space<vmem>>, vector<32x8xf32>
    tpu.vector_store %arg4[%c0_5, %c0_6], %5 {strides = array<i32>} : memref<32x8xf32, #tpu.memory_space<vmem>>, vector<32x8xf32>,
    return
  }
  func.func @transform_0(%arg0: i32) -> (i32, i32) {
    %c0_i32 = arith.constant 0 : i32
    %c0_i32_0 = arith.constant 0 : i32
    return %arg0, %c0_i32 : i32, i32
  }
  func.func @transform_1(%arg0: i32) -> (i32, i32) {
    %c0_i32 = arith.constant 0 : i32
    %c0_i32_0 = arith.constant 0 : i32
    %c0_i32_1 = arith.constant 0 : i32
    return %c0_i32, %c0_i32_0 : i32, i32
  }
  func.func @transform_2(%arg0: i32) -> (i32, i32) {
    %c0_i32 = arith.constant 0 : i32
    %c0_i32_0 = arith.constant 0 : i32
    %c0_i32_1 = arith.constant 0 : i32
    return %c0_i32, %c0_i32_0 : i32, i32
  }
  func.func @transform_3(%arg0: i32) -> (i32, i32) {
    %c0_i32 = arith.constant 0 : i32
    %c0_i32_0 = arith.constant 0 : i32
    return %arg0, %c0_i32 : i32, i32
  }
}

module attributes {stable_mosaic.version = 11 : i64} {
  func.func @_scale_shift_act_kernel(%arg0: i32, %arg1: memref<2x128xf32, #tpu.memory_space<vmem>>, %arg2: memref<1x128xf32, #tpu.memory_space<vmem>>, %arg3: memref<1x128xf32, #tpu.memory_space<vmem>>, %arg4: memref<2x128xf32, #tpu.memory_space<vmem>>) attributes {dimension_semantics = [#tpu.dimension_semantics<parallel>], iteration_bounds = array<i64: 1>, scalar_prefetch = 0 : i64, scratch_operands = 0 : i64, tpu.core_type = #tpu.core_type<tc>, window_params = [{transform_indices = @transform_0, window_bounds = array<i64: 2, 128>}, {pipeline_mode = #tpu.pipeline_mode<synchronous>, transform_indices = @transform_1, window_bounds = array<i64: 1, 128>}, {pipeline_mode = #tpu.pipeline_mode<synchronous>, transform_indices = @transform_2, window_bounds = array<i64: 1, 128>}, {transform_indices = @transform_3, window_bounds = array<i64: 2, 128>}]} {
    %c0 = arith.constant 0 : index
    %c0_0 = arith.constant 0 : index
    %0 = vector.load %arg1[%c0, %c0_0] : memref<2x128xf32, #tpu.memory_space<vmem>>, vector<2x128xf32>
    %c0_1 = arith.constant 0 : index
    %c0_2 = arith.constant 0 : index
    %1 = vector.load %arg2[%c0_1, %c0_2] : memref<1x128xf32, #tpu.memory_space<vmem>>, vector<1x128xf32>
    %2 = vector.broadcast %1 : vector<1x128xf32> to vector<2x128xf32>
    %3 = arith.mulf %0, %2 : vector<2x128xf32>
    %c0_3 = arith.constant 0 : index
    %c0_4 = arith.constant 0 : index
    %4 = vector.load %arg3[%c0_3, %c0_4] : memref<1x128xf32, #tpu.memory_space<vmem>>, vector<1x128xf32>
    %5 = vector.broadcast %4 : vector<1x128xf32> to vector<2x128xf32>
    %6 = arith.addf %3, %5 : vector<2x128xf32>
    %c0_5 = arith.constant 0 : index
    %c0_6 = arith.constant 0 : index
    %7 = vector.load %arg4[%c0_5, %c0_6] : memref<2x128xf32, #tpu.memory_space<vmem>>, vector<2x128xf32>
    tpu.vector_store %arg4[%c0_5, %c0_6], %6 {strides = array<i32>} : memref<2x128xf32, #tpu.memory_space<vmem>>, vector<2x128xf32>,
    return
  }
  func.func @transform_0(%arg0: i32) -> (i32, i32) {
    %c0_i32 = arith.constant 0 : i32
    %c0_i32_0 = arith.constant 0 : i32
    return %arg0, %c0_i32 : i32, i32
  }
  func.func @transform_1(%arg0: i32) -> (i32, i32) {
    %c0_i32 = arith.constant 0 : i32
    %c0_i32_0 = arith.constant 0 : i32
    %c0_i32_1 = arith.constant 0 : i32
    return %c0_i32, %c0_i32_0 : i32, i32
  }
  func.func @transform_2(%arg0: i32) -> (i32, i32) {
    %c0_i32 = arith.constant 0 : i32
    %c0_i32_0 = arith.constant 0 : i32
    %c0_i32_1 = arith.constant 0 : i32
    return %c0_i32, %c0_i32_0 : i32, i32
  }
  func.func @transform_3(%arg0: i32) -> (i32, i32) {
    %c0_i32 = arith.constant 0 : i32
    %c0_i32_0 = arith.constant 0 : i32
    return %arg0, %c0_i32 : i32, i32
  }
}

module attributes {stable_mosaic.version = 11 : i64} {
  func.func @_matmul_bias_kernel(%arg0: i32, %arg1: memref<64x24xbf16, #tpu.memory_space<vmem>>, %arg2: memref<24x8xbf16, #tpu.memory_space<vmem>>, %arg3: memref<1x8xf32, #tpu.memory_space<vmem>>, %arg4: memref<64x8xf32, #tpu.memory_space<vmem>>) attributes {dimension_semantics = [#tpu.dimension_semantics<parallel>], iteration_bounds = array<i64: 1>, scalar_prefetch = 0 : i64, scratch_operands = 0 : i64, tpu.core_type = #tpu.core_type<tc>, window_params = [{transform_indices = @transform_0, window_bounds = array<i64: 64, 24>}, {pipeline_mode = #tpu.pipeline_mode<synchronous>, transform_indices = @transform_1, window_bounds = array<i64: 24, 8>}, {pipeline_mode = #tpu.pipeline_mode<synchronous>, transform_indices = @transform_2, window_bounds = array<i64: 1, 8>}, {transform_indices = @transform_3, window_bounds = array<i64: 64, 8>}]} {
    %c0 = arith.constant 0 : index
    %c0_0 = arith.constant 0 : index
    %0 = vector.load %arg1[%c0, %c0_0] : memref<64x24xbf16, #tpu.memory_space<vmem>>, vector<64x24xbf16>
    %c0_1 = arith.constant 0 : index
    %c0_2 = arith.constant 0 : index
    %1 = vector.load %arg2[%c0_1, %c0_2] : memref<24x8xbf16, #tpu.memory_space<vmem>>, vector<24x8xbf16>
    %cst = arith.constant dense<0.000000e+00> : vector<64x8xf32>
    %2 = tpu.matmul %0, %1, %cst {dimension_numbers = #tpu.dot_dimension_numbers<[1], [0], [0], [1], [0, 0, 1, 1], [], []>} : vector<64x24xbf16>, vector<24x8xbf16>, vector<64x8xf32> -> vector<64x8xf32>
    %c0_3 = arith.constant 0 : index
    %c0_4 = arith.constant 0 : index
    %3 = vector.load %arg3[%c0_3, %c0_4] : memref<1x8xf32, #tpu.memory_space<vmem>>, vector<1x8xf32>
    %4 = vector.broadcast %3 : vector<1x8xf32> to vector<64x8xf32>
    %5 = arith.addf %2, %4 : vector<64x8xf32>
    %c0_5 = arith.constant 0 : index
    %c0_6 = arith.constant 0 : index
    %6 = vector.load %arg4[%c0_5, %c0_6] : memref<64x8xf32, #tpu.memory_space<vmem>>, vector<64x8xf32>
    tpu.vector_store %arg4[%c0_5, %c0_6], %5 {strides = array<i32>} : memref<64x8xf32, #tpu.memory_space<vmem>>, vector<64x8xf32>,
    return
  }
  func.func @transform_0(%arg0: i32) -> (i32, i32) {
    %c0_i32 = arith.constant 0 : i32
    %c0_i32_0 = arith.constant 0 : i32
    return %arg0, %c0_i32 : i32, i32
  }
  func.func @transform_1(%arg0: i32) -> (i32, i32) {
    %c0_i32 = arith.constant 0 : i32
    %c0_i32_0 = arith.constant 0 : i32
    %c0_i32_1 = arith.constant 0 : i32
    return %c0_i32, %c0_i32_0 : i32, i32
  }
  func.func @transform_2(%arg0: i32) -> (i32, i32) {
    %c0_i32 = arith.constant 0 : i32
    %c0_i32_0 = arith.constant 0 : i32
    %c0_i32_1 = arith.constant 0 : i32
    return %c0_i32, %c0_i32_0 : i32, i32
  }
  func.func @transform_3(%arg0: i32) -> (i32, i32) {
    %c0_i32 = arith.constant 0 : i32
    %c0_i32_0 = arith.constant 0 : i32
    return %arg0, %c0_i32 : i32, i32
  }
}

module attributes {stable_mosaic.version = 11 : i64} {
  func.func @_matmul_bias_kernel(%arg0: i32, %arg1: memref<128x24xbf16, #tpu.memory_space<vmem>>, %arg2: memref<24x4xbf16, #tpu.memory_space<vmem>>, %arg3: memref<1x4xf32, #tpu.memory_space<vmem>>, %arg4: memref<128x4xf32, #tpu.memory_space<vmem>>) attributes {dimension_semantics = [#tpu.dimension_semantics<parallel>], iteration_bounds = array<i64: 1>, scalar_prefetch = 0 : i64, scratch_operands = 0 : i64, tpu.core_type = #tpu.core_type<tc>, window_params = [{transform_indices = @transform_0, window_bounds = array<i64: 128, 24>}, {pipeline_mode = #tpu.pipeline_mode<synchronous>, transform_indices = @transform_1, window_bounds = array<i64: 24, 4>}, {pipeline_mode = #tpu.pipeline_mode<synchronous>, transform_indices = @transform_2, window_bounds = array<i64: 1, 4>}, {transform_indices = @transform_3, window_bounds = array<i64: 128, 4>}]} {
    %c0 = arith.constant 0 : index
    %c0_0 = arith.constant 0 : index
    %0 = vector.load %arg1[%c0, %c0_0] : memref<128x24xbf16, #tpu.memory_space<vmem>>, vector<128x24xbf16>
    %c0_1 = arith.constant 0 : index
    %c0_2 = arith.constant 0 : index
    %1 = vector.load %arg2[%c0_1, %c0_2] : memref<24x4xbf16, #tpu.memory_space<vmem>>, vector<24x4xbf16>
    %cst = arith.constant dense<0.000000e+00> : vector<128x4xf32>
    %2 = tpu.matmul %0, %1, %cst {dimension_numbers = #tpu.dot_dimension_numbers<[1], [0], [0], [1], [0, 0, 1, 1], [], []>} : vector<128x24xbf16>, vector<24x4xbf16>, vector<128x4xf32> -> vector<128x4xf32>
    %c0_3 = arith.constant 0 : index
    %c0_4 = arith.constant 0 : index
    %3 = vector.load %arg3[%c0_3, %c0_4] : memref<1x4xf32, #tpu.memory_space<vmem>>, vector<1x4xf32>
    %4 = vector.broadcast %3 : vector<1x4xf32> to vector<128x4xf32>
    %5 = arith.addf %2, %4 : vector<128x4xf32>
    %c0_5 = arith.constant 0 : index
    %c0_6 = arith.constant 0 : index
    %6 = vector.load %arg4[%c0_5, %c0_6] : memref<128x4xf32, #tpu.memory_space<vmem>>, vector<128x4xf32>
    tpu.vector_store %arg4[%c0_5, %c0_6], %5 {strides = array<i32>} : memref<128x4xf32, #tpu.memory_space<vmem>>, vector<128x4xf32>,
    return
  }
  func.func @transform_0(%arg0: i32) -> (i32, i32) {
    %c0_i32 = arith.constant 0 : i32
    %c0_i32_0 = arith.constant 0 : i32
    return %arg0, %c0_i32 : i32, i32
  }
  func.func @transform_1(%arg0: i32) -> (i32, i32) {
    %c0_i32 = arith.constant 0 : i32
    %c0_i32_0 = arith.constant 0 : i32
    %c0_i32_1 = arith.constant 0 : i32
    return %c0_i32, %c0_i32_0 : i32, i32
  }
  func.func @transform_2(%arg0: i32) -> (i32, i32) {
    %c0_i32 = arith.constant 0 : i32
    %c0_i32_0 = arith.constant 0 : i32
    %c0_i32_1 = arith.constant 0 : i32
    return %c0_i32, %c0_i32_0 : i32, i32
  }
  func.func @transform_3(%arg0: i32) -> (i32, i32) {
    %c0_i32 = arith.constant 0 : i32
    %c0_i32_0 = arith.constant 0 : i32
    return %arg0, %c0_i32 : i32, i32
  }
}

</mosaic_0001>

<bundles_post_ra>
// kernel: tdtransformer_forward.44
= control target key start
LH: loop header
LB: loop body
LE: loop exit
PB: predicated region body
PF: predicated region fallthrough
CT: control target
= control target key end

     0   :  { %s2068_s12 = smov 0   ;;  %s2625_s0 = inlined_call_operand.vmem [shape: bf16[8192,75], index: 0, kind: input, shape index: {}]   ;;  %s2626_s1 = inlined_call_operand.vmem [shape: bf16[75,2], index: 1, kind: input, shape index: {}]   ;;  %s2627_s2 = inlined_call_operand.vmem [shape: f32[1,2], index: 2, kind: input, shape index: {}]   ;;  %s2628_s3 = inlined_call_operand.vmem [shape: f32[8192,2], index: 3, kind: output, shape index: {}]  }
   0x1 LB: > { %s1599_s13 = sadd.s32 4294967295, %s2045_s12   ;;  %p1603_p0 = scmp.ge.s32.totalorder %s2045_s12, 1  ;;  %s2045_s12 = sphi %s2068_s12, %s13_s12  }
   0x2   : > { %p138_p1 = scmp.lt.s32.totalorder %s2045_s12, 9 }
   0x4   : > { %p139_p2 = pnand %p1603_p0, %p138_p1 }
   0x5   : > { %v1970_v0 = vld [vmem:[%s2626_s1] sm:$0xff] (!%p139_p2)   ;;  %v1971_v1 = vld [vmem:[%s2626_s1 + $0x8] sm:$0xff] (!%p139_p2)   ;;  %vm862_vm0 = vcmask (!%p139_p2), 1044480   ;;  %v1972_v2 = vld [vmem:[%s2626_s1 + $0x10] sm:$0xff] (!%p139_p2)   ;;  %s1604_s20 = sshll.u32 (!%p139_p2), %s1599_s13, 7  ;;  %vm863_vm1 = vcmask (!%p139_p2), 1045504  }
   0x6   : > { %142 = sbr.rel (%p139_p2) target bundleno = 364 (0x16c), region = 32  ;;  %1813 = vmatprep.subr.bf16.mxu0 (!%p139_p2), %v1970_v0  ;;  %1951 = vmatprep.subr.bf16.mxu1 (!%p139_p2), %v1970_v0  ;;  %v2047_v3 = vmov (!%p139_p2), 65535   ;;  %p163_p3 = scmp.lt.s32.totalorder (!%p139_p2), %s1604_s20, 1023  ;;  %v1973_v5 = vld [vmem:[%s2626_s1 + $0x18] sm:$0xff] (!%p139_p2)   ;;  %v1974_v6 = vld [vmem:[%s2626_s1 + $0x20] sm:$0x3f] (!%p139_p2)  }
   0x7   : > { %1814 = vmatpush3.bf16.msra.mxu0 (!%p139_p2), %v1970_v0  ;;  %1956 = vmatpush3.bf16.msra.mxu1 (!%p139_p2), %v1970_v0  ;;  %v864_v4 = vsel (!%p139_p2), %vm862_vm0, 4294967295, %v2047_v3  ;;  %vm669_vm2 = vcmask (!%p139_p2), 613376   ;;  %vm1414_vm3 = vcmask (!%p139_p2), 15360  }
   0x8   : > { %1815 = vmatprep.subr.bf16.mxu0 (!%p139_p2), %v1971_v1  ;;  %1952 = vmatprep.subr.bf16.mxu1 (!%p139_p2), %v1971_v1  ;;  %v865_v7 = vsel (!%p139_p2), %vm863_vm1, %v864_v4, 0 }
   0x9   : > { %v867_v8 = vand.u32 (!%p139_p2), %v1974_v6, %v865_v7 }
   0xb   : > { %1816 = vmatpush3.bf16.msra.mxu0 (!%p139_p2), %v1971_v1  ;;  %1957 = vmatpush3.bf16.msra.mxu1 (!%p139_p2), %v1971_v1 }
   0xc   : > { %1817 = vmatprep.subr.bf16.mxu0 (!%p139_p2), %v1972_v2  ;;  %1953 = vmatprep.subr.bf16.mxu1 (!%p139_p2), %v1972_v2 }
   0xd   : > { %s2630_s20 = smov (!%p163_p3, %s1604_s20), 1023 }
   0xe   : > { %s1605_s25 = sshll.u32 %s2630_s20, 2  ;;  %s1607_s29 = sshll.u32 %s2630_s20, 3 }
   0xf   : > { %1818 = vmatpush3.bf16.msra.mxu0 %v1972_v2  ;;  %1958 = vmatpush3.bf16.msra.mxu1 %v1972_v2  ;;  %s2097_s28 = scalar_lea.vmem %s2625_s0, %s1605_s25  ;;  %s2236_s7 = scalar_lea.vmem %s2628_s3, %s1607_s29 }
  0x10   : > { %1819 = vmatprep.subr.bf16.mxu0 %v1973_v5  ;;  %1954 = vmatprep.subr.bf16.mxu1 %v1973_v5  ;;  %v1975_v9 = vld [vmem:[%s2097_s28] sm:$0xff]   ;;  %v1977_v11 = vld [vmem:[%s2097_s28 + $0x8] sm:$0xff]   ;;  %v1979_v13 = vld [vmem:[%s2097_s28 + $0x10] sm:$0xff]  }
  0x11   : > { %v1976_v10 = vld [vmem:[%s2097_s28 + $0x100] sm:$0xff]   ;;  %1823 = vmatprep.mubr.msk.bf16.mxu0 %vm669_vm2, %v1975_v9  ;;  %v1978_v12 = vld [vmem:[%s2097_s28 + $0x108] sm:$0xff]   ;;  %v1980_v14 = vld [vmem:[%s2097_s28 + $0x110] sm:$0xff]  }
  0x12   : > { %1887 = vmatprep.mubr.msk.bf16.mxu1 %vm669_vm2, %v1976_v10  ;;  %v1981_v15 = vld [vmem:[%s2097_s28 + $0x18] sm:$0xff]   ;;  %v1983_v17 = vld [vmem:[%s2097_s28 + $0x20] sm:$0xff]   ;;  %v1985_v19 = vld [vmem:[%s2097_s28 + $0x28] sm:$0xff]  }
  0x13   : > { %1820 = vmatpush3.bf16.msra.mxu0 %v1973_v5  ;;  %1959 = vmatpush3.bf16.msra.mxu1 %v1973_v5  ;;  %v1982_v16 = vld [vmem:[%s2097_s28 + $0x118] sm:$0xff]   ;;  %v1984_v18 = vld [vmem:[%s2097_s28 + $0x120] sm:$0xff]   ;;  %v1986_v20 = vld [vmem:[%s2097_s28 + $0x128] sm:$0xff]  }
  0x14   : > { %1821 = vmatprep.subr.bf16.mxu0 %v867_v8  ;;  %1955 = vmatprep.subr.bf16.mxu1 %v867_v8  ;;  %v1987_v21 = vld [vmem:[%s2097_s28 + $0x30] sm:$0xff]   ;;  %v1989_v23 = vld [vmem:[%s2097_s28 + $0x38] sm:$0xff]   ;;  %v1991_v25 = vld [vmem:[%s2097_s28 + $0x40] sm:$0xff]  }
  0x15   : > { %v1988_v22 = vld [vmem:[%s2097_s28 + $0x130] sm:$0xff]   ;;  %v1990_v24 = vld [vmem:[%s2097_s28 + $0x138] sm:$0xff]   ;;  %v1992_v26 = vld [vmem:[%s2097_s28 + $0x140] sm:$0xff]  }
  0x16   : > { %v1993_v27 = vld [vmem:[%s2097_s28 + $0x48] sm:$0xff]   ;;  %v1995_v29 = vld [vmem:[%s2097_s28 + $0x50] sm:$0xff]   ;;  %v1997_v31 = vld [vmem:[%s2097_s28 + $0x58] sm:$0xff]  }
  0x17   : > { %1822 = vmatpush3.bf16.msra.mxu0 %v867_v8  ;;  %1960 = vmatpush3.bf16.msra.mxu1 %v867_v8  ;;  %v1994_v28 = vld [vmem:[%s2097_s28 + $0x148] sm:$0xff]   ;;  %v1996_v30 = vld [vmem:[%s2097_s28 + $0x150] sm:$0xff]   ;;  %v1998_v32 = vld [vmem:[%s2097_s28 + $0x158] sm:$0xff]  }
  0x18   : > { %v1999_v33 = vld [vmem:[%s2097_s28 + $0x60] sm:$0xff]   ;;  %v2001_v35 = vld [vmem:[%s2097_s28 + $0x68] sm:$0xff]   ;;  %v2003_v37 = vld [vmem:[%s2097_s28 + $0x70] sm:$0xff]  }
  0x19   : > { %v2000_v34 = vld [vmem:[%s2097_s28 + $0x160] sm:$0xff]   ;;  %v2002_v36 = vld [vmem:[%s2097_s28 + $0x168] sm:$0xff]   ;;  %v2004_v38 = vld [vmem:[%s2097_s28 + $0x170] sm:$0xff]  }
  0x1a   : > { %1824 = vmatmul.mubr.msk.bf16.vlgmr.msra.gmra.mrb[0].mxu0 %vm669_vm2, %v1977_v11  ;;  %1888 = vmatmul.mubr.msk.bf16.vlgmr.msra.gmra.mrb[0].mxu1 %vm669_vm2, %v1978_v12  ;;  %v2005_v39 = vld [vmem:[%s2097_s28 + $0x78] sm:$0xff]   ;;  %v2007_v41 = vld [vmem:[%s2097_s28 + $0x80] sm:$0xff]   ;;  %v2009_v43 = vld [vmem:[%s2097_s28 + $0x88] sm:$0xff]  }
  0x1b   : > { %1827 = vmatprep.mubr.msk.bf16.mxu0 %vm669_vm2, %v1979_v13  ;;  %1891 = vmatprep.mubr.msk.bf16.mxu1 %vm669_vm2, %v1980_v14  ;;  %v2006_v40 = vld [vmem:[%s2097_s28 + $0x178] sm:$0xff]   ;;  %v2008_v42 = vld [vmem:[%s2097_s28 + $0x180] sm:$0xff]   ;;  %v2010_v44 = vld [vmem:[%s2097_s28 + $0x188] sm:$0xff]  }
  0x1c   : > { %v2011_v45 = vld [vmem:[%s2097_s28 + $0x90] sm:$0xff]   ;;  %v2013_v47 = vld [vmem:[%s2097_s28 + $0x98] sm:$0xff]   ;;  %v2015_v49 = vld [vmem:[%s2097_s28 + $0xa0] sm:$0xff]  }
  0x1d   : > { %v2012_v46 = vld [vmem:[%s2097_s28 + $0x190] sm:$0xff]   ;;  %v2014_v48 = vld [vmem:[%s2097_s28 + $0x198] sm:$0xff]   ;;  %v2016_v50 = vld [vmem:[%s2097_s28 + $0x1a0] sm:$0xff]  }
  0x1e   : > { %v2017_v51 = vld [vmem:[%s2097_s28 + $0xa8] sm:$0xff]   ;;  %v2019_v53 = vld [vmem:[%s2097_s28 + $0xb0] sm:$0xff]   ;;  %v2021_v55 = vld [vmem:[%s2097_s28 + $0xb8] sm:$0xff]  }
  0x1f   : > { %v2018_v52 = vld [vmem:[%s2097_s28 + $0x1a8] sm:$0xff]   ;;  %v2020_v54 = vld [vmem:[%s2097_s28 + $0x1b0] sm:$0xff]   ;;  %v2022_v56 = vld [vmem:[%s2097_s28 + $0x1b8] sm:$0xff]  }
  0x20   : > { %v2023_v57 = vld [vmem:[%s2097_s28 + $0xc0] sm:$0xff]   ;;  %v2025_v59 = vld [vmem:[%s2097_s28 + $0xc8] sm:$0xff]   ;;  %v2027_v61 = vld [vmem:[%s2097_s28 + $0xd0] sm:$0xff]  }
  0x21   : > { %v2024_v58 = vld [vmem:[%s2097_s28 + $0x1c0] sm:$0xff]   ;;  %v2026_v60 = vld [vmem:[%s2097_s28 + $0x1c8] sm:$0xff]   ;;  %v2028_v62 = vld [vmem:[%s2097_s28 + $0x1d0] sm:$0xff]  }
  0x22   : > { %1828 = vmatmul.mubr.msk.bf16.gmra.mrb[4].mxu0 %vm669_vm2, %v1981_v15  ;;  %1892 = vmatmul.mubr.msk.bf16.gmra.mrb[4].mxu1 %vm669_vm2, %v1982_v16  ;;  %v2029_v63 = vld [vmem:[%s2097_s28 + $0xd8] sm:$0xff]   ;;  %v2031_v1 = vld [vmem:[%s2097_s28 + $0xe0] sm:$0xff]   ;;  %v2033_v3 = vld [vmem:[%s2097_s28 + $0xe8] sm:$0xff]  }
  0x23   : > { %1831 = vmatprep.mubr.msk.bf16.mxu0 %vm669_vm2, %v1983_v17  ;;  %1895 = vmatprep.mubr.msk.bf16.mxu1 %vm669_vm2, %v1984_v18  ;;  %v2030_v0 = vld [vmem:[%s2097_s28 + $0x1d8] sm:$0xff]   ;;  %v2032_v2 = vld [vmem:[%s2097_s28 + $0x1e0] sm:$0xff]   ;;  %v2034_v4 = vld [vmem:[%s2097_s28 + $0x1e8] sm:$0xff]  }
  0x24   : > { %v2035_v5 = vld [vmem:[%s2097_s28 + $0xf0] sm:$0xff]   ;;  %v2037_v7 = vld [vmem:[%s2097_s28 + $0xf8] sm:$0xff]   ;;  %v2231_v9 = vld [vmem:[%s2627_s2] ss:$0 sm:$0xff] }
  0x25   : > { %v2036_v6 = vld [vmem:[%s2097_s28 + $0x1f0] sm:$0xff]   ;;  %v2038_v8 = vld [vmem:[%s2097_s28 + $0x1f8] sm:$0xff]  }
  0x2a   : > { %1832 = vmatmul.mubr.msk.bf16.gmra.mrb[8].mxu0 %vm669_vm2, %v1985_v19  ;;  %1896 = vmatmul.mubr.msk.bf16.gmra.mrb[8].mxu1 %vm669_vm2, %v1986_v20 }
  0x2b   : > { %1835 = vmatprep.mubr.msk.bf16.mxu0 %vm669_vm2, %v1987_v21  ;;  %1899 = vmatprep.mubr.msk.bf16.mxu1 %vm669_vm2, %v1988_v22 }
  0x32   : > { %1836 = vmatmul.mubr.msk.bf16.gmra.mrb[12].mxu0 %vm669_vm2, %v1989_v23  ;;  %1900 = vmatmul.mubr.msk.bf16.gmra.mrb[12].mxu1 %vm669_vm2, %v1990_v24 }
  0x33   : > { %1839 = vmatprep.mubr.msk.bf16.mxu0 %vm669_vm2, %v1991_v25  ;;  %1903 = vmatprep.mubr.msk.bf16.mxu1 %vm669_vm2, %v1992_v26 }
  0x3a   : > { %1840 = vmatmul.mubr.msk.bf16.gmra.mrb[16].mxu0 %vm669_vm2, %v1993_v27  ;;  %1904 = vmatmul.mubr.msk.bf16.gmra.mrb[16].mxu1 %vm669_vm2, %v1994_v28 }
  0x3b   : > { %1843 = vmatprep.mubr.msk.bf16.mxu0 %vm669_vm2, %v1995_v29  ;;  %1907 = vmatprep.mubr.msk.bf16.mxu1 %vm669_vm2, %v1996_v30 }
  0x42   : > { %1844 = vmatmul.mubr.msk.bf16.gmra.mrb[20].mxu0 %vm669_vm2, %v1997_v31  ;;  %1908 = vmatmul.mubr.msk.bf16.gmra.mrb[20].mxu1 %vm669_vm2, %v1998_v32 }
  0x43   : > { %1847 = vmatprep.mubr.msk.bf16.mxu0 %vm669_vm2, %v1999_v33  ;;  %1911 = vmatprep.mubr.msk.bf16.mxu1 %vm669_vm2, %v2000_v34 }
  0x4a   : > { %1848 = vmatmul.mubr.msk.bf16.gmra.mrb[24].mxu0 %vm669_vm2, %v2001_v35  ;;  %1912 = vmatmul.mubr.msk.bf16.gmra.mrb[24].mxu1 %vm669_vm2, %v2002_v36 }
  0x4b   : > { %1851 = vmatprep.mubr.msk.bf16.mxu0 %vm669_vm2, %v2003_v37  ;;  %1915 = vmatprep.mubr.msk.bf16.mxu1 %vm669_vm2, %v2004_v38 }
  0x52   : > { %1852 = vmatmul.mubr.msk.bf16.gmra.mrb[28].mxu0 %vm669_vm2, %v2005_v39  ;;  %1916 = vmatmul.mubr.msk.bf16.gmra.mrb[28].mxu1 %vm669_vm2, %v2006_v40 }
  0x53   : > { %1855 = vmatprep.mubr.msk.bf16.mxu0 %vm669_vm2, %v2007_v41  ;;  %1919 = vmatprep.mubr.msk.bf16.mxu1 %vm669_vm2, %v2008_v42 }
  0x5a   : > { %1856 = vmatmul.mubr.msk.bf16.gmra.mrb[32].mxu0 %vm669_vm2, %v2009_v43  ;;  %1920 = vmatmul.mubr.msk.bf16.gmra.mrb[32].mxu1 %vm669_vm2, %v2010_v44 }
  0x5b   : > { %1859 = vmatprep.mubr.msk.bf16.mxu0 %vm669_vm2, %v2011_v45  ;;  %1923 = vmatprep.mubr.msk.bf16.mxu1 %vm669_vm2, %v2012_v46 }
  0x62   : > { %1860 = vmatmul.mubr.msk.bf16.gmra.mrb[36].mxu0 %vm669_vm2, %v2013_v47  ;;  %1924 = vmatmul.mubr.msk.bf16.gmra.mrb[36].mxu1 %vm669_vm2, %v2014_v48 }
  0x63   : > { %1863 = vmatprep.mubr.msk.bf16.mxu0 %vm669_vm2, %v2015_v49  ;;  %1927 = vmatprep.mubr.msk.bf16.mxu1 %vm669_vm2, %v2016_v50 }
  0x6a   : > { %1864 = vmatmul.mubr.msk.bf16.gmra.mrb[40].mxu0 %vm669_vm2, %v2017_v51  ;;  %1928 = vmatmul.mubr.msk.bf16.gmra.mrb[40].mxu1 %vm669_vm2, %v2018_v52 }
  0x6b   : > { %1867 = vmatprep.mubr.msk.bf16.mxu0 %vm669_vm2, %v2019_v53  ;;  %1931 = vmatprep.mubr.msk.bf16.mxu1 %vm669_vm2, %v2020_v54 }
  0x72   : > { %1868 = vmatmul.mubr.msk.bf16.gmra.mrb[44].mxu0 %vm669_vm2, %v2021_v55  ;;  %1932 = vmatmul.mubr.msk.bf16.gmra.mrb[44].mxu1 %vm669_vm2, %v2022_v56 }
  0x73   : > { %1871 = vmatprep.mubr.msk.bf16.mxu0 %vm669_vm2, %v2023_v57  ;;  %1935 = vmatprep.mubr.msk.bf16.mxu1 %vm669_vm2, %v2024_v58 }
  0x7a   : > { %1872 = vmatmul.mubr.msk.bf16.gmra.mrb[48].mxu0 %vm669_vm2, %v2025_v59  ;;  %1936 = vmatmul.mubr.msk.bf16.gmra.mrb[48].mxu1 %vm669_vm2, %v2026_v60 }
  0x7b   : > { %1875 = vmatprep.mubr.msk.bf16.mxu0 %vm669_vm2, %v2027_v61  ;;  %1939 = vmatprep.mubr.msk.bf16.mxu1 %vm669_vm2, %v2028_v62 }
  0x82   : > { %1876 = vmatmul.mubr.msk.bf16.gmra.mrb[52].mxu0 %vm669_vm2, %v2029_v63  ;;  %1940 = vmatmul.mubr.msk.bf16.gmra.mrb[52].mxu1 %vm669_vm2, %v2030_v0 }
  0x83   : > { %1879 = vmatprep.mubr.msk.bf16.mxu0 %vm669_vm2, %v2031_v1  ;;  %1943 = vmatprep.mubr.msk.bf16.mxu1 %vm669_vm2, %v2032_v2 }
  0x8a   : > { %1880 = vmatmul.mubr.msk.bf16.gmra.mrb[56].mxu0 %vm669_vm2, %v2033_v3  ;;  %1944 = vmatmul.mubr.msk.bf16.gmra.mrb[56].mxu1 %vm669_vm2, %v2034_v4 }
  0x8b   : > { %1883 = vmatprep.mubr.msk.bf16.mxu0 %vm669_vm2, %v2035_v5  ;;  %1947 = vmatprep.mubr.msk.bf16.mxu1 %vm669_vm2, %v2036_v6 }
  0x92   : > { %1884 = vmatmul.mubr.msk.bf16.gmra.mrb[60].mxu0 %vm669_vm2, %v2037_v7  ;;  %1948 = vmatmul.mubr.msk.bf16.gmra.mrb[60].mxu1 %vm669_vm2, %v2038_v8 }
  0xed   : > { %v1825_v10 = vpop.f32.mrb[0].mxu0  ;;  %v1889_v11 = vpop.f32.mrb[0].mxu1 }
  0xee   : > { %v912_v12 = vadd.f32 %v1825_v10, %v2231_v9  ;;  %v1168_v13 = vadd.f32 %v1889_v11, %v2231_v9  ;;  %v903_v14 = vpop.f32.mrb[1].mxu0  ;;  %v1159_v15 = vpop.f32.mrb[1].mxu1 }
  0xef   : > { %v904_v16 = vadd.f32 %v2231_v9, %v903_v14  ;;  %v1160_v17 = vadd.f32 %v2231_v9, %v1159_v15  ;;  %v1826_v18 = vpop.f32.mrb[2].mxu0  ;;  %v1890_v19 = vpop.f32.mrb[2].mxu1 }
  0xf0   : > { %1417 = vst.msk [vmem:[%s2236_s7 + $0x10] sm:$0xff] %vm1414_vm3, %v912_v12  ;;  %1481 = vst.msk [vmem:[%s2236_s7 + $0x210] sm:$0xff] %vm1414_vm3, %v1168_v13  ;;  %v915_v20 = vadd.f32 %v1826_v18, %v2231_v9  ;;  %v1171_v21 = vadd.f32 %v1890_v19, %v2231_v9  ;;  %v906_v22 = vpop.f32.mrb[3].mxu0  ;;  %v1162_v23 = vpop.f32.mrb[3].mxu1 }
  0xf1   : > { %1415 = vst.msk [vmem:[%s2236_s7] sm:$0xff] %vm1414_vm3, %v904_v16  ;;  %1479 = vst.msk [vmem:[%s2236_s7 + $0x200] sm:$0xff] %vm1414_vm3, %v1160_v17  ;;  %v907_v24 = vadd.f32 %v2231_v9, %v906_v22  ;;  %v1163_v25 = vadd.f32 %v2231_v9, %v1162_v23 }
  0xf2   : > { %1418 = vst.msk [vmem:[%s2236_s7 + $0x18] sm:$0xff] %vm1414_vm3, %v915_v20  ;;  %1482 = vst.msk [vmem:[%s2236_s7 + $0x218] sm:$0xff] %vm1414_vm3, %v1171_v21 }
  0xf3   : > { %1416 = vst.msk [vmem:[%s2236_s7 + $0x8] sm:$0xff] %vm1414_vm3, %v907_v24  ;;  %1480 = vst.msk [vmem:[%s2236_s7 + $0x208] sm:$0xff] %vm1414_vm3, %v1163_v25 }
  0xf5   : > { %v1829_v26 = vpop.f32.mrb[4].mxu0  ;;  %v1893_v27 = vpop.f32.mrb[4].mxu1 }
  0xf6   : > { %v928_v28 = vadd.f32 %v1829_v26, %v2231_v9  ;;  %v1184_v29 = vadd.f32 %v1893_v27, %v2231_v9  ;;  %v919_v30 = vpop.f32.mrb[5].mxu0  ;;  %v1175_v31 = vpop.f32.mrb[5].mxu1 }
  0xf7   : > { %v920_v32 = vadd.f32 %v2231_v9, %v919_v30  ;;  %v1176_v33 = vadd.f32 %v2231_v9, %v1175_v31  ;;  %v1830_v34 = vpop.f32.mrb[6].mxu0  ;;  %v1894_v35 = vpop.f32.mrb[6].mxu1 }
  0xf8   : > { %1421 = vst.msk [vmem:[%s2236_s7 + $0x30] sm:$0xff] %vm1414_vm3, %v928_v28  ;;  %1485 = vst.msk [vmem:[%s2236_s7 + $0x230] sm:$0xff] %vm1414_vm3, %v1184_v29  ;;  %v931_v36 = vadd.f32 %v1830_v34, %v2231_v9  ;;  %v1187_v37 = vadd.f32 %v1894_v35, %v2231_v9  ;;  %v922_v38 = vpop.f32.mrb[7].mxu0  ;;  %v1178_v39 = vpop.f32.mrb[7].mxu1 }
  0xf9   : > { %1419 = vst.msk [vmem:[%s2236_s7 + $0x20] sm:$0xff] %vm1414_vm3, %v920_v32  ;;  %1483 = vst.msk [vmem:[%s2236_s7 + $0x220] sm:$0xff] %vm1414_vm3, %v1176_v33  ;;  %v923_v40 = vadd.f32 %v2231_v9, %v922_v38  ;;  %v1179_v41 = vadd.f32 %v2231_v9, %v1178_v39 }
  0xfa   : > { %1422 = vst.msk [vmem:[%s2236_s7 + $0x38] sm:$0xff] %vm1414_vm3, %v931_v36  ;;  %1486 = vst.msk [vmem:[%s2236_s7 + $0x238] sm:$0xff] %vm1414_vm3, %v1187_v37 }
  0xfb   : > { %1420 = vst.msk [vmem:[%s2236_s7 + $0x28] sm:$0xff] %vm1414_vm3, %v923_v40  ;;  %1484 = vst.msk [vmem:[%s2236_s7 + $0x228] sm:$0xff] %vm1414_vm3, %v1179_v41 }
  0xfd   : > { %v1833_v42 = vpop.f32.mrb[8].mxu0  ;;  %v1897_v43 = vpop.f32.mrb[8].mxu1 }
  0xfe   : > { %v944_v44 = vadd.f32 %v1833_v42, %v2231_v9  ;;  %v1200_v45 = vadd.f32 %v1897_v43, %v2231_v9  ;;  %v935_v46 = vpop.f32.mrb[9].mxu0  ;;  %v1191_v47 = vpop.f32.mrb[9].mxu1 }
  0xff   : > { %v936_v48 = vadd.f32 %v2231_v9, %v935_v46  ;;  %v1192_v49 = vadd.f32 %v2231_v9, %v1191_v47  ;;  %v1834_v50 = vpop.f32.mrb[10].mxu0  ;;  %v1898_v51 = vpop.f32.mrb[10].mxu1 }
 0x100   : > { %1425 = vst.msk [vmem:[%s2236_s7 + $0x50] sm:$0xff] %vm1414_vm3, %v944_v44  ;;  %1489 = vst.msk [vmem:[%s2236_s7 + $0x250] sm:$0xff] %vm1414_vm3, %v1200_v45  ;;  %v947_v52 = vadd.f32 %v1834_v50, %v2231_v9  ;;  %v1203_v53 = vadd.f32 %v1898_v51, %v2231_v9  ;;  %v938_v54 = vpop.f32.mrb[11].mxu0  ;;  %v1194_v55 = vpop.f32.mrb[11].mxu1 }
 0x101   : > { %1423 = vst.msk [vmem:[%s2236_s7 + $0x40] sm:$0xff] %vm1414_vm3, %v936_v48  ;;  %1487 = vst.msk [vmem:[%s2236_s7 + $0x240] sm:$0xff] %vm1414_vm3, %v1192_v49  ;;  %v939_v56 = vadd.f32 %v2231_v9, %v938_v54  ;;  %v1195_v57 = vadd.f32 %v2231_v9, %v1194_v55 }
 0x102   : > { %1426 = vst.msk [vmem:[%s2236_s7 + $0x58] sm:$0xff] %vm1414_vm3, %v947_v52  ;;  %1490 = vst.msk [vmem:[%s2236_s7 + $0x258] sm:$0xff] %vm1414_vm3, %v1203_v53 }
 0x103   : > { %1424 = vst.msk [vmem:[%s2236_s7 + $0x48] sm:$0xff] %vm1414_vm3, %v939_v56  ;;  %1488 = vst.msk [vmem:[%s2236_s7 + $0x248] sm:$0xff] %vm1414_vm3, %v1195_v57 }
 0x105   : > { %v1837_v58 = vpop.f32.mrb[12].mxu0  ;;  %v1901_v59 = vpop.f32.mrb[12].mxu1 }
 0x106   : > { %v960_v60 = vadd.f32 %v1837_v58, %v2231_v9  ;;  %v1216_v61 = vadd.f32 %v1901_v59, %v2231_v9  ;;  %v951_v62 = vpop.f32.mrb[13].mxu0  ;;  %v1207_v63 = vpop.f32.mrb[13].mxu1 }
 0x107   : > { %v952_v0 = vadd.f32 %v2231_v9, %v951_v62  ;;  %v1208_v1 = vadd.f32 %v2231_v9, %v1207_v63  ;;  %v1838_v2 = vpop.f32.mrb[14].mxu0  ;;  %v1902_v3 = vpop.f32.mrb[14].mxu1 }
 0x108   : > { %1429 = vst.msk [vmem:[%s2236_s7 + $0x70] sm:$0xff] %vm1414_vm3, %v960_v60  ;;  %1493 = vst.msk [vmem:[%s2236_s7 + $0x270] sm:$0xff] %vm1414_vm3, %v1216_v61  ;;  %v963_v4 = vadd.f32 %v1838_v2, %v2231_v9  ;;  %v1219_v5 = vadd.f32 %v1902_v3, %v2231_v9  ;;  %v954_v6 = vpop.f32.mrb[15].mxu0  ;;  %v1210_v7 = vpop.f32.mrb[15].mxu1 }
 0x109   : > { %1427 = vst.msk [vmem:[%s2236_s7 + $0x60] sm:$0xff] %vm1414_vm3, %v952_v0  ;;  %1491 = vst.msk [vmem:[%s2236_s7 + $0x260] sm:$0xff] %vm1414_vm3, %v1208_v1  ;;  %v955_v8 = vadd.f32 %v2231_v9, %v954_v6  ;;  %v1211_v10 = vadd.f32 %v2231_v9, %v1210_v7 }
 0x10a   : > { %1430 = vst.msk [vmem:[%s2236_s7 + $0x78] sm:$0xff] %vm1414_vm3, %v963_v4  ;;  %1494 = vst.msk [vmem:[%s2236_s7 + $0x278] sm:$0xff] %vm1414_vm3, %v1219_v5 }
 0x10b   : > { %1428 = vst.msk [vmem:[%s2236_s7 + $0x68] sm:$0xff] %vm1414_vm3, %v955_v8  ;;  %1492 = vst.msk [vmem:[%s2236_s7 + $0x268] sm:$0xff] %vm1414_vm3, %v1211_v10 }
 0x10d   : > { %v1841_v11 = vpop.f32.mrb[16].mxu0  ;;  %v1905_v12 = vpop.f32.mrb[16].mxu1 }
 0x10e   : > { %v976_v13 = vadd.f32 %v1841_v11, %v2231_v9  ;;  %v1232_v14 = vadd.f32 %v1905_v12, %v2231_v9  ;;  %v967_v15 = vpop.f32.mrb[17].mxu0  ;;  %v1223_v16 = vpop.f32.mrb[17].mxu1 }
 0x10f   : > { %v968_v17 = vadd.f32 %v2231_v9, %v967_v15  ;;  %v1224_v18 = vadd.f32 %v2231_v9, %v1223_v16  ;;  %v1842_v19 = vpop.f32.mrb[18].mxu0  ;;  %v1906_v20 = vpop.f32.mrb[18].mxu1 }
 0x110   : > { %1433 = vst.msk [vmem:[%s2236_s7 + $0x90] sm:$0xff] %vm1414_vm3, %v976_v13  ;;  %1497 = vst.msk [vmem:[%s2236_s7 + $0x290] sm:$0xff] %vm1414_vm3, %v1232_v14  ;;  %v979_v21 = vadd.f32 %v1842_v19, %v2231_v9  ;;  %v1235_v22 = vadd.f32 %v1906_v20, %v2231_v9  ;;  %v970_v23 = vpop.f32.mrb[19].mxu0  ;;  %v1226_v24 = vpop.f32.mrb[19].mxu1 }
 0x111   : > { %1431 = vst.msk [vmem:[%s2236_s7 + $0x80] sm:$0xff] %vm1414_vm3, %v968_v17  ;;  %1495 = vst.msk [vmem:[%s2236_s7 + $0x280] sm:$0xff] %vm1414_vm3, %v1224_v18  ;;  %v971_v25 = vadd.f32 %v2231_v9, %v970_v23  ;;  %v1227_v26 = vadd.f32 %v2231_v9, %v1226_v24 }
 0x112   : > { %1434 = vst.msk [vmem:[%s2236_s7 + $0x98] sm:$0xff] %vm1414_vm3, %v979_v21  ;;  %1498 = vst.msk [vmem:[%s2236_s7 + $0x298] sm:$0xff] %vm1414_vm3, %v1235_v22 }
 0x113   : > { %1432 = vst.msk [vmem:[%s2236_s7 + $0x88] sm:$0xff] %vm1414_vm3, %v971_v25  ;;  %1496 = vst.msk [vmem:[%s2236_s7 + $0x288] sm:$0xff] %vm1414_vm3, %v1227_v26 }
 0x115   : > { %v1845_v27 = vpop.f32.mrb[20].mxu0  ;;  %v1909_v28 = vpop.f32.mrb[20].mxu1 }
 0x116   : > { %v992_v29 = vadd.f32 %v1845_v27, %v2231_v9  ;;  %v1248_v30 = vadd.f32 %v1909_v28, %v2231_v9  ;;  %v983_v31 = vpop.f32.mrb[21].mxu0  ;;  %v1239_v32 = vpop.f32.mrb[21].mxu1 }
 0x117   : > { %v984_v33 = vadd.f32 %v2231_v9, %v983_v31  ;;  %v1240_v34 = vadd.f32 %v2231_v9, %v1239_v32  ;;  %v1846_v35 = vpop.f32.mrb[22].mxu0  ;;  %v1910_v36 = vpop.f32.mrb[22].mxu1 }
 0x118   : > { %1437 = vst.msk [vmem:[%s2236_s7 + $0xb0] sm:$0xff] %vm1414_vm3, %v992_v29  ;;  %1501 = vst.msk [vmem:[%s2236_s7 + $0x2b0] sm:$0xff] %vm1414_vm3, %v1248_v30  ;;  %v995_v37 = vadd.f32 %v1846_v35, %v2231_v9  ;;  %v1251_v38 = vadd.f32 %v1910_v36, %v2231_v9  ;;  %v986_v39 = vpop.f32.mrb[23].mxu0  ;;  %v1242_v40 = vpop.f32.mrb[23].mxu1 }
 0x119   : > { %1435 = vst.msk [vmem:[%s2236_s7 + $0xa0] sm:$0xff] %vm1414_vm3, %v984_v33  ;;  %1499 = vst.msk [vmem:[%s2236_s7 + $0x2a0] sm:$0xff] %vm1414_vm3, %v1240_v34  ;;  %v987_v41 = vadd.f32 %v2231_v9, %v986_v39  ;;  %v1243_v42 = vadd.f32 %v2231_v9, %v1242_v40 }
 0x11a   : > { %1438 = vst.msk [vmem:[%s2236_s7 + $0xb8] sm:$0xff] %vm1414_vm3, %v995_v37  ;;  %1502 = vst.msk [vmem:[%s2236_s7 + $0x2b8] sm:$0xff] %vm1414_vm3, %v1251_v38 }
 0x11b   : > { %1436 = vst.msk [vmem:[%s2236_s7 + $0xa8] sm:$0xff] %vm1414_vm3, %v987_v41  ;;  %1500 = vst.msk [vmem:[%s2236_s7 + $0x2a8] sm:$0xff] %vm1414_vm3, %v1243_v42 }
 0x11d   : > { %v1849_v43 = vpop.f32.mrb[24].mxu0  ;;  %v1913_v44 = vpop.f32.mrb[24].mxu1 }
 0x11e   : > { %v1008_v45 = vadd.f32 %v1849_v43, %v2231_v9  ;;  %v1264_v46 = vadd.f32 %v1913_v44, %v2231_v9  ;;  %v999_v47 = vpop.f32.mrb[25].mxu0  ;;  %v1255_v48 = vpop.f32.mrb[25].mxu1 }
 0x11f   : > { %v1000_v49 = vadd.f32 %v2231_v9, %v999_v47  ;;  %v1256_v50 = vadd.f32 %v2231_v9, %v1255_v48  ;;  %v1850_v51 = vpop.f32.mrb[26].mxu0  ;;  %v1914_v52 = vpop.f32.mrb[26].mxu1 }
 0x120   : > { %1441 = vst.msk [vmem:[%s2236_s7 + $0xd0] sm:$0xff] %vm1414_vm3, %v1008_v45  ;;  %1505 = vst.msk [vmem:[%s2236_s7 + $0x2d0] sm:$0xff] %vm1414_vm3, %v1264_v46  ;;  %v1011_v53 = vadd.f32 %v1850_v51, %v2231_v9  ;;  %v1267_v54 = vadd.f32 %v1914_v52, %v2231_v9  ;;  %v1002_v55 = vpop.f32.mrb[27].mxu0  ;;  %v1258_v56 = vpop.f32.mrb[27].mxu1 }
 0x121   : > { %1439 = vst.msk [vmem:[%s2236_s7 + $0xc0] sm:$0xff] %vm1414_vm3, %v1000_v49  ;;  %1503 = vst.msk [vmem:[%s2236_s7 + $0x2c0] sm:$0xff] %vm1414_vm3, %v1256_v50  ;;  %v1003_v57 = vadd.f32 %v2231_v9, %v1002_v55  ;;  %v1259_v58 = vadd.f32 %v2231_v9, %v1258_v56 }
 0x122   : > { %1442 = vst.msk [vmem:[%s2236_s7 + $0xd8] sm:$0xff] %vm1414_vm3, %v1011_v53  ;;  %1506 = vst.msk [vmem:[%s2236_s7 + $0x2d8] sm:$0xff] %vm1414_vm3, %v1267_v54 }
 0x123   : > { %1440 = vst.msk [vmem:[%s2236_s7 + $0xc8] sm:$0xff] %vm1414_vm3, %v1003_v57  ;;  %1504 = vst.msk [vmem:[%s2236_s7 + $0x2c8] sm:$0xff] %vm1414_vm3, %v1259_v58 }
 0x125   : > { %v1853_v59 = vpop.f32.mrb[28].mxu0  ;;  %v1917_v60 = vpop.f32.mrb[28].mxu1 }
 0x126   : > { %v1024_v61 = vadd.f32 %v1853_v59, %v2231_v9  ;;  %v1280_v62 = vadd.f32 %v1917_v60, %v2231_v9  ;;  %v1015_v63 = vpop.f32.mrb[29].mxu0  ;;  %v1271_v0 = vpop.f32.mrb[29].mxu1 }
 0x127   : > { %v1016_v1 = vadd.f32 %v2231_v9, %v1015_v63  ;;  %v1272_v2 = vadd.f32 %v2231_v9, %v1271_v0  ;;  %v1854_v3 = vpop.f32.mrb[30].mxu0  ;;  %v1918_v4 = vpop.f32.mrb[30].mxu1 }
 0x128   : > { %1445 = vst.msk [vmem:[%s2236_s7 + $0xf0] sm:$0xff] %vm1414_vm3, %v1024_v61  ;;  %1509 = vst.msk [vmem:[%s2236_s7 + $0x2f0] sm:$0xff] %vm1414_vm3, %v1280_v62  ;;  %v1027_v5 = vadd.f32 %v1854_v3, %v2231_v9  ;;  %v1283_v6 = vadd.f32 %v1918_v4, %v2231_v9  ;;  %v1018_v7 = vpop.f32.mrb[31].mxu0  ;;  %v1274_v8 = vpop.f32.mrb[31].mxu1 }
 0x129   : > { %1443 = vst.msk [vmem:[%s2236_s7 + $0xe0] sm:$0xff] %vm1414_vm3, %v1016_v1  ;;  %1507 = vst.msk [vmem:[%s2236_s7 + $0x2e0] sm:$0xff] %vm1414_vm3, %v1272_v2  ;;  %v1019_v10 = vadd.f32 %v2231_v9, %v1018_v7  ;;  %v1275_v11 = vadd.f32 %v2231_v9, %v1274_v8 }
 0x12a   : > { %1446 = vst.msk [vmem:[%s2236_s7 + $0xf8] sm:$0xff] %vm1414_vm3, %v1027_v5  ;;  %1510 = vst.msk [vmem:[%s2236_s7 + $0x2f8] sm:$0xff] %vm1414_vm3, %v1283_v6 }
 0x12b   : > { %1444 = vst.msk [vmem:[%s2236_s7 + $0xe8] sm:$0xff] %vm1414_vm3, %v1019_v10  ;;  %1508 = vst.msk [vmem:[%s2236_s7 + $0x2e8] sm:$0xff] %vm1414_vm3, %v1275_v11 }
 0x12d   : > { %v1857_v12 = vpop.f32.mrb[32].mxu0  ;;  %v1921_v13 = vpop.f32.mrb[32].mxu1 }
 0x12e   : > { %v1040_v14 = vadd.f32 %v1857_v12, %v2231_v9  ;;  %v1296_v15 = vadd.f32 %v1921_v13, %v2231_v9  ;;  %v1031_v16 = vpop.f32.mrb[33].mxu0  ;;  %v1287_v17 = vpop.f32.mrb[33].mxu1 }
 0x12f   : > { %v1032_v18 = vadd.f32 %v2231_v9, %v1031_v16  ;;  %v1288_v19 = vadd.f32 %v2231_v9, %v1287_v17  ;;  %v1858_v20 = vpop.f32.mrb[34].mxu0  ;;  %v1922_v21 = vpop.f32.mrb[34].mxu1 }
 0x130   : > { %1449 = vst.msk [vmem:[%s2236_s7 + $0x110] sm:$0xff] %vm1414_vm3, %v1040_v14  ;;  %1513 = vst.msk [vmem:[%s2236_s7 + $0x310] sm:$0xff] %vm1414_vm3, %v1296_v15  ;;  %v1043_v22 = vadd.f32 %v1858_v20, %v2231_v9  ;;  %v1299_v23 = vadd.f32 %v1922_v21, %v2231_v9  ;;  %v1034_v24 = vpop.f32.mrb[35].mxu0  ;;  %v1290_v25 = vpop.f32.mrb[35].mxu1 }
 0x131   : > { %1447 = vst.msk [vmem:[%s2236_s7 + $0x100] sm:$0xff] %vm1414_vm3, %v1032_v18  ;;  %1511 = vst.msk [vmem:[%s2236_s7 + $0x300] sm:$0xff] %vm1414_vm3, %v1288_v19  ;;  %v1035_v26 = vadd.f32 %v2231_v9, %v1034_v24  ;;  %v1291_v27 = vadd.f32 %v2231_v9, %v1290_v25 }
 0x132   : > { %1450 = vst.msk [vmem:[%s2236_s7 + $0x118] sm:$0xff] %vm1414_vm3, %v1043_v22  ;;  %1514 = vst.msk [vmem:[%s2236_s7 + $0x318] sm:$0xff] %vm1414_vm3, %v1299_v23 }
 0x133   : > { %1448 = vst.msk [vmem:[%s2236_s7 + $0x108] sm:$0xff] %vm1414_vm3, %v1035_v26  ;;  %1512 = vst.msk [vmem:[%s2236_s7 + $0x308] sm:$0xff] %vm1414_vm3, %v1291_v27 }
 0x135   : > { %v1861_v28 = vpop.f32.mrb[36].mxu0  ;;  %v1925_v29 = vpop.f32.mrb[36].mxu1 }
 0x136   : > { %v1056_v30 = vadd.f32 %v1861_v28, %v2231_v9  ;;  %v1312_v31 = vadd.f32 %v1925_v29, %v2231_v9  ;;  %v1047_v32 = vpop.f32.mrb[37].mxu0  ;;  %v1303_v33 = vpop.f32.mrb[37].mxu1 }
 0x137   : > { %v1048_v34 = vadd.f32 %v2231_v9, %v1047_v32  ;;  %v1304_v35 = vadd.f32 %v2231_v9, %v1303_v33  ;;  %v1862_v36 = vpop.f32.mrb[38].mxu0  ;;  %v1926_v37 = vpop.f32.mrb[38].mxu1 }
 0x138   : > { %1453 = vst.msk [vmem:[%s2236_s7 + $0x130] sm:$0xff] %vm1414_vm3, %v1056_v30  ;;  %1517 = vst.msk [vmem:[%s2236_s7 + $0x330] sm:$0xff] %vm1414_vm3, %v1312_v31  ;;  %v1059_v38 = vadd.f32 %v1862_v36, %v2231_v9  ;;  %v1315_v39 = vadd.f32 %v1926_v37, %v2231_v9  ;;  %v1050_v40 = vpop.f32.mrb[39].mxu0  ;;  %v1306_v41 = vpop.f32.mrb[39].mxu1 }
 0x139   : > { %1451 = vst.msk [vmem:[%s2236_s7 + $0x120] sm:$0xff] %vm1414_vm3, %v1048_v34  ;;  %1515 = vst.msk [vmem:[%s2236_s7 + $0x320] sm:$0xff] %vm1414_vm3, %v1304_v35  ;;  %v1051_v42 = vadd.f32 %v2231_v9, %v1050_v40  ;;  %v1307_v43 = vadd.f32 %v2231_v9, %v1306_v41 }
 0x13a   : > { %1454 = vst.msk [vmem:[%s2236_s7 + $0x138] sm:$0xff] %vm1414_vm3, %v1059_v38  ;;  %1518 = vst.msk [vmem:[%s2236_s7 + $0x338] sm:$0xff] %vm1414_vm3, %v1315_v39 }
 0x13b   : > { %1452 = vst.msk [vmem:[%s2236_s7 + $0x128] sm:$0xff] %vm1414_vm3, %v1051_v42  ;;  %1516 = vst.msk [vmem:[%s2236_s7 + $0x328] sm:$0xff] %vm1414_vm3, %v1307_v43 }
 0x13d   : > { %v1865_v44 = vpop.f32.mrb[40].mxu0  ;;  %v1929_v45 = vpop.f32.mrb[40].mxu1 }
 0x13e   : > { %v1072_v46 = vadd.f32 %v1865_v44, %v2231_v9  ;;  %v1328_v47 = vadd.f32 %v1929_v45, %v2231_v9  ;;  %v1063_v48 = vpop.f32.mrb[41].mxu0  ;;  %v1319_v49 = vpop.f32.mrb[41].mxu1 }
 0x13f   : > { %v1064_v50 = vadd.f32 %v2231_v9, %v1063_v48  ;;  %v1320_v51 = vadd.f32 %v2231_v9, %v1319_v49  ;;  %v1866_v52 = vpop.f32.mrb[42].mxu0  ;;  %v1930_v53 = vpop.f32.mrb[42].mxu1 }
 0x140   : > { %1457 = vst.msk [vmem:[%s2236_s7 + $0x150] sm:$0xff] %vm1414_vm3, %v1072_v46  ;;  %1521 = vst.msk [vmem:[%s2236_s7 + $0x350] sm:$0xff] %vm1414_vm3, %v1328_v47  ;;  %v1075_v54 = vadd.f32 %v1866_v52, %v2231_v9  ;;  %v1331_v55 = vadd.f32 %v1930_v53, %v2231_v9  ;;  %v1066_v56 = vpop.f32.mrb[43].mxu0  ;;  %v1322_v57 = vpop.f32.mrb[43].mxu1 }
 0x141   : > { %1455 = vst.msk [vmem:[%s2236_s7 + $0x140] sm:$0xff] %vm1414_vm3, %v1064_v50  ;;  %1519 = vst.msk [vmem:[%s2236_s7 + $0x340] sm:$0xff] %vm1414_vm3, %v1320_v51  ;;  %v1067_v58 = vadd.f32 %v2231_v9, %v1066_v56  ;;  %v1323_v59 = vadd.f32 %v2231_v9, %v1322_v57 }
 0x142   : > { %1458 = vst.msk [vmem:[%s2236_s7 + $0x158] sm:$0xff] %vm1414_vm3, %v1075_v54  ;;  %1522 = vst.msk [vmem:[%s2236_s7 + $0x358] sm:$0xff] %vm1414_vm3, %v1331_v55 }
 0x143   : > { %1456 = vst.msk [vmem:[%s2236_s7 + $0x148] sm:$0xff] %vm1414_vm3, %v1067_v58  ;;  %1520 = vst.msk [vmem:[%s2236_s7 + $0x348] sm:$0xff] %vm1414_vm3, %v1323_v59 }
 0x145   : > { %v1869_v60 = vpop.f32.mrb[44].mxu0  ;;  %v1933_v61 = vpop.f32.mrb[44].mxu1 }
 0x146   : > { %v1088_v62 = vadd.f32 %v1869_v60, %v2231_v9  ;;  %v1344_v63 = vadd.f32 %v1933_v61, %v2231_v9  ;;  %v1079_v0 = vpop.f32.mrb[45].mxu0  ;;  %v1335_v1 = vpop.f32.mrb[45].mxu1 }
 0x147   : > { %v1080_v2 = vadd.f32 %v2231_v9, %v1079_v0  ;;  %v1336_v3 = vadd.f32 %v2231_v9, %v1335_v1  ;;  %v1870_v4 = vpop.f32.mrb[46].mxu0  ;;  %v1934_v5 = vpop.f32.mrb[46].mxu1 }
 0x148   : > { %1461 = vst.msk [vmem:[%s2236_s7 + $0x170] sm:$0xff] %vm1414_vm3, %v1088_v62  ;;  %1525 = vst.msk [vmem:[%s2236_s7 + $0x370] sm:$0xff] %vm1414_vm3, %v1344_v63  ;;  %v1091_v6 = vadd.f32 %v1870_v4, %v2231_v9  ;;  %v1347_v7 = vadd.f32 %v1934_v5, %v2231_v9  ;;  %v1082_v8 = vpop.f32.mrb[47].mxu0  ;;  %v1338_v10 = vpop.f32.mrb[47].mxu1 }
 0x149   : > { %1459 = vst.msk [vmem:[%s2236_s7 + $0x160] sm:$0xff] %vm1414_vm3, %v1080_v2  ;;  %1523 = vst.msk [vmem:[%s2236_s7 + $0x360] sm:$0xff] %vm1414_vm3, %v1336_v3  ;;  %v1083_v11 = vadd.f32 %v2231_v9, %v1082_v8  ;;  %v1339_v12 = vadd.f32 %v2231_v9, %v1338_v10 }
 0x14a   : > { %1462 = vst.msk [vmem:[%s2236_s7 + $0x178] sm:$0xff] %vm1414_vm3, %v1091_v6  ;;  %1526 = vst.msk [vmem:[%s2236_s7 + $0x378] sm:$0xff] %vm1414_vm3, %v1347_v7 }
 0x14b   : > { %1460 = vst.msk [vmem:[%s2236_s7 + $0x168] sm:$0xff] %vm1414_vm3, %v1083_v11  ;;  %1524 = vst.msk [vmem:[%s2236_s7 + $0x368] sm:$0xff] %vm1414_vm3, %v1339_v12 }
 0x14d   : > { %v1873_v13 = vpop.f32.mrb[48].mxu0  ;;  %v1937_v14 = vpop.f32.mrb[48].mxu1 }
 0x14e   : > { %v1104_v15 = vadd.f32 %v1873_v13, %v2231_v9  ;;  %v1360_v16 = vadd.f32 %v1937_v14, %v2231_v9  ;;  %v1095_v17 = vpop.f32.mrb[49].mxu0  ;;  %v1351_v18 = vpop.f32.mrb[49].mxu1 }
 0x14f   : > { %v1096_v19 = vadd.f32 %v2231_v9, %v1095_v17  ;;  %v1352_v20 = vadd.f32 %v2231_v9, %v1351_v18  ;;  %v1874_v21 = vpop.f32.mrb[50].mxu0  ;;  %v1938_v22 = vpop.f32.mrb[50].mxu1 }
 0x150   : > { %1465 = vst.msk [vmem:[%s2236_s7 + $0x190] sm:$0xff] %vm1414_vm3, %v1104_v15  ;;  %1529 = vst.msk [vmem:[%s2236_s7 + $0x390] sm:$0xff] %vm1414_vm3, %v1360_v16  ;;  %v1107_v23 = vadd.f32 %v1874_v21, %v2231_v9  ;;  %v1363_v24 = vadd.f32 %v1938_v22, %v2231_v9  ;;  %v1098_v25 = vpop.f32.mrb[51].mxu0  ;;  %v1354_v26 = vpop.f32.mrb[51].mxu1 }
 0x151   : > { %1463 = vst.msk [vmem:[%s2236_s7 + $0x180] sm:$0xff] %vm1414_vm3, %v1096_v19  ;;  %1527 = vst.msk [vmem:[%s2236_s7 + $0x380] sm:$0xff] %vm1414_vm3, %v1352_v20  ;;  %v1099_v27 = vadd.f32 %v2231_v9, %v1098_v25  ;;  %v1355_v28 = vadd.f32 %v2231_v9, %v1354_v26 }
 0x152   : > { %1466 = vst.msk [vmem:[%s2236_s7 + $0x198] sm:$0xff] %vm1414_vm3, %v1107_v23  ;;  %1530 = vst.msk [vmem:[%s2236_s7 + $0x398] sm:$0xff] %vm1414_vm3, %v1363_v24 }
 0x153   : > { %1464 = vst.msk [vmem:[%s2236_s7 + $0x188] sm:$0xff] %vm1414_vm3, %v1099_v27  ;;  %1528 = vst.msk [vmem:[%s2236_s7 + $0x388] sm:$0xff] %vm1414_vm3, %v1355_v28 }
 0x155   : > { %v1877_v29 = vpop.f32.mrb[52].mxu0  ;;  %v1941_v30 = vpop.f32.mrb[52].mxu1 }
 0x156   : > { %v1120_v31 = vadd.f32 %v1877_v29, %v2231_v9  ;;  %v1376_v32 = vadd.f32 %v1941_v30, %v2231_v9  ;;  %v1111_v33 = vpop.f32.mrb[53].mxu0  ;;  %v1367_v34 = vpop.f32.mrb[53].mxu1 }
 0x157   : > { %v1112_v35 = vadd.f32 %v2231_v9, %v1111_v33  ;;  %v1368_v36 = vadd.f32 %v2231_v9, %v1367_v34  ;;  %v1878_v37 = vpop.f32.mrb[54].mxu0  ;;  %v1942_v38 = vpop.f32.mrb[54].mxu1 }
 0x158   : > { %1469 = vst.msk [vmem:[%s2236_s7 + $0x1b0] sm:$0xff] %vm1414_vm3, %v1120_v31  ;;  %1533 = vst.msk [vmem:[%s2236_s7 + $0x3b0] sm:$0xff] %vm1414_vm3, %v1376_v32  ;;  %v1123_v39 = vadd.f32 %v1878_v37, %v2231_v9  ;;  %v1379_v40 = vadd.f32 %v1942_v38, %v2231_v9  ;;  %v1114_v41 = vpop.f32.mrb[55].mxu0  ;;  %v1370_v42 = vpop.f32.mrb[55].mxu1 }
 0x159   : > { %1467 = vst.msk [vmem:[%s2236_s7 + $0x1a0] sm:$0xff] %vm1414_vm3, %v1112_v35  ;;  %1531 = vst.msk [vmem:[%s2236_s7 + $0x3a0] sm:$0xff] %vm1414_vm3, %v1368_v36  ;;  %v1115_v43 = vadd.f32 %v2231_v9, %v1114_v41  ;;  %v1371_v44 = vadd.f32 %v2231_v9, %v1370_v42 }
 0x15a   : > { %1470 = vst.msk [vmem:[%s2236_s7 + $0x1b8] sm:$0xff] %vm1414_vm3, %v1123_v39  ;;  %1534 = vst.msk [vmem:[%s2236_s7 + $0x3b8] sm:$0xff] %vm1414_vm3, %v1379_v40 }
 0x15b   : > { %1468 = vst.msk [vmem:[%s2236_s7 + $0x1a8] sm:$0xff] %vm1414_vm3, %v1115_v43  ;;  %1532 = vst.msk [vmem:[%s2236_s7 + $0x3a8] sm:$0xff] %vm1414_vm3, %v1371_v44 }
 0x15d   : > { %v1881_v45 = vpop.f32.mrb[56].mxu0  ;;  %v1945_v46 = vpop.f32.mrb[56].mxu1 }
 0x15e   : > { %v1136_v47 = vadd.f32 %v1881_v45, %v2231_v9  ;;  %v1392_v48 = vadd.f32 %v1945_v46, %v2231_v9  ;;  %v1127_v49 = vpop.f32.mrb[57].mxu0  ;;  %v1383_v50 = vpop.f32.mrb[57].mxu1 }
 0x15f   : > { %v1128_v51 = vadd.f32 %v2231_v9, %v1127_v49  ;;  %v1384_v52 = vadd.f32 %v2231_v9, %v1383_v50  ;;  %v1882_v53 = vpop.f32.mrb[58].mxu0  ;;  %v1946_v54 = vpop.f32.mrb[58].mxu1 }
 0x160   : > { %1473 = vst.msk [vmem:[%s2236_s7 + $0x1d0] sm:$0xff] %vm1414_vm3, %v1136_v47  ;;  %1537 = vst.msk [vmem:[%s2236_s7 + $0x3d0] sm:$0xff] %vm1414_vm3, %v1392_v48  ;;  %v1139_v55 = vadd.f32 %v1882_v53, %v2231_v9  ;;  %v1395_v56 = vadd.f32 %v1946_v54, %v2231_v9  ;;  %v1130_v57 = vpop.f32.mrb[59].mxu0  ;;  %v1386_v58 = vpop.f32.mrb[59].mxu1 }
 0x161   : > { %1471 = vst.msk [vmem:[%s2236_s7 + $0x1c0] sm:$0xff] %vm1414_vm3, %v1128_v51  ;;  %1535 = vst.msk [vmem:[%s2236_s7 + $0x3c0] sm:$0xff] %vm1414_vm3, %v1384_v52  ;;  %v1131_v59 = vadd.f32 %v2231_v9, %v1130_v57  ;;  %v1387_v60 = vadd.f32 %v2231_v9, %v1386_v58 }
 0x162   : > { %1474 = vst.msk [vmem:[%s2236_s7 + $0x1d8] sm:$0xff] %vm1414_vm3, %v1139_v55  ;;  %1538 = vst.msk [vmem:[%s2236_s7 + $0x3d8] sm:$0xff] %vm1414_vm3, %v1395_v56 }
 0x163   : > { %1472 = vst.msk [vmem:[%s2236_s7 + $0x1c8] sm:$0xff] %vm1414_vm3, %v1131_v59  ;;  %1536 = vst.msk [vmem:[%s2236_s7 + $0x3c8] sm:$0xff] %vm1414_vm3, %v1387_v60 }
 0x165   : > { %v1885_v61 = vpop.f32.mrb[60].mxu0  ;;  %v1949_v62 = vpop.f32.mrb[60].mxu1 }
 0x166   : > { %v1152_v63 = vadd.f32 %v1885_v61, %v2231_v9  ;;  %v1408_v0 = vadd.f32 %v1949_v62, %v2231_v9  ;;  %v1143_v1 = vpop.f32.mrb[61].mxu0  ;;  %v1399_v2 = vpop.f32.mrb[61].mxu1 }
 0x167   : > { %v1144_v3 = vadd.f32 %v2231_v9, %v1143_v1  ;;  %v1400_v4 = vadd.f32 %v2231_v9, %v1399_v2  ;;  %v1886_v5 = vpop.f32.mrb[62].mxu0  ;;  %v1950_v6 = vpop.f32.mrb[62].mxu1 }
 0x168   : > { %1477 = vst.msk [vmem:[%s2236_s7 + $0x1f0] sm:$0xff] %vm1414_vm3, %v1152_v63  ;;  %1541 = vst.msk [vmem:[%s2236_s7 + $0x3f0] sm:$0xff] %vm1414_vm3, %v1408_v0  ;;  %v1155_v7 = vadd.f32 %v1886_v5, %v2231_v9  ;;  %v1411_v8 = vadd.f32 %v1950_v6, %v2231_v9  ;;  %v1146_v10 = vpop.f32.mrb[63].mxu0  ;;  %v1402_v11 = vpop.f32.mrb[63].mxu1 }
 0x169   : > { %1475 = vst.msk [vmem:[%s2236_s7 + $0x1e0] sm:$0xff] %vm1414_vm3, %v1144_v3  ;;  %1539 = vst.msk [vmem:[%s2236_s7 + $0x3e0] sm:$0xff] %vm1414_vm3, %v1400_v4  ;;  %v1147_v12 = vadd.f32 %v2231_v9, %v1146_v10  ;;  %v1403_v13 = vadd.f32 %v2231_v9, %v1402_v11 }
 0x16a   : > { %1478 = vst.msk [vmem:[%s2236_s7 + $0x1f8] sm:$0xff] %vm1414_vm3, %v1155_v7  ;;  %1542 = vst.msk [vmem:[%s2236_s7 + $0x3f8] sm:$0xff] %vm1414_vm3, %v1411_v8 }
 0x16b   : > { %1476 = vst.msk [vmem:[%s2236_s7 + $0x1e8] sm:$0xff] %vm1414_vm3, %v1147_v12  ;;  %1540 = vst.msk [vmem:[%s2236_s7 + $0x3e8] sm:$0xff] %vm1414_vm3, %v1403_v13 }
 0x16c PF: > { %s13_s12 = sadd.s32 1, %s2045_s12  }
 0x16d   : > { %p10_p4 = scmp.ge.s32.totalorder %s13_s12, 10  }
 0x16f   :  { %12 = sbr.rel (!%p10_p4) target bundleno = 1 (0x1), region = 62 }

// kernel: tile.158
= control target key start
LH: loop header
LB: loop body
LE: loop exit
PB: predicated region body
PF: predicated region fallthrough
CT: control target
= control target key end

     0   :  { %s64_s0 = inlined_call_operand.vmem [shape: f32[2], index: 0, kind: input, shape index: {}]   ;;  %s65_s1 = inlined_call_operand.vmem [shape: f32[64,2], index: 1, kind: output, shape index: {}]  }
   0x1   :  { %v4_v0 = vld [vmem:[%s64_s0] ss:$0 sm:$0xff] }
   0x2   :  { %5 = vst [vmem:[%s65_s1] sm:$0xff] %v4_v0  ;;  %20 = vst [vmem:[%s65_s1 + $0x8] sm:$0xff] %v4_v0 }
   0x3   :  { %21 = vst [vmem:[%s65_s1 + $0x10] sm:$0xff] %v4_v0  ;;  %22 = vst [vmem:[%s65_s1 + $0x18] sm:$0xff] %v4_v0 }
   0x4   :  { %23 = vst [vmem:[%s65_s1 + $0x20] sm:$0xff] %v4_v0  ;;  %24 = vst [vmem:[%s65_s1 + $0x28] sm:$0xff] %v4_v0 }
   0x5   :  { %25 = vst [vmem:[%s65_s1 + $0x30] sm:$0xff] %v4_v0  ;;  %26 = vst [vmem:[%s65_s1 + $0x38] sm:$0xff] %v4_v0 }

// kernel: tile.159
= control target key start
LH: loop header
LB: loop body
LE: loop exit
PB: predicated region body
PF: predicated region fallthrough
CT: control target
= control target key end

     0   :  { %s515_s10 = smov 126   ;;  %s516_s11 = smov 122   ;;  %vm3_vm0 = vcmask 15360   ;;  %vm9_vm1 = vcmask 1048560   ;;  %vm21_vm2 = vcmask 1015760   ;;  %vm15_vm3 = vcmask 1032160   ;;  %s783_s0 = inlined_call_operand.vmem [shape: f32[64,2], index: 0, kind: input, shape index: {}]   ;;  %s784_s1 = inlined_call_operand.vmem [shape: f32[1,128], index: 1, kind: output, shape index: {}]  }
   0x1   :  { %v389_v0 = vld [vmem:[%s783_s0 + $0x3f] sm:$0x1]   ;;  %v391_v1 = vld [vmem:[%s783_s0 + $0x3d] sm:$0x1]   ;;  %v390_v2 = vld [vmem:[%s783_s0 + $0x3e] sm:$0x1]  }
   0x2   :  { %7 = vrot.lane.b32.xlu0 %v389_v0, %s515_s10  ;;  %19 = vrot.lane.b32.xlu1 %v391_v1, %s516_s11  ;;  %v392_v3 = vld [vmem:[%s783_s0 + $0x3c] sm:$0x1]   ;;  %s517_s16 = smov 124   ;;  %s518_s17 = smov 120   ;;  %v393_v4 = vld [vmem:[%s783_s0 + $0x3b] sm:$0x1]  }
   0x3   :  { %v394_v5 = vld [vmem:[%s783_s0 + $0x3a] sm:$0x1]   ;;  %s519_s22 = smov 118   ;;  %s520_s23 = smov 116   ;;  %v395_v6 = vld [vmem:[%s783_s0 + $0x39] sm:$0x1]  }
   0x4   :  { %v396_v7 = vld [vmem:[%s783_s0 + $0x38] sm:$0x1]   ;;  %s521_s28 = smov 114   ;;  %s522_s29 = smov 112   ;;  %v397_v8 = vld [vmem:[%s783_s0 + $0x37] sm:$0x1]  }
   0x5   :  { %v398_v9 = vld [vmem:[%s783_s0 + $0x36] sm:$0x1]   ;;  %s523_s5 = smov 110   ;;  %s524_s6 = smov 108   ;;  %v399_v10 = vld [vmem:[%s783_s0 + $0x35] sm:$0x1]  }
   0x6   :  { %13 = vrot.lane.b32.xlu0 %v390_v2, %s517_s16  ;;  %25 = vrot.lane.b32.xlu1 %v392_v3, %s518_s17  ;;  %v400_v11 = vld [vmem:[%s783_s0 + $0x34] sm:$0x1]   ;;  %s525_s11 = smov 106   ;;  %s526_s12 = smov 104   ;;  %v401_v12 = vld [vmem:[%s783_s0 + $0x33] sm:$0x1]  }
   0x7   :  { %v402_v13 = vld [vmem:[%s783_s0 + $0x32] sm:$0x1]   ;;  %s527_s17 = smov 102   ;;  %s528_s18 = smov 100   ;;  %v403_v14 = vld [vmem:[%s783_s0 + $0x31] sm:$0x1]  }
   0x8   :  { %v404_v15 = vld [vmem:[%s783_s0 + $0x30] sm:$0x1]   ;;  %v2_v16 = vld [vmem:[%s783_s0] sm:$0x1]   ;;  %s529_s25 = smov 98   ;;  %s530_s26 = smov 96  }
   0x9   :  { %v405_v17 = vld [vmem:[%s783_s0 + $0x2f] sm:$0x1]   ;;  %v406_v18 = vld [vmem:[%s783_s0 + $0x2e] sm:$0x1]   ;;  %4 = vst.msk [vmem:[#allocation0] sm:$0x1] %vm3_vm0, %v2_v16  }
   0xa   :  { %31 = vrot.lane.b32.xlu0 %v393_v4, %s519_s22  ;;  %37 = vrot.lane.b32.xlu1 %v394_v5, %s520_s23  ;;  %s531_s2 = smov 94   ;;  %s532_s3 = smov 92   ;;  %v407_v19 = vld [vmem:[%s783_s0 + $0x2d] sm:$0x1]   ;;  %v408_v20 = vld [vmem:[%s783_s0 + $0x2c] sm:$0x1]  }
   0xb   :  { %s533_s8 = smov 90   ;;  %s534_s9 = smov 88   ;;  %v409_v21 = vld [vmem:[%s783_s0 + $0x2b] sm:$0x1]   ;;  %v410_v22 = vld [vmem:[%s783_s0 + $0x2a] sm:$0x1]  }
   0xc   :  { %s535_s14 = smov 86   ;;  %s536_s15 = smov 84   ;;  %v411_v23 = vld [vmem:[%s783_s0 + $0x29] sm:$0x1]   ;;  %v412_v24 = vld [vmem:[%s783_s0 + $0x28] sm:$0x1]  }
   0xd   :  { %s537_s20 = smov 82   ;;  %s538_s21 = smov 80   ;;  %v413_v25 = vld [vmem:[%s783_s0 + $0x27] sm:$0x1]   ;;  %v414_v26 = vld [vmem:[%s783_s0 + $0x26] sm:$0x1]  }
   0xe   :  { %43 = vrot.lane.b32.xlu0 %v395_v6, %s521_s28  ;;  %49 = vrot.lane.b32.xlu1 %v396_v7, %s522_s29  ;;  %s540_s27 = smov 76   ;;  %v415_v27 = vld [vmem:[%s783_s0 + $0x25] sm:$0x1]   ;;  %v416_v28 = vld [vmem:[%s783_s0 + $0x24] sm:$0x1]   ;;  %s542_s4 = smov 72  }
   0xf   :  { %v417_v29 = vld [vmem:[%s783_s0 + $0x23] sm:$0x1]   ;;  %v418_v30 = vld [vmem:[%s783_s0 + $0x22] sm:$0x1]   ;;  %s544_s10 = smov 68   ;;  %s546_s16 = smov 64  }
  0x10   :  { %v419_v31 = vld [vmem:[%s783_s0 + $0x21] sm:$0x1]   ;;  %v420_v32 = vld [vmem:[%s783_s0 + $0x20] sm:$0x1]   ;;  %v421_v33 = vld [vmem:[%s783_s0 + $0x1f] sm:$0x1]  }
  0x11   :  { %v422_v34 = vld [vmem:[%s783_s0 + $0x1e] sm:$0x1]   ;;  %s548_s22 = smov 60   ;;  %v423_v35 = vld [vmem:[%s783_s0 + $0x1d] sm:$0x1]   ;;  %s550_s28 = smov 56  }
  0x12   :  { %55 = vrot.lane.b32.xlu0 %v397_v8, %s523_s5  ;;  %61 = vrot.lane.b32.xlu1 %v398_v9, %s524_s6  ;;  %v424_v36 = vld [vmem:[%s783_s0 + $0x1c] sm:$0x1]   ;;  %v425_v37 = vld [vmem:[%s783_s0 + $0x1b] sm:$0x1]   ;;  %s552_s5 = smov 52   ;;  %s558_s23 = smov 40  }
  0x13   :  { %v426_v38 = vld [vmem:[%s783_s0 + $0x1a] sm:$0x1]   ;;  %v427_v39 = vld [vmem:[%s783_s0 + $0x19] sm:$0x1]   ;;  %v428_v40 = vld [vmem:[%s783_s0 + $0x18] sm:$0x1]  }
  0x14   :  { %v429_v41 = vld [vmem:[%s783_s0 + $0x17] sm:$0x1]   ;;  %v430_v42 = vld [vmem:[%s783_s0 + $0x16] sm:$0x1]   ;;  %v431_v43 = vld [vmem:[%s783_s0 + $0x15] sm:$0x1]  }
  0x15   :  { %v432_v44 = vld [vmem:[%s783_s0 + $0x14] sm:$0x1]   ;;  %v433_v45 = vld [vmem:[%s783_s0 + $0x13] sm:$0x1]   ;;  %v434_v46 = vld [vmem:[%s783_s0 + $0x12] sm:$0x1]  }
  0x16   :  { %67 = vrot.lane.b32.xlu0 %v399_v10, %s525_s11  ;;  %73 = vrot.lane.b32.xlu1 %v400_v11, %s526_s12  ;;  %s554_s11 = smov 48   ;;  %s560_s29 = smov 36   ;;  %v435_v47 = vld [vmem:[%s783_s0 + $0x11] sm:$0x1]   ;;  %v436_v48 = vld [vmem:[%s783_s0 + $0x10] sm:$0x1]  }
  0x17   :  { %s562_s6 = smov 32   ;;  %v437_v49 = vld [vmem:[%s783_s0 + $0xf] sm:$0x1]   ;;  %v438_v50 = vld [vmem:[%s783_s0 + $0xe] sm:$0x1]   ;;  %s564_s12 = smov 28  }
  0x18   :  { %v439_v51 = vld [vmem:[%s783_s0 + $0xd] sm:$0x1]   ;;  %v440_v52 = vld [vmem:[%s783_s0 + $0xc] sm:$0x1]   ;;  %v441_v53 = vld [vmem:[%s783_s0 + $0xb] sm:$0x1]  }
  0x19   :  { %v442_v54 = vld [vmem:[%s783_s0 + $0xa] sm:$0x1]   ;;  %s568_s24 = smov 20   ;;  %v443_v55 = vld [vmem:[%s783_s0 + $0x9] sm:$0x1]   ;;  %s570_s30 = smov 16  }
  0x1a   :  { %79 = vrot.lane.b32.xlu0 %v401_v12, %s527_s17  ;;  %85 = vrot.lane.b32.xlu1 %v402_v13, %s528_s18  ;;  %s556_s17 = smov 44   ;;  %s566_s18 = smov 24   ;;  %v444_v56 = vld [vmem:[%s783_s0 + $0x8] sm:$0x1]   ;;  %v445_v57 = vld [vmem:[%s783_s0 + $0x7] sm:$0x1]  }
  0x1b   :  { %v446_v58 = vld [vmem:[%s783_s0 + $0x6] sm:$0x1]   ;;  %s572_s7 = smov 12   ;;  %v447_v59 = vld [vmem:[%s783_s0 + $0x5] sm:$0x1]   ;;  %s574_s13 = smov 8  }
  0x1c   :  { %v448_v60 = vld [vmem:[%s783_s0 + $0x4] sm:$0x1]   ;;  %v449_v63 = vld [vmem:[%s783_s0 + $0x3] sm:$0x1]   ;;  %v450_v0 = vld [vmem:[%s783_s0 + $0x2] sm:$0x1]  }
  0x1d   :  { %vm27_vm4 = vcmask 999360   ;;  %vm33_vm5 = vcmask 982960   ;;  %s576_s19 = smov 4   ;;  %v451_v3 = vld [vmem:[%s783_s0 + $0x1] sm:$0x1]   ;;  %vm39_vm6 = vcmask 966560  }
  0x1e   :  { %91 = vrot.lane.b32.xlu0 %v403_v14, %s529_s25  ;;  %97 = vrot.lane.b32.xlu1 %v404_v15, %s530_s26  ;;  %s539_s26 = smov 78   ;;  %s577_s0 = smov 2   ;;  %vm45_vm7 = vcmask 950160   ;;  %vm51_vm8 = vcmask 933760   ;;  %vm57_vm9 = vcmask 917360   ;;  %vm63_vm10 = vcmask 900960  }
  0x1f   :  { %vm69_vm11 = vcmask 884560   ;;  %vm75_vm12 = vcmask 868160   ;;  %vm81_vm13 = vcmask 851760   ;;  %vm87_vm14 = vcmask 835360  }
  0x20   :  { %vm93_vm15 = vcmask 818960   ;;  %vm99_vm0 = vcmask 802560  }
  0x22   :  { %103 = vrot.lane.b32.xlu0 %v405_v17, %s531_s2  ;;  %109 = vrot.lane.b32.xlu1 %v406_v18, %s532_s3  ;;  %s541_s3 = smov 74  }
  0x26   :  { %115 = vrot.lane.b32.xlu0 %v407_v19, %s533_s8  ;;  %121 = vrot.lane.b32.xlu1 %v408_v20, %s534_s9  ;;  %s543_s9 = smov 70  }
  0x2a   :  { %127 = vrot.lane.b32.xlu0 %v409_v21, %s535_s14  ;;  %133 = vrot.lane.b32.xlu1 %v410_v22, %s536_s15  ;;  %s545_s15 = smov 66  }
  0x2e   :  { %139 = vrot.lane.b32.xlu0 %v411_v23, %s537_s20  ;;  %145 = vrot.lane.b32.xlu1 %v412_v24, %s538_s21  ;;  %s547_s21 = smov 62  }
  0x32   :  { %151 = vrot.lane.b32.xlu0 %v413_v25, %s539_s26  ;;  %157 = vrot.lane.b32.xlu1 %v414_v26, %s540_s27  ;;  %s549_s27 = smov 58  }
  0x36   :  { %163 = vrot.lane.b32.xlu0 %v415_v27, %s541_s3  ;;  %169 = vrot.lane.b32.xlu1 %v416_v28, %s542_s4  ;;  %s551_s4 = smov 54  }
  0x3a   :  { %175 = vrot.lane.b32.xlu0 %v417_v29, %s543_s9  ;;  %181 = vrot.lane.b32.xlu1 %v418_v30, %s544_s10  ;;  %s553_s10 = smov 50  }
  0x3e   :  { %187 = vrot.lane.b32.xlu0 %v419_v31, %s545_s15  ;;  %193 = vrot.lane.b32.xlu1 %v420_v32, %s546_s16  ;;  %s555_s16 = smov 46  }
  0x42   :  { %199 = vrot.lane.b32.xlu0 %v421_v33, %s547_s21  ;;  %205 = vrot.lane.b32.xlu1 %v422_v34, %s548_s22  ;;  %s557_s22 = smov 42  }
  0x46   :  { %211 = vrot.lane.b32.xlu0 %v423_v35, %s549_s27  ;;  %217 = vrot.lane.b32.xlu1 %v424_v36, %s550_s28  ;;  %s559_s28 = smov 38  }
  0x4a   :  { %223 = vrot.lane.b32.xlu0 %v425_v37, %s551_s4  ;;  %229 = vrot.lane.b32.xlu1 %v426_v38, %s552_s5  ;;  %s561_s5 = smov 34  }
  0x4e   :  { %235 = vrot.lane.b32.xlu0 %v427_v39, %s553_s10  ;;  %241 = vrot.lane.b32.xlu1 %v428_v40, %s554_s11  ;;  %s563_s11 = smov 30  }
  0x52   :  { %247 = vrot.lane.b32.xlu0 %v429_v41, %s555_s16  ;;  %253 = vrot.lane.b32.xlu1 %v430_v42, %s556_s17  ;;  %s565_s17 = smov 26  }
  0x56   :  { %259 = vrot.lane.b32.xlu0 %v431_v43, %s557_s22  ;;  %265 = vrot.lane.b32.xlu1 %v432_v44, %s558_s23  ;;  %s567_s23 = smov 22  }
  0x5a   :  { %271 = vrot.lane.b32.xlu0 %v433_v45, %s559_s28  ;;  %277 = vrot.lane.b32.xlu1 %v434_v46, %s560_s29  ;;  %s569_s29 = smov 18  }
  0x5e   :  { %283 = vrot.lane.b32.xlu0 %v435_v47, %s561_s5  ;;  %289 = vrot.lane.b32.xlu1 %v436_v48, %s562_s6  ;;  %s571_s6 = smov 14  }
  0x62   :  { %295 = vrot.lane.b32.xlu0 %v437_v49, %s563_s11  ;;  %301 = vrot.lane.b32.xlu1 %v438_v50, %s564_s12  ;;  %s573_s12 = smov 10  }
  0x66   :  { %307 = vrot.lane.b32.xlu0 %v439_v51, %s565_s17  ;;  %313 = vrot.lane.b32.xlu1 %v440_v52, %s566_s18  ;;  %s575_s18 = smov 6  }
  0x6a   :  { %319 = vrot.lane.b32.xlu0 %v441_v53, %s567_s23  ;;  %325 = vrot.lane.b32.xlu1 %v442_v54, %s568_s24 }
  0x6e   :  { %331 = vrot.lane.b32.xlu0 %v443_v55, %s569_s29  ;;  %337 = vrot.lane.b32.xlu1 %v444_v56, %s570_s30 }
  0x72   :  { %343 = vrot.lane.b32.xlu0 %v445_v57, %s571_s6  ;;  %349 = vrot.lane.b32.xlu1 %v446_v58, %s572_s7 }
  0x74   :  { %v8_v61 = vpop.permute.xlu0 %7   ;;  %v20_v62 = vpop.permute.xlu1 %19  }
  0x75   :  { %10 = vst.msk [vmem:[#allocation0] sm:$0x1] %vm9_vm1, %v8_v61   ;;  %vm105_vm1 = vcmask 786160  }
  0x76   :  { %355 = vrot.lane.b32.xlu0 %v447_v59, %s573_s12  ;;  %361 = vrot.lane.b32.xlu1 %v448_v60, %s574_s13 }
  0x78   :  { %v14_v1 = vpop.permute.xlu0 %13   ;;  %v26_v2 = vpop.permute.xlu1 %25  }
  0x79   :  { %16 = vst.msk [vmem:[#allocation0] sm:$0x1] %vm15_vm3, %v14_v1   ;;  %vm117_vm3 = vcmask 753360  }
  0x7a   :  { %22 = vst.msk [vmem:[#allocation0] sm:$0x1] %vm21_vm2, %v20_v62   ;;  %367 = vrot.lane.b32.xlu0 %v449_v63, %s575_s18  ;;  %373 = vrot.lane.b32.xlu1 %v450_v0, %s576_s19  ;;  %vm111_vm2 = vcmask 769760  }
  0x7b   :  { %28 = vst.msk [vmem:[#allocation0] sm:$0x1] %vm27_vm4, %v26_v2   ;;  %vm123_vm4 = vcmask 736960  }
  0x7c   :  { %v32_v4 = vpop.permute.xlu0 %31   ;;  %v38_v5 = vpop.permute.xlu1 %37  }
  0x7d   :  { %34 = vst.msk [vmem:[#allocation0] sm:$0x1] %vm33_vm5, %v32_v4   ;;  %vm129_vm5 = vcmask 720560  }
  0x7e   :  { %379 = vrot.lane.b32.xlu0 %v451_v3, %s577_s0  ;;  %40 = vst.msk [vmem:[#allocation0] sm:$0x1] %vm39_vm6, %v38_v5   ;;  %vm135_vm6 = vcmask 704160  }
  0x80   :  { %v44_v6 = vpop.permute.xlu0 %43   ;;  %v50_v7 = vpop.permute.xlu1 %49  }
  0x81   :  { %46 = vst.msk [vmem:[#allocation0] sm:$0x1] %vm45_vm7, %v44_v6   ;;  %vm141_vm7 = vcmask 687760  }
  0x82   :  { %52 = vst.msk [vmem:[#allocation0] sm:$0x1] %vm51_vm8, %v50_v7   ;;  %vm147_vm8 = vcmask 671360  }
  0x84   :  { %v56_v8 = vpop.permute.xlu0 %55   ;;  %v62_v9 = vpop.permute.xlu1 %61  }
  0x85   :  { %58 = vst.msk [vmem:[#allocation0] sm:$0x1] %vm57_vm9, %v56_v8   ;;  %vm153_vm9 = vcmask 654960  }
  0x86   :  { %64 = vst.msk [vmem:[#allocation0] sm:$0x1] %vm63_vm10, %v62_v9   ;;  %vm159_vm10 = vcmask 638560  }
  0x88   :  { %v68_v10 = vpop.permute.xlu0 %67   ;;  %v74_v11 = vpop.permute.xlu1 %73  }
  0x89   :  { %70 = vst.msk [vmem:[#allocation0] sm:$0x1] %vm69_vm11, %v68_v10   ;;  %vm165_vm11 = vcmask 622160  }
  0x8a   :  { %76 = vst.msk [vmem:[#allocation0] sm:$0x1] %vm75_vm12, %v74_v11   ;;  %vm171_vm12 = vcmask 605760  }
  0x8c   :  { %v80_v12 = vpop.permute.xlu0 %79   ;;  %v86_v13 = vpop.permute.xlu1 %85  }
  0x8d   :  { %82 = vst.msk [vmem:[#allocation0] sm:$0x1] %vm81_vm13, %v80_v12   ;;  %vm177_vm13 = vcmask 589360  }
  0x8e   :  { %88 = vst.msk [vmem:[#allocation0] sm:$0x1] %vm87_vm14, %v86_v13   ;;  %vm183_vm14 = vcmask 572960  }
  0x90   :  { %v92_v14 = vpop.permute.xlu0 %91   ;;  %v98_v15 = vpop.permute.xlu1 %97  }
  0x91   :  { %94 = vst.msk [vmem:[#allocation0] sm:$0x1] %vm93_vm15, %v92_v14   ;;  %vm189_vm15 = vcmask 556560  }
  0x92   :  { %100 = vst.msk [vmem:[#allocation0] sm:$0x1] %vm99_vm0, %v98_v15   ;;  %vm195_vm0 = vcmask 540160  }
  0x94   :  { %v104_v16 = vpop.permute.xlu0 %103   ;;  %v110_v17 = vpop.permute.xlu1 %109  }
  0x95   :  { %106 = vst.msk [vmem:[#allocation0] sm:$0x1] %vm105_vm1, %v104_v16   ;;  %vm201_vm1 = vcmask 523760  }
  0x96   :  { %112 = vst.msk [vmem:[#allocation0] sm:$0x1] %vm111_vm2, %v110_v17   ;;  %vm207_vm2 = vcmask 507360  }
  0x98   :  { %v116_v18 = vpop.permute.xlu0 %115   ;;  %v122_v19 = vpop.permute.xlu1 %121  }
  0x99   :  { %118 = vst.msk [vmem:[#allocation0] sm:$0x1] %vm117_vm3, %v116_v18   ;;  %vm213_vm3 = vcmask 490960  }
  0x9a   :  { %124 = vst.msk [vmem:[#allocation0] sm:$0x1] %vm123_vm4, %v122_v19   ;;  %vm219_vm4 = vcmask 474560  }
  0x9c   :  { %v128_v20 = vpop.permute.xlu0 %127   ;;  %v134_v21 = vpop.permute.xlu1 %133  }
  0x9d   :  { %130 = vst.msk [vmem:[#allocation0] sm:$0x1] %vm129_vm5, %v128_v20   ;;  %vm225_vm5 = vcmask 458160  }
  0x9e   :  { %136 = vst.msk [vmem:[#allocation0] sm:$0x1] %vm135_vm6, %v134_v21   ;;  %vm231_vm6 = vcmask 441760  }
  0xa0   :  { %v140_v22 = vpop.permute.xlu0 %139   ;;  %v146_v23 = vpop.permute.xlu1 %145  }
  0xa1   :  { %142 = vst.msk [vmem:[#allocation0] sm:$0x1] %vm141_vm7, %v140_v22   ;;  %vm237_vm7 = vcmask 425360  }
  0xa2   :  { %148 = vst.msk [vmem:[#allocation0] sm:$0x1] %vm147_vm8, %v146_v23   ;;  %vm243_vm8 = vcmask 408960  }
  0xa4   :  { %v152_v24 = vpop.permute.xlu0 %151   ;;  %v158_v25 = vpop.permute.xlu1 %157  }
  0xa5   :  { %154 = vst.msk [vmem:[#allocation0] sm:$0x1] %vm153_vm9, %v152_v24   ;;  %vm249_vm9 = vcmask 392560  }
  0xa6   :  { %160 = vst.msk [vmem:[#allocation0] sm:$0x1] %vm159_vm10, %v158_v25   ;;  %vm255_vm10 = vcmask 376160  }
  0xa8   :  { %v164_v26 = vpop.permute.xlu0 %163   ;;  %v170_v27 = vpop.permute.xlu1 %169  }
  0xa9   :  { %166 = vst.msk [vmem:[#allocation0] sm:$0x1] %vm165_vm11, %v164_v26   ;;  %vm261_vm11 = vcmask 359760  }
  0xaa   :  { %172 = vst.msk [vmem:[#allocation0] sm:$0x1] %vm171_vm12, %v170_v27   ;;  %vm267_vm12 = vcmask 343360  }
  0xac   :  { %v176_v28 = vpop.permute.xlu0 %175   ;;  %v182_v29 = vpop.permute.xlu1 %181  }
  0xad   :  { %178 = vst.msk [vmem:[#allocation0] sm:$0x1] %vm177_vm13, %v176_v28   ;;  %vm273_vm13 = vcmask 326960  }
  0xae   :  { %184 = vst.msk [vmem:[#allocation0] sm:$0x1] %vm183_vm14, %v182_v29   ;;  %vm279_vm14 = vcmask 310560  }
  0xb0   :  { %v188_v30 = vpop.permute.xlu0 %187   ;;  %v194_v31 = vpop.permute.xlu1 %193  }
  0xb1   :  { %190 = vst.msk [vmem:[#allocation0] sm:$0x1] %vm189_vm15, %v188_v30   ;;  %vm285_vm15 = vcmask 294160  }
  0xb2   :  { %196 = vst.msk [vmem:[#allocation0] sm:$0x1] %vm195_vm0, %v194_v31   ;;  %vm291_vm0 = vcmask 277760  }
  0xb4   :  { %v200_v32 = vpop.permute.xlu0 %199   ;;  %v206_v33 = vpop.permute.xlu1 %205  }
  0xb5   :  { %202 = vst.msk [vmem:[#allocation0] sm:$0x1] %vm201_vm1, %v200_v32   ;;  %vm297_vm1 = vcmask 261360  }
  0xb6   :  { %208 = vst.msk [vmem:[#allocation0] sm:$0x1] %vm207_vm2, %v206_v33   ;;  %vm303_vm2 = vcmask 244960  }
  0xb8   :  { %v212_v34 = vpop.permute.xlu0 %211   ;;  %v218_v35 = vpop.permute.xlu1 %217  }
  0xb9   :  { %214 = vst.msk [vmem:[#allocation0] sm:$0x1] %vm213_vm3, %v212_v34   ;;  %vm309_vm3 = vcmask 228560  }
  0xba   :  { %220 = vst.msk [vmem:[#allocation0] sm:$0x1] %vm219_vm4, %v218_v35   ;;  %vm315_vm4 = vcmask 212160  }
  0xbc   :  { %v224_v36 = vpop.permute.xlu0 %223   ;;  %v230_v37 = vpop.permute.xlu1 %229  }
  0xbd   :  { %226 = vst.msk [vmem:[#allocation0] sm:$0x1] %vm225_vm5, %v224_v36   ;;  %vm321_vm5 = vcmask 195760  }
  0xbe   :  { %232 = vst.msk [vmem:[#allocation0] sm:$0x1] %vm231_vm6, %v230_v37   ;;  %vm327_vm6 = vcmask 179360  }
  0xc0   :  { %v236_v38 = vpop.permute.xlu0 %235   ;;  %v242_v39 = vpop.permute.xlu1 %241  }
  0xc1   :  { %238 = vst.msk [vmem:[#allocation0] sm:$0x1] %vm237_vm7, %v236_v38   ;;  %vm333_vm7 = vcmask 162960  }
  0xc2   :  { %244 = vst.msk [vmem:[#allocation0] sm:$0x1] %vm243_vm8, %v242_v39   ;;  %vm339_vm8 = vcmask 146560  }
  0xc4   :  { %v248_v40 = vpop.permute.xlu0 %247   ;;  %v254_v41 = vpop.permute.xlu1 %253  }
  0xc5   :  { %250 = vst.msk [vmem:[#allocation0] sm:$0x1] %vm249_vm9, %v248_v40   ;;  %vm345_vm9 = vcmask 130160  }
  0xc6   :  { %256 = vst.msk [vmem:[#allocation0] sm:$0x1] %vm255_vm10, %v254_v41   ;;  %vm351_vm10 = vcmask 113760  }
  0xc8   :  { %v260_v42 = vpop.permute.xlu0 %259   ;;  %v266_v43 = vpop.permute.xlu1 %265  }
  0xc9   :  { %262 = vst.msk [vmem:[#allocation0] sm:$0x1] %vm261_vm11, %v260_v42   ;;  %vm357_vm11 = vcmask 97360  }
  0xca   :  { %268 = vst.msk [vmem:[#allocation0] sm:$0x1] %vm267_vm12, %v266_v43   ;;  %vm363_vm12 = vcmask 80960  }
  0xcc   :  { %v272_v44 = vpop.permute.xlu0 %271   ;;  %v278_v45 = vpop.permute.xlu1 %277  }
  0xcd   :  { %274 = vst.msk [vmem:[#allocation0] sm:$0x1] %vm273_vm13, %v272_v44   ;;  %vm369_vm13 = vcmask 64560  }
  0xce   :  { %280 = vst.msk [vmem:[#allocation0] sm:$0x1] %vm279_vm14, %v278_v45   ;;  %vm375_vm14 = vcmask 48160  }
  0xd0   :  { %v284_v46 = vpop.permute.xlu0 %283   ;;  %v290_v47 = vpop.permute.xlu1 %289  }
  0xd1   :  { %286 = vst.msk [vmem:[#allocation0] sm:$0x1] %vm285_vm15, %v284_v46   ;;  %vm381_vm15 = vcmask 31760  }
  0xd2   :  { %292 = vst.msk [vmem:[#allocation0] sm:$0x1] %vm291_vm0, %v290_v47  }
  0xd4   :  { %v296_v48 = vpop.permute.xlu0 %295   ;;  %v302_v49 = vpop.permute.xlu1 %301  }
  0xd5   :  { %298 = vst.msk [vmem:[#allocation0] sm:$0x1] %vm297_vm1, %v296_v48  }
  0xd6   :  { %304 = vst.msk [vmem:[#allocation0] sm:$0x1] %vm303_vm2, %v302_v49  }
  0xd8   :  { %v308_v50 = vpop.permute.xlu0 %307   ;;  %v314_v51 = vpop.permute.xlu1 %313  }
  0xd9   :  { %310 = vst.msk [vmem:[#allocation0] sm:$0x1] %vm309_vm3, %v308_v50  }
  0xda   :  { %316 = vst.msk [vmem:[#allocation0] sm:$0x1] %vm315_vm4, %v314_v51  }
  0xdc   :  { %v320_v52 = vpop.permute.xlu0 %319   ;;  %v326_v53 = vpop.permute.xlu1 %325  }
  0xdd   :  { %322 = vst.msk [vmem:[#allocation0] sm:$0x1] %vm321_vm5, %v320_v52  }
  0xde   :  { %328 = vst.msk [vmem:[#allocation0] sm:$0x1] %vm327_vm6, %v326_v53  }
  0xe0   :  { %v332_v54 = vpop.permute.xlu0 %331   ;;  %v338_v55 = vpop.permute.xlu1 %337  }
  0xe1   :  { %334 = vst.msk [vmem:[#allocation0] sm:$0x1] %vm333_vm7, %v332_v54  }
  0xe2   :  { %340 = vst.msk [vmem:[#allocation0] sm:$0x1] %vm339_vm8, %v338_v55  }
  0xe4   :  { %v344_v56 = vpop.permute.xlu0 %343   ;;  %v350_v57 = vpop.permute.xlu1 %349  }
  0xe5   :  { %346 = vst.msk [vmem:[#allocation0] sm:$0x1] %vm345_vm9, %v344_v56  }
  0xe6   :  { %352 = vst.msk [vmem:[#allocation0] sm:$0x1] %vm351_vm10, %v350_v57  }
  0xe8   :  { %v356_v58 = vpop.permute.xlu0 %355   ;;  %v362_v59 = vpop.permute.xlu1 %361  }
  0xe9   :  { %358 = vst.msk [vmem:[#allocation0] sm:$0x1] %vm357_vm11, %v356_v58  }
  0xea   :  { %364 = vst.msk [vmem:[#allocation0] sm:$0x1] %vm363_vm12, %v362_v59  }
  0xec   :  { %v368_v60 = vpop.permute.xlu0 %367   ;;  %v374_v61 = vpop.permute.xlu1 %373  }
  0xed   :  { %370 = vst.msk [vmem:[#allocation0] sm:$0x1] %vm369_vm13, %v368_v60  }
  0xee   :  { %376 = vst.msk [vmem:[#allocation0] sm:$0x1] %vm375_vm14, %v374_v61  }
  0xf0   :  { %v380_v62 = vpop.permute.xlu0 %379  }
  0xf1   :  { %382 = vst.msk [vmem:[#allocation0] sm:$0x1] %vm381_vm15, %v380_v62  }
  0xf8   :  { %v386_v63 = vld [vmem:[#allocation0] sm:$0x1] }
  0xf9   :  { %388 = vst [vmem:[%s784_s1] sm:$0x1] %v386_v63 }

// kernel: tdtransformer_forward.45
= control target key start
LH: loop header
LB: loop body
LE: loop exit
PB: predicated region body
PF: predicated region fallthrough
CT: control target
= control target key end

     0   :  { %s260_s0 = inlined_call_operand.vmem [shape: f32[32,128], index: 0, kind: input, shape index: {}]   ;;  %s261_s1 = inlined_call_operand.vmem [shape: f32[32,128], index: 1, kind: input, shape index: {}]   ;;  %s262_s2 = inlined_call_operand.vmem [shape: f32[32,128], index: 2, kind: input, shape index: {}]   ;;  %s263_s3 = inlined_call_operand.vmem [shape: f32[32,128], index: 3, kind: input, shape index: {}]   ;;  %s264_s4 = inlined_call_operand.vmem [shape: f32[1,128], index: 4, kind: input, shape index: {}]   ;;  %s265_s5 = inlined_call_operand.vmem [shape: f32[1,128], index: 5, kind: input, shape index: {}]   ;;  %s266_s6 = inlined_call_operand.vmem [shape: f32[32,128], index: 6, kind: output, shape index: {}]  }
   0x1   :  { %v161_v0 = vld [vmem:[%s264_s4] ss:$0 sm:$0xff]  ;;  %v26_v10 = vld [vmem:[%s260_s0 + $0x8] sm:$0xff]  ;;  %v27_v22 = vld [vmem:[%s260_s0 + $0x10] sm:$0xff] }
   0x2   :  { %v166_v1 = vld [vmem:[%s265_s5] ss:$0 sm:$0xff]  ;;  %v54_v11 = vld [vmem:[%s261_s1 + $0x8] sm:$0xff]  ;;  %v36_v14 = vmul.f32 %v161_v0, %v26_v10  ;;  %v55_v27 = vld [vmem:[%s261_s1 + $0x10] sm:$0xff]  ;;  %v37_v37 = vmul.f32 %v161_v0, %v27_v22 }
   0x3   :  { %v25_v2 = vld [vmem:[%s260_s0] sm:$0xff]  ;;  %v74_v12 = vld [vmem:[%s262_s2 + $0x8] sm:$0xff]  ;;  %v58_v15 = vmul.f32 %v161_v0, %v54_v11  ;;  %v75_v32 = vld [vmem:[%s262_s2 + $0x10] sm:$0xff]  ;;  %v59_v42 = vmul.f32 %v161_v0, %v55_v27 }
   0x4   :  { %v35_v3 = vmul.f32 %v161_v0, %v25_v2  ;;  %v53_v4 = vld [vmem:[%s261_s1] sm:$0xff]  ;;  %v78_v16 = vmul.f32 %v161_v0, %v74_v12  ;;  %v90_v17 = vld [vmem:[%s263_s3 + $0x8] sm:$0xff]  ;;  %v46_v24 = vadd.f32 %v166_v1, %v36_v14  ;;  %v91_v33 = vld [vmem:[%s263_s3 + $0x10] sm:$0xff]  ;;  %v47_v45 = vadd.f32 %v166_v1, %v37_v37 }
   0x5   :  { %v73_v5 = vld [vmem:[%s262_s2] sm:$0xff]  ;;  %v57_v7 = vmul.f32 %v161_v0, %v53_v4  ;;  %v94_v21 = vmul.f32 %v161_v0, %v90_v17  ;;  %v62_v25 = vadd.f32 %v166_v1, %v58_v15  ;;  %v28_v38 = vld [vmem:[%s260_s0 + $0x18] sm:$0xff]  ;;  %v79_v46 = vmul.f32 %v161_v0, %v75_v32 }
   0x6   :  { %v89_v6 = vld [vmem:[%s263_s3] sm:$0xff]  ;;  %v77_v8 = vmul.f32 %v161_v0, %v73_v5  ;;  %v45_v13 = vadd.f32 %v166_v1, %v35_v3  ;;  %v82_v26 = vadd.f32 %v166_v1, %v78_v16  ;;  %v50_v34 = vmax.f32 %v46_v24, 0.0  ;;  %v56_v43 = vld [vmem:[%s261_s1 + $0x18] sm:$0xff] }
   0x7   :  { %v93_v9 = vmul.f32 %v161_v0, %v89_v6  ;;  %v61_v18 = vadd.f32 %v166_v1, %v57_v7  ;;  %v98_v31 = vadd.f32 %v166_v1, %v94_v21  ;;  %v66_v35 = vmax.f32 %v62_v25, 0.0  ;;  %v76_v48 = vld [vmem:[%s262_s2 + $0x18] sm:$0xff] }
   0x8   :  { %v81_v19 = vadd.f32 %v166_v1, %v77_v8  ;;  %v49_v23 = vmax.f32 %v45_v13, 0.0  ;;  %v86_v36 = vmax.f32 %v82_v26, 0.0  ;;  %v95_v47 = vmul.f32 %v161_v0, %v91_v33  ;;  %v92_v53 = vld [vmem:[%s263_s3 + $0x18] sm:$0xff] }
   0x9   :  { %v97_v20 = vadd.f32 %v166_v1, %v93_v9  ;;  %v65_v28 = vmax.f32 %v61_v18, 0.0  ;;  %v102_v41 = vmax.f32 %v98_v31, 0.0  ;;  %v70_v44 = vmax.f32 %v50_v34, %v66_v35 }
   0xa   :  { %v85_v29 = vmax.f32 %v81_v19, 0.0  ;;  %v63_v51 = vadd.f32 %v166_v1, %v59_v42  ;;  %v38_v52 = vmul.f32 %v161_v0, %v28_v38  ;;  %v51_v54 = vmax.f32 %v47_v45, 0.0 }
   0xb   :  { %v101_v30 = vmax.f32 %v97_v20, 0.0  ;;  %v69_v39 = vmax.f32 %v49_v23, %v65_v28  ;;  %v106_v50 = vmax.f32 %v86_v36, %v102_v41  ;;  %v83_v55 = vadd.f32 %v166_v1, %v79_v46 }
   0xc   :  { %v99_v56 = vadd.f32 %v166_v1, %v95_v47  ;;  %v60_v57 = vmul.f32 %v161_v0, %v56_v43  ;;  %v67_v59 = vmax.f32 %v63_v51, 0.0  ;;  %v48_v60 = vadd.f32 %v166_v1, %v38_v52 }
   0xd   :  { %v105_v40 = vmax.f32 %v85_v29, %v101_v30  ;;  %v110_v58 = vmax.f32 %v70_v44, %v106_v50  ;;  %v80_v61 = vmul.f32 %v161_v0, %v76_v48  ;;  %v87_v62 = vmax.f32 %v83_v55, 0.0 }
   0xe   :  { %v103_v63 = vmax.f32 %v99_v56, 0.0  ;;  %v64_v2 = vadd.f32 %v166_v1, %v60_v57  ;;  %v96_v3 = vmul.f32 %v161_v0, %v92_v53  ;;  %v71_v4 = vmax.f32 %v51_v54, %v67_v59 }
   0xf   :  { %v109_v49 = vmax.f32 %v69_v39, %v105_v40  ;;  %114 = vst [vmem:[%s266_s6 + $0x8] sm:$0xff] %v110_v58  ;;  %v52_v5 = vmax.f32 %v48_v60, 0.0  ;;  %v84_v6 = vadd.f32 %v166_v1, %v80_v61 }
  0x10   :  { %v107_v7 = vmax.f32 %v87_v62, %v103_v63  ;;  %v68_v8 = vmax.f32 %v64_v2, 0.0  ;;  %v100_v9 = vadd.f32 %v166_v1, %v96_v3 }
  0x11   :  { %113 = vst [vmem:[%s266_s6] sm:$0xff] %v109_v49  ;;  %v88_v10 = vmax.f32 %v84_v6, 0.0 }
  0x12   :  { %v111_v11 = vmax.f32 %v71_v4, %v107_v7  ;;  %v72_v12 = vmax.f32 %v52_v5, %v68_v8  ;;  %v104_v13 = vmax.f32 %v100_v9, 0.0 }
  0x14   :  { %115 = vst [vmem:[%s266_s6 + $0x10] sm:$0xff] %v111_v11  ;;  %v108_v0 = vmax.f32 %v88_v10, %v104_v13 }
  0x16   :  { %v112_v14 = vmax.f32 %v72_v12, %v108_v0 }
  0x18   :  { %116 = vst [vmem:[%s266_s6 + $0x18] sm:$0xff] %v112_v14 }

// kernel: tdtransformer_forward.46
= control target key start
LH: loop header
LB: loop body
LE: loop exit
PB: predicated region body
PF: predicated region fallthrough
CT: control target
= control target key end

     0   :  { %s2047_s12 = smov 0   ;;  %s2601_s0 = inlined_call_operand.vmem [shape: bf16[2048,54], index: 0, kind: input, shape index: {}]   ;;  %s2602_s1 = inlined_call_operand.vmem [shape: bf16[54,4], index: 1, kind: input, shape index: {}]   ;;  %s2603_s2 = inlined_call_operand.vmem [shape: f32[1,4], index: 2, kind: input, shape index: {}]   ;;  %s2604_s3 = inlined_call_operand.vmem [shape: f32[2048,4], index: 3, kind: output, shape index: {}]  }
   0x1 LB: > { %s1585_s13 = sadd.s32 4294967295, %s2025_s12   ;;  %p1589_p0 = scmp.ge.s32.totalorder %s2025_s12, 1  ;;  %s2025_s12 = sphi %s2047_s12, %s13_s12  }
   0x2   : > { %p138_p1 = scmp.lt.s32.totalorder %s2025_s12, 3 }
   0x4   : > { %p139_p2 = pnand %p1589_p0, %p138_p1 }
   0x5   : > { %v1951_v0 = vld [vmem:[%s2602_s1] sm:$0xff] (!%p139_p2)   ;;  %v1952_v1 = vld [vmem:[%s2602_s1 + $0x8] sm:$0xff] (!%p139_p2)   ;;  %s1590_s18 = sshll.u32 (!%p139_p2), %s1585_s13, 7  ;;  %v1953_v2 = vld [vmem:[%s2602_s1 + $0x10] sm:$0xff] (!%p139_p2)   ;;  %vm658_vm0 = vcmask (!%p139_p2), 441344   ;;  %vm851_vm1 = vcmask (!%p139_p2), 1042432  }
   0x6   : > { %142 = sbr.rel (%p139_p2) target bundleno = 360 (0x168), region = 32  ;;  %1797 = vmatprep.subr.bf16.mxu0 (!%p139_p2), %v1951_v0  ;;  %1933 = vmatprep.subr.bf16.mxu1 (!%p139_p2), %v1951_v0  ;;  %p163_p3 = scmp.lt.s32.totalorder (!%p139_p2), %s1590_s18, 255  ;;  %v1954_v3 = vld [vmem:[%s2602_s1 + $0x18] ss:$0 sps:$4 sm:$0x77] (!%p139_p2)   ;;  %vm1400_vm2 = vcmask (!%p139_p2), 31744  }
   0x7   : > { %1798 = vmatpush3.bf16.msra.mxu0 (!%p139_p2), %v1951_v0  ;;  %1937 = vmatpush3.bf16.msra.mxu1 (!%p139_p2), %v1951_v0  ;;  %v853_v6 = vsel (!%p139_p2), %vm851_vm1, %v1954_v3, 0 }
   0x8   : > { %1799 = vmatprep.subr.bf16.mxu0 (!%p139_p2), %v1952_v1  ;;  %1934 = vmatprep.subr.bf16.mxu1 (!%p139_p2), %v1952_v1 }
   0xb   : > { %1800 = vmatpush3.bf16.msra.mxu0 (!%p139_p2), %v1952_v1  ;;  %1938 = vmatpush3.bf16.msra.mxu1 (!%p139_p2), %v1952_v1 }
   0xc   : > { %1801 = vmatprep.subr.bf16.mxu0 (!%p139_p2), %v1953_v2  ;;  %1935 = vmatprep.subr.bf16.mxu1 (!%p139_p2), %v1953_v2 }
   0xd   : > { %s2606_s18 = smov (!%p163_p3, %s1590_s18), 255 }
   0xe   : > { %s1591_s21 = sshll.u32 %s2606_s18, 2  ;;  %s1593_s27 = sshll.u32 %s2606_s18, 3 }
   0xf   : > { %s2073_s26 = scalar_lea.vmem %s2601_s0, %s1591_s21  ;;  %1802 = vmatpush3.bf16.msra.mxu0 %v1953_v2  ;;  %1939 = vmatpush3.bf16.msra.mxu1 %v1953_v2  ;;  %s2212_s5 = scalar_lea.vmem %s2604_s3, %s1593_s27 }
  0x10   : > { %v1955_v4 = vld [vmem:[%s2073_s26] sm:$0xff]   ;;  %1941 = vmatprep.subr.msk.bf16.mxu0 %vm851_vm1, %v1954_v3  ;;  %1942 = vmatprep.subr.msk.bf16.mxu1 %vm851_vm1, %v1954_v3  ;;  %v1957_v7 = vld [vmem:[%s2073_s26 + $0x8] sm:$0xff]   ;;  %v1959_v9 = vld [vmem:[%s2073_s26 + $0x10] sm:$0xff]  }
  0x11   : > { %v1956_v5 = vld [vmem:[%s2073_s26 + $0x100] sm:$0xff]   ;;  %1805 = vmatprep.mubr.msk.bf16.mxu0 %vm658_vm0, %v1955_v4  ;;  %v1958_v8 = vld [vmem:[%s2073_s26 + $0x108] sm:$0xff]   ;;  %v1960_v10 = vld [vmem:[%s2073_s26 + $0x110] sm:$0xff]  }
  0x12   : > { %1869 = vmatprep.mubr.msk.bf16.mxu1 %vm658_vm0, %v1956_v5  ;;  %v1961_v11 = vld [vmem:[%s2073_s26 + $0x18] sm:$0xff]   ;;  %v1963_v13 = vld [vmem:[%s2073_s26 + $0x20] sm:$0xff]   ;;  %v1965_v15 = vld [vmem:[%s2073_s26 + $0x28] sm:$0xff]  }
  0x13   : > { %1804 = vmatpush3.bf16.msra.mxu0 %v853_v6  ;;  %1940 = vmatpush3.bf16.msra.mxu1 %v853_v6  ;;  %v1962_v12 = vld [vmem:[%s2073_s26 + $0x118] sm:$0xff]   ;;  %v1964_v14 = vld [vmem:[%s2073_s26 + $0x120] sm:$0xff]   ;;  %v1966_v16 = vld [vmem:[%s2073_s26 + $0x128] sm:$0xff]  }
  0x14   : > { %v1967_v17 = vld [vmem:[%s2073_s26 + $0x30] sm:$0xff]   ;;  %v1969_v19 = vld [vmem:[%s2073_s26 + $0x38] sm:$0xff]   ;;  %v1971_v21 = vld [vmem:[%s2073_s26 + $0x40] sm:$0xff]  }
  0x15   : > { %v1968_v18 = vld [vmem:[%s2073_s26 + $0x130] sm:$0xff]   ;;  %v1970_v20 = vld [vmem:[%s2073_s26 + $0x138] sm:$0xff]   ;;  %v1972_v22 = vld [vmem:[%s2073_s26 + $0x140] sm:$0xff]  }
  0x16   : > { %1806 = vmatmul.mubr.msk.bf16.vlgmr.msra.gmra.mrb[0].mxu0 %vm658_vm0, %v1957_v7  ;;  %1870 = vmatmul.mubr.msk.bf16.vlgmr.msra.gmra.mrb[0].mxu1 %vm658_vm0, %v1958_v8  ;;  %v1973_v23 = vld [vmem:[%s2073_s26 + $0x48] sm:$0xff]   ;;  %v1975_v25 = vld [vmem:[%s2073_s26 + $0x50] sm:$0xff]   ;;  %v1977_v27 = vld [vmem:[%s2073_s26 + $0x58] sm:$0xff]  }
  0x17   : > { %1809 = vmatprep.mubr.msk.bf16.mxu0 %vm658_vm0, %v1959_v9  ;;  %1873 = vmatprep.mubr.msk.bf16.mxu1 %vm658_vm0, %v1960_v10  ;;  %v1974_v24 = vld [vmem:[%s2073_s26 + $0x148] sm:$0xff]   ;;  %v1976_v26 = vld [vmem:[%s2073_s26 + $0x150] sm:$0xff]   ;;  %v1978_v28 = vld [vmem:[%s2073_s26 + $0x158] sm:$0xff]  }
  0x18   : > { %v1979_v29 = vld [vmem:[%s2073_s26 + $0x60] sm:$0xff]   ;;  %v1981_v31 = vld [vmem:[%s2073_s26 + $0x68] sm:$0xff]   ;;  %v1983_v33 = vld [vmem:[%s2073_s26 + $0x70] sm:$0xff]  }
  0x19   : > { %v1980_v30 = vld [vmem:[%s2073_s26 + $0x160] sm:$0xff]   ;;  %v1982_v32 = vld [vmem:[%s2073_s26 + $0x168] sm:$0xff]   ;;  %v1984_v34 = vld [vmem:[%s2073_s26 + $0x170] sm:$0xff]  }
  0x1a   : > { %v1985_v35 = vld [vmem:[%s2073_s26 + $0x78] sm:$0xff]   ;;  %v1987_v37 = vld [vmem:[%s2073_s26 + $0x80] sm:$0xff]   ;;  %v1989_v39 = vld [vmem:[%s2073_s26 + $0x88] sm:$0xff]  }
  0x1b   : > { %v1986_v36 = vld [vmem:[%s2073_s26 + $0x178] sm:$0xff]   ;;  %v1988_v38 = vld [vmem:[%s2073_s26 + $0x180] sm:$0xff]   ;;  %v1990_v40 = vld [vmem:[%s2073_s26 + $0x188] sm:$0xff]  }
  0x1c   : > { %v1991_v41 = vld [vmem:[%s2073_s26 + $0x90] sm:$0xff]   ;;  %v1993_v43 = vld [vmem:[%s2073_s26 + $0x98] sm:$0xff]   ;;  %v1995_v45 = vld [vmem:[%s2073_s26 + $0xa0] sm:$0xff]  }
  0x1d   : > { %v1992_v42 = vld [vmem:[%s2073_s26 + $0x190] sm:$0xff]   ;;  %v1994_v44 = vld [vmem:[%s2073_s26 + $0x198] sm:$0xff]   ;;  %v1996_v46 = vld [vmem:[%s2073_s26 + $0x1a0] sm:$0xff]  }
  0x1e   : > { %1810 = vmatmul.mubr.msk.bf16.gmra.mrb[4].mxu0 %vm658_vm0, %v1961_v11  ;;  %1874 = vmatmul.mubr.msk.bf16.gmra.mrb[4].mxu1 %vm658_vm0, %v1962_v12  ;;  %v1997_v47 = vld [vmem:[%s2073_s26 + $0xa8] sm:$0xff]   ;;  %v1999_v49 = vld [vmem:[%s2073_s26 + $0xb0] sm:$0xff]   ;;  %v2001_v51 = vld [vmem:[%s2073_s26 + $0xb8] sm:$0xff]  }
  0x1f   : > { %1813 = vmatprep.mubr.msk.bf16.mxu0 %vm658_vm0, %v1963_v13  ;;  %1877 = vmatprep.mubr.msk.bf16.mxu1 %vm658_vm0, %v1964_v14  ;;  %v1998_v48 = vld [vmem:[%s2073_s26 + $0x1a8] sm:$0xff]   ;;  %v2000_v50 = vld [vmem:[%s2073_s26 + $0x1b0] sm:$0xff]   ;;  %v2002_v52 = vld [vmem:[%s2073_s26 + $0x1b8] sm:$0xff]  }
  0x20   : > { %v2003_v53 = vld [vmem:[%s2073_s26 + $0xc0] sm:$0xff]   ;;  %v2005_v55 = vld [vmem:[%s2073_s26 + $0xc8] sm:$0xff]   ;;  %v2007_v57 = vld [vmem:[%s2073_s26 + $0xd0] sm:$0xff]  }
  0x21   : > { %v2004_v54 = vld [vmem:[%s2073_s26 + $0x1c0] sm:$0xff]   ;;  %v2006_v56 = vld [vmem:[%s2073_s26 + $0x1c8] sm:$0xff]   ;;  %v2008_v58 = vld [vmem:[%s2073_s26 + $0x1d0] sm:$0xff]  }
  0x22   : > { %v2009_v59 = vld [vmem:[%s2073_s26 + $0xd8] sm:$0xff]   ;;  %v2011_v61 = vld [vmem:[%s2073_s26 + $0xe0] sm:$0xff]   ;;  %v2013_v63 = vld [vmem:[%s2073_s26 + $0xe8] sm:$0xff]  }
  0x23   : > { %v2010_v60 = vld [vmem:[%s2073_s26 + $0x1d8] sm:$0xff]   ;;  %v2012_v62 = vld [vmem:[%s2073_s26 + $0x1e0] sm:$0xff]   ;;  %v2014_v0 = vld [vmem:[%s2073_s26 + $0x1e8] sm:$0xff]  }
  0x24   : > { %v2015_v1 = vld [vmem:[%s2073_s26 + $0xf0] sm:$0xff]   ;;  %v2017_v3 = vld [vmem:[%s2073_s26 + $0xf8] sm:$0xff]   ;;  %v2207_v5 = vld [vmem:[%s2603_s2] ss:$0 sm:$0xff] }
  0x25   : > { %v2016_v2 = vld [vmem:[%s2073_s26 + $0x1f0] sm:$0xff]   ;;  %v2018_v4 = vld [vmem:[%s2073_s26 + $0x1f8] sm:$0xff]  }
  0x26   : > { %1814 = vmatmul.mubr.msk.bf16.gmra.mrb[8].mxu0 %vm658_vm0, %v1965_v15  ;;  %1878 = vmatmul.mubr.msk.bf16.gmra.mrb[8].mxu1 %vm658_vm0, %v1966_v16 }
  0x27   : > { %1817 = vmatprep.mubr.msk.bf16.mxu0 %vm658_vm0, %v1967_v17  ;;  %1881 = vmatprep.mubr.msk.bf16.mxu1 %vm658_vm0, %v1968_v18 }
  0x2e   : > { %1818 = vmatmul.mubr.msk.bf16.gmra.mrb[12].mxu0 %vm658_vm0, %v1969_v19  ;;  %1882 = vmatmul.mubr.msk.bf16.gmra.mrb[12].mxu1 %vm658_vm0, %v1970_v20 }
  0x2f   : > { %1821 = vmatprep.mubr.msk.bf16.mxu0 %vm658_vm0, %v1971_v21  ;;  %1885 = vmatprep.mubr.msk.bf16.mxu1 %vm658_vm0, %v1972_v22 }
  0x36   : > { %1822 = vmatmul.mubr.msk.bf16.gmra.mrb[16].mxu0 %vm658_vm0, %v1973_v23  ;;  %1886 = vmatmul.mubr.msk.bf16.gmra.mrb[16].mxu1 %vm658_vm0, %v1974_v24 }
  0x37   : > { %1825 = vmatprep.mubr.msk.bf16.mxu0 %vm658_vm0, %v1975_v25  ;;  %1889 = vmatprep.mubr.msk.bf16.mxu1 %vm658_vm0, %v1976_v26 }
  0x3e   : > { %1826 = vmatmul.mubr.msk.bf16.gmra.mrb[20].mxu0 %vm658_vm0, %v1977_v27  ;;  %1890 = vmatmul.mubr.msk.bf16.gmra.mrb[20].mxu1 %vm658_vm0, %v1978_v28 }
  0x3f   : > { %1829 = vmatprep.mubr.msk.bf16.mxu0 %vm658_vm0, %v1979_v29  ;;  %1893 = vmatprep.mubr.msk.bf16.mxu1 %vm658_vm0, %v1980_v30 }
  0x46   : > { %1830 = vmatmul.mubr.msk.bf16.gmra.mrb[24].mxu0 %vm658_vm0, %v1981_v31  ;;  %1894 = vmatmul.mubr.msk.bf16.gmra.mrb[24].mxu1 %vm658_vm0, %v1982_v32 }
  0x47   : > { %1833 = vmatprep.mubr.msk.bf16.mxu0 %vm658_vm0, %v1983_v33  ;;  %1897 = vmatprep.mubr.msk.bf16.mxu1 %vm658_vm0, %v1984_v34 }
  0x4e   : > { %1834 = vmatmul.mubr.msk.bf16.gmra.mrb[28].mxu0 %vm658_vm0, %v1985_v35  ;;  %1898 = vmatmul.mubr.msk.bf16.gmra.mrb[28].mxu1 %vm658_vm0, %v1986_v36 }
  0x4f   : > { %1837 = vmatprep.mubr.msk.bf16.mxu0 %vm658_vm0, %v1987_v37  ;;  %1901 = vmatprep.mubr.msk.bf16.mxu1 %vm658_vm0, %v1988_v38 }
  0x56   : > { %1838 = vmatmul.mubr.msk.bf16.gmra.mrb[32].mxu0 %vm658_vm0, %v1989_v39  ;;  %1902 = vmatmul.mubr.msk.bf16.gmra.mrb[32].mxu1 %vm658_vm0, %v1990_v40 }
  0x57   : > { %1841 = vmatprep.mubr.msk.bf16.mxu0 %vm658_vm0, %v1991_v41  ;;  %1905 = vmatprep.mubr.msk.bf16.mxu1 %vm658_vm0, %v1992_v42 }
  0x5e   : > { %1842 = vmatmul.mubr.msk.bf16.gmra.mrb[36].mxu0 %vm658_vm0, %v1993_v43  ;;  %1906 = vmatmul.mubr.msk.bf16.gmra.mrb[36].mxu1 %vm658_vm0, %v1994_v44 }
  0x5f   : > { %1845 = vmatprep.mubr.msk.bf16.mxu0 %vm658_vm0, %v1995_v45  ;;  %1909 = vmatprep.mubr.msk.bf16.mxu1 %vm658_vm0, %v1996_v46 }
  0x66   : > { %1846 = vmatmul.mubr.msk.bf16.gmra.mrb[40].mxu0 %vm658_vm0, %v1997_v47  ;;  %1910 = vmatmul.mubr.msk.bf16.gmra.mrb[40].mxu1 %vm658_vm0, %v1998_v48 }
  0x67   : > { %1849 = vmatprep.mubr.msk.bf16.mxu0 %vm658_vm0, %v1999_v49  ;;  %1913 = vmatprep.mubr.msk.bf16.mxu1 %vm658_vm0, %v2000_v50 }
  0x6e   : > { %1850 = vmatmul.mubr.msk.bf16.gmra.mrb[44].mxu0 %vm658_vm0, %v2001_v51  ;;  %1914 = vmatmul.mubr.msk.bf16.gmra.mrb[44].mxu1 %vm658_vm0, %v2002_v52 }
  0x6f   : > { %1853 = vmatprep.mubr.msk.bf16.mxu0 %vm658_vm0, %v2003_v53  ;;  %1917 = vmatprep.mubr.msk.bf16.mxu1 %vm658_vm0, %v2004_v54 }
  0x76   : > { %1854 = vmatmul.mubr.msk.bf16.gmra.mrb[48].mxu0 %vm658_vm0, %v2005_v55  ;;  %1918 = vmatmul.mubr.msk.bf16.gmra.mrb[48].mxu1 %vm658_vm0, %v2006_v56 }
  0x77   : > { %1857 = vmatprep.mubr.msk.bf16.mxu0 %vm658_vm0, %v2007_v57  ;;  %1921 = vmatprep.mubr.msk.bf16.mxu1 %vm658_vm0, %v2008_v58 }
  0x7e   : > { %1858 = vmatmul.mubr.msk.bf16.gmra.mrb[52].mxu0 %vm658_vm0, %v2009_v59  ;;  %1922 = vmatmul.mubr.msk.bf16.gmra.mrb[52].mxu1 %vm658_vm0, %v2010_v60 }
  0x7f   : > { %1861 = vmatprep.mubr.msk.bf16.mxu0 %vm658_vm0, %v2011_v61  ;;  %1925 = vmatprep.mubr.msk.bf16.mxu1 %vm658_vm0, %v2012_v62 }
  0x86   : > { %1862 = vmatmul.mubr.msk.bf16.gmra.mrb[56].mxu0 %vm658_vm0, %v2013_v63  ;;  %1926 = vmatmul.mubr.msk.bf16.gmra.mrb[56].mxu1 %vm658_vm0, %v2014_v0 }
  0x87   : > { %1865 = vmatprep.mubr.msk.bf16.mxu0 %vm658_vm0, %v2015_v1  ;;  %1929 = vmatprep.mubr.msk.bf16.mxu1 %vm658_vm0, %v2016_v2 }
  0x8e   : > { %1866 = vmatmul.mubr.msk.bf16.gmra.mrb[60].mxu0 %vm658_vm0, %v2017_v3  ;;  %1930 = vmatmul.mubr.msk.bf16.gmra.mrb[60].mxu1 %vm658_vm0, %v2018_v4 }
  0xe9   : > { %v1807_v6 = vpop.f32.mrb[0].mxu0  ;;  %v1871_v7 = vpop.f32.mrb[0].mxu1 }
  0xea   : > { %v898_v8 = vadd.f32 %v1807_v6, %v2207_v5  ;;  %v1154_v9 = vadd.f32 %v1871_v7, %v2207_v5  ;;  %v889_v10 = vpop.f32.mrb[1].mxu0  ;;  %v1145_v11 = vpop.f32.mrb[1].mxu1 }
  0xeb   : > { %v890_v12 = vadd.f32 %v2207_v5, %v889_v10  ;;  %v1146_v13 = vadd.f32 %v2207_v5, %v1145_v11  ;;  %v1808_v14 = vpop.f32.mrb[2].mxu0  ;;  %v1872_v15 = vpop.f32.mrb[2].mxu1 }
  0xec   : > { %1403 = vst.msk [vmem:[%s2212_s5 + $0x10] sm:$0xff] %vm1400_vm2, %v898_v8  ;;  %1467 = vst.msk [vmem:[%s2212_s5 + $0x210] sm:$0xff] %vm1400_vm2, %v1154_v9  ;;  %v901_v16 = vadd.f32 %v1808_v14, %v2207_v5  ;;  %v1157_v17 = vadd.f32 %v1872_v15, %v2207_v5  ;;  %v892_v18 = vpop.f32.mrb[3].mxu0  ;;  %v1148_v19 = vpop.f32.mrb[3].mxu1 }
  0xed   : > { %1401 = vst.msk [vmem:[%s2212_s5] sm:$0xff] %vm1400_vm2, %v890_v12  ;;  %1465 = vst.msk [vmem:[%s2212_s5 + $0x200] sm:$0xff] %vm1400_vm2, %v1146_v13  ;;  %v893_v20 = vadd.f32 %v2207_v5, %v892_v18  ;;  %v1149_v21 = vadd.f32 %v2207_v5, %v1148_v19 }
  0xee   : > { %1404 = vst.msk [vmem:[%s2212_s5 + $0x18] sm:$0xff] %vm1400_vm2, %v901_v16  ;;  %1468 = vst.msk [vmem:[%s2212_s5 + $0x218] sm:$0xff] %vm1400_vm2, %v1157_v17 }
  0xef   : > { %1402 = vst.msk [vmem:[%s2212_s5 + $0x8] sm:$0xff] %vm1400_vm2, %v893_v20  ;;  %1466 = vst.msk [vmem:[%s2212_s5 + $0x208] sm:$0xff] %vm1400_vm2, %v1149_v21 }
  0xf1   : > { %v1811_v22 = vpop.f32.mrb[4].mxu0  ;;  %v1875_v23 = vpop.f32.mrb[4].mxu1 }
  0xf2   : > { %v914_v24 = vadd.f32 %v1811_v22, %v2207_v5  ;;  %v1170_v25 = vadd.f32 %v1875_v23, %v2207_v5  ;;  %v905_v26 = vpop.f32.mrb[5].mxu0  ;;  %v1161_v27 = vpop.f32.mrb[5].mxu1 }
  0xf3   : > { %v906_v28 = vadd.f32 %v2207_v5, %v905_v26  ;;  %v1162_v29 = vadd.f32 %v2207_v5, %v1161_v27  ;;  %v1812_v30 = vpop.f32.mrb[6].mxu0  ;;  %v1876_v31 = vpop.f32.mrb[6].mxu1 }
  0xf4   : > { %1407 = vst.msk [vmem:[%s2212_s5 + $0x30] sm:$0xff] %vm1400_vm2, %v914_v24  ;;  %1471 = vst.msk [vmem:[%s2212_s5 + $0x230] sm:$0xff] %vm1400_vm2, %v1170_v25  ;;  %v917_v32 = vadd.f32 %v1812_v30, %v2207_v5  ;;  %v1173_v33 = vadd.f32 %v1876_v31, %v2207_v5  ;;  %v908_v34 = vpop.f32.mrb[7].mxu0  ;;  %v1164_v35 = vpop.f32.mrb[7].mxu1 }
  0xf5   : > { %1405 = vst.msk [vmem:[%s2212_s5 + $0x20] sm:$0xff] %vm1400_vm2, %v906_v28  ;;  %1469 = vst.msk [vmem:[%s2212_s5 + $0x220] sm:$0xff] %vm1400_vm2, %v1162_v29  ;;  %v909_v36 = vadd.f32 %v2207_v5, %v908_v34  ;;  %v1165_v37 = vadd.f32 %v2207_v5, %v1164_v35 }
  0xf6   : > { %1408 = vst.msk [vmem:[%s2212_s5 + $0x38] sm:$0xff] %vm1400_vm2, %v917_v32  ;;  %1472 = vst.msk [vmem:[%s2212_s5 + $0x238] sm:$0xff] %vm1400_vm2, %v1173_v33 }
  0xf7   : > { %1406 = vst.msk [vmem:[%s2212_s5 + $0x28] sm:$0xff] %vm1400_vm2, %v909_v36  ;;  %1470 = vst.msk [vmem:[%s2212_s5 + $0x228] sm:$0xff] %vm1400_vm2, %v1165_v37 }
  0xf9   : > { %v1815_v38 = vpop.f32.mrb[8].mxu0  ;;  %v1879_v39 = vpop.f32.mrb[8].mxu1 }
  0xfa   : > { %v930_v40 = vadd.f32 %v1815_v38, %v2207_v5  ;;  %v1186_v41 = vadd.f32 %v1879_v39, %v2207_v5  ;;  %v921_v42 = vpop.f32.mrb[9].mxu0  ;;  %v1177_v43 = vpop.f32.mrb[9].mxu1 }
  0xfb   : > { %v922_v44 = vadd.f32 %v2207_v5, %v921_v42  ;;  %v1178_v45 = vadd.f32 %v2207_v5, %v1177_v43  ;;  %v1816_v46 = vpop.f32.mrb[10].mxu0  ;;  %v1880_v47 = vpop.f32.mrb[10].mxu1 }
  0xfc   : > { %1411 = vst.msk [vmem:[%s2212_s5 + $0x50] sm:$0xff] %vm1400_vm2, %v930_v40  ;;  %1475 = vst.msk [vmem:[%s2212_s5 + $0x250] sm:$0xff] %vm1400_vm2, %v1186_v41  ;;  %v933_v48 = vadd.f32 %v1816_v46, %v2207_v5  ;;  %v1189_v49 = vadd.f32 %v1880_v47, %v2207_v5  ;;  %v924_v50 = vpop.f32.mrb[11].mxu0  ;;  %v1180_v51 = vpop.f32.mrb[11].mxu1 }
  0xfd   : > { %1409 = vst.msk [vmem:[%s2212_s5 + $0x40] sm:$0xff] %vm1400_vm2, %v922_v44  ;;  %1473 = vst.msk [vmem:[%s2212_s5 + $0x240] sm:$0xff] %vm1400_vm2, %v1178_v45  ;;  %v925_v52 = vadd.f32 %v2207_v5, %v924_v50  ;;  %v1181_v53 = vadd.f32 %v2207_v5, %v1180_v51 }
  0xfe   : > { %1412 = vst.msk [vmem:[%s2212_s5 + $0x58] sm:$0xff] %vm1400_vm2, %v933_v48  ;;  %1476 = vst.msk [vmem:[%s2212_s5 + $0x258] sm:$0xff] %vm1400_vm2, %v1189_v49 }
  0xff   : > { %1410 = vst.msk [vmem:[%s2212_s5 + $0x48] sm:$0xff] %vm1400_vm2, %v925_v52  ;;  %1474 = vst.msk [vmem:[%s2212_s5 + $0x248] sm:$0xff] %vm1400_vm2, %v1181_v53 }
 0x101   : > { %v1819_v54 = vpop.f32.mrb[12].mxu0  ;;  %v1883_v55 = vpop.f32.mrb[12].mxu1 }
 0x102   : > { %v946_v56 = vadd.f32 %v1819_v54, %v2207_v5  ;;  %v1202_v57 = vadd.f32 %v1883_v55, %v2207_v5  ;;  %v937_v58 = vpop.f32.mrb[13].mxu0  ;;  %v1193_v59 = vpop.f32.mrb[13].mxu1 }
 0x103   : > { %v938_v60 = vadd.f32 %v2207_v5, %v937_v58  ;;  %v1194_v61 = vadd.f32 %v2207_v5, %v1193_v59  ;;  %v1820_v62 = vpop.f32.mrb[14].mxu0  ;;  %v1884_v63 = vpop.f32.mrb[14].mxu1 }
 0x104   : > { %1415 = vst.msk [vmem:[%s2212_s5 + $0x70] sm:$0xff] %vm1400_vm2, %v946_v56  ;;  %1479 = vst.msk [vmem:[%s2212_s5 + $0x270] sm:$0xff] %vm1400_vm2, %v1202_v57  ;;  %v949_v0 = vadd.f32 %v1820_v62, %v2207_v5  ;;  %v1205_v1 = vadd.f32 %v1884_v63, %v2207_v5  ;;  %v940_v2 = vpop.f32.mrb[15].mxu0  ;;  %v1196_v3 = vpop.f32.mrb[15].mxu1 }
 0x105   : > { %1413 = vst.msk [vmem:[%s2212_s5 + $0x60] sm:$0xff] %vm1400_vm2, %v938_v60  ;;  %1477 = vst.msk [vmem:[%s2212_s5 + $0x260] sm:$0xff] %vm1400_vm2, %v1194_v61  ;;  %v941_v4 = vadd.f32 %v2207_v5, %v940_v2  ;;  %v1197_v6 = vadd.f32 %v2207_v5, %v1196_v3 }
 0x106   : > { %1416 = vst.msk [vmem:[%s2212_s5 + $0x78] sm:$0xff] %vm1400_vm2, %v949_v0  ;;  %1480 = vst.msk [vmem:[%s2212_s5 + $0x278] sm:$0xff] %vm1400_vm2, %v1205_v1 }
 0x107   : > { %1414 = vst.msk [vmem:[%s2212_s5 + $0x68] sm:$0xff] %vm1400_vm2, %v941_v4  ;;  %1478 = vst.msk [vmem:[%s2212_s5 + $0x268] sm:$0xff] %vm1400_vm2, %v1197_v6 }
 0x109   : > { %v1823_v7 = vpop.f32.mrb[16].mxu0  ;;  %v1887_v8 = vpop.f32.mrb[16].mxu1 }
 0x10a   : > { %v962_v9 = vadd.f32 %v1823_v7, %v2207_v5  ;;  %v1218_v10 = vadd.f32 %v1887_v8, %v2207_v5  ;;  %v953_v11 = vpop.f32.mrb[17].mxu0  ;;  %v1209_v12 = vpop.f32.mrb[17].mxu1 }
 0x10b   : > { %v954_v13 = vadd.f32 %v2207_v5, %v953_v11  ;;  %v1210_v14 = vadd.f32 %v2207_v5, %v1209_v12  ;;  %v1824_v15 = vpop.f32.mrb[18].mxu0  ;;  %v1888_v16 = vpop.f32.mrb[18].mxu1 }
 0x10c   : > { %1419 = vst.msk [vmem:[%s2212_s5 + $0x90] sm:$0xff] %vm1400_vm2, %v962_v9  ;;  %1483 = vst.msk [vmem:[%s2212_s5 + $0x290] sm:$0xff] %vm1400_vm2, %v1218_v10  ;;  %v965_v17 = vadd.f32 %v1824_v15, %v2207_v5  ;;  %v1221_v18 = vadd.f32 %v1888_v16, %v2207_v5  ;;  %v956_v19 = vpop.f32.mrb[19].mxu0  ;;  %v1212_v20 = vpop.f32.mrb[19].mxu1 }
 0x10d   : > { %1417 = vst.msk [vmem:[%s2212_s5 + $0x80] sm:$0xff] %vm1400_vm2, %v954_v13  ;;  %1481 = vst.msk [vmem:[%s2212_s5 + $0x280] sm:$0xff] %vm1400_vm2, %v1210_v14  ;;  %v957_v21 = vadd.f32 %v2207_v5, %v956_v19  ;;  %v1213_v22 = vadd.f32 %v2207_v5, %v1212_v20 }
 0x10e   : > { %1420 = vst.msk [vmem:[%s2212_s5 + $0x98] sm:$0xff] %vm1400_vm2, %v965_v17  ;;  %1484 = vst.msk [vmem:[%s2212_s5 + $0x298] sm:$0xff] %vm1400_vm2, %v1221_v18 }
 0x10f   : > { %1418 = vst.msk [vmem:[%s2212_s5 + $0x88] sm:$0xff] %vm1400_vm2, %v957_v21  ;;  %1482 = vst.msk [vmem:[%s2212_s5 + $0x288] sm:$0xff] %vm1400_vm2, %v1213_v22 }
 0x111   : > { %v1827_v23 = vpop.f32.mrb[20].mxu0  ;;  %v1891_v24 = vpop.f32.mrb[20].mxu1 }
 0x112   : > { %v978_v25 = vadd.f32 %v1827_v23, %v2207_v5  ;;  %v1234_v26 = vadd.f32 %v1891_v24, %v2207_v5  ;;  %v969_v27 = vpop.f32.mrb[21].mxu0  ;;  %v1225_v28 = vpop.f32.mrb[21].mxu1 }
 0x113   : > { %v970_v29 = vadd.f32 %v2207_v5, %v969_v27  ;;  %v1226_v30 = vadd.f32 %v2207_v5, %v1225_v28  ;;  %v1828_v31 = vpop.f32.mrb[22].mxu0  ;;  %v1892_v32 = vpop.f32.mrb[22].mxu1 }
 0x114   : > { %1423 = vst.msk [vmem:[%s2212_s5 + $0xb0] sm:$0xff] %vm1400_vm2, %v978_v25  ;;  %1487 = vst.msk [vmem:[%s2212_s5 + $0x2b0] sm:$0xff] %vm1400_vm2, %v1234_v26  ;;  %v981_v33 = vadd.f32 %v1828_v31, %v2207_v5  ;;  %v1237_v34 = vadd.f32 %v1892_v32, %v2207_v5  ;;  %v972_v35 = vpop.f32.mrb[23].mxu0  ;;  %v1228_v36 = vpop.f32.mrb[23].mxu1 }
 0x115   : > { %1421 = vst.msk [vmem:[%s2212_s5 + $0xa0] sm:$0xff] %vm1400_vm2, %v970_v29  ;;  %1485 = vst.msk [vmem:[%s2212_s5 + $0x2a0] sm:$0xff] %vm1400_vm2, %v1226_v30  ;;  %v973_v37 = vadd.f32 %v2207_v5, %v972_v35  ;;  %v1229_v38 = vadd.f32 %v2207_v5, %v1228_v36 }
 0x116   : > { %1424 = vst.msk [vmem:[%s2212_s5 + $0xb8] sm:$0xff] %vm1400_vm2, %v981_v33  ;;  %1488 = vst.msk [vmem:[%s2212_s5 + $0x2b8] sm:$0xff] %vm1400_vm2, %v1237_v34 }
 0x117   : > { %1422 = vst.msk [vmem:[%s2212_s5 + $0xa8] sm:$0xff] %vm1400_vm2, %v973_v37  ;;  %1486 = vst.msk [vmem:[%s2212_s5 + $0x2a8] sm:$0xff] %vm1400_vm2, %v1229_v38 }
 0x119   : > { %v1831_v39 = vpop.f32.mrb[24].mxu0  ;;  %v1895_v40 = vpop.f32.mrb[24].mxu1 }
 0x11a   : > { %v994_v41 = vadd.f32 %v1831_v39, %v2207_v5  ;;  %v1250_v42 = vadd.f32 %v1895_v40, %v2207_v5  ;;  %v985_v43 = vpop.f32.mrb[25].mxu0  ;;  %v1241_v44 = vpop.f32.mrb[25].mxu1 }
 0x11b   : > { %v986_v45 = vadd.f32 %v2207_v5, %v985_v43  ;;  %v1242_v46 = vadd.f32 %v2207_v5, %v1241_v44  ;;  %v1832_v47 = vpop.f32.mrb[26].mxu0  ;;  %v1896_v48 = vpop.f32.mrb[26].mxu1 }
 0x11c   : > { %1427 = vst.msk [vmem:[%s2212_s5 + $0xd0] sm:$0xff] %vm1400_vm2, %v994_v41  ;;  %1491 = vst.msk [vmem:[%s2212_s5 + $0x2d0] sm:$0xff] %vm1400_vm2, %v1250_v42  ;;  %v997_v49 = vadd.f32 %v1832_v47, %v2207_v5  ;;  %v1253_v50 = vadd.f32 %v1896_v48, %v2207_v5  ;;  %v988_v51 = vpop.f32.mrb[27].mxu0  ;;  %v1244_v52 = vpop.f32.mrb[27].mxu1 }
 0x11d   : > { %1425 = vst.msk [vmem:[%s2212_s5 + $0xc0] sm:$0xff] %vm1400_vm2, %v986_v45  ;;  %1489 = vst.msk [vmem:[%s2212_s5 + $0x2c0] sm:$0xff] %vm1400_vm2, %v1242_v46  ;;  %v989_v53 = vadd.f32 %v2207_v5, %v988_v51  ;;  %v1245_v54 = vadd.f32 %v2207_v5, %v1244_v52 }
 0x11e   : > { %1428 = vst.msk [vmem:[%s2212_s5 + $0xd8] sm:$0xff] %vm1400_vm2, %v997_v49  ;;  %1492 = vst.msk [vmem:[%s2212_s5 + $0x2d8] sm:$0xff] %vm1400_vm2, %v1253_v50 }
 0x11f   : > { %1426 = vst.msk [vmem:[%s2212_s5 + $0xc8] sm:$0xff] %vm1400_vm2, %v989_v53  ;;  %1490 = vst.msk [vmem:[%s2212_s5 + $0x2c8] sm:$0xff] %vm1400_vm2, %v1245_v54 }
 0x121   : > { %v1835_v55 = vpop.f32.mrb[28].mxu0  ;;  %v1899_v56 = vpop.f32.mrb[28].mxu1 }
 0x122   : > { %v1010_v57 = vadd.f32 %v1835_v55, %v2207_v5  ;;  %v1266_v58 = vadd.f32 %v1899_v56, %v2207_v5  ;;  %v1001_v59 = vpop.f32.mrb[29].mxu0  ;;  %v1257_v60 = vpop.f32.mrb[29].mxu1 }
 0x123   : > { %v1002_v61 = vadd.f32 %v2207_v5, %v1001_v59  ;;  %v1258_v62 = vadd.f32 %v2207_v5, %v1257_v60  ;;  %v1836_v63 = vpop.f32.mrb[30].mxu0  ;;  %v1900_v0 = vpop.f32.mrb[30].mxu1 }
 0x124   : > { %1431 = vst.msk [vmem:[%s2212_s5 + $0xf0] sm:$0xff] %vm1400_vm2, %v1010_v57  ;;  %1495 = vst.msk [vmem:[%s2212_s5 + $0x2f0] sm:$0xff] %vm1400_vm2, %v1266_v58  ;;  %v1013_v1 = vadd.f32 %v1836_v63, %v2207_v5  ;;  %v1269_v2 = vadd.f32 %v1900_v0, %v2207_v5  ;;  %v1004_v3 = vpop.f32.mrb[31].mxu0  ;;  %v1260_v4 = vpop.f32.mrb[31].mxu1 }
 0x125   : > { %1429 = vst.msk [vmem:[%s2212_s5 + $0xe0] sm:$0xff] %vm1400_vm2, %v1002_v61  ;;  %1493 = vst.msk [vmem:[%s2212_s5 + $0x2e0] sm:$0xff] %vm1400_vm2, %v1258_v62  ;;  %v1005_v6 = vadd.f32 %v2207_v5, %v1004_v3  ;;  %v1261_v7 = vadd.f32 %v2207_v5, %v1260_v4 }
 0x126   : > { %1432 = vst.msk [vmem:[%s2212_s5 + $0xf8] sm:$0xff] %vm1400_vm2, %v1013_v1  ;;  %1496 = vst.msk [vmem:[%s2212_s5 + $0x2f8] sm:$0xff] %vm1400_vm2, %v1269_v2 }
 0x127   : > { %1430 = vst.msk [vmem:[%s2212_s5 + $0xe8] sm:$0xff] %vm1400_vm2, %v1005_v6  ;;  %1494 = vst.msk [vmem:[%s2212_s5 + $0x2e8] sm:$0xff] %vm1400_vm2, %v1261_v7 }
 0x129   : > { %v1839_v8 = vpop.f32.mrb[32].mxu0  ;;  %v1903_v9 = vpop.f32.mrb[32].mxu1 }
 0x12a   : > { %v1026_v10 = vadd.f32 %v1839_v8, %v2207_v5  ;;  %v1282_v11 = vadd.f32 %v1903_v9, %v2207_v5  ;;  %v1017_v12 = vpop.f32.mrb[33].mxu0  ;;  %v1273_v13 = vpop.f32.mrb[33].mxu1 }
 0x12b   : > { %v1018_v14 = vadd.f32 %v2207_v5, %v1017_v12  ;;  %v1274_v15 = vadd.f32 %v2207_v5, %v1273_v13  ;;  %v1840_v16 = vpop.f32.mrb[34].mxu0  ;;  %v1904_v17 = vpop.f32.mrb[34].mxu1 }
 0x12c   : > { %1435 = vst.msk [vmem:[%s2212_s5 + $0x110] sm:$0xff] %vm1400_vm2, %v1026_v10  ;;  %1499 = vst.msk [vmem:[%s2212_s5 + $0x310] sm:$0xff] %vm1400_vm2, %v1282_v11  ;;  %v1029_v18 = vadd.f32 %v1840_v16, %v2207_v5  ;;  %v1285_v19 = vadd.f32 %v1904_v17, %v2207_v5  ;;  %v1020_v20 = vpop.f32.mrb[35].mxu0  ;;  %v1276_v21 = vpop.f32.mrb[35].mxu1 }
 0x12d   : > { %1433 = vst.msk [vmem:[%s2212_s5 + $0x100] sm:$0xff] %vm1400_vm2, %v1018_v14  ;;  %1497 = vst.msk [vmem:[%s2212_s5 + $0x300] sm:$0xff] %vm1400_vm2, %v1274_v15  ;;  %v1021_v22 = vadd.f32 %v2207_v5, %v1020_v20  ;;  %v1277_v23 = vadd.f32 %v2207_v5, %v1276_v21 }
 0x12e   : > { %1436 = vst.msk [vmem:[%s2212_s5 + $0x118] sm:$0xff] %vm1400_vm2, %v1029_v18  ;;  %1500 = vst.msk [vmem:[%s2212_s5 + $0x318] sm:$0xff] %vm1400_vm2, %v1285_v19 }
 0x12f   : > { %1434 = vst.msk [vmem:[%s2212_s5 + $0x108] sm:$0xff] %vm1400_vm2, %v1021_v22  ;;  %1498 = vst.msk [vmem:[%s2212_s5 + $0x308] sm:$0xff] %vm1400_vm2, %v1277_v23 }
 0x131   : > { %v1843_v24 = vpop.f32.mrb[36].mxu0  ;;  %v1907_v25 = vpop.f32.mrb[36].mxu1 }
 0x132   : > { %v1042_v26 = vadd.f32 %v1843_v24, %v2207_v5  ;;  %v1298_v27 = vadd.f32 %v1907_v25, %v2207_v5  ;;  %v1033_v28 = vpop.f32.mrb[37].mxu0  ;;  %v1289_v29 = vpop.f32.mrb[37].mxu1 }
 0x133   : > { %v1034_v30 = vadd.f32 %v2207_v5, %v1033_v28  ;;  %v1290_v31 = vadd.f32 %v2207_v5, %v1289_v29  ;;  %v1844_v32 = vpop.f32.mrb[38].mxu0  ;;  %v1908_v33 = vpop.f32.mrb[38].mxu1 }
 0x134   : > { %1439 = vst.msk [vmem:[%s2212_s5 + $0x130] sm:$0xff] %vm1400_vm2, %v1042_v26  ;;  %1503 = vst.msk [vmem:[%s2212_s5 + $0x330] sm:$0xff] %vm1400_vm2, %v1298_v27  ;;  %v1045_v34 = vadd.f32 %v1844_v32, %v2207_v5  ;;  %v1301_v35 = vadd.f32 %v1908_v33, %v2207_v5  ;;  %v1036_v36 = vpop.f32.mrb[39].mxu0  ;;  %v1292_v37 = vpop.f32.mrb[39].mxu1 }
 0x135   : > { %1437 = vst.msk [vmem:[%s2212_s5 + $0x120] sm:$0xff] %vm1400_vm2, %v1034_v30  ;;  %1501 = vst.msk [vmem:[%s2212_s5 + $0x320] sm:$0xff] %vm1400_vm2, %v1290_v31  ;;  %v1037_v38 = vadd.f32 %v2207_v5, %v1036_v36  ;;  %v1293_v39 = vadd.f32 %v2207_v5, %v1292_v37 }
 0x136   : > { %1440 = vst.msk [vmem:[%s2212_s5 + $0x138] sm:$0xff] %vm1400_vm2, %v1045_v34  ;;  %1504 = vst.msk [vmem:[%s2212_s5 + $0x338] sm:$0xff] %vm1400_vm2, %v1301_v35 }
 0x137   : > { %1438 = vst.msk [vmem:[%s2212_s5 + $0x128] sm:$0xff] %vm1400_vm2, %v1037_v38  ;;  %1502 = vst.msk [vmem:[%s2212_s5 + $0x328] sm:$0xff] %vm1400_vm2, %v1293_v39 }
 0x139   : > { %v1847_v40 = vpop.f32.mrb[40].mxu0  ;;  %v1911_v41 = vpop.f32.mrb[40].mxu1 }
 0x13a   : > { %v1058_v42 = vadd.f32 %v1847_v40, %v2207_v5  ;;  %v1314_v43 = vadd.f32 %v1911_v41, %v2207_v5  ;;  %v1049_v44 = vpop.f32.mrb[41].mxu0  ;;  %v1305_v45 = vpop.f32.mrb[41].mxu1 }
 0x13b   : > { %v1050_v46 = vadd.f32 %v2207_v5, %v1049_v44  ;;  %v1306_v47 = vadd.f32 %v2207_v5, %v1305_v45  ;;  %v1848_v48 = vpop.f32.mrb[42].mxu0  ;;  %v1912_v49 = vpop.f32.mrb[42].mxu1 }
 0x13c   : > { %1443 = vst.msk [vmem:[%s2212_s5 + $0x150] sm:$0xff] %vm1400_vm2, %v1058_v42  ;;  %1507 = vst.msk [vmem:[%s2212_s5 + $0x350] sm:$0xff] %vm1400_vm2, %v1314_v43  ;;  %v1061_v50 = vadd.f32 %v1848_v48, %v2207_v5  ;;  %v1317_v51 = vadd.f32 %v1912_v49, %v2207_v5  ;;  %v1052_v52 = vpop.f32.mrb[43].mxu0  ;;  %v1308_v53 = vpop.f32.mrb[43].mxu1 }
 0x13d   : > { %1441 = vst.msk [vmem:[%s2212_s5 + $0x140] sm:$0xff] %vm1400_vm2, %v1050_v46  ;;  %1505 = vst.msk [vmem:[%s2212_s5 + $0x340] sm:$0xff] %vm1400_vm2, %v1306_v47  ;;  %v1053_v54 = vadd.f32 %v2207_v5, %v1052_v52  ;;  %v1309_v55 = vadd.f32 %v2207_v5, %v1308_v53 }
 0x13e   : > { %1444 = vst.msk [vmem:[%s2212_s5 + $0x158] sm:$0xff] %vm1400_vm2, %v1061_v50  ;;  %1508 = vst.msk [vmem:[%s2212_s5 + $0x358] sm:$0xff] %vm1400_vm2, %v1317_v51 }
 0x13f   : > { %1442 = vst.msk [vmem:[%s2212_s5 + $0x148] sm:$0xff] %vm1400_vm2, %v1053_v54  ;;  %1506 = vst.msk [vmem:[%s2212_s5 + $0x348] sm:$0xff] %vm1400_vm2, %v1309_v55 }
 0x141   : > { %v1851_v56 = vpop.f32.mrb[44].mxu0  ;;  %v1915_v57 = vpop.f32.mrb[44].mxu1 }
 0x142   : > { %v1074_v58 = vadd.f32 %v1851_v56, %v2207_v5  ;;  %v1330_v59 = vadd.f32 %v1915_v57, %v2207_v5  ;;  %v1065_v60 = vpop.f32.mrb[45].mxu0  ;;  %v1321_v61 = vpop.f32.mrb[45].mxu1 }
 0x143   : > { %v1066_v62 = vadd.f32 %v2207_v5, %v1065_v60  ;;  %v1322_v63 = vadd.f32 %v2207_v5, %v1321_v61  ;;  %v1852_v0 = vpop.f32.mrb[46].mxu0  ;;  %v1916_v1 = vpop.f32.mrb[46].mxu1 }
 0x144   : > { %1447 = vst.msk [vmem:[%s2212_s5 + $0x170] sm:$0xff] %vm1400_vm2, %v1074_v58  ;;  %1511 = vst.msk [vmem:[%s2212_s5 + $0x370] sm:$0xff] %vm1400_vm2, %v1330_v59  ;;  %v1077_v2 = vadd.f32 %v1852_v0, %v2207_v5  ;;  %v1333_v3 = vadd.f32 %v1916_v1, %v2207_v5  ;;  %v1068_v4 = vpop.f32.mrb[47].mxu0  ;;  %v1324_v6 = vpop.f32.mrb[47].mxu1 }
 0x145   : > { %1445 = vst.msk [vmem:[%s2212_s5 + $0x160] sm:$0xff] %vm1400_vm2, %v1066_v62  ;;  %1509 = vst.msk [vmem:[%s2212_s5 + $0x360] sm:$0xff] %vm1400_vm2, %v1322_v63  ;;  %v1069_v7 = vadd.f32 %v2207_v5, %v1068_v4  ;;  %v1325_v8 = vadd.f32 %v2207_v5, %v1324_v6 }
 0x146   : > { %1448 = vst.msk [vmem:[%s2212_s5 + $0x178] sm:$0xff] %vm1400_vm2, %v1077_v2  ;;  %1512 = vst.msk [vmem:[%s2212_s5 + $0x378] sm:$0xff] %vm1400_vm2, %v1333_v3 }
 0x147   : > { %1446 = vst.msk [vmem:[%s2212_s5 + $0x168] sm:$0xff] %vm1400_vm2, %v1069_v7  ;;  %1510 = vst.msk [vmem:[%s2212_s5 + $0x368] sm:$0xff] %vm1400_vm2, %v1325_v8 }
 0x149   : > { %v1855_v9 = vpop.f32.mrb[48].mxu0  ;;  %v1919_v10 = vpop.f32.mrb[48].mxu1 }
 0x14a   : > { %v1090_v11 = vadd.f32 %v1855_v9, %v2207_v5  ;;  %v1346_v12 = vadd.f32 %v1919_v10, %v2207_v5  ;;  %v1081_v13 = vpop.f32.mrb[49].mxu0  ;;  %v1337_v14 = vpop.f32.mrb[49].mxu1 }
 0x14b   : > { %v1082_v15 = vadd.f32 %v2207_v5, %v1081_v13  ;;  %v1338_v16 = vadd.f32 %v2207_v5, %v1337_v14  ;;  %v1856_v17 = vpop.f32.mrb[50].mxu0  ;;  %v1920_v18 = vpop.f32.mrb[50].mxu1 }
 0x14c   : > { %1451 = vst.msk [vmem:[%s2212_s5 + $0x190] sm:$0xff] %vm1400_vm2, %v1090_v11  ;;  %1515 = vst.msk [vmem:[%s2212_s5 + $0x390] sm:$0xff] %vm1400_vm2, %v1346_v12  ;;  %v1093_v19 = vadd.f32 %v1856_v17, %v2207_v5  ;;  %v1349_v20 = vadd.f32 %v1920_v18, %v2207_v5  ;;  %v1084_v21 = vpop.f32.mrb[51].mxu0  ;;  %v1340_v22 = vpop.f32.mrb[51].mxu1 }
 0x14d   : > { %1449 = vst.msk [vmem:[%s2212_s5 + $0x180] sm:$0xff] %vm1400_vm2, %v1082_v15  ;;  %1513 = vst.msk [vmem:[%s2212_s5 + $0x380] sm:$0xff] %vm1400_vm2, %v1338_v16  ;;  %v1085_v23 = vadd.f32 %v2207_v5, %v1084_v21  ;;  %v1341_v24 = vadd.f32 %v2207_v5, %v1340_v22 }
 0x14e   : > { %1452 = vst.msk [vmem:[%s2212_s5 + $0x198] sm:$0xff] %vm1400_vm2, %v1093_v19  ;;  %1516 = vst.msk [vmem:[%s2212_s5 + $0x398] sm:$0xff] %vm1400_vm2, %v1349_v20 }
 0x14f   : > { %1450 = vst.msk [vmem:[%s2212_s5 + $0x188] sm:$0xff] %vm1400_vm2, %v1085_v23  ;;  %1514 = vst.msk [vmem:[%s2212_s5 + $0x388] sm:$0xff] %vm1400_vm2, %v1341_v24 }
 0x151   : > { %v1859_v25 = vpop.f32.mrb[52].mxu0  ;;  %v1923_v26 = vpop.f32.mrb[52].mxu1 }
 0x152   : > { %v1106_v27 = vadd.f32 %v1859_v25, %v2207_v5  ;;  %v1362_v28 = vadd.f32 %v1923_v26, %v2207_v5  ;;  %v1097_v29 = vpop.f32.mrb[53].mxu0  ;;  %v1353_v30 = vpop.f32.mrb[53].mxu1 }
 0x153   : > { %v1098_v31 = vadd.f32 %v2207_v5, %v1097_v29  ;;  %v1354_v32 = vadd.f32 %v2207_v5, %v1353_v30  ;;  %v1860_v33 = vpop.f32.mrb[54].mxu0  ;;  %v1924_v34 = vpop.f32.mrb[54].mxu1 }
 0x154   : > { %1455 = vst.msk [vmem:[%s2212_s5 + $0x1b0] sm:$0xff] %vm1400_vm2, %v1106_v27  ;;  %1519 = vst.msk [vmem:[%s2212_s5 + $0x3b0] sm:$0xff] %vm1400_vm2, %v1362_v28  ;;  %v1109_v35 = vadd.f32 %v1860_v33, %v2207_v5  ;;  %v1365_v36 = vadd.f32 %v1924_v34, %v2207_v5  ;;  %v1100_v37 = vpop.f32.mrb[55].mxu0  ;;  %v1356_v38 = vpop.f32.mrb[55].mxu1 }
 0x155   : > { %1453 = vst.msk [vmem:[%s2212_s5 + $0x1a0] sm:$0xff] %vm1400_vm2, %v1098_v31  ;;  %1517 = vst.msk [vmem:[%s2212_s5 + $0x3a0] sm:$0xff] %vm1400_vm2, %v1354_v32  ;;  %v1101_v39 = vadd.f32 %v2207_v5, %v1100_v37  ;;  %v1357_v40 = vadd.f32 %v2207_v5, %v1356_v38 }
 0x156   : > { %1456 = vst.msk [vmem:[%s2212_s5 + $0x1b8] sm:$0xff] %vm1400_vm2, %v1109_v35  ;;  %1520 = vst.msk [vmem:[%s2212_s5 + $0x3b8] sm:$0xff] %vm1400_vm2, %v1365_v36 }
 0x157   : > { %1454 = vst.msk [vmem:[%s2212_s5 + $0x1a8] sm:$0xff] %vm1400_vm2, %v1101_v39  ;;  %1518 = vst.msk [vmem:[%s2212_s5 + $0x3a8] sm:$0xff] %vm1400_vm2, %v1357_v40 }
 0x159   : > { %v1863_v41 = vpop.f32.mrb[56].mxu0  ;;  %v1927_v42 = vpop.f32.mrb[56].mxu1 }
 0x15a   : > { %v1122_v43 = vadd.f32 %v1863_v41, %v2207_v5  ;;  %v1378_v44 = vadd.f32 %v1927_v42, %v2207_v5  ;;  %v1113_v45 = vpop.f32.mrb[57].mxu0  ;;  %v1369_v46 = vpop.f32.mrb[57].mxu1 }
 0x15b   : > { %v1114_v47 = vadd.f32 %v2207_v5, %v1113_v45  ;;  %v1370_v48 = vadd.f32 %v2207_v5, %v1369_v46  ;;  %v1864_v49 = vpop.f32.mrb[58].mxu0  ;;  %v1928_v50 = vpop.f32.mrb[58].mxu1 }
 0x15c   : > { %1459 = vst.msk [vmem:[%s2212_s5 + $0x1d0] sm:$0xff] %vm1400_vm2, %v1122_v43  ;;  %1523 = vst.msk [vmem:[%s2212_s5 + $0x3d0] sm:$0xff] %vm1400_vm2, %v1378_v44  ;;  %v1125_v51 = vadd.f32 %v1864_v49, %v2207_v5  ;;  %v1381_v52 = vadd.f32 %v1928_v50, %v2207_v5  ;;  %v1116_v53 = vpop.f32.mrb[59].mxu0  ;;  %v1372_v54 = vpop.f32.mrb[59].mxu1 }
 0x15d   : > { %1457 = vst.msk [vmem:[%s2212_s5 + $0x1c0] sm:$0xff] %vm1400_vm2, %v1114_v47  ;;  %1521 = vst.msk [vmem:[%s2212_s5 + $0x3c0] sm:$0xff] %vm1400_vm2, %v1370_v48  ;;  %v1117_v55 = vadd.f32 %v2207_v5, %v1116_v53  ;;  %v1373_v56 = vadd.f32 %v2207_v5, %v1372_v54 }
 0x15e   : > { %1460 = vst.msk [vmem:[%s2212_s5 + $0x1d8] sm:$0xff] %vm1400_vm2, %v1125_v51  ;;  %1524 = vst.msk [vmem:[%s2212_s5 + $0x3d8] sm:$0xff] %vm1400_vm2, %v1381_v52 }
 0x15f   : > { %1458 = vst.msk [vmem:[%s2212_s5 + $0x1c8] sm:$0xff] %vm1400_vm2, %v1117_v55  ;;  %1522 = vst.msk [vmem:[%s2212_s5 + $0x3c8] sm:$0xff] %vm1400_vm2, %v1373_v56 }
 0x161   : > { %v1867_v57 = vpop.f32.mrb[60].mxu0  ;;  %v1931_v58 = vpop.f32.mrb[60].mxu1 }
 0x162   : > { %v1138_v59 = vadd.f32 %v1867_v57, %v2207_v5  ;;  %v1394_v60 = vadd.f32 %v1931_v58, %v2207_v5  ;;  %v1129_v61 = vpop.f32.mrb[61].mxu0  ;;  %v1385_v62 = vpop.f32.mrb[61].mxu1 }
 0x163   : > { %v1130_v63 = vadd.f32 %v2207_v5, %v1129_v61  ;;  %v1386_v0 = vadd.f32 %v2207_v5, %v1385_v62  ;;  %v1868_v1 = vpop.f32.mrb[62].mxu0  ;;  %v1932_v2 = vpop.f32.mrb[62].mxu1 }
 0x164   : > { %1463 = vst.msk [vmem:[%s2212_s5 + $0x1f0] sm:$0xff] %vm1400_vm2, %v1138_v59  ;;  %1527 = vst.msk [vmem:[%s2212_s5 + $0x3f0] sm:$0xff] %vm1400_vm2, %v1394_v60  ;;  %v1141_v3 = vadd.f32 %v1868_v1, %v2207_v5  ;;  %v1397_v4 = vadd.f32 %v1932_v2, %v2207_v5  ;;  %v1132_v6 = vpop.f32.mrb[63].mxu0  ;;  %v1388_v7 = vpop.f32.mrb[63].mxu1 }
 0x165   : > { %1461 = vst.msk [vmem:[%s2212_s5 + $0x1e0] sm:$0xff] %vm1400_vm2, %v1130_v63  ;;  %1525 = vst.msk [vmem:[%s2212_s5 + $0x3e0] sm:$0xff] %vm1400_vm2, %v1386_v0  ;;  %v1133_v8 = vadd.f32 %v2207_v5, %v1132_v6  ;;  %v1389_v9 = vadd.f32 %v2207_v5, %v1388_v7 }
 0x166   : > { %1464 = vst.msk [vmem:[%s2212_s5 + $0x1f8] sm:$0xff] %vm1400_vm2, %v1141_v3  ;;  %1528 = vst.msk [vmem:[%s2212_s5 + $0x3f8] sm:$0xff] %vm1400_vm2, %v1397_v4 }
 0x167   : > { %1462 = vst.msk [vmem:[%s2212_s5 + $0x1e8] sm:$0xff] %vm1400_vm2, %v1133_v8  ;;  %1526 = vst.msk [vmem:[%s2212_s5 + $0x3e8] sm:$0xff] %vm1400_vm2, %v1389_v9 }
 0x168 PF: > { %s13_s12 = sadd.s32 1, %s2025_s12  }
 0x169   : > { %p10_p4 = scmp.ge.s32.totalorder %s13_s12, 4  }
 0x16b   :  { %12 = sbr.rel (!%p10_p4) target bundleno = 1 (0x1), region = 62 }

// kernel: tile.168
= control target key start
LH: loop header
LB: loop body
LE: loop exit
PB: predicated region body
PF: predicated region fallthrough
CT: control target
= control target key end

     0   :  { %s40_s0 = inlined_call_operand.vmem [shape: f32[4], index: 0, kind: input, shape index: {}]   ;;  %s41_s1 = inlined_call_operand.vmem [shape: f32[32,4], index: 1, kind: output, shape index: {}]  }
   0x1   :  { %v4_v0 = vld [vmem:[%s40_s0] ss:$0 sm:$0xff] }
   0x2   :  { %5 = vst [vmem:[%s41_s1] sm:$0xff] %v4_v0  ;;  %12 = vst [vmem:[%s41_s1 + $0x8] sm:$0xff] %v4_v0 }
   0x3   :  { %13 = vst [vmem:[%s41_s1 + $0x10] sm:$0xff] %v4_v0  ;;  %14 = vst [vmem:[%s41_s1 + $0x18] sm:$0xff] %v4_v0 }

// kernel: tile.169
= control target key start
LH: loop header
LB: loop body
LE: loop exit
PB: predicated region body
PF: predicated region fallthrough
CT: control target
= control target key end

     0   :  { %s259_s10 = smov 124   ;;  %s260_s11 = smov 116   ;;  %vm3_vm0 = vcmask 31744   ;;  %vm9_vm1 = vcmask 1048544   ;;  %vm15_vm2 = vcmask 1015744   ;;  %vm21_vm3 = vcmask 982944   ;;  %s399_s0 = inlined_call_operand.vmem [shape: f32[32,4], index: 0, kind: input, shape index: {}]   ;;  %s400_s1 = inlined_call_operand.vmem [shape: f32[1,128], index: 1, kind: output, shape index: {}]  }
   0x1   :  { %v197_v0 = vld [vmem:[%s399_s0 + $0x1f] sm:$0x1]   ;;  %v199_v1 = vld [vmem:[%s399_s0 + $0x1d] sm:$0x1]   ;;  %v198_v2 = vld [vmem:[%s399_s0 + $0x1e] sm:$0x1]  }
   0x2   :  { %7 = vrot.lane.b32.xlu0 %v197_v0, %s259_s10  ;;  %19 = vrot.lane.b32.xlu1 %v199_v1, %s260_s11  ;;  %v200_v3 = vld [vmem:[%s399_s0 + $0x1c] sm:$0x1]   ;;  %s261_s16 = smov 120   ;;  %s262_s17 = smov 112   ;;  %v201_v4 = vld [vmem:[%s399_s0 + $0x1b] sm:$0x1]  }
   0x3   :  { %v202_v5 = vld [vmem:[%s399_s0 + $0x1a] sm:$0x1]   ;;  %s263_s22 = smov 108   ;;  %s264_s23 = smov 104   ;;  %v203_v6 = vld [vmem:[%s399_s0 + $0x19] sm:$0x1]  }
   0x4   :  { %v204_v7 = vld [vmem:[%s399_s0 + $0x18] sm:$0x1]   ;;  %s265_s28 = smov 100   ;;  %s266_s29 = smov 96   ;;  %v205_v8 = vld [vmem:[%s399_s0 + $0x17] sm:$0x1]  }
   0x5   :  { %v206_v9 = vld [vmem:[%s399_s0 + $0x16] sm:$0x1]   ;;  %v2_v10 = vld [vmem:[%s399_s0] sm:$0x1]   ;;  %s267_s7 = smov 92   ;;  %s268_s8 = smov 88  }
   0x6   :  { %13 = vrot.lane.b32.xlu0 %v198_v2, %s261_s16  ;;  %25 = vrot.lane.b32.xlu1 %v200_v3, %s262_s17  ;;  %4 = vst.msk [vmem:[#allocation0] sm:$0x1] %vm3_vm0, %v2_v10   ;;  %v207_v11 = vld [vmem:[%s399_s0 + $0x15] sm:$0x1]   ;;  %v208_v12 = vld [vmem:[%s399_s0 + $0x14] sm:$0x1]  }
   0x7   :  { %s269_s13 = smov 84   ;;  %s270_s14 = smov 80   ;;  %v209_v13 = vld [vmem:[%s399_s0 + $0x13] sm:$0x1]   ;;  %v210_v14 = vld [vmem:[%s399_s0 + $0x12] sm:$0x1]  }
   0x8   :  { %s271_s19 = smov 76   ;;  %s272_s20 = smov 72   ;;  %v211_v15 = vld [vmem:[%s399_s0 + $0x11] sm:$0x1]   ;;  %v212_v16 = vld [vmem:[%s399_s0 + $0x10] sm:$0x1]  }
   0x9   :  { %s273_s25 = smov 68   ;;  %s274_s26 = smov 64   ;;  %v213_v17 = vld [vmem:[%s399_s0 + $0xf] sm:$0x1]   ;;  %v214_v18 = vld [vmem:[%s399_s0 + $0xe] sm:$0x1]  }
   0xa   :  { %31 = vrot.lane.b32.xlu0 %v201_v4, %s263_s22  ;;  %37 = vrot.lane.b32.xlu1 %v202_v5, %s264_s23  ;;  %s275_s2 = smov 60   ;;  %s276_s3 = smov 56   ;;  %v215_v19 = vld [vmem:[%s399_s0 + $0xd] sm:$0x1]   ;;  %v216_v20 = vld [vmem:[%s399_s0 + $0xc] sm:$0x1]  }
   0xb   :  { %s278_s9 = smov 48   ;;  %v217_v21 = vld [vmem:[%s399_s0 + $0xb] sm:$0x1]   ;;  %v218_v22 = vld [vmem:[%s399_s0 + $0xa] sm:$0x1]   ;;  %s280_s15 = smov 40  }
   0xc   :  { %v219_v23 = vld [vmem:[%s399_s0 + $0x9] sm:$0x1]   ;;  %v220_v24 = vld [vmem:[%s399_s0 + $0x8] sm:$0x1]   ;;  %s282_s21 = smov 32   ;;  %s284_s27 = smov 24  }
   0xd   :  { %v221_v25 = vld [vmem:[%s399_s0 + $0x7] sm:$0x1]   ;;  %v222_v26 = vld [vmem:[%s399_s0 + $0x6] sm:$0x1]   ;;  %v223_v27 = vld [vmem:[%s399_s0 + $0x5] sm:$0x1]  }
   0xe   :  { %43 = vrot.lane.b32.xlu0 %v203_v6, %s265_s28  ;;  %49 = vrot.lane.b32.xlu1 %v204_v7, %s266_s29  ;;  %v224_v28 = vld [vmem:[%s399_s0 + $0x4] sm:$0x1]   ;;  %s286_s4 = smov 16   ;;  %v225_v29 = vld [vmem:[%s399_s0 + $0x3] sm:$0x1]   ;;  %s288_s10 = smov 8  }
   0xf   :  { %v226_v30 = vld [vmem:[%s399_s0 + $0x2] sm:$0x1]   ;;  %v227_v31 = vld [vmem:[%s399_s0 + $0x1] sm:$0x1]   ;;  %s289_s0 = smov 4   ;;  %vm27_vm4 = vcmask 950144  }
  0x10   :  { %vm33_vm5 = vcmask 917344   ;;  %vm39_vm6 = vcmask 884544   ;;  %vm45_vm7 = vcmask 851744   ;;  %vm51_vm8 = vcmask 818944  }
  0x11   :  { %vm57_vm9 = vcmask 786144   ;;  %vm63_vm10 = vcmask 753344   ;;  %vm69_vm11 = vcmask 720544   ;;  %vm75_vm12 = vcmask 687744  }
  0x12   :  { %55 = vrot.lane.b32.xlu0 %v205_v8, %s267_s7  ;;  %61 = vrot.lane.b32.xlu1 %v206_v9, %s268_s8  ;;  %s277_s8 = smov 52   ;;  %vm81_vm13 = vcmask 654944   ;;  %vm87_vm14 = vcmask 622144   ;;  %vm93_vm15 = vcmask 589344   ;;  %vm99_vm0 = vcmask 556544  }
  0x16   :  { %67 = vrot.lane.b32.xlu0 %v207_v11, %s269_s13  ;;  %73 = vrot.lane.b32.xlu1 %v208_v12, %s270_s14  ;;  %s279_s14 = smov 44  }
  0x1a   :  { %79 = vrot.lane.b32.xlu0 %v209_v13, %s271_s19  ;;  %85 = vrot.lane.b32.xlu1 %v210_v14, %s272_s20  ;;  %s281_s20 = smov 36  }
  0x1e   :  { %91 = vrot.lane.b32.xlu0 %v211_v15, %s273_s25  ;;  %97 = vrot.lane.b32.xlu1 %v212_v16, %s274_s26  ;;  %s283_s26 = smov 28  }
  0x22   :  { %103 = vrot.lane.b32.xlu0 %v213_v17, %s275_s2  ;;  %109 = vrot.lane.b32.xlu1 %v214_v18, %s276_s3  ;;  %s285_s3 = smov 20  }
  0x26   :  { %115 = vrot.lane.b32.xlu0 %v215_v19, %s277_s8  ;;  %121 = vrot.lane.b32.xlu1 %v216_v20, %s278_s9  ;;  %s287_s9 = smov 12  }
  0x2a   :  { %127 = vrot.lane.b32.xlu0 %v217_v21, %s279_s14  ;;  %133 = vrot.lane.b32.xlu1 %v218_v22, %s280_s15 }
  0x2e   :  { %139 = vrot.lane.b32.xlu0 %v219_v23, %s281_s20  ;;  %145 = vrot.lane.b32.xlu1 %v220_v24, %s282_s21 }
  0x32   :  { %151 = vrot.lane.b32.xlu0 %v221_v25, %s283_s26  ;;  %157 = vrot.lane.b32.xlu1 %v222_v26, %s284_s27 }
  0x36   :  { %163 = vrot.lane.b32.xlu0 %v223_v27, %s285_s3  ;;  %169 = vrot.lane.b32.xlu1 %v224_v28, %s286_s4 }
  0x3a   :  { %175 = vrot.lane.b32.xlu0 %v225_v29, %s287_s9  ;;  %181 = vrot.lane.b32.xlu1 %v226_v30, %s288_s10 }
  0x3e   :  { %187 = vrot.lane.b32.xlu0 %v227_v31, %s289_s0 }
  0x74   :  { %v8_v32 = vpop.permute.xlu0 %7   ;;  %v20_v33 = vpop.permute.xlu1 %19  }
  0x75   :  { %10 = vst.msk [vmem:[#allocation0] sm:$0x1] %vm9_vm1, %v8_v32   ;;  %vm105_vm1 = vcmask 523744  }
  0x78   :  { %v14_v34 = vpop.permute.xlu0 %13   ;;  %v26_v35 = vpop.permute.xlu1 %25  }
  0x79   :  { %16 = vst.msk [vmem:[#allocation0] sm:$0x1] %vm15_vm2, %v14_v34   ;;  %vm111_vm2 = vcmask 490944  }
  0x7a   :  { %22 = vst.msk [vmem:[#allocation0] sm:$0x1] %vm21_vm3, %v20_v33   ;;  %vm117_vm3 = vcmask 458144  }
  0x7b   :  { %28 = vst.msk [vmem:[#allocation0] sm:$0x1] %vm27_vm4, %v26_v35   ;;  %vm123_vm4 = vcmask 425344  }
  0x7c   :  { %v32_v36 = vpop.permute.xlu0 %31   ;;  %v38_v37 = vpop.permute.xlu1 %37  }
  0x7d   :  { %34 = vst.msk [vmem:[#allocation0] sm:$0x1] %vm33_vm5, %v32_v36   ;;  %vm129_vm5 = vcmask 392544  }
  0x7e   :  { %40 = vst.msk [vmem:[#allocation0] sm:$0x1] %vm39_vm6, %v38_v37   ;;  %vm135_vm6 = vcmask 359744  }
  0x80   :  { %v44_v38 = vpop.permute.xlu0 %43   ;;  %v50_v39 = vpop.permute.xlu1 %49  }
  0x81   :  { %46 = vst.msk [vmem:[#allocation0] sm:$0x1] %vm45_vm7, %v44_v38   ;;  %vm141_vm7 = vcmask 326944  }
  0x82   :  { %52 = vst.msk [vmem:[#allocation0] sm:$0x1] %vm51_vm8, %v50_v39   ;;  %vm147_vm8 = vcmask 294144  }
  0x84   :  { %v56_v40 = vpop.permute.xlu0 %55   ;;  %v62_v41 = vpop.permute.xlu1 %61  }
  0x85   :  { %58 = vst.msk [vmem:[#allocation0] sm:$0x1] %vm57_vm9, %v56_v40   ;;  %vm153_vm9 = vcmask 261344  }
  0x86   :  { %64 = vst.msk [vmem:[#allocation0] sm:$0x1] %vm63_vm10, %v62_v41   ;;  %vm159_vm10 = vcmask 228544  }
  0x88   :  { %v68_v42 = vpop.permute.xlu0 %67   ;;  %v74_v43 = vpop.permute.xlu1 %73  }
  0x89   :  { %70 = vst.msk [vmem:[#allocation0] sm:$0x1] %vm69_vm11, %v68_v42   ;;  %vm165_vm11 = vcmask 195744  }
  0x8a   :  { %76 = vst.msk [vmem:[#allocation0] sm:$0x1] %vm75_vm12, %v74_v43   ;;  %vm171_vm12 = vcmask 162944  }
  0x8c   :  { %v80_v44 = vpop.permute.xlu0 %79   ;;  %v86_v45 = vpop.permute.xlu1 %85  }
  0x8d   :  { %82 = vst.msk [vmem:[#allocation0] sm:$0x1] %vm81_vm13, %v80_v44   ;;  %vm177_vm13 = vcmask 130144  }
  0x8e   :  { %88 = vst.msk [vmem:[#allocation0] sm:$0x1] %vm87_vm14, %v86_v45   ;;  %vm183_vm14 = vcmask 97344  }
  0x90   :  { %v92_v46 = vpop.permute.xlu0 %91   ;;  %v98_v47 = vpop.permute.xlu1 %97  }
  0x91   :  { %94 = vst.msk [vmem:[#allocation0] sm:$0x1] %vm93_vm15, %v92_v46   ;;  %vm189_vm15 = vcmask 64544  }
  0x92   :  { %100 = vst.msk [vmem:[#allocation0] sm:$0x1] %vm99_vm0, %v98_v47  }
  0x94   :  { %v104_v48 = vpop.permute.xlu0 %103   ;;  %v110_v49 = vpop.permute.xlu1 %109  }
  0x95   :  { %106 = vst.msk [vmem:[#allocation0] sm:$0x1] %vm105_vm1, %v104_v48  }
  0x96   :  { %112 = vst.msk [vmem:[#allocation0] sm:$0x1] %vm111_vm2, %v110_v49  }
  0x98   :  { %v116_v50 = vpop.permute.xlu0 %115   ;;  %v122_v51 = vpop.permute.xlu1 %121  }
  0x99   :  { %118 = vst.msk [vmem:[#allocation0] sm:$0x1] %vm117_vm3, %v116_v50  }
  0x9a   :  { %124 = vst.msk [vmem:[#allocation0] sm:$0x1] %vm123_vm4, %v122_v51  }
  0x9c   :  { %v128_v52 = vpop.permute.xlu0 %127   ;;  %v134_v53 = vpop.permute.xlu1 %133  }
  0x9d   :  { %130 = vst.msk [vmem:[#allocation0] sm:$0x1] %vm129_vm5, %v128_v52  }
  0x9e   :  { %136 = vst.msk [vmem:[#allocation0] sm:$0x1] %vm135_vm6, %v134_v53  }
  0xa0   :  { %v140_v54 = vpop.permute.xlu0 %139   ;;  %v146_v55 = vpop.permute.xlu1 %145  }
  0xa1   :  { %142 = vst.msk [vmem:[#allocation0] sm:$0x1] %vm141_vm7, %v140_v54  }
  0xa2   :  { %148 = vst.msk [vmem:[#allocation0] sm:$0x1] %vm147_vm8, %v146_v55  }
  0xa4   :  { %v152_v56 = vpop.permute.xlu0 %151   ;;  %v158_v57 = vpop.permute.xlu1 %157  }
  0xa5   :  { %154 = vst.msk [vmem:[#allocation0] sm:$0x1] %vm153_vm9, %v152_v56  }
  0xa6   :  { %160 = vst.msk [vmem:[#allocation0] sm:$0x1] %vm159_vm10, %v158_v57  }
  0xa8   :  { %v164_v58 = vpop.permute.xlu0 %163   ;;  %v170_v59 = vpop.permute.xlu1 %169  }
  0xa9   :  { %166 = vst.msk [vmem:[#allocation0] sm:$0x1] %vm165_vm11, %v164_v58  }
  0xaa   :  { %172 = vst.msk [vmem:[#allocation0] sm:$0x1] %vm171_vm12, %v170_v59  }
  0xac   :  { %v176_v60 = vpop.permute.xlu0 %175   ;;  %v182_v61 = vpop.permute.xlu1 %181  }
  0xad   :  { %178 = vst.msk [vmem:[#allocation0] sm:$0x1] %vm177_vm13, %v176_v60  }
  0xae   :  { %184 = vst.msk [vmem:[#allocation0] sm:$0x1] %vm183_vm14, %v182_v61  }
  0xb0   :  { %v188_v62 = vpop.permute.xlu0 %187  }
  0xb1   :  { %190 = vst.msk [vmem:[#allocation0] sm:$0x1] %vm189_vm15, %v188_v62  }
  0xb8   :  { %v194_v63 = vld [vmem:[#allocation0] sm:$0x1] }
  0xb9   :  { %196 = vst [vmem:[%s400_s1] sm:$0x1] %v194_v63 }

// kernel: tdtransformer_forward.47
= control target key start
LH: loop header
LB: loop body
LE: loop exit
PB: predicated region body
PF: predicated region fallthrough
CT: control target
= control target key end

     0   :  { %s154_s0 = inlined_call_operand.vmem [shape: f32[16,128], index: 0, kind: input, shape index: {}]   ;;  %s155_s1 = inlined_call_operand.vmem [shape: f32[16,128], index: 1, kind: input, shape index: {}]   ;;  %s156_s2 = inlined_call_operand.vmem [shape: f32[16,128], index: 2, kind: input, shape index: {}]   ;;  %s157_s3 = inlined_call_operand.vmem [shape: f32[16,128], index: 3, kind: input, shape index: {}]   ;;  %s158_s4 = inlined_call_operand.vmem [shape: f32[1,128], index: 4, kind: input, shape index: {}]   ;;  %s159_s5 = inlined_call_operand.vmem [shape: f32[1,128], index: 5, kind: input, shape index: {}]   ;;  %s160_s6 = inlined_call_operand.vmem [shape: f32[16,128], index: 6, kind: output, shape index: {}]  }
   0x1   :  { %v81_v0 = vld [vmem:[%s158_s4] ss:$0 sm:$0xff]  ;;  %v26_v10 = vld [vmem:[%s154_s0 + $0x8] sm:$0xff] }
   0x2   :  { %v82_v1 = vld [vmem:[%s159_s5] ss:$0 sm:$0xff]  ;;  %v46_v11 = vld [vmem:[%s155_s1 + $0x8] sm:$0xff]  ;;  %v34_v14 = vmul.f32 %v81_v0, %v26_v10 }
   0x3   :  { %v25_v2 = vld [vmem:[%s154_s0] sm:$0xff]  ;;  %v56_v12 = vld [vmem:[%s156_s2 + $0x8] sm:$0xff]  ;;  %v48_v15 = vmul.f32 %v81_v0, %v46_v11 }
   0x4   :  { %v33_v3 = vmul.f32 %v81_v0, %v25_v2  ;;  %v45_v4 = vld [vmem:[%s155_s1] sm:$0xff]  ;;  %v58_v16 = vmul.f32 %v81_v0, %v56_v12  ;;  %v64_v17 = vld [vmem:[%s157_s3 + $0x8] sm:$0xff]  ;;  %v42_v23 = vadd.f32 %v82_v1, %v34_v14 }
   0x5   :  { %v55_v5 = vld [vmem:[%s156_s2] sm:$0xff]  ;;  %v47_v7 = vmul.f32 %v81_v0, %v45_v4  ;;  %v66_v21 = vmul.f32 %v81_v0, %v64_v17  ;;  %v50_v24 = vadd.f32 %v82_v1, %v48_v15 }
   0x6   :  { %v63_v6 = vld [vmem:[%s157_s3] sm:$0xff]  ;;  %v57_v8 = vmul.f32 %v81_v0, %v55_v5  ;;  %v41_v13 = vadd.f32 %v82_v1, %v33_v3  ;;  %v60_v25 = vadd.f32 %v82_v1, %v58_v16  ;;  %v44_v30 = vmax.f32 %v42_v23, 0.0 }
   0x7   :  { %v65_v9 = vmul.f32 %v81_v0, %v63_v6  ;;  %v49_v18 = vadd.f32 %v82_v1, %v47_v7  ;;  %v68_v29 = vadd.f32 %v82_v1, %v66_v21  ;;  %v52_v31 = vmax.f32 %v50_v24, 0.0 }
   0x8   :  { %v59_v19 = vadd.f32 %v82_v1, %v57_v8  ;;  %v43_v22 = vmax.f32 %v41_v13, 0.0  ;;  %v62_v32 = vmax.f32 %v60_v25, 0.0 }
   0x9   :  { %v67_v20 = vadd.f32 %v82_v1, %v65_v9  ;;  %v51_v26 = vmax.f32 %v49_v18, 0.0  ;;  %v70_v35 = vmax.f32 %v68_v29, 0.0  ;;  %v54_v36 = vmax.f32 %v44_v30, %v52_v31 }
   0xa   :  { %v61_v27 = vmax.f32 %v59_v19, 0.0 }
   0xb   :  { %v69_v28 = vmax.f32 %v67_v20, 0.0  ;;  %v53_v33 = vmax.f32 %v43_v22, %v51_v26  ;;  %v72_v38 = vmax.f32 %v62_v32, %v70_v35 }
   0xd   :  { %v71_v34 = vmax.f32 %v61_v27, %v69_v28  ;;  %v74_v39 = vmax.f32 %v54_v36, %v72_v38 }
   0xf   :  { %v73_v37 = vmax.f32 %v53_v33, %v71_v34  ;;  %76 = vst [vmem:[%s160_s6 + $0x8] sm:$0xff] %v74_v39 }
  0x11   :  { %75 = vst [vmem:[%s160_s6] sm:$0xff] %v73_v37 }

// kernel: tdtransformer_forward.48
= control target key start
LH: loop header
LB: loop body
LE: loop exit
PB: predicated region body
PF: predicated region fallthrough
CT: control target
= control target key end

     0   :  { %vm301_vm0 = vcmask 883712   ;;  %vm398_vm1 = vcmask 1045504   ;;  %vm691_vm2 = vcmask 64512   ;;  %s1498_s1 = inlined_call_operand.vmem [shape: bf16[108,8], index: 1, kind: input, shape index: {}]   ;;  %s1499_s0 = inlined_call_operand.vmem [shape: bf16[512,108], index: 0, kind: input, shape index: {}]   ;;  %s1500_s2 = inlined_call_operand.vmem [shape: f32[1,8], index: 2, kind: input, shape index: {}]   ;;  %s1501_s3 = inlined_call_operand.vmem [shape: f32[512,8], index: 3, kind: output, shape index: {}]  }
   0x1   :  { %v965_v0 = vld [vmem:[%s1498_s1] sm:$0xff]   ;;  %v966_v1 = vld [vmem:[%s1498_s1 + $0x8] sm:$0xff]   ;;  %v967_v2 = vld [vmem:[%s1498_s1 + $0x10] sm:$0xff]  }
   0x2   :  { %871 = vmatprep.subr.bf16.mxu0 %v965_v0  ;;  %949 = vmatprep.subr.bf16.mxu1 %v965_v0  ;;  %v968_v3 = vld [vmem:[%s1498_s1 + $0x18] sm:$0xff]   ;;  %v972_v4 = vld [vmem:[%s1499_s0] sm:$0xff]   ;;  %v970_v7 = vld [vmem:[%s1498_s1 + $0x28] sm:$0xff]  }
   0x3   :  { %872 = vmatpush3.bf16.msra.mxu0 %v965_v0  ;;  %956 = vmatpush3.bf16.msra.mxu1 %v965_v0  ;;  %v973_v5 = vld [vmem:[%s1499_s0 + $0x80] sm:$0xff]   ;;  %v971_v8 = vld [vmem:[%s1498_s1 + $0x30] sm:$0x3f]   ;;  %v974_v10 = vld [vmem:[%s1499_s0 + $0x8] sm:$0xff]  }
   0x4   :  { %873 = vmatprep.subr.bf16.mxu0 %v966_v1  ;;  %950 = vmatprep.subr.bf16.mxu1 %v966_v1  ;;  %v969_v6 = vld [vmem:[%s1498_s1 + $0x20] sm:$0xff]   ;;  %v400_v9 = vsel %vm398_vm1, %v971_v8, 0  ;;  %v975_v11 = vld [vmem:[%s1499_s0 + $0x88] sm:$0xff]   ;;  %v976_v12 = vld [vmem:[%s1499_s0 + $0x10] sm:$0xff]  }
   0x5   :  { %885 = vmatprep.mubr.msk.bf16.mxu0 %vm301_vm0, %v972_v4  ;;  %917 = vmatprep.mubr.msk.bf16.mxu1 %vm301_vm0, %v973_v5  ;;  %v977_v13 = vld [vmem:[%s1499_s0 + $0x90] sm:$0xff]   ;;  %v978_v14 = vld [vmem:[%s1499_s0 + $0x18] sm:$0xff]   ;;  %v980_v16 = vld [vmem:[%s1499_s0 + $0x20] sm:$0xff]  }
   0x6   :  { %v979_v15 = vld [vmem:[%s1499_s0 + $0x98] sm:$0xff]   ;;  %v981_v17 = vld [vmem:[%s1499_s0 + $0xa0] sm:$0xff]   ;;  %v982_v18 = vld [vmem:[%s1499_s0 + $0x28] sm:$0xff]  }
   0x7   :  { %874 = vmatpush3.bf16.msra.mxu0 %v966_v1  ;;  %957 = vmatpush3.bf16.msra.mxu1 %v966_v1  ;;  %v983_v19 = vld [vmem:[%s1499_s0 + $0xa8] sm:$0xff]   ;;  %v984_v20 = vld [vmem:[%s1499_s0 + $0x30] sm:$0xff]   ;;  %v986_v22 = vld [vmem:[%s1499_s0 + $0x38] sm:$0xff]  }
   0x8   :  { %875 = vmatprep.subr.bf16.mxu0 %v967_v2  ;;  %951 = vmatprep.subr.bf16.mxu1 %v967_v2  ;;  %v985_v21 = vld [vmem:[%s1499_s0 + $0xb0] sm:$0xff]   ;;  %v987_v23 = vld [vmem:[%s1499_s0 + $0xb8] sm:$0xff]   ;;  %v988_v24 = vld [vmem:[%s1499_s0 + $0x40] sm:$0xff]  }
   0x9   :  { %v989_v25 = vld [vmem:[%s1499_s0 + $0xc0] sm:$0xff]   ;;  %v990_v26 = vld [vmem:[%s1499_s0 + $0x48] sm:$0xff]   ;;  %v992_v28 = vld [vmem:[%s1499_s0 + $0x50] sm:$0xff]  }
   0xa   :  { %v991_v27 = vld [vmem:[%s1499_s0 + $0xc8] sm:$0xff]   ;;  %v993_v29 = vld [vmem:[%s1499_s0 + $0xd0] sm:$0xff]   ;;  %v994_v30 = vld [vmem:[%s1499_s0 + $0x58] sm:$0xff]  }
   0xb   :  { %876 = vmatpush3.bf16.msra.mxu0 %v967_v2  ;;  %958 = vmatpush3.bf16.msra.mxu1 %v967_v2  ;;  %v995_v31 = vld [vmem:[%s1499_s0 + $0xd8] sm:$0xff]   ;;  %v996_v32 = vld [vmem:[%s1499_s0 + $0x60] sm:$0xff]   ;;  %v998_v34 = vld [vmem:[%s1499_s0 + $0x68] sm:$0xff]  }
   0xc   :  { %877 = vmatprep.subr.bf16.mxu0 %v968_v3  ;;  %952 = vmatprep.subr.bf16.mxu1 %v968_v3  ;;  %v997_v33 = vld [vmem:[%s1499_s0 + $0xe0] sm:$0xff]   ;;  %v999_v35 = vld [vmem:[%s1499_s0 + $0xe8] sm:$0xff]   ;;  %v1000_v36 = vld [vmem:[%s1499_s0 + $0x70] sm:$0xff]  }
   0xd   :  { %v1001_v37 = vld [vmem:[%s1499_s0 + $0xf0] sm:$0xff]   ;;  %v1002_v38 = vld [vmem:[%s1499_s0 + $0x78] sm:$0xff]   ;;  %v1176_v40 = vld [vmem:[%s1500_s2] ss:$0 sm:$0xff] }
   0xe   :  { %v1003_v39 = vld [vmem:[%s1499_s0 + $0xf8] sm:$0xff]  }
   0xf   :  { %878 = vmatpush3.bf16.msra.mxu0 %v968_v3  ;;  %959 = vmatpush3.bf16.msra.mxu1 %v968_v3 }
  0x10   :  { %879 = vmatprep.subr.bf16.mxu0 %v969_v6  ;;  %953 = vmatprep.subr.bf16.mxu1 %v969_v6 }
  0x13   :  { %880 = vmatpush3.bf16.msra.mxu0 %v969_v6  ;;  %960 = vmatpush3.bf16.msra.mxu1 %v969_v6 }
  0x14   :  { %881 = vmatprep.subr.bf16.mxu0 %v970_v7  ;;  %954 = vmatprep.subr.bf16.mxu1 %v970_v7 }
  0x17   :  { %882 = vmatpush3.bf16.msra.mxu0 %v970_v7  ;;  %961 = vmatpush3.bf16.msra.mxu1 %v970_v7 }
  0x18   :  { %963 = vmatprep.subr.msk.bf16.mxu0 %vm398_vm1, %v971_v8  ;;  %964 = vmatprep.subr.msk.bf16.mxu1 %vm398_vm1, %v971_v8 }
  0x1b   :  { %884 = vmatpush3.bf16.msra.mxu0 %v400_v9  ;;  %962 = vmatpush3.bf16.msra.mxu1 %v400_v9 }
  0x1e   :  { %886 = vmatmul.mubr.msk.bf16.vlgmr.msra.gmra.mrb[0].mxu0 %vm301_vm0, %v974_v10  ;;  %918 = vmatmul.mubr.msk.bf16.vlgmr.msra.gmra.mrb[0].mxu1 %vm301_vm0, %v975_v11 }
  0x1f   :  { %889 = vmatprep.mubr.msk.bf16.mxu0 %vm301_vm0, %v976_v12  ;;  %921 = vmatprep.mubr.msk.bf16.mxu1 %vm301_vm0, %v977_v13 }
  0x26   :  { %890 = vmatmul.mubr.msk.bf16.gmra.mrb[4].mxu0 %vm301_vm0, %v978_v14  ;;  %922 = vmatmul.mubr.msk.bf16.gmra.mrb[4].mxu1 %vm301_vm0, %v979_v15 }
  0x27   :  { %893 = vmatprep.mubr.msk.bf16.mxu0 %vm301_vm0, %v980_v16  ;;  %925 = vmatprep.mubr.msk.bf16.mxu1 %vm301_vm0, %v981_v17 }
  0x2e   :  { %894 = vmatmul.mubr.msk.bf16.gmra.mrb[8].mxu0 %vm301_vm0, %v982_v18  ;;  %926 = vmatmul.mubr.msk.bf16.gmra.mrb[8].mxu1 %vm301_vm0, %v983_v19 }
  0x2f   :  { %897 = vmatprep.mubr.msk.bf16.mxu0 %vm301_vm0, %v984_v20  ;;  %929 = vmatprep.mubr.msk.bf16.mxu1 %vm301_vm0, %v985_v21 }
  0x36   :  { %898 = vmatmul.mubr.msk.bf16.gmra.mrb[12].mxu0 %vm301_vm0, %v986_v22  ;;  %930 = vmatmul.mubr.msk.bf16.gmra.mrb[12].mxu1 %vm301_vm0, %v987_v23 }
  0x37   :  { %901 = vmatprep.mubr.msk.bf16.mxu0 %vm301_vm0, %v988_v24  ;;  %933 = vmatprep.mubr.msk.bf16.mxu1 %vm301_vm0, %v989_v25 }
  0x3e   :  { %902 = vmatmul.mubr.msk.bf16.gmra.mrb[16].mxu0 %vm301_vm0, %v990_v26  ;;  %934 = vmatmul.mubr.msk.bf16.gmra.mrb[16].mxu1 %vm301_vm0, %v991_v27 }
  0x3f   :  { %905 = vmatprep.mubr.msk.bf16.mxu0 %vm301_vm0, %v992_v28  ;;  %937 = vmatprep.mubr.msk.bf16.mxu1 %vm301_vm0, %v993_v29 }
  0x46   :  { %906 = vmatmul.mubr.msk.bf16.gmra.mrb[20].mxu0 %vm301_vm0, %v994_v30  ;;  %938 = vmatmul.mubr.msk.bf16.gmra.mrb[20].mxu1 %vm301_vm0, %v995_v31 }
  0x47   :  { %909 = vmatprep.mubr.msk.bf16.mxu0 %vm301_vm0, %v996_v32  ;;  %941 = vmatprep.mubr.msk.bf16.mxu1 %vm301_vm0, %v997_v33 }
  0x4e   :  { %910 = vmatmul.mubr.msk.bf16.gmra.mrb[24].mxu0 %vm301_vm0, %v998_v34  ;;  %942 = vmatmul.mubr.msk.bf16.gmra.mrb[24].mxu1 %vm301_vm0, %v999_v35 }
  0x4f   :  { %913 = vmatprep.mubr.msk.bf16.mxu0 %vm301_vm0, %v1000_v36  ;;  %945 = vmatprep.mubr.msk.bf16.mxu1 %vm301_vm0, %v1001_v37 }
  0x56   :  { %914 = vmatmul.mubr.msk.bf16.gmra.mrb[28].mxu0 %vm301_vm0, %v1002_v38  ;;  %946 = vmatmul.mubr.msk.bf16.gmra.mrb[28].mxu1 %vm301_vm0, %v1003_v39 }
  0xf1   :  { %v887_v41 = vpop.f32.mrb[0].mxu0  ;;  %v919_v42 = vpop.f32.mrb[0].mxu1 }
  0xf2   :  { %v445_v43 = vadd.f32 %v887_v41, %v1176_v40  ;;  %v573_v44 = vadd.f32 %v919_v42, %v1176_v40  ;;  %v436_v45 = vpop.f32.mrb[1].mxu0  ;;  %v564_v46 = vpop.f32.mrb[1].mxu1 }
  0xf3   :  { %v437_v47 = vadd.f32 %v1176_v40, %v436_v45  ;;  %v565_v48 = vadd.f32 %v1176_v40, %v564_v46  ;;  %v888_v49 = vpop.f32.mrb[2].mxu0  ;;  %v920_v50 = vpop.f32.mrb[2].mxu1 }
  0xf4   :  { %694 = vst.msk [vmem:[%s1501_s3 + $0x10] sm:$0xff] %vm691_vm2, %v445_v43  ;;  %726 = vst.msk [vmem:[%s1501_s3 + $0x110] sm:$0xff] %vm691_vm2, %v573_v44  ;;  %v448_v51 = vadd.f32 %v888_v49, %v1176_v40  ;;  %v576_v52 = vadd.f32 %v920_v50, %v1176_v40  ;;  %v439_v53 = vpop.f32.mrb[3].mxu0  ;;  %v567_v54 = vpop.f32.mrb[3].mxu1 }
  0xf5   :  { %692 = vst.msk [vmem:[%s1501_s3] sm:$0xff] %vm691_vm2, %v437_v47  ;;  %724 = vst.msk [vmem:[%s1501_s3 + $0x100] sm:$0xff] %vm691_vm2, %v565_v48  ;;  %v440_v55 = vadd.f32 %v1176_v40, %v439_v53  ;;  %v568_v56 = vadd.f32 %v1176_v40, %v567_v54 }
  0xf6   :  { %695 = vst.msk [vmem:[%s1501_s3 + $0x18] sm:$0xff] %vm691_vm2, %v448_v51  ;;  %727 = vst.msk [vmem:[%s1501_s3 + $0x118] sm:$0xff] %vm691_vm2, %v576_v52 }
  0xf7   :  { %693 = vst.msk [vmem:[%s1501_s3 + $0x8] sm:$0xff] %vm691_vm2, %v440_v55  ;;  %725 = vst.msk [vmem:[%s1501_s3 + $0x108] sm:$0xff] %vm691_vm2, %v568_v56 }
  0xf9   :  { %v891_v57 = vpop.f32.mrb[4].mxu0  ;;  %v923_v58 = vpop.f32.mrb[4].mxu1 }
  0xfa   :  { %v461_v59 = vadd.f32 %v891_v57, %v1176_v40  ;;  %v589_v60 = vadd.f32 %v923_v58, %v1176_v40  ;;  %v452_v61 = vpop.f32.mrb[5].mxu0  ;;  %v580_v62 = vpop.f32.mrb[5].mxu1 }
  0xfb   :  { %v453_v63 = vadd.f32 %v1176_v40, %v452_v61  ;;  %v581_v0 = vadd.f32 %v1176_v40, %v580_v62  ;;  %v892_v1 = vpop.f32.mrb[6].mxu0  ;;  %v924_v2 = vpop.f32.mrb[6].mxu1 }
  0xfc   :  { %698 = vst.msk [vmem:[%s1501_s3 + $0x30] sm:$0xff] %vm691_vm2, %v461_v59  ;;  %730 = vst.msk [vmem:[%s1501_s3 + $0x130] sm:$0xff] %vm691_vm2, %v589_v60  ;;  %v464_v3 = vadd.f32 %v892_v1, %v1176_v40  ;;  %v592_v4 = vadd.f32 %v924_v2, %v1176_v40  ;;  %v455_v5 = vpop.f32.mrb[7].mxu0  ;;  %v583_v6 = vpop.f32.mrb[7].mxu1 }
  0xfd   :  { %696 = vst.msk [vmem:[%s1501_s3 + $0x20] sm:$0xff] %vm691_vm2, %v453_v63  ;;  %728 = vst.msk [vmem:[%s1501_s3 + $0x120] sm:$0xff] %vm691_vm2, %v581_v0  ;;  %v456_v7 = vadd.f32 %v1176_v40, %v455_v5  ;;  %v584_v8 = vadd.f32 %v1176_v40, %v583_v6 }
  0xfe   :  { %699 = vst.msk [vmem:[%s1501_s3 + $0x38] sm:$0xff] %vm691_vm2, %v464_v3  ;;  %731 = vst.msk [vmem:[%s1501_s3 + $0x138] sm:$0xff] %vm691_vm2, %v592_v4 }
  0xff   :  { %697 = vst.msk [vmem:[%s1501_s3 + $0x28] sm:$0xff] %vm691_vm2, %v456_v7  ;;  %729 = vst.msk [vmem:[%s1501_s3 + $0x128] sm:$0xff] %vm691_vm2, %v584_v8 }
 0x101   :  { %v895_v9 = vpop.f32.mrb[8].mxu0  ;;  %v927_v10 = vpop.f32.mrb[8].mxu1 }
 0x102   :  { %v477_v11 = vadd.f32 %v895_v9, %v1176_v40  ;;  %v605_v12 = vadd.f32 %v927_v10, %v1176_v40  ;;  %v468_v13 = vpop.f32.mrb[9].mxu0  ;;  %v596_v14 = vpop.f32.mrb[9].mxu1 }
 0x103   :  { %v469_v15 = vadd.f32 %v1176_v40, %v468_v13  ;;  %v597_v16 = vadd.f32 %v1176_v40, %v596_v14  ;;  %v896_v17 = vpop.f32.mrb[10].mxu0  ;;  %v928_v18 = vpop.f32.mrb[10].mxu1 }
 0x104   :  { %702 = vst.msk [vmem:[%s1501_s3 + $0x50] sm:$0xff] %vm691_vm2, %v477_v11  ;;  %734 = vst.msk [vmem:[%s1501_s3 + $0x150] sm:$0xff] %vm691_vm2, %v605_v12  ;;  %v480_v19 = vadd.f32 %v896_v17, %v1176_v40  ;;  %v608_v20 = vadd.f32 %v928_v18, %v1176_v40  ;;  %v471_v21 = vpop.f32.mrb[11].mxu0  ;;  %v599_v22 = vpop.f32.mrb[11].mxu1 }
 0x105   :  { %700 = vst.msk [vmem:[%s1501_s3 + $0x40] sm:$0xff] %vm691_vm2, %v469_v15  ;;  %732 = vst.msk [vmem:[%s1501_s3 + $0x140] sm:$0xff] %vm691_vm2, %v597_v16  ;;  %v472_v23 = vadd.f32 %v1176_v40, %v471_v21  ;;  %v600_v24 = vadd.f32 %v1176_v40, %v599_v22 }
 0x106   :  { %703 = vst.msk [vmem:[%s1501_s3 + $0x58] sm:$0xff] %vm691_vm2, %v480_v19  ;;  %735 = vst.msk [vmem:[%s1501_s3 + $0x158] sm:$0xff] %vm691_vm2, %v608_v20 }
 0x107   :  { %701 = vst.msk [vmem:[%s1501_s3 + $0x48] sm:$0xff] %vm691_vm2, %v472_v23  ;;  %733 = vst.msk [vmem:[%s1501_s3 + $0x148] sm:$0xff] %vm691_vm2, %v600_v24 }
 0x109   :  { %v899_v25 = vpop.f32.mrb[12].mxu0  ;;  %v931_v26 = vpop.f32.mrb[12].mxu1 }
 0x10a   :  { %v493_v27 = vadd.f32 %v899_v25, %v1176_v40  ;;  %v621_v28 = vadd.f32 %v931_v26, %v1176_v40  ;;  %v484_v29 = vpop.f32.mrb[13].mxu0  ;;  %v612_v30 = vpop.f32.mrb[13].mxu1 }
 0x10b   :  { %v485_v31 = vadd.f32 %v1176_v40, %v484_v29  ;;  %v613_v32 = vadd.f32 %v1176_v40, %v612_v30  ;;  %v900_v33 = vpop.f32.mrb[14].mxu0  ;;  %v932_v34 = vpop.f32.mrb[14].mxu1 }
 0x10c   :  { %706 = vst.msk [vmem:[%s1501_s3 + $0x70] sm:$0xff] %vm691_vm2, %v493_v27  ;;  %738 = vst.msk [vmem:[%s1501_s3 + $0x170] sm:$0xff] %vm691_vm2, %v621_v28  ;;  %v496_v35 = vadd.f32 %v900_v33, %v1176_v40  ;;  %v624_v36 = vadd.f32 %v932_v34, %v1176_v40  ;;  %v487_v37 = vpop.f32.mrb[15].mxu0  ;;  %v615_v38 = vpop.f32.mrb[15].mxu1 }
 0x10d   :  { %704 = vst.msk [vmem:[%s1501_s3 + $0x60] sm:$0xff] %vm691_vm2, %v485_v31  ;;  %736 = vst.msk [vmem:[%s1501_s3 + $0x160] sm:$0xff] %vm691_vm2, %v613_v32  ;;  %v488_v39 = vadd.f32 %v1176_v40, %v487_v37  ;;  %v616_v41 = vadd.f32 %v1176_v40, %v615_v38 }
 0x10e   :  { %707 = vst.msk [vmem:[%s1501_s3 + $0x78] sm:$0xff] %vm691_vm2, %v496_v35  ;;  %739 = vst.msk [vmem:[%s1501_s3 + $0x178] sm:$0xff] %vm691_vm2, %v624_v36 }
 0x10f   :  { %705 = vst.msk [vmem:[%s1501_s3 + $0x68] sm:$0xff] %vm691_vm2, %v488_v39  ;;  %737 = vst.msk [vmem:[%s1501_s3 + $0x168] sm:$0xff] %vm691_vm2, %v616_v41 }
 0x111   :  { %v903_v42 = vpop.f32.mrb[16].mxu0  ;;  %v935_v43 = vpop.f32.mrb[16].mxu1 }
 0x112   :  { %v509_v44 = vadd.f32 %v903_v42, %v1176_v40  ;;  %v637_v45 = vadd.f32 %v935_v43, %v1176_v40  ;;  %v500_v46 = vpop.f32.mrb[17].mxu0  ;;  %v628_v47 = vpop.f32.mrb[17].mxu1 }
 0x113   :  { %v501_v48 = vadd.f32 %v1176_v40, %v500_v46  ;;  %v629_v49 = vadd.f32 %v1176_v40, %v628_v47  ;;  %v904_v50 = vpop.f32.mrb[18].mxu0  ;;  %v936_v51 = vpop.f32.mrb[18].mxu1 }
 0x114   :  { %710 = vst.msk [vmem:[%s1501_s3 + $0x90] sm:$0xff] %vm691_vm2, %v509_v44  ;;  %742 = vst.msk [vmem:[%s1501_s3 + $0x190] sm:$0xff] %vm691_vm2, %v637_v45  ;;  %v512_v52 = vadd.f32 %v904_v50, %v1176_v40  ;;  %v640_v53 = vadd.f32 %v936_v51, %v1176_v40  ;;  %v503_v54 = vpop.f32.mrb[19].mxu0  ;;  %v631_v55 = vpop.f32.mrb[19].mxu1 }
 0x115   :  { %708 = vst.msk [vmem:[%s1501_s3 + $0x80] sm:$0xff] %vm691_vm2, %v501_v48  ;;  %740 = vst.msk [vmem:[%s1501_s3 + $0x180] sm:$0xff] %vm691_vm2, %v629_v49  ;;  %v504_v56 = vadd.f32 %v1176_v40, %v503_v54  ;;  %v632_v57 = vadd.f32 %v1176_v40, %v631_v55 }
 0x116   :  { %711 = vst.msk [vmem:[%s1501_s3 + $0x98] sm:$0xff] %vm691_vm2, %v512_v52  ;;  %743 = vst.msk [vmem:[%s1501_s3 + $0x198] sm:$0xff] %vm691_vm2, %v640_v53 }
 0x117   :  { %709 = vst.msk [vmem:[%s1501_s3 + $0x88] sm:$0xff] %vm691_vm2, %v504_v56  ;;  %741 = vst.msk [vmem:[%s1501_s3 + $0x188] sm:$0xff] %vm691_vm2, %v632_v57 }
 0x119   :  { %v907_v58 = vpop.f32.mrb[20].mxu0  ;;  %v939_v59 = vpop.f32.mrb[20].mxu1 }
 0x11a   :  { %v525_v60 = vadd.f32 %v907_v58, %v1176_v40  ;;  %v653_v61 = vadd.f32 %v939_v59, %v1176_v40  ;;  %v516_v62 = vpop.f32.mrb[21].mxu0  ;;  %v644_v63 = vpop.f32.mrb[21].mxu1 }
 0x11b   :  { %v517_v0 = vadd.f32 %v1176_v40, %v516_v62  ;;  %v645_v1 = vadd.f32 %v1176_v40, %v644_v63  ;;  %v908_v2 = vpop.f32.mrb[22].mxu0  ;;  %v940_v3 = vpop.f32.mrb[22].mxu1 }
 0x11c   :  { %714 = vst.msk [vmem:[%s1501_s3 + $0xb0] sm:$0xff] %vm691_vm2, %v525_v60  ;;  %746 = vst.msk [vmem:[%s1501_s3 + $0x1b0] sm:$0xff] %vm691_vm2, %v653_v61  ;;  %v528_v4 = vadd.f32 %v908_v2, %v1176_v40  ;;  %v656_v5 = vadd.f32 %v940_v3, %v1176_v40  ;;  %v519_v6 = vpop.f32.mrb[23].mxu0  ;;  %v647_v7 = vpop.f32.mrb[23].mxu1 }
 0x11d   :  { %712 = vst.msk [vmem:[%s1501_s3 + $0xa0] sm:$0xff] %vm691_vm2, %v517_v0  ;;  %744 = vst.msk [vmem:[%s1501_s3 + $0x1a0] sm:$0xff] %vm691_vm2, %v645_v1  ;;  %v520_v8 = vadd.f32 %v1176_v40, %v519_v6  ;;  %v648_v9 = vadd.f32 %v1176_v40, %v647_v7 }
 0x11e   :  { %715 = vst.msk [vmem:[%s1501_s3 + $0xb8] sm:$0xff] %vm691_vm2, %v528_v4  ;;  %747 = vst.msk [vmem:[%s1501_s3 + $0x1b8] sm:$0xff] %vm691_vm2, %v656_v5 }
 0x11f   :  { %713 = vst.msk [vmem:[%s1501_s3 + $0xa8] sm:$0xff] %vm691_vm2, %v520_v8  ;;  %745 = vst.msk [vmem:[%s1501_s3 + $0x1a8] sm:$0xff] %vm691_vm2, %v648_v9 }
 0x121   :  { %v911_v10 = vpop.f32.mrb[24].mxu0  ;;  %v943_v11 = vpop.f32.mrb[24].mxu1 }
 0x122   :  { %v541_v12 = vadd.f32 %v911_v10, %v1176_v40  ;;  %v669_v13 = vadd.f32 %v943_v11, %v1176_v40  ;;  %v532_v14 = vpop.f32.mrb[25].mxu0  ;;  %v660_v15 = vpop.f32.mrb[25].mxu1 }
 0x123   :  { %v533_v16 = vadd.f32 %v1176_v40, %v532_v14  ;;  %v661_v17 = vadd.f32 %v1176_v40, %v660_v15  ;;  %v912_v18 = vpop.f32.mrb[26].mxu0  ;;  %v944_v19 = vpop.f32.mrb[26].mxu1 }
 0x124   :  { %718 = vst.msk [vmem:[%s1501_s3 + $0xd0] sm:$0xff] %vm691_vm2, %v541_v12  ;;  %750 = vst.msk [vmem:[%s1501_s3 + $0x1d0] sm:$0xff] %vm691_vm2, %v669_v13  ;;  %v544_v20 = vadd.f32 %v912_v18, %v1176_v40  ;;  %v672_v21 = vadd.f32 %v944_v19, %v1176_v40  ;;  %v535_v22 = vpop.f32.mrb[27].mxu0  ;;  %v663_v23 = vpop.f32.mrb[27].mxu1 }
 0x125   :  { %716 = vst.msk [vmem:[%s1501_s3 + $0xc0] sm:$0xff] %vm691_vm2, %v533_v16  ;;  %748 = vst.msk [vmem:[%s1501_s3 + $0x1c0] sm:$0xff] %vm691_vm2, %v661_v17  ;;  %v536_v24 = vadd.f32 %v1176_v40, %v535_v22  ;;  %v664_v25 = vadd.f32 %v1176_v40, %v663_v23 }
 0x126   :  { %719 = vst.msk [vmem:[%s1501_s3 + $0xd8] sm:$0xff] %vm691_vm2, %v544_v20  ;;  %751 = vst.msk [vmem:[%s1501_s3 + $0x1d8] sm:$0xff] %vm691_vm2, %v672_v21 }
 0x127   :  { %717 = vst.msk [vmem:[%s1501_s3 + $0xc8] sm:$0xff] %vm691_vm2, %v536_v24  ;;  %749 = vst.msk [vmem:[%s1501_s3 + $0x1c8] sm:$0xff] %vm691_vm2, %v664_v25 }
 0x129   :  { %v915_v26 = vpop.f32.mrb[28].mxu0  ;;  %v947_v27 = vpop.f32.mrb[28].mxu1 }
 0x12a   :  { %v557_v28 = vadd.f32 %v915_v26, %v1176_v40  ;;  %v685_v29 = vadd.f32 %v947_v27, %v1176_v40  ;;  %v548_v30 = vpop.f32.mrb[29].mxu0  ;;  %v676_v31 = vpop.f32.mrb[29].mxu1 }
 0x12b   :  { %v549_v32 = vadd.f32 %v1176_v40, %v548_v30  ;;  %v677_v33 = vadd.f32 %v1176_v40, %v676_v31  ;;  %v916_v34 = vpop.f32.mrb[30].mxu0  ;;  %v948_v35 = vpop.f32.mrb[30].mxu1 }
 0x12c   :  { %722 = vst.msk [vmem:[%s1501_s3 + $0xf0] sm:$0xff] %vm691_vm2, %v557_v28  ;;  %754 = vst.msk [vmem:[%s1501_s3 + $0x1f0] sm:$0xff] %vm691_vm2, %v685_v29  ;;  %v560_v36 = vadd.f32 %v916_v34, %v1176_v40  ;;  %v688_v37 = vadd.f32 %v948_v35, %v1176_v40  ;;  %v551_v38 = vpop.f32.mrb[31].mxu0  ;;  %v679_v39 = vpop.f32.mrb[31].mxu1 }
 0x12d   :  { %720 = vst.msk [vmem:[%s1501_s3 + $0xe0] sm:$0xff] %vm691_vm2, %v549_v32  ;;  %752 = vst.msk [vmem:[%s1501_s3 + $0x1e0] sm:$0xff] %vm691_vm2, %v677_v33  ;;  %v552_v41 = vadd.f32 %v1176_v40, %v551_v38  ;;  %v680_v42 = vadd.f32 %v1176_v40, %v679_v39 }
 0x12e   :  { %723 = vst.msk [vmem:[%s1501_s3 + $0xf8] sm:$0xff] %vm691_vm2, %v560_v36  ;;  %755 = vst.msk [vmem:[%s1501_s3 + $0x1f8] sm:$0xff] %vm691_vm2, %v688_v37 }
 0x12f   :  { %721 = vst.msk [vmem:[%s1501_s3 + $0xe8] sm:$0xff] %vm691_vm2, %v552_v41  ;;  %753 = vst.msk [vmem:[%s1501_s3 + $0x1e8] sm:$0xff] %vm691_vm2, %v680_v42 }

// kernel: tile.178
= control target key start
LH: loop header
LB: loop body
LE: loop exit
PB: predicated region body
PF: predicated region fallthrough
CT: control target
= control target key end

     0   :  { %s28_s0 = inlined_call_operand.vmem [shape: f32[8], index: 0, kind: input, shape index: {}]   ;;  %s29_s1 = inlined_call_operand.vmem [shape: f32[16,8], index: 1, kind: output, shape index: {}]  }
   0x1   :  { %v4_v0 = vld [vmem:[%s28_s0] ss:$0 sm:$0xff] }
   0x2   :  { %5 = vst [vmem:[%s29_s1] sm:$0xff] %v4_v0  ;;  %8 = vst [vmem:[%s29_s1 + $0x8] sm:$0xff] %v4_v0 }

// kernel: tile.179
= control target key start
LH: loop header
LB: loop body
LE: loop exit
PB: predicated region body
PF: predicated region fallthrough
CT: control target
= control target key end

     0   :  { %s131_s10 = smov 120   ;;  %s132_s11 = smov 104   ;;  %vm3_vm0 = vcmask 64512   ;;  %vm9_vm1 = vcmask 1048512   ;;  %vm15_vm2 = vcmask 982912   ;;  %vm21_vm3 = vcmask 917312   ;;  %s207_s0 = inlined_call_operand.vmem [shape: f32[16,8], index: 0, kind: input, shape index: {}]   ;;  %s208_s1 = inlined_call_operand.vmem [shape: f32[1,128], index: 1, kind: output, shape index: {}]  }
   0x1   :  { %v101_v0 = vld [vmem:[%s207_s0 + $0xf] sm:$0x1]   ;;  %v103_v1 = vld [vmem:[%s207_s0 + $0xd] sm:$0x1]   ;;  %v102_v2 = vld [vmem:[%s207_s0 + $0xe] sm:$0x1]  }
   0x2   :  { %7 = vrot.lane.b32.xlu0 %v101_v0, %s131_s10  ;;  %19 = vrot.lane.b32.xlu1 %v103_v1, %s132_s11  ;;  %v104_v3 = vld [vmem:[%s207_s0 + $0xc] sm:$0x1]   ;;  %s133_s16 = smov 112   ;;  %s134_s17 = smov 96   ;;  %v105_v4 = vld [vmem:[%s207_s0 + $0xb] sm:$0x1]  }
   0x3   :  { %v106_v5 = vld [vmem:[%s207_s0 + $0xa] sm:$0x1]   ;;  %v2_v6 = vld [vmem:[%s207_s0] sm:$0x1]   ;;  %s135_s24 = smov 88   ;;  %s136_s25 = smov 80  }
   0x4   :  { %4 = vst.msk [vmem:[#allocation0] sm:$0x1] %vm3_vm0, %v2_v6   ;;  %v107_v7 = vld [vmem:[%s207_s0 + $0x9] sm:$0x1]   ;;  %v108_v8 = vld [vmem:[%s207_s0 + $0x8] sm:$0x1]  }
   0x5   :  { %s137_s30 = smov 72   ;;  %s138_s2 = smov 64   ;;  %v109_v9 = vld [vmem:[%s207_s0 + $0x7] sm:$0x1]   ;;  %v110_v10 = vld [vmem:[%s207_s0 + $0x6] sm:$0x1]  }
   0x6   :  { %13 = vrot.lane.b32.xlu0 %v102_v2, %s133_s16  ;;  %25 = vrot.lane.b32.xlu1 %v104_v3, %s134_s17  ;;  %s139_s7 = smov 56   ;;  %s140_s8 = smov 48   ;;  %v111_v11 = vld [vmem:[%s207_s0 + $0x5] sm:$0x1]   ;;  %v112_v12 = vld [vmem:[%s207_s0 + $0x4] sm:$0x1]  }
   0x7   :  { %s141_s13 = smov 40   ;;  %s142_s14 = smov 32   ;;  %v113_v13 = vld [vmem:[%s207_s0 + $0x3] sm:$0x1]   ;;  %v114_v14 = vld [vmem:[%s207_s0 + $0x2] sm:$0x1]  }
   0x8   :  { %s143_s19 = smov 24   ;;  %s144_s20 = smov 16   ;;  %v115_v15 = vld [vmem:[%s207_s0 + $0x1] sm:$0x1]   ;;  %vm27_vm4 = vcmask 851712   ;;  %vm33_vm5 = vcmask 786112  }
   0x9   :  { %s145_s0 = smov 8   ;;  %vm39_vm6 = vcmask 720512   ;;  %vm45_vm7 = vcmask 654912   ;;  %vm51_vm8 = vcmask 589312   ;;  %vm57_vm9 = vcmask 523712  }
   0xa   :  { %31 = vrot.lane.b32.xlu0 %v105_v4, %s135_s24  ;;  %37 = vrot.lane.b32.xlu1 %v106_v5, %s136_s25  ;;  %vm63_vm10 = vcmask 458112   ;;  %vm69_vm11 = vcmask 392512   ;;  %vm75_vm12 = vcmask 326912   ;;  %vm81_vm13 = vcmask 261312  }
   0xb   :  { %vm87_vm14 = vcmask 195712   ;;  %vm93_vm15 = vcmask 130112  }
   0xe   :  { %43 = vrot.lane.b32.xlu0 %v107_v7, %s137_s30  ;;  %49 = vrot.lane.b32.xlu1 %v108_v8, %s138_s2 }
  0x12   :  { %55 = vrot.lane.b32.xlu0 %v109_v9, %s139_s7  ;;  %61 = vrot.lane.b32.xlu1 %v110_v10, %s140_s8 }
  0x16   :  { %67 = vrot.lane.b32.xlu0 %v111_v11, %s141_s13  ;;  %73 = vrot.lane.b32.xlu1 %v112_v12, %s142_s14 }
  0x1a   :  { %79 = vrot.lane.b32.xlu0 %v113_v13, %s143_s19  ;;  %85 = vrot.lane.b32.xlu1 %v114_v14, %s144_s20 }
  0x1e   :  { %91 = vrot.lane.b32.xlu0 %v115_v15, %s145_s0 }
  0x74   :  { %v8_v16 = vpop.permute.xlu0 %7   ;;  %v20_v17 = vpop.permute.xlu1 %19  }
  0x75   :  { %10 = vst.msk [vmem:[#allocation0] sm:$0x1] %vm9_vm1, %v8_v16  }
  0x78   :  { %v14_v18 = vpop.permute.xlu0 %13   ;;  %v26_v19 = vpop.permute.xlu1 %25  }
  0x79   :  { %16 = vst.msk [vmem:[#allocation0] sm:$0x1] %vm15_vm2, %v14_v18  }
  0x7a   :  { %22 = vst.msk [vmem:[#allocation0] sm:$0x1] %vm21_vm3, %v20_v17  }
  0x7b   :  { %28 = vst.msk [vmem:[#allocation0] sm:$0x1] %vm27_vm4, %v26_v19  }
  0x7c   :  { %v32_v20 = vpop.permute.xlu0 %31   ;;  %v38_v21 = vpop.permute.xlu1 %37  }
  0x7d   :  { %34 = vst.msk [vmem:[#allocation0] sm:$0x1] %vm33_vm5, %v32_v20  }
  0x7e   :  { %40 = vst.msk [vmem:[#allocation0] sm:$0x1] %vm39_vm6, %v38_v21  }
  0x80   :  { %v44_v22 = vpop.permute.xlu0 %43   ;;  %v50_v23 = vpop.permute.xlu1 %49  }
  0x81   :  { %46 = vst.msk [vmem:[#allocation0] sm:$0x1] %vm45_vm7, %v44_v22  }
  0x82   :  { %52 = vst.msk [vmem:[#allocation0] sm:$0x1] %vm51_vm8, %v50_v23  }
  0x84   :  { %v56_v24 = vpop.permute.xlu0 %55   ;;  %v62_v25 = vpop.permute.xlu1 %61  }
  0x85   :  { %58 = vst.msk [vmem:[#allocation0] sm:$0x1] %vm57_vm9, %v56_v24  }
  0x86   :  { %64 = vst.msk [vmem:[#allocation0] sm:$0x1] %vm63_vm10, %v62_v25  }
  0x88   :  { %v68_v26 = vpop.permute.xlu0 %67   ;;  %v74_v27 = vpop.permute.xlu1 %73  }
  0x89   :  { %70 = vst.msk [vmem:[#allocation0] sm:$0x1] %vm69_vm11, %v68_v26  }
  0x8a   :  { %76 = vst.msk [vmem:[#allocation0] sm:$0x1] %vm75_vm12, %v74_v27  }
  0x8c   :  { %v80_v28 = vpop.permute.xlu0 %79   ;;  %v86_v29 = vpop.permute.xlu1 %85  }
  0x8d   :  { %82 = vst.msk [vmem:[#allocation0] sm:$0x1] %vm81_vm13, %v80_v28  }
  0x8e   :  { %88 = vst.msk [vmem:[#allocation0] sm:$0x1] %vm87_vm14, %v86_v29  }
  0x90   :  { %v92_v30 = vpop.permute.xlu0 %91  }
  0x91   :  { %94 = vst.msk [vmem:[#allocation0] sm:$0x1] %vm93_vm15, %v92_v30  }
  0x98   :  { %v98_v31 = vld [vmem:[#allocation0] sm:$0x1] }
  0x99   :  { %100 = vst [vmem:[%s208_s1] sm:$0x1] %v98_v31 }

// kernel: tdtransformer_forward.49
= control target key start
LH: loop header
LB: loop body
LE: loop exit
PB: predicated region body
PF: predicated region fallthrough
CT: control target
= control target key end

     0   :  { %s119_s0 = inlined_call_operand.vmem [shape: f32[8,128], index: 0, kind: input, shape index: {}]   ;;  %s120_s1 = inlined_call_operand.vmem [shape: f32[8,128], index: 1, kind: input, shape index: {}]   ;;  %s121_s2 = inlined_call_operand.vmem [shape: f32[8,128], index: 2, kind: input, shape index: {}]   ;;  %s122_s3 = inlined_call_operand.vmem [shape: f32[8,128], index: 3, kind: input, shape index: {}]   ;;  %s123_s4 = inlined_call_operand.vmem [shape: f32[1,128], index: 4, kind: input, shape index: {}]   ;;  %s124_s5 = inlined_call_operand.vmem [shape: f32[1,128], index: 5, kind: input, shape index: {}]   ;;  %s125_s6 = inlined_call_operand.vmem [shape: f32[8,128], index: 6, kind: output, shape index: {}]  }
   0x1   :  { %v61_v0 = vld [vmem:[%s123_s4] ss:$0 sm:$0xff] }
   0x2   :  { %v62_v1 = vld [vmem:[%s124_s5] ss:$0 sm:$0xff] }
   0x3   :  { %v25_v2 = vld [vmem:[%s119_s0] sm:$0xff] }
   0x4   :  { %v32_v3 = vmul.f32 %v61_v0, %v25_v2  ;;  %v41_v4 = vld [vmem:[%s120_s1] sm:$0xff] }
   0x5   :  { %v46_v5 = vld [vmem:[%s121_s2] sm:$0xff]  ;;  %v42_v7 = vmul.f32 %v61_v0, %v41_v4 }
   0x6   :  { %v50_v6 = vld [vmem:[%s122_s3] sm:$0xff]  ;;  %v47_v8 = vmul.f32 %v61_v0, %v46_v5  ;;  %v39_v10 = vadd.f32 %v62_v1, %v32_v3 }
   0x7   :  { %v51_v9 = vmul.f32 %v61_v0, %v50_v6  ;;  %v43_v11 = vadd.f32 %v62_v1, %v42_v7 }
   0x8   :  { %v48_v12 = vadd.f32 %v62_v1, %v47_v8  ;;  %v40_v14 = vmax.f32 %v39_v10, 0.0 }
   0x9   :  { %v52_v13 = vadd.f32 %v62_v1, %v51_v9  ;;  %v44_v15 = vmax.f32 %v43_v11, 0.0 }
   0xa   :  { %v49_v16 = vmax.f32 %v48_v12, 0.0 }
   0xb   :  { %v53_v17 = vmax.f32 %v52_v13, 0.0  ;;  %v45_v18 = vmax.f32 %v40_v14, %v44_v15 }
   0xd   :  { %v54_v19 = vmax.f32 %v49_v16, %v53_v17 }
   0xf   :  { %v55_v20 = vmax.f32 %v45_v18, %v54_v19 }
  0x11   :  { %56 = vst [vmem:[%s125_s6] sm:$0xff] %v55_v20 }

// kernel: tdtransformer_forward.50
= control target key start
LH: loop header
LB: loop body
LE: loop exit
PB: predicated region body
PF: predicated region fallthrough
CT: control target
= control target key end

     0   :  { %vm52_vm0 = vcmask 261120   ;;  %vm108_vm1 = vcmask 64512   ;;  %s187_s1 = inlined_call_operand.vmem [shape: bf16[32,8], index: 1, kind: input, shape index: {}]   ;;  %s188_s0 = inlined_call_operand.vmem [shape: bf16[32,32], index: 0, kind: input, shape index: {}]   ;;  %s189_s2 = inlined_call_operand.vmem [shape: f32[1,8], index: 2, kind: input, shape index: {}]   ;;  %s190_s3 = inlined_call_operand.vmem [shape: f32[32,8], index: 3, kind: output, shape index: {}]  }
   0x1   :  { %v136_v0 = vld [vmem:[%s187_s1] sm:$0xff]   ;;  %v137_v1 = vld [vmem:[%s187_s1 + $0x8] sm:$0xff]  }
   0x2   :  { %128 = vmatprep.subr.bf16.mxu0 %v136_v0  ;;  %v138_v2 = vld [vmem:[%s188_s0] sm:$0xff]   ;;  %v139_v3 = vld [vmem:[%s188_s0 + $0x8] sm:$0xff]  }
   0x3   :  { %129 = vmatpush3.bf16.msra.mxu0 %v136_v0  ;;  %132 = vmatprep.mubr.msk.bf16.mxu0 %vm52_vm0, %v138_v2  ;;  %v117_v4 = vld [vmem:[%s189_s2] ss:$0 sm:$0xff] }
   0x4   :  { %130 = vmatprep.subr.bf16.mxu0 %v137_v1 }
   0x7   :  { %131 = vmatpush3.bf16.msra.mxu0 %v137_v1 }
   0xa   :  { %133 = vmatmul.mubr.msk.bf16.vlgmr.msra.gmra.mrb[0].mxu0 %vm52_vm0, %v139_v3 }
  0xdd   :  { %v134_v5 = vpop.f32.mrb[0].mxu0 }
  0xde   :  { %v102_v6 = vadd.f32 %v134_v5, %v117_v4  ;;  %v93_v7 = vpop.f32.mrb[1].mxu0 }
  0xdf   :  { %v94_v8 = vadd.f32 %v117_v4, %v93_v7  ;;  %v135_v9 = vpop.f32.mrb[2].mxu0 }
  0xe0   :  { %111 = vst.msk [vmem:[%s190_s3 + $0x10] sm:$0xff] %vm108_vm1, %v102_v6  ;;  %v105_v10 = vadd.f32 %v135_v9, %v117_v4  ;;  %v96_v11 = vpop.f32.mrb[3].mxu0 }
  0xe1   :  { %109 = vst.msk [vmem:[%s190_s3] sm:$0xff] %vm108_vm1, %v94_v8  ;;  %v97_v12 = vadd.f32 %v117_v4, %v96_v11 }
  0xe2   :  { %112 = vst.msk [vmem:[%s190_s3 + $0x18] sm:$0xff] %vm108_vm1, %v105_v10 }
  0xe3   :  { %110 = vst.msk [vmem:[%s190_s3 + $0x8] sm:$0xff] %vm108_vm1, %v97_v12 }

// kernel: tdtransformer_forward.51
= control target key start
LH: loop header
LB: loop body
LE: loop exit
PB: predicated region body
PF: predicated region fallthrough
CT: control target
= control target key end

     0   :  { %vm18_vm0 = vcmask 64512   ;;  %s174_s0 = inlined_call_operand.vmem [shape: f32[32,8], index: 0, kind: input, shape index: {}]   ;;  %s175_s1 = inlined_call_operand.vmem [shape: f32[1,8], index: 1, kind: input, shape index: {}]   ;;  %s176_s2 = inlined_call_operand.vmem [shape: f32[1,8], index: 2, kind: input, shape index: {}]   ;;  %s177_s3 = inlined_call_operand.vmem [shape: f32[32,8], index: 3, kind: output, shape index: {}]  }
   0x1   :  { %v14_v0 = vld [vmem:[%s174_s0] sm:$0xff]  ;;  %v16_v1 = vld [vmem:[%s174_s0 + $0x10] sm:$0xff]  ;;  %v15_v2 = vld [vmem:[%s174_s0 + $0x8] sm:$0xff] }
   0x2   :  { %v19_v3 = vsel %vm18_vm0, %v14_v0, 0.0  ;;  %v25_v4 = vsel %vm18_vm0, %v16_v1, 0.0  ;;  %v17_v5 = vld [vmem:[%s174_s0 + $0x18] sm:$0xff]  ;;  %v22_v6 = vsel %vm18_vm0, %v15_v2, 0.0  ;;  %v102_v41 = vld [vmem:[%s175_s1] ss:$0 sm:$0xff] }
   0x3   :  { %20 = vadd.xlane.f32.xlu0 %v19_v3  ;;  %26 = vadd.xlane.f32.xlu1 %v25_v4  ;;  %v28_v7 = vsel %vm18_vm0, %v17_v5, 0.0  ;;  %v103_v43 = vld [vmem:[%s176_s2] ss:$0 sm:$0xff] }
   0x7   :  { %23 = vadd.xlane.f32.xlu0 %v22_v6  ;;  %29 = vadd.xlane.f32.xlu1 %v28_v7 }
  0x90   :  { %v21_v8 = vpop.xlane.xlu0 %20  ;;  %v27_v9 = vpop.xlane.xlu1 %26 }
  0x91   :  { %v32_v10 = vmul.f32 0.125, %v21_v8  ;;  %v34_v11 = vmul.f32 0.125, %v27_v9 }
  0x93   :  { %v36_v12 = vsub.f32 %v14_v0, %v32_v10  ;;  %v38_v13 = vsub.f32 %v16_v1, %v34_v11 }
  0x94   :  { %v24_v14 = vpop.xlane.xlu0 %23  ;;  %v30_v15 = vpop.xlane.xlu1 %29 }
  0x95   :  { %v33_v16 = vmul.f32 0.125, %v24_v14  ;;  %v35_v17 = vmul.f32 0.125, %v30_v15  ;;  %v40_v18 = vmul.f32 %v36_v12, %v36_v12  ;;  %v42_v19 = vmul.f32 %v38_v13, %v38_v13 }
  0x97   :  { %v37_v20 = vsub.f32 %v15_v2, %v33_v16  ;;  %v39_v21 = vsub.f32 %v17_v5, %v35_v17  ;;  %v44_v22 = vsel %vm18_vm0, %v40_v18, 0.0  ;;  %v50_v23 = vsel %vm18_vm0, %v42_v19, 0.0 }
  0x98   :  { %45 = vadd.xlane.f32.xlu0 %v44_v22 }
  0x99   :  { %v41_v24 = vmul.f32 %v37_v20, %v37_v20  ;;  %v43_v25 = vmul.f32 %v39_v21, %v39_v21 }
  0x9b   :  { %v47_v26 = vsel %vm18_vm0, %v41_v24, 0.0  ;;  %v53_v27 = vsel %vm18_vm0, %v43_v25, 0.0 }
  0x9c   :  { %51 = vadd.xlane.f32.xlu0 %v50_v23  ;;  %48 = vadd.xlane.f32.xlu1 %v47_v26 }
  0xa0   :  { %54 = vadd.xlane.f32.xlu1 %v53_v27 }
 0x125   :  { %v46_v28 = vpop.xlane.xlu0 %45 }
 0x126   :  { %v56_v29 = vmul.f32 0.125, %v46_v28 }
 0x128   :  { %v60_v30 = vadd.f32 1e-06, %v56_v29 }
 0x129   :  { %v49_v31 = vpop.xlane.xlu1 %48  ;;  %v52_v32 = vpop.xlane.xlu0 %51 }
 0x12a   :  { %104 = vrsqrt.f32 %v60_v30  ;;  %v57_v33 = vmul.f32 0.125, %v49_v31  ;;  %v58_v34 = vmul.f32 0.125, %v52_v32 }
 0x12c   :  { %v61_v35 = vadd.f32 1e-06, %v57_v33  ;;  %v62_v36 = vadd.f32 1e-06, %v58_v34 }
 0x12d   :  { %v55_v37 = vpop.xlane.xlu1 %54 }
 0x12e   :  { %106 = vrsqrt.f32 %v61_v35  ;;  %v59_v38 = vmul.f32 0.125, %v55_v37 }
 0x12f   :  { %108 = vrsqrt.f32 %v62_v36 }
 0x130   :  { %v63_v39 = vadd.f32 1e-06, %v59_v38 }
 0x132   :  { %110 = vrsqrt.f32 %v63_v39 }
 0x134   :  { %v105_v40 = vpop.eup %104 }
 0x135   :  { %v68_v42 = vmul.f32 %v105_v40, %v36_v12 }
 0x137   :  { %v79_v44 = vmul.f32 %v102_v41, %v68_v42 }
 0x138   :  { %v107_v45 = vpop.eup %106 }
 0x139   :  { %v109_v46 = vpop.eup %108  ;;  %v90_v47 = vadd.f32 %v103_v43, %v79_v44  ;;  %v69_v48 = vmul.f32 %v107_v45, %v37_v20 }
 0x13a   :  { %v70_v49 = vmul.f32 %v109_v46, %v38_v13 }
 0x13b   :  { %94 = vst.msk [vmem:[%s177_s3] sm:$0xff] %vm18_vm0, %v90_v47  ;;  %v80_v50 = vmul.f32 %v102_v41, %v69_v48 }
 0x13c   :  { %v111_v51 = vpop.eup %110  ;;  %v81_v52 = vmul.f32 %v102_v41, %v70_v49 }
 0x13d   :  { %v91_v53 = vadd.f32 %v103_v43, %v80_v50  ;;  %v71_v54 = vmul.f32 %v111_v51, %v39_v21 }
 0x13e   :  { %v92_v55 = vadd.f32 %v103_v43, %v81_v52 }
 0x13f   :  { %95 = vst.msk [vmem:[%s177_s3 + $0x8] sm:$0xff] %vm18_vm0, %v91_v53  ;;  %v82_v56 = vmul.f32 %v102_v41, %v71_v54 }
 0x140   :  { %96 = vst.msk [vmem:[%s177_s3 + $0x10] sm:$0xff] %vm18_vm0, %v92_v55 }
 0x141   :  { %v93_v57 = vadd.f32 %v103_v43, %v82_v56 }
 0x143   :  { %97 = vst.msk [vmem:[%s177_s3 + $0x18] sm:$0xff] %vm18_vm0, %v93_v57 }

// kernel: tdtransformer_forward.52
= control target key start
LH: loop header
LB: loop body
LE: loop exit
PB: predicated region body
PF: predicated region fallthrough
CT: control target
= control target key end

     0   :  { %v291_v0 = vmov 0   ;;  %vm152_vm0 = vcmask 719872   ;;  %vm159_vm1 = vcmask 1043456   ;;  %vm212_vm2 = vcmask 195584   ;;  %s409_s1 = inlined_call_operand.vmem [shape: bf16[216,24], index: 1, kind: input, shape index: {}]   ;;  %s410_s0 = inlined_call_operand.vmem [shape: bf16[32,216], index: 0, kind: input, shape index: {}]   ;;  %s411_s2 = inlined_call_operand.vmem [shape: f32[1,24], index: 2, kind: input, shape index: {}]   ;;  %s412_s3 = inlined_call_operand.vmem [shape: f32[32,24], index: 3, kind: output, shape index: {}]  }
   0x1   :  { %163 = vmatprep.subr.bf16.mxu0 %v291_v0  ;;  %242 = vmatprep.subr.bf16.mxu1 %v291_v0  ;;  %v271_v1 = vld [vmem:[%s409_s1] sm:$0xff]   ;;  %v272_v2 = vld [vmem:[%s409_s1 + $0x8] sm:$0xff]   ;;  %v273_v3 = vld [vmem:[%s409_s1 + $0x10] sm:$0xff]  }
   0x2   :  { %164 = vmatpush1.bf16.msra.mxu0 %v271_v1  ;;  %256 = vmatpush1.bf16.msra.mxu1 %v271_v1  ;;  %v274_v4 = vld [vmem:[%s409_s1 + $0x18] sm:$0xff]   ;;  %v275_v5 = vld [vmem:[%s409_s1 + $0x20] sm:$0xff]   ;;  %v276_v8 = vld [vmem:[%s409_s1 + $0x28] sm:$0xff]  }
   0x3   :  { %165 = vmatprep.subr.bf16.mxu0 %v291_v0  ;;  %243 = vmatprep.subr.bf16.mxu1 %v291_v0  ;;  %v287_v6 = vld [vmem:[%s410_s0 + $0x4] ss:$8 sps:$4 sm:$0xff]   ;;  %v290_v7 = vld [vmem:[%s410_s0 + $0x14] ss:$8 sps:$4 sm:$0xff]   ;;  %v284_v16 = vld [vmem:[%s409_s1 + $0x68] ss:$0 sps:$4 sm:$0xff]  }
   0x4   :  { %240 = vmatprep.mubr.msk.bf16.mxu0 %vm152_vm0, %v287_v6  ;;  %241 = vmatprep.mubr.msk.bf16.mxu1 %vm152_vm0, %v290_v7  ;;  %v277_v9 = vld [vmem:[%s409_s1 + $0x30] sm:$0xff]   ;;  %v278_v10 = vld [vmem:[%s409_s1 + $0x38] sm:$0xff]   ;;  %v279_v11 = vld [vmem:[%s409_s1 + $0x40] sm:$0xff]   ;;  %v161_v17 = vsel %vm159_vm1, %v284_v16, 0 }
   0x5   :  { %v280_v12 = vld [vmem:[%s409_s1 + $0x48] sm:$0xff]   ;;  %v281_v13 = vld [vmem:[%s409_s1 + $0x50] sm:$0xff]   ;;  %v282_v14 = vld [vmem:[%s409_s1 + $0x58] sm:$0xff]  }
   0x6   :  { %166 = vmatpush1.bf16.msra.mxu0 %v272_v2  ;;  %257 = vmatpush1.bf16.msra.mxu1 %v272_v2  ;;  %v283_v15 = vld [vmem:[%s409_s1 + $0x60] sm:$0xff]   ;;  %v288_v19 = vld [vmem:[%s410_s0 + $0x10] ss:$8 sps:$4 sm:$0xff]  }
   0x7   :  { %167 = vmatprep.subr.bf16.mxu0 %v291_v0  ;;  %244 = vmatprep.subr.bf16.mxu1 %v291_v0  ;;  %v285_v18 = vld [vmem:[%s410_s0] ss:$8 sps:$4 sm:$0xff]  }
   0x8   :  { %v221_v20 = vld [vmem:[%s411_s2] ss:$0 sm:$0xff] }
   0xa   :  { %168 = vmatpush1.bf16.msra.mxu0 %v273_v3  ;;  %258 = vmatpush1.bf16.msra.mxu1 %v273_v3 }
   0xb   :  { %169 = vmatprep.subr.bf16.mxu0 %v291_v0  ;;  %245 = vmatprep.subr.bf16.mxu1 %v291_v0 }
   0xe   :  { %170 = vmatpush1.bf16.msra.mxu0 %v274_v4  ;;  %259 = vmatpush1.bf16.msra.mxu1 %v274_v4 }
   0xf   :  { %171 = vmatprep.subr.bf16.mxu0 %v291_v0  ;;  %246 = vmatprep.subr.bf16.mxu1 %v291_v0 }
  0x12   :  { %172 = vmatpush1.bf16.msra.mxu0 %v275_v5  ;;  %260 = vmatpush1.bf16.msra.mxu1 %v275_v5 }
  0x13   :  { %173 = vmatprep.subr.bf16.mxu0 %v291_v0  ;;  %247 = vmatprep.subr.bf16.mxu1 %v291_v0 }
  0x16   :  { %174 = vmatpush1.bf16.msra.mxu0 %v276_v8  ;;  %261 = vmatpush1.bf16.msra.mxu1 %v276_v8 }
  0x17   :  { %175 = vmatprep.subr.bf16.mxu0 %v291_v0  ;;  %248 = vmatprep.subr.bf16.mxu1 %v291_v0 }
  0x1a   :  { %176 = vmatpush1.bf16.msra.mxu0 %v277_v9  ;;  %262 = vmatpush1.bf16.msra.mxu1 %v277_v9 }
  0x1b   :  { %177 = vmatprep.subr.bf16.mxu0 %v291_v0  ;;  %249 = vmatprep.subr.bf16.mxu1 %v291_v0 }
  0x1e   :  { %178 = vmatpush1.bf16.msra.mxu0 %v278_v10  ;;  %263 = vmatpush1.bf16.msra.mxu1 %v278_v10 }
  0x1f   :  { %179 = vmatprep.subr.bf16.mxu0 %v291_v0  ;;  %250 = vmatprep.subr.bf16.mxu1 %v291_v0 }
  0x22   :  { %180 = vmatpush1.bf16.msra.mxu0 %v279_v11  ;;  %264 = vmatpush1.bf16.msra.mxu1 %v279_v11 }
  0x23   :  { %181 = vmatprep.subr.bf16.mxu0 %v291_v0  ;;  %251 = vmatprep.subr.bf16.mxu1 %v291_v0 }
  0x26   :  { %182 = vmatpush1.bf16.msra.mxu0 %v280_v12  ;;  %265 = vmatpush1.bf16.msra.mxu1 %v280_v12 }
  0x27   :  { %183 = vmatprep.subr.bf16.mxu0 %v291_v0  ;;  %252 = vmatprep.subr.bf16.mxu1 %v291_v0 }
  0x2a   :  { %184 = vmatpush1.bf16.msra.mxu0 %v281_v13  ;;  %266 = vmatpush1.bf16.msra.mxu1 %v281_v13 }
  0x2b   :  { %185 = vmatprep.subr.bf16.mxu0 %v291_v0  ;;  %253 = vmatprep.subr.bf16.mxu1 %v291_v0 }
  0x2e   :  { %186 = vmatpush1.bf16.msra.mxu0 %v282_v14  ;;  %267 = vmatpush1.bf16.msra.mxu1 %v282_v14 }
  0x2f   :  { %187 = vmatprep.subr.bf16.mxu0 %v291_v0  ;;  %254 = vmatprep.subr.bf16.mxu1 %v291_v0 }
  0x32   :  { %188 = vmatpush1.bf16.msra.mxu0 %v283_v15  ;;  %268 = vmatpush1.bf16.msra.mxu1 %v283_v15 }
  0x33   :  { %189 = vmatprep.subr.bf16.mxu0 %v291_v0  ;;  %255 = vmatprep.subr.bf16.mxu1 %v291_v0 }
  0x36   :  { %190 = vmatpush1.bf16.msra.mxu0 %v161_v17  ;;  %269 = vmatpush1.bf16.msra.mxu1 %v161_v17 }
  0x39   :  { %196 = vmatmul.mubr.bf16.vlgmr.msra.gmra.mrb[0].mxu0 %v285_v18  ;;  %204 = vmatmul.mubr.bf16.vlgmr.msra.gmra.mrb[0].mxu1 %v288_v19 }
 0x10c   :  { %v197_v21 = vpop.f32.mrb[0].mxu0  ;;  %v205_v22 = vpop.f32.mrb[0].mxu1 }
 0x10d   :  { %v198_v23 = vadd.f32 %v221_v20, %v197_v21  ;;  %v206_v24 = vadd.f32 %v221_v20, %v205_v22  ;;  %v199_v25 = vpop.f32.mrb[1].mxu0  ;;  %v207_v26 = vpop.f32.mrb[1].mxu1 }
 0x10e   :  { %v200_v27 = vpop.f32.mrb[2].mxu0  ;;  %v208_v28 = vpop.f32.mrb[2].mxu1 }
 0x10f   :  { %213 = vst.msk [vmem:[%s412_s3] sm:$0xff] %vm212_vm2, %v198_v23  ;;  %215 = vst.msk [vmem:[%s412_s3 + $0x10] sm:$0xff] %vm212_vm2, %v206_v24  ;;  %v201_v29 = vadd.f32 %v221_v20, %v200_v27  ;;  %v209_v30 = vadd.f32 %v221_v20, %v208_v28  ;;  %v202_v31 = vpop.f32.mrb[3].mxu0  ;;  %v210_v32 = vpop.f32.mrb[3].mxu1 }
 0x111   :  { %214 = vst.msk [vmem:[%s412_s3 + $0x8] sm:$0xff] %vm212_vm2, %v201_v29  ;;  %216 = vst.msk [vmem:[%s412_s3 + $0x18] sm:$0xff] %vm212_vm2, %v209_v30 }

// kernel: tdtransformer_forward.53
= control target key start
LH: loop header
LB: loop body
LE: loop exit
PB: predicated region body
PF: predicated region fallthrough
CT: control target
= control target key end

     0   :  { %vm26_vm0 = vcmask 31744   ;;  %vm140_vm2 = vcmask 261120   ;;  %s942_s1 = inlined_call_operand.vmem [shape: f32[2,32,4], index: 1, kind: input, shape index: {}]   ;;  %s943_s0 = inlined_call_operand.vmem [shape: f32[2,32,4], index: 0, kind: input, shape index: {}]   ;;  %s944_s2 = inlined_call_operand.vmem [shape: f32[2,32,4], index: 2, kind: input, shape index: {}]   ;;  %s945_s3 = inlined_call_operand.vmem [shape: f32[2,32,4], index: 3, kind: output, shape index: {}]  }
   0x1   :  { %v18_v0 = vld [vmem:[%s942_s1] sm:$0xff]  ;;  %v19_v1 = vld [vmem:[%s942_s1 + $0x8] sm:$0xff]  ;;  %vm792_vm1 = vmpackc.low %vm26_vm0, %vm26_vm0 }
   0x2   :  { %v692_v3 = vpack.c.bf16 %v19_v1, %v18_v0  ;;  %v20_v4 = vld [vmem:[%s942_s1 + $0x10] sm:$0xff]  ;;  %v21_v5 = vld [vmem:[%s942_s1 + $0x18] sm:$0xff]  ;;  %v14_v6 = vld [vmem:[%s943_s0] sm:$0xff] }
   0x3   :  { %v698_v7 = vpack.c.bf16 %v21_v5, %v20_v4  ;;  %644 = vmatprep.mubr.msk.f32.mxu0 %vm26_vm0, %v14_v6  ;;  %v15_v8 = vld [vmem:[%s943_s0 + $0x8] sm:$0xff]  ;;  %v16_v9 = vld [vmem:[%s943_s0 + $0x10] sm:$0xff]  ;;  %v17_v10 = vld [vmem:[%s943_s0 + $0x18] sm:$0xff] }
   0x4   :  { %694 = vmatprep.subr.msk.bf16.mxu0 %vm792_vm1, %v692_v3  ;;  %v22_v43 = vld [vmem:[%s944_s2] sm:$0xff]  ;;  %v23_v44 = vld [vmem:[%s944_s2 + $0x8] sm:$0xff]  ;;  %v24_v46 = vld [vmem:[%s944_s2 + $0x10] sm:$0xff] }
   0x5   :  { %697 = vmatpush3.bf16.xpose.msk.msra.mxu0 %vm792_vm1, %v692_v3  ;;  %v704_v45 = vpack.c.bf16 %v23_v44, %v22_v43  ;;  %v25_v47 = vld [vmem:[%s944_s2 + $0x18] sm:$0xff]  ;;  %v580_v49 = vld [vmem:[%s942_s1 + $0x20] sm:$0xff]  ;;  %v581_v50 = vld [vmem:[%s942_s1 + $0x28] sm:$0xff] }
   0x6   :  { %700 = vmatprep.subr.msk.bf16.mxu0 %vm792_vm1, %v698_v7  ;;  %v708_v48 = vpack.c.bf16 %v25_v47, %v24_v46  ;;  %v712_v51 = vpack.c.bf16 %v581_v50, %v580_v49  ;;  %v582_v58 = vld [vmem:[%s942_s1 + $0x30] sm:$0xff]  ;;  %v583_v59 = vld [vmem:[%s942_s1 + $0x38] sm:$0xff]  ;;  %v576_v4 = vld [vmem:[%s943_s0 + $0x20] sm:$0xff] }
   0x7   :  { %705 = vmatprep.subr.bf16.mxu1 %v704_v45  ;;  %v718_v63 = vpack.c.bf16 %v583_v59, %v582_v58  ;;  %v577_v5 = vld [vmem:[%s943_s0 + $0x28] sm:$0xff]  ;;  %v578_v6 = vld [vmem:[%s943_s0 + $0x30] sm:$0xff]  ;;  %v584_v43 = vld [vmem:[%s944_s2 + $0x20] sm:$0xff] }
   0x8   :  { %707 = vmatpush3.bf16.msra.mxu1 %v704_v45  ;;  %v585_v44 = vld [vmem:[%s944_s2 + $0x28] sm:$0xff]  ;;  %v586_v46 = vld [vmem:[%s944_s2 + $0x30] sm:$0xff]  ;;  %v587_v47 = vld [vmem:[%s944_s2 + $0x38] sm:$0xff] }
   0x9   :  { %709 = vmatprep.subr.bf16.mxu1 %v708_v48  ;;  %v724_v45 = vpack.c.bf16 %v585_v44, %v584_v43 }
   0xc   :  { %711 = vmatpush3.bf16.msra.mxu1 %v708_v48  ;;  %v728_v48 = vpack.c.bf16 %v587_v47, %v586_v46 }
   0xd   :  { %703 = vmatpush3.bf16.xpose.msk.msra.mxu0 %vm792_vm1, %v698_v7  ;;  %714 = vmatprep.subr.msk.bf16.mxu1 %vm792_vm1, %v712_v51  ;;  %v579_v7 = vld [vmem:[%s943_s0 + $0x38] sm:$0xff] }
   0xe   :  { %725 = vmatprep.subr.bf16.mxu0 %v724_v45 }
  0x14   :  { %645 = vmatmul.mubr.msk.f32.vlgmr.msra.gmra.mrb[0].mxu0 %vm26_vm0, %v15_v8 }
  0x15   :  { %647 = vmatprep.mubr.msk.f32.mxu0 %vm26_vm0, %v16_v9  ;;  %727 = vmatpush3.bf16.msra.mxu0 %v724_v45 }
  0x16   :  { %729 = vmatprep.subr.bf16.mxu0 %v728_v48 }
  0x18   :  { %648 = vmatmul.mubr.msk.f32.gmra.mrb[2].mxu0 %vm26_vm0, %v17_v10 }
  0x19   :  { %731 = vmatpush3.bf16.msra.mxu0 %v728_v48 }
  0xe7   :  { %v646_v11 = vpop.f32.mrb[0].mxu0 }
  0xe8   :  { %v117_v12 = vpop.f32.mrb[1].mxu0  ;;  %v137_v14 = vmul.f32 0.5, %v646_v11 }
  0xe9   :  { %v136_v13 = vmul.f32 0.5, %v117_v12 }
  0xea   :  { %v144_v20 = vsel %vm140_vm2, %v137_v14, -inf }
  0xeb   :  { %v649_v15 = vpop.f32.mrb[2].mxu0  ;;  %v141_v16 = vsel %vm140_vm2, %v136_v13, -inf }
  0xec   :  { %142 = vmax.xlane.f32.xlu0 %v141_v16  ;;  %v127_v17 = vpop.f32.mrb[3].mxu0  ;;  %v139_v18 = vmul.f32 0.5, %v649_v15 }
  0xed   :  { %v138_v19 = vmul.f32 0.5, %v127_v17 }
  0xee   :  { %v150_v22 = vsel %vm140_vm2, %v139_v18, -inf }
  0xef   :  { %v147_v21 = vsel %vm140_vm2, %v138_v19, -inf }
  0xf0   :  { %145 = vmax.xlane.f32.xlu0 %v144_v20  ;;  %148 = vmax.xlane.f32.xlu1 %v147_v21 }
  0xf4   :  { %151 = vmax.xlane.f32.xlu1 %v150_v22 }
 0x179   :  { %v143_v23 = vpop.xlane.xlu0 %142 }
 0x17a   :  { %v153_v24 = vsub.f32 %v136_v13, %v143_v23 }
 0x17c   :  { %v157_v25 = vmul.f32 1.442695, %v153_v24 }
 0x17d   :  { %v146_v26 = vpop.xlane.xlu0 %145  ;;  %v149_v27 = vpop.xlane.xlu1 %148 }
 0x17e   :  { %732 = vpow2.f32 %v157_v25  ;;  %v154_v28 = vsub.f32 %v137_v14, %v146_v26  ;;  %v155_v29 = vsub.f32 %v138_v19, %v149_v27 }
 0x180   :  { %v159_v30 = vmul.f32 1.442695, %v154_v28  ;;  %v161_v31 = vmul.f32 1.442695, %v155_v29 }
 0x181   :  { %v152_v32 = vpop.xlane.xlu1 %151 }
 0x182   :  { %734 = vpow2.f32 %v159_v30  ;;  %v156_v33 = vsub.f32 %v139_v18, %v152_v32 }
 0x183   :  { %736 = vpow2.f32 %v161_v31 }
 0x184   :  { %v163_v34 = vmul.f32 1.442695, %v156_v33 }
 0x186   :  { %738 = vpow2.f32 %v163_v34 }
 0x188   :  { %v733_v35 = vpop.eup %732 }
 0x189   :  { %v165_v36 = vsel %vm140_vm2, %v733_v35, 0.0 }
 0x18a   :  { %166 = vadd.xlane.f32.xlu0 %v165_v36 }
 0x18c   :  { %v735_v37 = vpop.eup %734 }
 0x18d   :  { %v737_v38 = vpop.eup %736  ;;  %v168_v39 = vsel %vm140_vm2, %v735_v37, 0.0 }
 0x18e   :  { %169 = vadd.xlane.f32.xlu1 %v168_v39  ;;  %v171_v40 = vsel %vm140_vm2, %v737_v38, 0.0 }
 0x18f   :  { %172 = vadd.xlane.f32.xlu0 %v171_v40 }
 0x190   :  { %v739_v41 = vpop.eup %738 }
 0x191   :  { %v174_v42 = vsel %vm140_vm2, %v739_v41, 0.0 }
 0x192   :  { %175 = vadd.xlane.f32.xlu1 %v174_v42 }
 0x217   :  { %v167_v52 = vpop.xlane.xlu0 %166 }
 0x218   :  { %740 = vrcp.f32 %v167_v52 }
 0x21b   :  { %v170_v53 = vpop.xlane.xlu1 %169 }
 0x21c   :  { %v173_v54 = vpop.xlane.xlu0 %172  ;;  %742 = vrcp.f32 %v170_v53 }
 0x21d   :  { %744 = vrcp.f32 %v173_v54 }
 0x21f   :  { %v176_v55 = vpop.xlane.xlu1 %175 }
 0x220   :  { %746 = vrcp.f32 %v176_v55 }
 0x222   :  { %v741_v56 = vpop.eup %740 }
 0x223   :  { %v181_v57 = vmul.f32 %v741_v56, %v733_v35 }
 0x225   :  { %658 = vmatprep.mubr.msk.f32.mxu1 %vm140_vm2, %v181_v57 }
 0x226   :  { %v743_v60 = vpop.eup %742 }
 0x227   :  { %v745_v61 = vpop.eup %744  ;;  %v182_v62 = vmul.f32 %v743_v60, %v735_v37 }
 0x228   :  { %v183_v0 = vmul.f32 %v745_v61, %v737_v38 }
 0x229   :  { %659 = vmatmul.mubr.msk.f32.vlgmr.msra.gmra.mrb[0].mxu1 %vm140_vm2, %v182_v62 }
 0x22a   :  { %v747_v1 = vpop.eup %746  ;;  %717 = vmatpush3.bf16.xpose.msk.msra.mxu1 %vm792_vm1, %v712_v51  ;;  %661 = vmatprep.mubr.msk.f32.mxu1 %vm140_vm2, %v183_v0 }
 0x22b   :  { %v184_v3 = vmul.f32 %v747_v1, %v739_v41  ;;  %720 = vmatprep.subr.msk.bf16.mxu1 %vm792_vm1, %v718_v63 }
 0x22d   :  { %662 = vmatmul.mubr.msk.f32.gmra.mrb[2].mxu1 %vm140_vm2, %v184_v3 }
 0x22e   :  { %672 = vmatprep.mubr.msk.f32.mxu1 %vm26_vm0, %v576_v4 }
 0x232   :  { %723 = vmatpush3.bf16.xpose.msk.msra.mxu1 %vm792_vm1, %v718_v63 }
 0x239   :  { %673 = vmatmul.mubr.msk.f32.vlgmr.msra.gmra.mrb[4].mxu1 %vm26_vm0, %v577_v5 }
 0x23a   :  { %675 = vmatprep.mubr.msk.f32.mxu1 %vm26_vm0, %v578_v6 }
 0x23d   :  { %676 = vmatmul.mubr.msk.f32.gmra.mrb[6].mxu1 %vm26_vm0, %v579_v7 }
 0x2fc   :  { %v660_v2 = vpop.f32.mrb[0].mxu1 }
 0x2fd   :  { %283 = vst.msk [vmem:[%s945_s3 + $0x8] sm:$0xff] %vm26_vm0, %v660_v2  ;;  %v263_v8 = vpop.f32.mrb[1].mxu1 }
 0x2fe   :  { %282 = vst.msk [vmem:[%s945_s3] sm:$0xff] %vm26_vm0, %v263_v8 }
 0x300   :  { %v663_v9 = vpop.f32.mrb[2].mxu1 }
 0x301   :  { %285 = vst.msk [vmem:[%s945_s3 + $0x18] sm:$0xff] %vm26_vm0, %v663_v9  ;;  %v273_v10 = vpop.f32.mrb[3].mxu1 }
 0x302   :  { %284 = vst.msk [vmem:[%s945_s3 + $0x10] sm:$0xff] %vm26_vm0, %v273_v10 }
 0x30c   :  { %v674_v11 = vpop.f32.mrb[4].mxu1 }
 0x30d   :  { %v411_v12 = vmul.f32 0.5, %v674_v11  ;;  %v391_v13 = vpop.f32.mrb[5].mxu1 }
 0x30e   :  { %v410_v14 = vmul.f32 0.5, %v391_v13 }
 0x30f   :  { %v417_v15 = vsel %vm140_vm2, %v411_v12, -inf }
 0x310   :  { %418 = vmax.xlane.f32.xlu1 %v417_v15  ;;  %v677_v16 = vpop.f32.mrb[6].mxu1  ;;  %v414_v17 = vsel %vm140_vm2, %v410_v14, -inf }
 0x311   :  { %v413_v18 = vmul.f32 0.5, %v677_v16  ;;  %415 = vmax.xlane.f32.xlu0 %v414_v17  ;;  %v401_v19 = vpop.f32.mrb[7].mxu1 }
 0x312   :  { %v412_v20 = vmul.f32 0.5, %v401_v19 }
 0x313   :  { %v423_v21 = vsel %vm140_vm2, %v413_v18, -inf }
 0x314   :  { %424 = vmax.xlane.f32.xlu1 %v423_v21  ;;  %v420_v22 = vsel %vm140_vm2, %v412_v20, -inf }
 0x315   :  { %421 = vmax.xlane.f32.xlu0 %v420_v22 }
 0x39d   :  { %v419_v23 = vpop.xlane.xlu1 %418 }
 0x39e   :  { %v427_v24 = vsub.f32 %v411_v12, %v419_v23  ;;  %v416_v25 = vpop.xlane.xlu0 %415 }
 0x39f   :  { %v426_v26 = vsub.f32 %v410_v14, %v416_v25 }
 0x3a0   :  { %v432_v27 = vmul.f32 1.442695, %v427_v24 }
 0x3a1   :  { %v430_v28 = vmul.f32 1.442695, %v426_v26  ;;  %v425_v29 = vpop.xlane.xlu1 %424 }
 0x3a2   :  { %748 = vpow2.f32 %v432_v27  ;;  %v429_v30 = vsub.f32 %v413_v18, %v425_v29  ;;  %v422_v31 = vpop.xlane.xlu0 %421 }
 0x3a3   :  { %750 = vpow2.f32 %v430_v28  ;;  %v428_v32 = vsub.f32 %v412_v20, %v422_v31 }
 0x3a4   :  { %v436_v33 = vmul.f32 1.442695, %v429_v30 }
 0x3a5   :  { %v434_v34 = vmul.f32 1.442695, %v428_v32 }
 0x3a6   :  { %752 = vpow2.f32 %v436_v33 }
 0x3a7   :  { %754 = vpow2.f32 %v434_v34 }
 0x3ac   :  { %v749_v35 = vpop.eup %748 }
 0x3ad   :  { %v751_v36 = vpop.eup %750  ;;  %v441_v37 = vsel %vm140_vm2, %v749_v35, 0.0 }
 0x3ae   :  { %442 = vadd.xlane.f32.xlu1 %v441_v37  ;;  %v438_v38 = vsel %vm140_vm2, %v751_v36, 0.0 }
 0x3af   :  { %439 = vadd.xlane.f32.xlu0 %v438_v38 }
 0x3b0   :  { %v753_v39 = vpop.eup %752 }
 0x3b1   :  { %v755_v40 = vpop.eup %754  ;;  %v447_v41 = vsel %vm140_vm2, %v753_v39, 0.0 }
 0x3b2   :  { %448 = vadd.xlane.f32.xlu1 %v447_v41  ;;  %v444_v42 = vsel %vm140_vm2, %v755_v40, 0.0 }
 0x3b3   :  { %445 = vadd.xlane.f32.xlu0 %v444_v42 }
 0x43b   :  { %v443_v49 = vpop.xlane.xlu1 %442 }
 0x43c   :  { %756 = vrcp.f32 %v443_v49  ;;  %v440_v50 = vpop.xlane.xlu0 %439 }
 0x43d   :  { %758 = vrcp.f32 %v440_v50 }
 0x43f   :  { %v449_v51 = vpop.xlane.xlu1 %448 }
 0x440   :  { %760 = vrcp.f32 %v449_v51  ;;  %v446_v52 = vpop.xlane.xlu0 %445 }
 0x441   :  { %762 = vrcp.f32 %v446_v52 }
 0x446   :  { %v757_v53 = vpop.eup %756 }
 0x447   :  { %v759_v54 = vpop.eup %758  ;;  %v455_v56 = vmul.f32 %v757_v53, %v749_v35 }
 0x448   :  { %v454_v55 = vmul.f32 %v759_v54, %v751_v36 }
 0x44a   :  { %v761_v57 = vpop.eup %760  ;;  %686 = vmatprep.mubr.msk.f32.mxu0 %vm140_vm2, %v454_v55 }
 0x44b   :  { %v763_v58 = vpop.eup %762  ;;  %687 = vmatmul.mubr.msk.f32.vlgmr.msra.gmra.mrb[4].mxu0 %vm140_vm2, %v455_v56  ;;  %v457_v60 = vmul.f32 %v761_v57, %v753_v39 }
 0x44c   :  { %v456_v59 = vmul.f32 %v763_v58, %v755_v40 }
 0x44e   :  { %689 = vmatprep.mubr.msk.f32.mxu0 %vm140_vm2, %v456_v59 }
 0x44f   :  { %690 = vmatmul.mubr.msk.f32.gmra.mrb[6].mxu0 %vm140_vm2, %v457_v60 }
 0x51e   :  { %v688_v61 = vpop.f32.mrb[4].mxu0 }
 0x51f   :  { %601 = vst.msk [vmem:[%s945_s3 + $0x28] sm:$0xff] %vm26_vm0, %v688_v61  ;;  %v536_v62 = vpop.f32.mrb[5].mxu0 }
 0x520   :  { %600 = vst.msk [vmem:[%s945_s3 + $0x20] sm:$0xff] %vm26_vm0, %v536_v62 }
 0x522   :  { %v691_v63 = vpop.f32.mrb[6].mxu0 }
 0x523   :  { %603 = vst.msk [vmem:[%s945_s3 + $0x38] sm:$0xff] %vm26_vm0, %v691_v63  ;;  %v546_v0 = vpop.f32.mrb[7].mxu0 }
 0x524   :  { %602 = vst.msk [vmem:[%s945_s3 + $0x30] sm:$0xff] %vm26_vm0, %v546_v0 }

// kernel: tdtransformer_forward.54
= control target key start
LH: loop header
LB: loop body
LE: loop exit
PB: predicated region body
PF: predicated region fallthrough
CT: control target
= control target key end

     0   :  { %vm44_vm0 = vcmask 1043456   ;;  %vm37_vm1 = vcmask 64512   ;;  %s172_s1 = inlined_call_operand.vmem [shape: bf16[8,8], index: 1, kind: input, shape index: {}]   ;;  %s173_s0 = inlined_call_operand.vmem [shape: bf16[32,8], index: 0, kind: input, shape index: {}]   ;;  %s174_s2 = inlined_call_operand.vmem [shape: f32[1,8], index: 2, kind: input, shape index: {}]   ;;  %s175_s3 = inlined_call_operand.vmem [shape: f32[32,8], index: 3, kind: output, shape index: {}]  }
   0x1   :  { %v19_v0 = vld [vmem:[%s172_s1] sm:$0xf]  ;;  %v121_v3 = vld [vmem:[%s173_s0 + $0x8] sm:$0xff]  }
   0x2   :  { %119 = vmatprep.subr.msk.bf16.mxu0 %vm44_vm0, %v19_v0  ;;  %v46_v1 = vsel %vm44_vm0, %v19_v0, 0  ;;  %v120_v2 = vld [vmem:[%s173_s0] sm:$0xff]  }
   0x3   :  { %114 = vmatpush3.bf16.msra.mxu0 %v46_v1  ;;  %115 = vmatprep.mubr.msk.bf16.mxu0 %vm37_vm1, %v120_v2  ;;  %v105_v4 = vld [vmem:[%s174_s2] ss:$0 sm:$0xff] }
   0x6   :  { %116 = vmatmul.mubr.msk.bf16.vlgmr.msra.gmra.mrb[0].mxu0 %vm37_vm1, %v121_v3 }
  0xd9   :  { %v117_v5 = vpop.f32.mrb[0].mxu0 }
  0xda   :  { %v91_v6 = vadd.f32 %v117_v5, %v105_v4  ;;  %v82_v7 = vpop.f32.mrb[1].mxu0 }
  0xdb   :  { %v83_v8 = vadd.f32 %v105_v4, %v82_v7  ;;  %v118_v9 = vpop.f32.mrb[2].mxu0 }
  0xdc   :  { %99 = vst.msk [vmem:[%s175_s3 + $0x10] sm:$0xff] %vm37_vm1, %v91_v6  ;;  %v94_v10 = vadd.f32 %v118_v9, %v105_v4  ;;  %v85_v11 = vpop.f32.mrb[3].mxu0 }
  0xdd   :  { %97 = vst.msk [vmem:[%s175_s3] sm:$0xff] %vm37_vm1, %v83_v8  ;;  %v86_v12 = vadd.f32 %v105_v4, %v85_v11 }
  0xde   :  { %100 = vst.msk [vmem:[%s175_s3 + $0x18] sm:$0xff] %vm37_vm1, %v94_v10 }
  0xdf   :  { %98 = vst.msk [vmem:[%s175_s3 + $0x8] sm:$0xff] %vm37_vm1, %v86_v12 }

// kernel: tdtransformer_forward.56
= control target key start
LH: loop header
LB: loop body
LE: loop exit
PB: predicated region body
PF: predicated region fallthrough
CT: control target
= control target key end

     0   :  { %vm44_vm0 = vcmask 1043456   ;;  %vm37_vm1 = vcmask 64512   ;;  %vm97_vm2 = vcmask 130048   ;;  %s167_s1 = inlined_call_operand.vmem [shape: bf16[8,16], index: 1, kind: input, shape index: {}]   ;;  %s168_s0 = inlined_call_operand.vmem [shape: bf16[32,8], index: 0, kind: input, shape index: {}]   ;;  %s169_s2 = inlined_call_operand.vmem [shape: f32[1,16], index: 2, kind: input, shape index: {}]   ;;  %s170_s3 = inlined_call_operand.vmem [shape: f32[32,16], index: 3, kind: output, shape index: {}]  }
   0x1   :  { %v19_v0 = vld [vmem:[%s167_s1] sm:$0xf]  ;;  %v122_v3 = vld [vmem:[%s168_s0 + $0x8] sm:$0xff]  }
   0x2   :  { %120 = vmatprep.subr.msk.bf16.mxu0 %vm44_vm0, %v19_v0  ;;  %v46_v1 = vsel %vm44_vm0, %v19_v0, 0  ;;  %v121_v2 = vld [vmem:[%s168_s0] sm:$0xff]  }
   0x3   :  { %115 = vmatpush3.bf16.msra.mxu0 %v46_v1  ;;  %116 = vmatprep.mubr.msk.bf16.mxu0 %vm37_vm1, %v121_v2  ;;  %v106_v4 = vld [vmem:[%s169_s2] ss:$0 sm:$0xff] }
   0x6   :  { %117 = vmatmul.mubr.msk.bf16.vlgmr.msra.gmra.mrb[0].mxu0 %vm37_vm1, %v122_v3 }
  0xd9   :  { %v118_v5 = vpop.f32.mrb[0].mxu0 }
  0xda   :  { %v91_v6 = vadd.f32 %v118_v5, %v106_v4  ;;  %v82_v7 = vpop.f32.mrb[1].mxu0 }
  0xdb   :  { %v83_v8 = vadd.f32 %v106_v4, %v82_v7  ;;  %v119_v9 = vpop.f32.mrb[2].mxu0 }
  0xdc   :  { %100 = vst.msk [vmem:[%s170_s3 + $0x10] sm:$0xff] %vm97_vm2, %v91_v6  ;;  %v94_v10 = vadd.f32 %v119_v9, %v106_v4  ;;  %v85_v11 = vpop.f32.mrb[3].mxu0 }
  0xdd   :  { %98 = vst.msk [vmem:[%s170_s3] sm:$0xff] %vm97_vm2, %v83_v8  ;;  %v86_v12 = vadd.f32 %v106_v4, %v85_v11 }
  0xde   :  { %101 = vst.msk [vmem:[%s170_s3 + $0x18] sm:$0xff] %vm97_vm2, %v94_v10 }
  0xdf   :  { %99 = vst.msk [vmem:[%s170_s3 + $0x8] sm:$0xff] %vm97_vm2, %v86_v12 }

// kernel: tile.188
= control target key start
LH: loop header
LB: loop body
LE: loop exit
PB: predicated region body
PF: predicated region fallthrough
CT: control target
= control target key end

     0   :  { %s22_s0 = inlined_call_operand.vmem [shape: f32[16], index: 0, kind: input, shape index: {}]   ;;  %s23_s1 = inlined_call_operand.vmem [shape: f32[8,16], index: 1, kind: output, shape index: {}]  }
   0x1   :  { %v4_v0 = vld [vmem:[%s22_s0] ss:$0 sm:$0xff] }
   0x2   :  { %5 = vst [vmem:[%s23_s1] sm:$0xff] %v4_v0 }

// kernel: tile.189
= control target key start
LH: loop header
LB: loop body
LE: loop exit
PB: predicated region body
PF: predicated region fallthrough
CT: control target
= control target key end

     0   :  { %s67_s10 = smov 112   ;;  %s68_s11 = smov 80   ;;  %vm3_vm0 = vcmask 130048   ;;  %vm9_vm1 = vcmask 1048448   ;;  %vm15_vm2 = vcmask 917248   ;;  %vm21_vm3 = vcmask 786048   ;;  %s111_s0 = inlined_call_operand.vmem [shape: f32[8,16], index: 0, kind: input, shape index: {}]   ;;  %s112_s1 = inlined_call_operand.vmem [shape: f32[1,128], index: 1, kind: output, shape index: {}]  }
   0x1   :  { %v53_v0 = vld [vmem:[%s111_s0 + $0x7] sm:$0x1]   ;;  %v55_v1 = vld [vmem:[%s111_s0 + $0x5] sm:$0x1]   ;;  %v54_v2 = vld [vmem:[%s111_s0 + $0x6] sm:$0x1]  }
   0x2   :  { %7 = vrot.lane.b32.xlu0 %v53_v0, %s67_s10  ;;  %19 = vrot.lane.b32.xlu1 %v55_v1, %s68_s11  ;;  %v56_v3 = vld [vmem:[%s111_s0 + $0x4] sm:$0x1]   ;;  %v2_v4 = vld [vmem:[%s111_s0] sm:$0x1]   ;;  %s69_s18 = smov 96   ;;  %s70_s19 = smov 64  }
   0x3   :  { %4 = vst.msk [vmem:[#allocation0] sm:$0x1] %vm3_vm0, %v2_v4   ;;  %v57_v5 = vld [vmem:[%s111_s0 + $0x3] sm:$0x1]   ;;  %v58_v6 = vld [vmem:[%s111_s0 + $0x2] sm:$0x1]  }
   0x4   :  { %s71_s24 = smov 48   ;;  %s72_s25 = smov 32   ;;  %v59_v7 = vld [vmem:[%s111_s0 + $0x1] sm:$0x1]   ;;  %vm27_vm4 = vcmask 654848   ;;  %vm33_vm5 = vcmask 523648  }
   0x5   :  { %s73_s0 = smov 16   ;;  %vm39_vm6 = vcmask 392448   ;;  %vm45_vm7 = vcmask 261248  }
   0x6   :  { %13 = vrot.lane.b32.xlu0 %v54_v2, %s69_s18  ;;  %25 = vrot.lane.b32.xlu1 %v56_v3, %s70_s19 }
   0xa   :  { %31 = vrot.lane.b32.xlu0 %v57_v5, %s71_s24  ;;  %37 = vrot.lane.b32.xlu1 %v58_v6, %s72_s25 }
   0xe   :  { %43 = vrot.lane.b32.xlu0 %v59_v7, %s73_s0 }
  0x74   :  { %v8_v8 = vpop.permute.xlu0 %7   ;;  %v20_v9 = vpop.permute.xlu1 %19  }
  0x75   :  { %10 = vst.msk [vmem:[#allocation0] sm:$0x1] %vm9_vm1, %v8_v8  }
  0x78   :  { %v14_v10 = vpop.permute.xlu0 %13   ;;  %v26_v11 = vpop.permute.xlu1 %25  }
  0x79   :  { %16 = vst.msk [vmem:[#allocation0] sm:$0x1] %vm15_vm2, %v14_v10  }
  0x7a   :  { %22 = vst.msk [vmem:[#allocation0] sm:$0x1] %vm21_vm3, %v20_v9  }
  0x7b   :  { %28 = vst.msk [vmem:[#allocation0] sm:$0x1] %vm27_vm4, %v26_v11  }
  0x7c   :  { %v32_v12 = vpop.permute.xlu0 %31   ;;  %v38_v13 = vpop.permute.xlu1 %37  }
  0x7d   :  { %34 = vst.msk [vmem:[#allocation0] sm:$0x1] %vm33_vm5, %v32_v12  }
  0x7e   :  { %40 = vst.msk [vmem:[#allocation0] sm:$0x1] %vm39_vm6, %v38_v13  }
  0x80   :  { %v44_v14 = vpop.permute.xlu0 %43  }
  0x81   :  { %46 = vst.msk [vmem:[#allocation0] sm:$0x1] %vm45_vm7, %v44_v14  }
  0x88   :  { %v50_v15 = vld [vmem:[#allocation0] sm:$0x1] }
  0x89   :  { %52 = vst [vmem:[%s112_s1] sm:$0x1] %v50_v15 }

// kernel: tdtransformer_forward.57
= control target key start
LH: loop header
LB: loop body
LE: loop exit
PB: predicated region body
PF: predicated region fallthrough
CT: control target
= control target key end

     0   :  { %s79_s0 = inlined_call_operand.vmem [shape: f32[4,128], index: 0, kind: input, shape index: {}]   ;;  %s80_s1 = inlined_call_operand.vmem [shape: f32[1,128], index: 1, kind: input, shape index: {}]   ;;  %s81_s2 = inlined_call_operand.vmem [shape: f32[1,128], index: 2, kind: input, shape index: {}]   ;;  %s82_s3 = inlined_call_operand.vmem [shape: f32[4,128], index: 3, kind: output, shape index: {}]  }
   0x1   :  { %v14_v0 = vld [vmem:[%s79_s0] sm:$0xf] }
   0x2   :  { %v42_v1 = vld [vmem:[%s80_s1] ss:$0 sm:$0xff] }
   0x3   :  { %v43_v2 = vld [vmem:[%s81_s2] ss:$0 sm:$0xff]  ;;  %v22_v3 = vmul.f32 %v42_v1, %v14_v0 }
   0x5   :  { %v30_v4 = vadd.f32 %v43_v2, %v22_v3 }
   0x7   :  { %v32_v5 = vmin.f32 %v30_v4, 0.0  ;;  %vm31_vm0 = vcmp.gt.f32.partialorder %v30_v4, 0.0 }
   0x9   :  { %v33_v6 = vmul.f32 1.442695, %v32_v5 }
   0xb   :  { %45 = vpow2.f32 %v33_v6 }
  0x15   :  { %v46_v7 = vpop.eup %45 }
  0x16   :  { %v44_v8 = vadd.f32 -1.0, %v46_v7 }
  0x18   :  { %v36_v9 = vsel %vm31_vm0, %v30_v4, %v44_v8 }
  0x19   :  { %37 = vst [vmem:[%s82_s3] sm:$0xf] %v36_v9 }

// kernel: squeeze.19
= control target key start
LH: loop header
LB: loop body
LE: loop exit
PB: predicated region body
PF: predicated region fallthrough
CT: control target
= control target key end

     0   :  { %vm46_vm0 = vcmask 130048   ;;  %s184_s0 = inlined_call_operand.vmem [shape: f32[16,3,3,3], index: 0, kind: input, shape index: {}]   ;;  %s185_s1 = inlined_call_operand.vmem [shape: f32[16,27], index: 1, kind: output, shape index: {}]  }
   0x1   :  { %v95_v0 = vld [vmem:[%s184_s0 + $0x20] sm:$0xf]  ;;  %v96_v1 = vld [vmem:[%s184_s0 + $0x1c] sm:$0xf]  ;;  %v97_v2 = vld [vmem:[%s184_s0 + $0x18] sm:$0xf] }
   0x2   :  { %8 = vst [vmem:[#allocation0 + $0x40] sm:$0xf] %v95_v0  ;;  %13 = vst [vmem:[#allocation0 + $0x38] sm:$0xf] %v96_v1  ;;  %v98_v3 = vld [vmem:[%s184_s0 + $0x14] sm:$0xf] }
   0x3   :  { %18 = vst [vmem:[#allocation0 + $0x30] sm:$0xf] %v97_v2  ;;  %v99_v4 = vld [vmem:[%s184_s0 + $0x10] sm:$0xf]  ;;  %v100_v5 = vld [vmem:[%s184_s0 + $0xc] sm:$0xf] }
   0x4   :  { %23 = vst [vmem:[#allocation0 + $0x28] sm:$0xf] %v98_v3  ;;  %28 = vst [vmem:[#allocation0 + $0x20] sm:$0xf] %v99_v4  ;;  %v101_v6 = vld [vmem:[%s184_s0 + $0x8] sm:$0xf] }
   0x5   :  { %33 = vst [vmem:[#allocation0 + $0x18] sm:$0xf] %v100_v5  ;;  %v102_v7 = vld [vmem:[%s184_s0 + $0x4] sm:$0xf]  ;;  %v43_v8 = vld [vmem:[%s184_s0] sm:$0xf] }
   0x6   :  { %38 = vst [vmem:[#allocation0 + $0x10] sm:$0xf] %v101_v6  ;;  %42 = vst [vmem:[#allocation0 + $0x8] sm:$0xf] %v102_v7 }
   0x7   :  { %44 = vst [vmem:[#allocation0] sm:$0xf] %v43_v8 }
   0x9   :  { %v79_v10 = vld [vmem:[#allocation0 + $0x38] sm:$0x7]   ;;  %v84_v11 = vld [vmem:[#allocation0 + $0x40] sm:$0x7]  }
   0xa   :  { %v74_v9 = vld [vmem:[#allocation0 + $0x30] sm:$0x7]   ;;  %109 = vst.msk [vmem:[%s185_s1 + $0x15] sm:$0x7] %vm46_vm0, %v79_v10   ;;  %110 = vst.msk [vmem:[%s185_s1 + $0x18] sm:$0x7] %vm46_vm0, %v84_v11  }
   0xb   :  { %v64_v13 = vld [vmem:[#allocation0 + $0x20] sm:$0x7]   ;;  %v69_v14 = vld [vmem:[#allocation0 + $0x28] sm:$0x7]   ;;  %108 = vst.msk [vmem:[%s185_s1 + $0x12] sm:$0x7] %vm46_vm0, %v74_v9  }
   0xc   :  { %v59_v12 = vld [vmem:[#allocation0 + $0x18] sm:$0x7]   ;;  %106 = vst.msk [vmem:[%s185_s1 + $0xc] sm:$0x7] %vm46_vm0, %v64_v13   ;;  %107 = vst.msk [vmem:[%s185_s1 + $0xf] sm:$0x7] %vm46_vm0, %v69_v14  }
   0xd   :  { %v49_v16 = vld [vmem:[#allocation0 + $0x8] sm:$0x7]   ;;  %v54_v17 = vld [vmem:[#allocation0 + $0x10] sm:$0x7]   ;;  %105 = vst.msk [vmem:[%s185_s1 + $0x9] sm:$0x7] %vm46_vm0, %v59_v12  }
   0xe   :  { %v45_v15 = vld [vmem:[#allocation0] sm:$0x7]   ;;  %103 = vst.msk [vmem:[%s185_s1 + $0x3] sm:$0x7] %vm46_vm0, %v49_v16   ;;  %104 = vst.msk [vmem:[%s185_s1 + $0x6] sm:$0x7] %vm46_vm0, %v54_v17  }
   0xf   :  { %47 = vst.msk [vmem:[%s185_s1] sm:$0x7] %vm46_vm0, %v45_v15  }

// kernel: tdtransformer_forward.58
= control target key start
LH: loop header
LB: loop body
LE: loop exit
PB: predicated region body
PF: predicated region fallthrough
CT: control target
= control target key end

     0   :  { %s596_s0 = inlined_call_operand.vmem [shape: f32[27,4,128], index: 0, kind: input, shape index: {}]   ;;  %s597_s1 = inlined_call_operand.vmem [shape: f32[27,1,128], index: 1, kind: input, shape index: {}]   ;;  %s598_s2 = inlined_call_operand.vmem [shape: f32[4,128], index: 2, kind: output, shape index: {}]  }
   0x1   :  { %v11_v0 = vld [vmem:[%s596_s0] sm:$0xf]  ;;  %v338_v2 = vld [vmem:[%s596_s0 + $0x4] sm:$0xf]  ;;  %v341_v5 = vld [vmem:[%s596_s0 + $0x8] sm:$0xf] }
   0x2   :  { %v337_v1 = vld [vmem:[%s597_s1] ss:$0 sm:$0xff]  ;;  %v340_v4 = vld [vmem:[%s597_s1 + $0x1] ss:$0 sm:$0xff]  ;;  %v343_v6 = vld [vmem:[%s597_s1 + $0x2] ss:$0 sm:$0xff] }
   0x3   :  { %v19_v3 = vmul.f32 %v337_v1, %v11_v0  ;;  %v30_v7 = vmul.f32 %v340_v4, %v338_v2  ;;  %v42_v8 = vmul.f32 %v343_v6, %v341_v5  ;;  %v344_v9 = vld [vmem:[%s596_s0 + $0xc] sm:$0xf]  ;;  %v346_v10 = vld [vmem:[%s597_s1 + $0x3] ss:$0 sm:$0xff]  ;;  %v347_v11 = vld [vmem:[%s596_s0 + $0x10] sm:$0xf] }
   0x4   :  { %v349_v12 = vld [vmem:[%s597_s1 + $0x4] ss:$0 sm:$0xff]  ;;  %v54_v14 = vmul.f32 %v346_v10, %v344_v9  ;;  %v350_v15 = vld [vmem:[%s596_s0 + $0x14] sm:$0xf]  ;;  %v352_v16 = vld [vmem:[%s597_s1 + $0x5] ss:$0 sm:$0xff] }
   0x5   :  { %v31_v13 = vadd.f32 %v30_v7, %v19_v3  ;;  %v66_v18 = vmul.f32 %v349_v12, %v347_v11  ;;  %v353_v19 = vld [vmem:[%s596_s0 + $0x18] sm:$0xf]  ;;  %v355_v20 = vld [vmem:[%s597_s1 + $0x6] ss:$0 sm:$0xff]  ;;  %v78_v22 = vmul.f32 %v352_v16, %v350_v15  ;;  %v356_v23 = vld [vmem:[%s596_s0 + $0x1c] sm:$0xf] }
   0x6   :  { %v358_v24 = vld [vmem:[%s597_s1 + $0x7] ss:$0 sm:$0xff]  ;;  %v90_v26 = vmul.f32 %v355_v20, %v353_v19  ;;  %v359_v27 = vld [vmem:[%s596_s0 + $0x20] sm:$0xf]  ;;  %v361_v28 = vld [vmem:[%s597_s1 + $0x8] ss:$0 sm:$0xff] }
   0x7   :  { %v43_v17 = vadd.f32 %v42_v8, %v31_v13  ;;  %v102_v30 = vmul.f32 %v358_v24, %v356_v23  ;;  %v362_v31 = vld [vmem:[%s596_s0 + $0x24] sm:$0xf]  ;;  %v364_v32 = vld [vmem:[%s597_s1 + $0x9] ss:$0 sm:$0xff]  ;;  %v114_v34 = vmul.f32 %v361_v28, %v359_v27  ;;  %v367_v36 = vld [vmem:[%s597_s1 + $0xa] ss:$0 sm:$0xff] }
   0x8   :  { %v365_v35 = vld [vmem:[%s596_s0 + $0x28] sm:$0xf]  ;;  %v126_v38 = vmul.f32 %v364_v32, %v362_v31  ;;  %v368_v39 = vld [vmem:[%s596_s0 + $0x2c] sm:$0xf]  ;;  %v371_v43 = vld [vmem:[%s596_s0 + $0x30] sm:$0xf] }
   0x9   :  { %v55_v21 = vadd.f32 %v54_v14, %v43_v17  ;;  %v370_v40 = vld [vmem:[%s597_s1 + $0xb] ss:$0 sm:$0xff]  ;;  %v138_v42 = vmul.f32 %v367_v36, %v365_v35  ;;  %v373_v44 = vld [vmem:[%s597_s1 + $0xc] ss:$0 sm:$0xff]  ;;  %v374_v47 = vld [vmem:[%s596_s0 + $0x34] sm:$0xf] }
   0xa   :  { %v150_v46 = vmul.f32 %v370_v40, %v368_v39  ;;  %v376_v48 = vld [vmem:[%s597_s1 + $0xd] ss:$0 sm:$0xff]  ;;  %v162_v50 = vmul.f32 %v373_v44, %v371_v43  ;;  %v377_v51 = vld [vmem:[%s596_s0 + $0x38] sm:$0xf]  ;;  %v379_v52 = vld [vmem:[%s597_s1 + $0xe] ss:$0 sm:$0xff] }
   0xb   :  { %v67_v25 = vadd.f32 %v66_v18, %v55_v21  ;;  %v174_v54 = vmul.f32 %v376_v48, %v374_v47  ;;  %v380_v55 = vld [vmem:[%s596_s0 + $0x3c] sm:$0xf]  ;;  %v382_v56 = vld [vmem:[%s597_s1 + $0xf] ss:$0 sm:$0xff]  ;;  %v186_v58 = vmul.f32 %v379_v52, %v377_v51  ;;  %v383_v59 = vld [vmem:[%s596_s0 + $0x40] sm:$0xf] }
   0xc   :  { %v385_v60 = vld [vmem:[%s597_s1 + $0x10] ss:$0 sm:$0xff]  ;;  %v198_v62 = vmul.f32 %v382_v56, %v380_v55  ;;  %v386_v63 = vld [vmem:[%s596_s0 + $0x44] sm:$0xf]  ;;  %v388_v0 = vld [vmem:[%s597_s1 + $0x11] ss:$0 sm:$0xff] }
   0xd   :  { %v79_v29 = vadd.f32 %v78_v22, %v67_v25  ;;  %v210_v2 = vmul.f32 %v385_v60, %v383_v59  ;;  %v389_v3 = vld [vmem:[%s596_s0 + $0x48] sm:$0xf]  ;;  %v391_v4 = vld [vmem:[%s597_s1 + $0x12] ss:$0 sm:$0xff]  ;;  %v222_v6 = vmul.f32 %v388_v0, %v386_v63  ;;  %v392_v7 = vld [vmem:[%s596_s0 + $0x4c] sm:$0xf] }
   0xe   :  { %v394_v8 = vld [vmem:[%s597_s1 + $0x13] ss:$0 sm:$0xff]  ;;  %v234_v10 = vmul.f32 %v391_v4, %v389_v3  ;;  %v397_v12 = vld [vmem:[%s597_s1 + $0x14] ss:$0 sm:$0xff]  ;;  %v400_v16 = vld [vmem:[%s597_s1 + $0x15] ss:$0 sm:$0xff] }
   0xf   :  { %v91_v33 = vadd.f32 %v90_v26, %v79_v29  ;;  %v395_v11 = vld [vmem:[%s596_s0 + $0x50] sm:$0xf]  ;;  %v246_v14 = vmul.f32 %v394_v8, %v392_v7  ;;  %v398_v15 = vld [vmem:[%s596_s0 + $0x54] sm:$0xf]  ;;  %v401_v19 = vld [vmem:[%s596_s0 + $0x58] sm:$0xf] }
  0x10   :  { %v258_v18 = vmul.f32 %v397_v12, %v395_v11  ;;  %v403_v20 = vld [vmem:[%s597_s1 + $0x16] ss:$0 sm:$0xff]  ;;  %v270_v22 = vmul.f32 %v400_v16, %v398_v15  ;;  %v404_v23 = vld [vmem:[%s596_s0 + $0x5c] sm:$0xf]  ;;  %v406_v24 = vld [vmem:[%s597_s1 + $0x17] ss:$0 sm:$0xff] }
  0x11   :  { %v103_v37 = vadd.f32 %v102_v30, %v91_v33  ;;  %v282_v26 = vmul.f32 %v403_v20, %v401_v19  ;;  %v407_v27 = vld [vmem:[%s596_s0 + $0x60] sm:$0xf]  ;;  %v409_v28 = vld [vmem:[%s597_s1 + $0x18] ss:$0 sm:$0xff]  ;;  %v294_v30 = vmul.f32 %v406_v24, %v404_v23  ;;  %v410_v31 = vld [vmem:[%s596_s0 + $0x64] sm:$0xf] }
  0x12   :  { %v412_v32 = vld [vmem:[%s597_s1 + $0x19] ss:$0 sm:$0xff]  ;;  %v413_v35 = vld [vmem:[%s596_s0 + $0x68] sm:$0xf]  ;;  %v415_v36 = vld [vmem:[%s597_s1 + $0x1a] ss:$0 sm:$0xff] }
  0x13   :  { %v115_v41 = vadd.f32 %v114_v34, %v103_v37  ;;  %v306_v34 = vmul.f32 %v409_v28, %v407_v27  ;;  %v330_v40 = vmul.f32 %v415_v36, %v413_v35 }
  0x15   :  { %v127_v45 = vadd.f32 %v126_v38, %v115_v41  ;;  %v318_v38 = vmul.f32 %v412_v32, %v410_v31 }
  0x17   :  { %v139_v49 = vadd.f32 %v138_v42, %v127_v45 }
  0x19   :  { %v151_v53 = vadd.f32 %v150_v46, %v139_v49 }
  0x1b   :  { %v163_v57 = vadd.f32 %v162_v50, %v151_v53 }
  0x1d   :  { %v175_v61 = vadd.f32 %v174_v54, %v163_v57 }
  0x1f   :  { %v187_v1 = vadd.f32 %v186_v58, %v175_v61 }
  0x21   :  { %v199_v5 = vadd.f32 %v198_v62, %v187_v1 }
  0x23   :  { %v211_v9 = vadd.f32 %v210_v2, %v199_v5 }
  0x25   :  { %v223_v13 = vadd.f32 %v222_v6, %v211_v9 }
  0x27   :  { %v235_v17 = vadd.f32 %v234_v10, %v223_v13 }
  0x29   :  { %v247_v21 = vadd.f32 %v246_v14, %v235_v17 }
  0x2b   :  { %v259_v25 = vadd.f32 %v258_v18, %v247_v21 }
  0x2d   :  { %v271_v29 = vadd.f32 %v270_v22, %v259_v25 }
  0x2f   :  { %v283_v33 = vadd.f32 %v282_v26, %v271_v29 }
  0x31   :  { %v295_v37 = vadd.f32 %v294_v30, %v283_v33 }
  0x33   :  { %v307_v39 = vadd.f32 %v306_v34, %v295_v37 }
  0x35   :  { %v319_v41 = vadd.f32 %v318_v38, %v307_v39 }
  0x37   :  { %v331_v42 = vadd.f32 %v330_v40, %v319_v41 }
  0x39   :  { %332 = vst [vmem:[%s598_s2] sm:$0xf] %v331_v42 }

// kernel: tdtransformer_forward.60
= control target key start
LH: loop header
LB: loop body
LE: loop exit
PB: predicated region body
PF: predicated region fallthrough
CT: control target
= control target key end

     0   :  { %vm44_vm0 = vcmask 130048   ;;  %vm100_vm1 = vcmask 64512   ;;  %s171_s1 = inlined_call_operand.vmem [shape: bf16[16,8], index: 1, kind: input, shape index: {}]   ;;  %s172_s0 = inlined_call_operand.vmem [shape: bf16[32,16], index: 0, kind: input, shape index: {}]   ;;  %s173_s2 = inlined_call_operand.vmem [shape: f32[1,8], index: 2, kind: input, shape index: {}]   ;;  %s174_s3 = inlined_call_operand.vmem [shape: f32[32,8], index: 3, kind: output, shape index: {}]  }
   0x1   :  { %v124_v0 = vld [vmem:[%s171_s1] sm:$0xff]   ;;  %v126_v2 = vld [vmem:[%s172_s0 + $0x8] sm:$0xff]  }
   0x2   :  { %v125_v1 = vld [vmem:[%s172_s0] sm:$0xff]   ;;  %118 = vmatprep.subr.bf16.mxu0 %v124_v0 }
   0x3   :  { %119 = vmatpush3.bf16.msra.mxu0 %v124_v0  ;;  %120 = vmatprep.mubr.msk.bf16.mxu0 %vm44_vm0, %v125_v1  ;;  %v109_v3 = vld [vmem:[%s173_s2] ss:$0 sm:$0xff] }
   0x6   :  { %121 = vmatmul.mubr.msk.bf16.vlgmr.msra.gmra.mrb[0].mxu0 %vm44_vm0, %v126_v2 }
  0xd9   :  { %v122_v4 = vpop.f32.mrb[0].mxu0 }
  0xda   :  { %v94_v5 = vadd.f32 %v122_v4, %v109_v3  ;;  %v85_v6 = vpop.f32.mrb[1].mxu0 }
  0xdb   :  { %v86_v7 = vadd.f32 %v109_v3, %v85_v6  ;;  %v123_v8 = vpop.f32.mrb[2].mxu0 }
  0xdc   :  { %103 = vst.msk [vmem:[%s174_s3 + $0x10] sm:$0xff] %vm100_vm1, %v94_v5  ;;  %v97_v9 = vadd.f32 %v123_v8, %v109_v3  ;;  %v88_v10 = vpop.f32.mrb[3].mxu0 }
  0xdd   :  { %101 = vst.msk [vmem:[%s174_s3] sm:$0xff] %vm100_vm1, %v86_v7  ;;  %v89_v11 = vadd.f32 %v109_v3, %v88_v10 }
  0xde   :  { %104 = vst.msk [vmem:[%s174_s3 + $0x18] sm:$0xff] %vm100_vm1, %v97_v9 }
  0xdf   :  { %102 = vst.msk [vmem:[%s174_s3 + $0x8] sm:$0xff] %vm100_vm1, %v89_v11 }

// kernel: tdtransformer_forward.61
= control target key start
LH: loop header
LB: loop body
LE: loop exit
PB: predicated region body
PF: predicated region fallthrough
CT: control target
= control target key end

     0   :  { %s70_s0 = inlined_call_operand.vmem [shape: f32[2,128], index: 0, kind: input, shape index: {}]   ;;  %s71_s1 = inlined_call_operand.vmem [shape: f32[1,128], index: 1, kind: input, shape index: {}]   ;;  %s72_s2 = inlined_call_operand.vmem [shape: f32[1,128], index: 2, kind: input, shape index: {}]   ;;  %s73_s3 = inlined_call_operand.vmem [shape: f32[2,128], index: 3, kind: output, shape index: {}]  }
   0x1   :  { %v14_v0 = vld [vmem:[%s70_s0] sm:$0x3] }
   0x2   :  { %v36_v1 = vld [vmem:[%s71_s1] ss:$0 sm:$0xff] }
   0x3   :  { %v37_v2 = vld [vmem:[%s72_s2] ss:$0 sm:$0xff]  ;;  %v22_v3 = vmul.f32 %v36_v1, %v14_v0 }
   0x5   :  { %v30_v4 = vadd.f32 %v37_v2, %v22_v3 }
   0x7   :  { %31 = vst [vmem:[%s73_s3] sm:$0x3] %v30_v4 }

// kernel: tdtransformer_forward.84
= control target key start
LH: loop header
LB: loop body
LE: loop exit
PB: predicated region body
PF: predicated region fallthrough
CT: control target
= control target key end

     0   :  { %vm75_vm0 = vcmask 1043456   ;;  %vm62_vm1 = vcmask 195584   ;;  %vm144_vm2 = vcmask 64512   ;;  %s271_s1 = inlined_call_operand.vmem [shape: bf16[24,8], index: 1, kind: input, shape index: {}]   ;;  %s272_s0 = inlined_call_operand.vmem [shape: bf16[64,24], index: 0, kind: input, shape index: {}]   ;;  %s273_s2 = inlined_call_operand.vmem [shape: f32[1,8], index: 2, kind: input, shape index: {}]   ;;  %s274_s3 = inlined_call_operand.vmem [shape: f32[64,8], index: 3, kind: output, shape index: {}]  }
   0x1   :  { %v192_v0 = vld [vmem:[%s271_s1] sm:$0xff]   ;;  %v193_v1 = vld [vmem:[%s271_s1 + $0x8] ss:$0 sps:$4 sm:$0xff]   ;;  %v195_v3 = vld [vmem:[%s272_s0 + $0x10] sm:$0xff]  }
   0x2   :  { %174 = vmatprep.subr.bf16.mxu0 %v192_v0  ;;  %186 = vmatprep.subr.bf16.mxu1 %v192_v0  ;;  %v194_v2 = vld [vmem:[%s272_s0] sm:$0xff]   ;;  %v77_v4 = vsel %vm75_vm0, %v193_v1, 0  ;;  %v196_v5 = vld [vmem:[%s272_s0 + $0x8] sm:$0xff]   ;;  %v197_v6 = vld [vmem:[%s272_s0 + $0x18] sm:$0xff]  }
   0x3   :  { %175 = vmatpush3.bf16.msra.mxu0 %v192_v0  ;;  %188 = vmatpush3.bf16.msra.mxu1 %v192_v0  ;;  %v157_v7 = vld [vmem:[%s273_s2] ss:$0 sm:$0xff] }
   0x4   :  { %190 = vmatprep.subr.msk.bf16.mxu0 %vm75_vm0, %v193_v1  ;;  %191 = vmatprep.subr.msk.bf16.mxu1 %vm75_vm0, %v193_v1 }
   0x5   :  { %178 = vmatprep.mubr.msk.bf16.mxu0 %vm62_vm1, %v194_v2  ;;  %182 = vmatprep.mubr.msk.bf16.mxu1 %vm62_vm1, %v195_v3 }
   0x7   :  { %177 = vmatpush3.bf16.msra.mxu0 %v77_v4  ;;  %189 = vmatpush3.bf16.msra.mxu1 %v77_v4 }
   0xa   :  { %179 = vmatmul.mubr.msk.bf16.vlgmr.msra.gmra.mrb[0].mxu0 %vm62_vm1, %v196_v5  ;;  %183 = vmatmul.mubr.msk.bf16.vlgmr.msra.gmra.mrb[0].mxu1 %vm62_vm1, %v197_v6 }
  0xdd   :  { %v180_v8 = vpop.f32.mrb[0].mxu0  ;;  %v184_v9 = vpop.f32.mrb[0].mxu1 }
  0xde   :  { %v122_v10 = vadd.f32 %v180_v8, %v157_v7  ;;  %v138_v11 = vadd.f32 %v184_v9, %v157_v7  ;;  %v113_v12 = vpop.f32.mrb[1].mxu0  ;;  %v129_v13 = vpop.f32.mrb[1].mxu1 }
  0xdf   :  { %v114_v14 = vadd.f32 %v157_v7, %v113_v12  ;;  %v130_v15 = vadd.f32 %v157_v7, %v129_v13  ;;  %v181_v16 = vpop.f32.mrb[2].mxu0  ;;  %v185_v17 = vpop.f32.mrb[2].mxu1 }
  0xe0   :  { %147 = vst.msk [vmem:[%s274_s3 + $0x10] sm:$0xff] %vm144_vm2, %v122_v10  ;;  %151 = vst.msk [vmem:[%s274_s3 + $0x30] sm:$0xff] %vm144_vm2, %v138_v11  ;;  %v125_v18 = vadd.f32 %v181_v16, %v157_v7  ;;  %v141_v19 = vadd.f32 %v185_v17, %v157_v7  ;;  %v116_v20 = vpop.f32.mrb[3].mxu0  ;;  %v132_v21 = vpop.f32.mrb[3].mxu1 }
  0xe1   :  { %145 = vst.msk [vmem:[%s274_s3] sm:$0xff] %vm144_vm2, %v114_v14  ;;  %149 = vst.msk [vmem:[%s274_s3 + $0x20] sm:$0xff] %vm144_vm2, %v130_v15  ;;  %v117_v22 = vadd.f32 %v157_v7, %v116_v20  ;;  %v133_v23 = vadd.f32 %v157_v7, %v132_v21 }
  0xe2   :  { %148 = vst.msk [vmem:[%s274_s3 + $0x18] sm:$0xff] %vm144_vm2, %v125_v18  ;;  %152 = vst.msk [vmem:[%s274_s3 + $0x38] sm:$0xff] %vm144_vm2, %v141_v19 }
  0xe3   :  { %146 = vst.msk [vmem:[%s274_s3 + $0x8] sm:$0xff] %vm144_vm2, %v117_v22  ;;  %150 = vst.msk [vmem:[%s274_s3 + $0x28] sm:$0xff] %vm144_vm2, %v133_v23 }

// kernel: tdtransformer_forward.86
= control target key start
LH: loop header
LB: loop body
LE: loop exit
PB: predicated region body
PF: predicated region fallthrough
CT: control target
= control target key end

     0   :  { %vm115_vm0 = vcmask 1043456   ;;  %vm90_vm1 = vcmask 195584   ;;  %vm216_vm2 = vcmask 31744   ;;  %s427_s1 = inlined_call_operand.vmem [shape: bf16[24,4], index: 1, kind: input, shape index: {}]   ;;  %s428_s0 = inlined_call_operand.vmem [shape: bf16[128,24], index: 0, kind: input, shape index: {}]   ;;  %s429_s2 = inlined_call_operand.vmem [shape: f32[1,4], index: 2, kind: input, shape index: {}]   ;;  %s430_s3 = inlined_call_operand.vmem [shape: f32[128,4], index: 3, kind: output, shape index: {}]  }
   0x1   :  { %v292_v0 = vld [vmem:[%s427_s1] sm:$0xff]   ;;  %v293_v1 = vld [vmem:[%s427_s1 + $0x8] ss:$0 sps:$4 sm:$0xff]   ;;  %v298_v7 = vld [vmem:[%s428_s0 + $0x10] sm:$0xff]  }
   0x2   :  { %266 = vmatprep.subr.bf16.mxu0 %v292_v0  ;;  %286 = vmatprep.subr.bf16.mxu1 %v292_v0  ;;  %v294_v2 = vld [vmem:[%s428_s0] sm:$0xff]   ;;  %v117_v4 = vsel %vm115_vm0, %v293_v1, 0  ;;  %v296_v5 = vld [vmem:[%s428_s0 + $0x8] sm:$0xff]   ;;  %v299_v8 = vld [vmem:[%s428_s0 + $0x30] sm:$0xff]  }
   0x3   :  { %267 = vmatpush3.bf16.msra.mxu0 %v292_v0  ;;  %288 = vmatpush3.bf16.msra.mxu1 %v292_v0  ;;  %v295_v3 = vld [vmem:[%s428_s0 + $0x20] sm:$0xff]   ;;  %v297_v6 = vld [vmem:[%s428_s0 + $0x28] sm:$0xff]   ;;  %v300_v9 = vld [vmem:[%s428_s0 + $0x18] sm:$0xff]  }
   0x4   :  { %290 = vmatprep.subr.msk.bf16.mxu0 %vm115_vm0, %v293_v1  ;;  %291 = vmatprep.subr.msk.bf16.mxu1 %vm115_vm0, %v293_v1  ;;  %v301_v10 = vld [vmem:[%s428_s0 + $0x38] sm:$0xff]   ;;  %v237_v11 = vld [vmem:[%s429_s2] ss:$0 sm:$0xff] }
   0x5   :  { %270 = vmatprep.mubr.msk.bf16.mxu0 %vm90_vm1, %v294_v2  ;;  %278 = vmatprep.mubr.msk.bf16.mxu1 %vm90_vm1, %v295_v3 }
   0x7   :  { %269 = vmatpush3.bf16.msra.mxu0 %v117_v4  ;;  %289 = vmatpush3.bf16.msra.mxu1 %v117_v4 }
   0xa   :  { %271 = vmatmul.mubr.msk.bf16.vlgmr.msra.gmra.mrb[0].mxu0 %vm90_vm1, %v296_v5  ;;  %279 = vmatmul.mubr.msk.bf16.vlgmr.msra.gmra.mrb[0].mxu1 %vm90_vm1, %v297_v6 }
   0xb   :  { %274 = vmatprep.mubr.msk.bf16.mxu0 %vm90_vm1, %v298_v7  ;;  %282 = vmatprep.mubr.msk.bf16.mxu1 %vm90_vm1, %v299_v8 }
  0x12   :  { %275 = vmatmul.mubr.msk.bf16.gmra.mrb[4].mxu0 %vm90_vm1, %v300_v9  ;;  %283 = vmatmul.mubr.msk.bf16.gmra.mrb[4].mxu1 %vm90_vm1, %v301_v10 }
  0xdd   :  { %v272_v12 = vpop.f32.mrb[0].mxu0  ;;  %v280_v13 = vpop.f32.mrb[0].mxu1 }
  0xde   :  { %v162_v14 = vadd.f32 %v272_v12, %v237_v11  ;;  %v194_v15 = vadd.f32 %v280_v13, %v237_v11  ;;  %v153_v16 = vpop.f32.mrb[1].mxu0  ;;  %v185_v17 = vpop.f32.mrb[1].mxu1 }
  0xdf   :  { %v154_v18 = vadd.f32 %v237_v11, %v153_v16  ;;  %v186_v19 = vadd.f32 %v237_v11, %v185_v17  ;;  %v273_v20 = vpop.f32.mrb[2].mxu0  ;;  %v281_v21 = vpop.f32.mrb[2].mxu1 }
  0xe0   :  { %219 = vst.msk [vmem:[%s430_s3 + $0x10] sm:$0xff] %vm216_vm2, %v162_v14  ;;  %227 = vst.msk [vmem:[%s430_s3 + $0x50] sm:$0xff] %vm216_vm2, %v194_v15  ;;  %v165_v22 = vadd.f32 %v273_v20, %v237_v11  ;;  %v197_v23 = vadd.f32 %v281_v21, %v237_v11  ;;  %v156_v24 = vpop.f32.mrb[3].mxu0  ;;  %v188_v25 = vpop.f32.mrb[3].mxu1 }
  0xe1   :  { %217 = vst.msk [vmem:[%s430_s3] sm:$0xff] %vm216_vm2, %v154_v18  ;;  %225 = vst.msk [vmem:[%s430_s3 + $0x40] sm:$0xff] %vm216_vm2, %v186_v19  ;;  %v157_v26 = vadd.f32 %v237_v11, %v156_v24  ;;  %v189_v27 = vadd.f32 %v237_v11, %v188_v25 }
  0xe2   :  { %220 = vst.msk [vmem:[%s430_s3 + $0x18] sm:$0xff] %vm216_vm2, %v165_v22  ;;  %228 = vst.msk [vmem:[%s430_s3 + $0x58] sm:$0xff] %vm216_vm2, %v197_v23 }
  0xe3   :  { %218 = vst.msk [vmem:[%s430_s3 + $0x8] sm:$0xff] %vm216_vm2, %v157_v26  ;;  %226 = vst.msk [vmem:[%s430_s3 + $0x48] sm:$0xff] %vm216_vm2, %v189_v27 }
  0xe5   :  { %v276_v28 = vpop.f32.mrb[4].mxu0  ;;  %v284_v29 = vpop.f32.mrb[4].mxu1 }
  0xe6   :  { %v178_v30 = vadd.f32 %v276_v28, %v237_v11  ;;  %v210_v31 = vadd.f32 %v284_v29, %v237_v11  ;;  %v169_v32 = vpop.f32.mrb[5].mxu0  ;;  %v201_v33 = vpop.f32.mrb[5].mxu1 }
  0xe7   :  { %v170_v34 = vadd.f32 %v237_v11, %v169_v32  ;;  %v202_v35 = vadd.f32 %v237_v11, %v201_v33  ;;  %v277_v36 = vpop.f32.mrb[6].mxu0  ;;  %v285_v37 = vpop.f32.mrb[6].mxu1 }
  0xe8   :  { %223 = vst.msk [vmem:[%s430_s3 + $0x30] sm:$0xff] %vm216_vm2, %v178_v30  ;;  %231 = vst.msk [vmem:[%s430_s3 + $0x70] sm:$0xff] %vm216_vm2, %v210_v31  ;;  %v181_v38 = vadd.f32 %v277_v36, %v237_v11  ;;  %v213_v39 = vadd.f32 %v285_v37, %v237_v11  ;;  %v172_v40 = vpop.f32.mrb[7].mxu0  ;;  %v204_v41 = vpop.f32.mrb[7].mxu1 }
  0xe9   :  { %221 = vst.msk [vmem:[%s430_s3 + $0x20] sm:$0xff] %vm216_vm2, %v170_v34  ;;  %229 = vst.msk [vmem:[%s430_s3 + $0x60] sm:$0xff] %vm216_vm2, %v202_v35  ;;  %v173_v42 = vadd.f32 %v237_v11, %v172_v40  ;;  %v205_v43 = vadd.f32 %v237_v11, %v204_v41 }
  0xea   :  { %224 = vst.msk [vmem:[%s430_s3 + $0x38] sm:$0xff] %vm216_vm2, %v181_v38  ;;  %232 = vst.msk [vmem:[%s430_s3 + $0x78] sm:$0xff] %vm216_vm2, %v213_v39 }
  0xeb   :  { %222 = vst.msk [vmem:[%s430_s3 + $0x28] sm:$0xff] %vm216_vm2, %v173_v42  ;;  %230 = vst.msk [vmem:[%s430_s3 + $0x68] sm:$0xff] %vm216_vm2, %v205_v43 }

</bundles_post_ra>
